<compile_context>
chip_gen: v5e
topology: v5e:2x2
jax: 0.10.0
libtpu: 0.0.40
codegen_flags: <defaults>
</compile_context>

<pallas_src>
import functools

import jax
import jax.numpy as jnp
from jax.experimental import pallas as pl
from jax.experimental.pallas import tpu as pltpu

INPUT_DIM = 208      # LSTM input feature size
HIDDEN = 128         # LSTM hidden size
X_DIM = 559          # side-info feature size
X_PAD = 640          # X_DIM zero-padded up to a lane multiple (5 * 128)
DENSE = 512          # hidden width of the MLP


def _round_up(v, m):
    return (v + m - 1) // m * m


def _big2_kernel(z_ref, x_ref,
                 w_ih_ref, w_hh_ref, b_lstm_ref,
                 w1h_ref, w1x_ref, b1_ref,
                 w2_ref, b2_ref,
                 w3_ref, b3_ref,
                 w4_ref, b4_ref,
                 w5_ref, b5_ref,
                 w6_ref, b6_ref,
                 out_ref):
    T, TB, _ = z_ref.shape        # time-major batch block (T, TB, 208), bf16
    H = HIDDEN

    # ---- LSTM ----------------------------------------------------------
    # Hoisted input projection: one big MXU matmul over all T steps instead
    # of T tiny ones inside the serial loop; b_lstm folded in exactly once.
    z_all = z_ref[...].reshape(T * TB, INPUT_DIM)                  # bf16
    gates_x = (jnp.dot(z_all, w_ih_ref[...],
                       preferred_element_type=jnp.float32)
               + b_lstm_ref[...])                                  # (T*TB, 4H) f32

    w_hh = w_hh_ref[...]                                           # (H, 4H) bf16

    h = jnp.zeros((TB, H), jnp.float32)
    c = jnp.zeros((TB, H), jnp.float32)
    # Static unroll: T is a compile-time constant, TB is a multiple of 8 so
    # every gates_x row-slice is sublane-group aligned.  Gate slices are each
    # exactly one 128-lane group (PyTorch gate order i, f, g, o).
    for t in range(T):
        gates = gates_x[t * TB:(t + 1) * TB, :] + jnp.dot(
            h.astype(w_hh.dtype), w_hh, preferred_element_type=jnp.float32)
        i_g = jax.nn.sigmoid(gates[:, 0 * H:1 * H])
        f_g = jax.nn.sigmoid(gates[:, 1 * H:2 * H])
        g_g = jnp.tanh(gates[:, 2 * H:3 * H])
        o_g = jax.nn.sigmoid(gates[:, 3 * H:4 * H])
        c = f_g * c + i_g * g_g
        h = o_g * jnp.tanh(c)

    # ---- MLP head -------------------------------------------------------
    # dense1 on concat([h, x]) == h @ W1_h + x @ W1_x  (split weight, x and
    # W1_x zero-padded to 640 input features -> lane-aligned loads).
    x = x_ref[...]                                                 # (TB, 640) bf16
    y = (jnp.dot(h.astype(jnp.bfloat16), w1h_ref[...],
                 preferred_element_type=jnp.float32)
         + jnp.dot(x, w1x_ref[...], preferred_element_type=jnp.float32)
         + b1_ref[...])
    y = jnp.maximum(y, 0.0)

    for w_ref, b_ref in ((w2_ref, b2_ref), (w3_ref, b3_ref),
                         (w4_ref, b4_ref), (w5_ref, b5_ref)):
        y = jnp.dot(y.astype(jnp.bfloat16), w_ref[...],
                    preferred_element_type=jnp.float32) + b_ref[...]
        y = jnp.maximum(y, 0.0)

    # Final 512 -> 1 layer on VPU/XLU (avoids an N=1 MXU matmul); w6 is the
    # transposed (1, 512) row kept in f32.
    out = jnp.sum(y * w6_ref[...], axis=-1, keepdims=True) + b6_ref[...]
    out_ref[...] = out.astype(out_ref.dtype)


@functools.partial(jax.jit, static_argnames=('batch_block',))
def big2_forward(z, x, params, *, batch_block=128):
    """z: (B, T, 208) float32, x: (B, 559) float32 -> values (B, 1) float32."""
    B, T, _ = z.shape

    # Time-major bf16 copy of z: the hoisted projection consumes it as one
    # contiguous (T*TB, 208) slab, and bf16 halves the relayout traffic.
    z_tm = jnp.transpose(z.astype(jnp.bfloat16), (1, 0, 2))        # (T, B, 208)

    if B <= batch_block:
        TB = _round_up(B, 8)            # sublane-align the batch block
        Bp = TB
    else:
        TB = batch_block                # 128: multiple of 8, fills MXU rows
        Bp = _round_up(B, TB)

    # Pad batch (rows) and the side-info feature dim (559 -> 640 lanes).
    z_tm = jnp.pad(z_tm, ((0, 0), (0, Bp - B), (0, 0)))
    x_bf = jnp.pad(x.astype(jnp.bfloat16),
                   ((0, Bp - B), (0, X_PAD - X_DIM)))
    grid = (Bp // TB,)

    weights = (
        params['w_ih'], params['w_hh'], params['b_lstm'],
        params['w1h'], params['w1x'], params['b1'],
        params['w2'], params['b2'],
        params['w3'], params['b3'],
        params['w4'], params['b4'],
        params['w5'], params['b5'],
        params['w6'], params['b6'],
    )

    def _resident(arr):
        # whole array, same block for every grid step -> stays VMEM-resident
        nd = arr.ndim
        return pl.BlockSpec(arr.shape, lambda i, _nd=nd: (0,) * _nd)

    in_specs = (
        [pl.BlockSpec((T, TB, INPUT_DIM), lambda i: (0, i, 0)),
         pl.BlockSpec((TB, X_PAD), lambda i: (i, 0))]
        + [_resident(w) for w in weights])

    values = pl.pallas_call(
        _big2_kernel,
        out_shape=jax.ShapeDtypeStruct((Bp, 1), jnp.float32),
        grid=grid,
        in_specs=in_specs,
        out_specs=pl.BlockSpec((TB, 1), lambda i: (i, 0)),
        compiler_params=pltpu.CompilerParams(
            dimension_semantics=("parallel",)),
    )(z_tm, x_bf, *weights)
    return values[:B]


def init_params(key):
    """Deterministic synthetic f32 parameters with the Big2Model shapes.

    PyTorch layout: lstm.weight_ih (4H, 208), weight_hh (4H, 128);
    dense_k.weight (out, in).  We store transposed (in, out) copies so the
    kernel multiplies row-major activations directly; dense1's weight is
    split into the LSTM part (first 128 rows) and the x part (559 rows);
    dense6's weight is stored as a (1, 512) row.
    """
    ks = jax.random.split(key, 16)
    u = lambda k, shape, fan: jax.random.uniform(
        k, shape, jnp.float32, -1.0 / jnp.sqrt(fan), 1.0 / jnp.sqrt(fan))

    H = HIDDEN
    p = {}
    # LSTM (gate order i, f, g, o as in PyTorch)
    p['w_ih'] = u(ks[0], (INPUT_DIM, 4 * H), H)          # == weight_ih.T
    p['w_hh'] = u(ks[1], (H, 4 * H), H)                  # == weight_hh.T
    b_ih = u(ks[2], (1, 4 * H), H)
    b_hh = u(ks[3], (1, 4 * H), H)
    p['b_lstm'] = b_ih + b_hh
    # dense1: in = 128 + 559 = 687, split weight
    w1 = u(ks[4], (H + X_DIM, DENSE), H + X_DIM)
    p['w1h'] = w1[:H, :]
    p['w1x'] = w1[H:, :]
    p['b1'] = u(ks[5], (1, DENSE), H + X_DIM)
    for idx, k_w, k_b in ((2, 6, 7), (3, 8, 9), (4, 10, 11), (5, 12, 13)):
        p[f'w{idx}'] = u(ks[k_w], (DENSE, DENSE), DENSE)
        p[f'b{idx}'] = u(ks[k_b], (1, DENSE), DENSE)
    p['w6'] = u(ks[14], (1, DENSE), DENSE)               # == dense6.weight (row)
    p['b6'] = u(ks[15], (1, 1), DENSE)
    return p


def to_kernel_params(p):
    """bf16 copies of the big matmul weights; biases / w6 / b6 stay f32.

    w1x is zero-padded from 559 to 640 input rows to match the lane-padded
    x features fed to the kernel (zero rows contribute nothing).
    """
    bf = lambda a: a.astype(jnp.bfloat16)
    kp = dict(p)
    for name in ('w_ih', 'w_hh', 'w1h', 'w2', 'w3', 'w4', 'w5'):
        kp[name] = bf(p[name])
    kp['w1x'] = bf(jnp.pad(p['w1x'], ((0, X_PAD - X_DIM), (0, 0))))
    return kp


def reference_forward(z, x, p):
    """Pure-JAX f32 reference of Big2Model.forward (return_value=True path)."""
    B, T, _ = z.shape
    H = HIDDEN
    h = jnp.zeros((B, H), jnp.float32)
    c = jnp.zeros((B, H), jnp.float32)
    for t in range(T):
        gates = z[:, t, :] @ p['w_ih'] + h @ p['w_hh'] + p['b_lstm']
        i = jax.nn.sigmoid(gates[:, 0 * H:1 * H])
        f = jax.nn.sigmoid(gates[:, 1 * H:2 * H])
        g = jnp.tanh(gates[:, 2 * H:3 * H])
        o = jax.nn.sigmoid(gates[:, 3 * H:4 * H])
        c = f * c + i * g
        h = o * jnp.tanh(c)
    y = jnp.maximum(h @ p['w1h'] + x @ p['w1x'] + p['b1'], 0.0)
    y = jnp.maximum(y @ p['w2'] + p['b2'], 0.0)
    y = jnp.maximum(y @ p['w3'] + p['b3'], 0.0)
    y = jnp.maximum(y @ p['w4'] + p['b4'], 0.0)
    y = jnp.maximum(y @ p['w5'] + p['b5'], 0.0)
    return y @ p['w6'].T + p['b6']


if __name__ == "__main__":
    key = jax.random.PRNGKey(0)
    k_param, k_z, k_x = jax.random.split(key, 3)

    B, T = 4, 8
    master = init_params(k_param)          # f32 "true" parameters
    kparams = to_kernel_params(master)     # bf16 weights fed to the kernel

    z = jax.random.normal(k_z, (B, T, INPUT_DIM), jnp.float32)
    x = jax.random.normal(k_x, (B, X_DIM), jnp.float32)

    values = jax.block_until_ready(big2_forward(z, x, kparams))

    # greedy action path of the original forward (return_value=False, no eps)
    # TODO(synk): epsilon-greedy random-exploration branch (np.random) not
    # implemented in-kernel; only the deterministic argmax path is provided.
    action = jax.block_until_ready(jnp.argmax(values[:, 0], axis=0))

    ref = reference_forward(z, x, master)
    assert values.shape == (B, 1)
    err = float(jnp.max(jnp.abs(values - ref)))
    # bf16 weights/activations at matmul inputs -> relaxed tolerance vs f32 ref
    assert err < 3e-2, f"mismatch: max abs err {err}"

    print("KERNEL_OK")
</pallas_src>

<mosaic_0001>
module attributes {stable_mosaic.version = 11 : i64} {
  func.func @_big2_kernel(%arg0: i32, %arg1: memref<8x8x208xbf16, #tpu.memory_space<vmem>>, %arg2: memref<8x640xbf16, #tpu.memory_space<vmem>>, %arg3: memref<208x512xbf16, #tpu.memory_space<vmem>>, %arg4: memref<128x512xbf16, #tpu.memory_space<vmem>>, %arg5: memref<1x512xf32, #tpu.memory_space<vmem>>, %arg6: memref<128x512xbf16, #tpu.memory_space<vmem>>, %arg7: memref<640x512xbf16, #tpu.memory_space<vmem>>, %arg8: memref<1x512xf32, #tpu.memory_space<vmem>>, %arg9: memref<512x512xbf16, #tpu.memory_space<vmem>>, %arg10: memref<1x512xf32, #tpu.memory_space<vmem>>, %arg11: memref<512x512xbf16, #tpu.memory_space<vmem>>, %arg12: memref<1x512xf32, #tpu.memory_space<vmem>>, %arg13: memref<512x512xbf16, #tpu.memory_space<vmem>>, %arg14: memref<1x512xf32, #tpu.memory_space<vmem>>, %arg15: memref<512x512xbf16, #tpu.memory_space<vmem>>, %arg16: memref<1x512xf32, #tpu.memory_space<vmem>>, %arg17: memref<1x512xf32, #tpu.memory_space<vmem>>, %arg18: memref<1x1xf32, #tpu.memory_space<vmem>>, %arg19: memref<8x1xf32, #tpu.memory_space<vmem>>) attributes {dimension_semantics = [#tpu.dimension_semantics<parallel>], iteration_bounds = array<i64: 1>, scalar_prefetch = 0 : i64, scratch_operands = 0 : i64, tpu.core_type = #tpu.core_type<tc>, window_params = [{transform_indices = @transform_0, window_bounds = array<i64: 8, 8, 208>}, {transform_indices = @transform_1, window_bounds = array<i64: 8, 640>}, {pipeline_mode = #tpu.pipeline_mode<synchronous>, transform_indices = @transform_2, window_bounds = array<i64: 208, 512>}, {pipeline_mode = #tpu.pipeline_mode<synchronous>, transform_indices = @transform_3, window_bounds = array<i64: 128, 512>}, {pipeline_mode = #tpu.pipeline_mode<synchronous>, transform_indices = @transform_4, window_bounds = array<i64: 1, 512>}, {pipeline_mode = #tpu.pipeline_mode<synchronous>, transform_indices = @transform_5, window_bounds = array<i64: 128, 512>}, {pipeline_mode = #tpu.pipeline_mode<synchronous>, transform_indices = @transform_6, window_bounds = array<i64: 640, 512>}, {pipeline_mode = #tpu.pipeline_mode<synchronous>, transform_indices = @transform_7, window_bounds = array<i64: 1, 512>}, {pipeline_mode = #tpu.pipeline_mode<synchronous>, transform_indices = @transform_8, window_bounds = array<i64: 512, 512>}, {pipeline_mode = #tpu.pipeline_mode<synchronous>, transform_indices = @transform_9, window_bounds = array<i64: 1, 512>}, {pipeline_mode = #tpu.pipeline_mode<synchronous>, transform_indices = @transform_10, window_bounds = array<i64: 512, 512>}, {pipeline_mode = #tpu.pipeline_mode<synchronous>, transform_indices = @transform_11, window_bounds = array<i64: 1, 512>}, {pipeline_mode = #tpu.pipeline_mode<synchronous>, transform_indices = @transform_12, window_bounds = array<i64: 512, 512>}, {pipeline_mode = #tpu.pipeline_mode<synchronous>, transform_indices = @transform_13, window_bounds = array<i64: 1, 512>}, {pipeline_mode = #tpu.pipeline_mode<synchronous>, transform_indices = @transform_14, window_bounds = array<i64: 512, 512>}, {pipeline_mode = #tpu.pipeline_mode<synchronous>, transform_indices = @transform_15, window_bounds = array<i64: 1, 512>}, {pipeline_mode = #tpu.pipeline_mode<synchronous>, transform_indices = @transform_16, window_bounds = array<i64: 1, 512>}, {pipeline_mode = #tpu.pipeline_mode<synchronous>, transform_indices = @transform_17, window_bounds = array<i64: 1, 1>}, {transform_indices = @transform_18, window_bounds = array<i64: 8, 1>}]} {
    %c0 = arith.constant 0 : index
    %c0_0 = arith.constant 0 : index
    %c0_1 = arith.constant 0 : index
    %0 = vector.load %arg1[%c0, %c0_0, %c0_1] : memref<8x8x208xbf16, #tpu.memory_space<vmem>>, vector<8x8x208xbf16>
    %1 = vector.shape_cast %0 : vector<8x8x208xbf16> to vector<64x208xbf16>
    %c0_2 = arith.constant 0 : index
    %c0_3 = arith.constant 0 : index
    %2 = vector.load %arg3[%c0_2, %c0_3] : memref<208x512xbf16, #tpu.memory_space<vmem>>, vector<208x512xbf16>
    %cst = arith.constant dense<0.000000e+00> : vector<64x512xf32>
    %3 = tpu.matmul %1, %2, %cst {dimension_numbers = #tpu.dot_dimension_numbers<[1], [0], [0], [1], [0, 0, 1, 1], [], []>} : vector<64x208xbf16>, vector<208x512xbf16>, vector<64x512xf32> -> vector<64x512xf32>
    %c0_4 = arith.constant 0 : index
    %c0_5 = arith.constant 0 : index
    %4 = vector.load %arg5[%c0_4, %c0_5] : memref<1x512xf32, #tpu.memory_space<vmem>>, vector<1x512xf32>
    %5 = vector.broadcast %4 : vector<1x512xf32> to vector<64x512xf32>
    %6 = arith.addf %3, %5 : vector<64x512xf32>
    %c0_6 = arith.constant 0 : index
    %c0_7 = arith.constant 0 : index
    %7 = vector.load %arg4[%c0_6, %c0_7] : memref<128x512xbf16, #tpu.memory_space<vmem>>, vector<128x512xbf16>
    %cst_8 = arith.constant 0.000000e+00 : f32
    %8 = vector.broadcast %cst_8 : f32 to vector<8x128xf32>
    %cst_9 = arith.constant 0.000000e+00 : f32
    %9 = vector.broadcast %cst_9 : f32 to vector<8x128xf32>
    %10 = vector.extract_strided_slice %6 {offsets = [0, 0], sizes = [8, 512], strides = [1, 1]} : vector<64x512xf32> to vector<8x512xf32>
    %11 = arith.truncf %8 : vector<8x128xf32> to vector<8x128xbf16>
    %cst_10 = arith.constant dense<0.000000e+00> : vector<8x512xf32>
    %12 = tpu.matmul %11, %7, %cst_10 {dimension_numbers = #tpu.dot_dimension_numbers<[1], [0], [0], [1], [0, 0, 1, 1], [], []>} : vector<8x128xbf16>, vector<128x512xbf16>, vector<8x512xf32> -> vector<8x512xf32>
    %13 = arith.addf %10, %12 : vector<8x512xf32>
    %14 = vector.extract_strided_slice %13 {offsets = [0, 0], sizes = [8, 128], strides = [1, 1]} : vector<8x512xf32> to vector<8x128xf32>
    %15 = arith.negf %14 : vector<8x128xf32>
    %16 = math.exp %15 : vector<8x128xf32>
    %cst_11 = arith.constant 1.000000e+00 : f32
    %17 = vector.broadcast %cst_11 : f32 to vector<8x128xf32>
    %18 = arith.addf %17, %16 : vector<8x128xf32>
    %19 = arith.divf %17, %18 : vector<8x128xf32>
    %20 = vector.extract_strided_slice %13 {offsets = [0, 128], sizes = [8, 128], strides = [1, 1]} : vector<8x512xf32> to vector<8x128xf32>
    %21 = arith.negf %20 : vector<8x128xf32>
    %22 = math.exp %21 : vector<8x128xf32>
    %cst_12 = arith.constant 1.000000e+00 : f32
    %23 = vector.broadcast %cst_12 : f32 to vector<8x128xf32>
    %24 = arith.addf %23, %22 : vector<8x128xf32>
    %25 = arith.divf %23, %24 : vector<8x128xf32>
    %26 = vector.extract_strided_slice %13 {offsets = [0, 256], sizes = [8, 128], strides = [1, 1]} : vector<8x512xf32> to vector<8x128xf32>
    %27 = math.tanh %26 : vector<8x128xf32>
    %28 = vector.extract_strided_slice %13 {offsets = [0, 384], sizes = [8, 128], strides = [1, 1]} : vector<8x512xf32> to vector<8x128xf32>
    %29 = arith.negf %28 : vector<8x128xf32>
    %30 = math.exp %29 : vector<8x128xf32>
    %cst_13 = arith.constant 1.000000e+00 : f32
    %31 = vector.broadcast %cst_13 : f32 to vector<8x128xf32>
    %32 = arith.addf %31, %30 : vector<8x128xf32>
    %33 = arith.divf %31, %32 : vector<8x128xf32>
    %34 = arith.mulf %25, %9 : vector<8x128xf32>
    %35 = arith.mulf %19, %27 : vector<8x128xf32>
    %36 = arith.addf %34, %35 : vector<8x128xf32>
    %37 = math.tanh %36 : vector<8x128xf32>
    %38 = arith.mulf %33, %37 : vector<8x128xf32>
    %39 = vector.extract_strided_slice %6 {offsets = [8, 0], sizes = [8, 512], strides = [1, 1]} : vector<64x512xf32> to vector<8x512xf32>
    %40 = arith.truncf %38 : vector<8x128xf32> to vector<8x128xbf16>
    %cst_14 = arith.constant dense<0.000000e+00> : vector<8x512xf32>
    %41 = tpu.matmul %40, %7, %cst_14 {dimension_numbers = #tpu.dot_dimension_numbers<[1], [0], [0], [1], [0, 0, 1, 1], [], []>} : vector<8x128xbf16>, vector<128x512xbf16>, vector<8x512xf32> -> vector<8x512xf32>
    %42 = arith.addf %39, %41 : vector<8x512xf32>
    %43 = vector.extract_strided_slice %42 {offsets = [0, 0], sizes = [8, 128], strides = [1, 1]} : vector<8x512xf32> to vector<8x128xf32>
    %44 = arith.negf %43 : vector<8x128xf32>
    %45 = math.exp %44 : vector<8x128xf32>
    %cst_15 = arith.constant 1.000000e+00 : f32
    %46 = vector.broadcast %cst_15 : f32 to vector<8x128xf32>
    %47 = arith.addf %46, %45 : vector<8x128xf32>
    %48 = arith.divf %46, %47 : vector<8x128xf32>
    %49 = vector.extract_strided_slice %42 {offsets = [0, 128], sizes = [8, 128], strides = [1, 1]} : vector<8x512xf32> to vector<8x128xf32>
    %50 = arith.negf %49 : vector<8x128xf32>
    %51 = math.exp %50 : vector<8x128xf32>
    %cst_16 = arith.constant 1.000000e+00 : f32
    %52 = vector.broadcast %cst_16 : f32 to vector<8x128xf32>
    %53 = arith.addf %52, %51 : vector<8x128xf32>
    %54 = arith.divf %52, %53 : vector<8x128xf32>
    %55 = vector.extract_strided_slice %42 {offsets = [0, 256], sizes = [8, 128], strides = [1, 1]} : vector<8x512xf32> to vector<8x128xf32>
    %56 = math.tanh %55 : vector<8x128xf32>
    %57 = vector.extract_strided_slice %42 {offsets = [0, 384], sizes = [8, 128], strides = [1, 1]} : vector<8x512xf32> to vector<8x128xf32>
    %58 = arith.negf %57 : vector<8x128xf32>
    %59 = math.exp %58 : vector<8x128xf32>
    %cst_17 = arith.constant 1.000000e+00 : f32
    %60 = vector.broadcast %cst_17 : f32 to vector<8x128xf32>
    %61 = arith.addf %60, %59 : vector<8x128xf32>
    %62 = arith.divf %60, %61 : vector<8x128xf32>
    %63 = arith.mulf %54, %36 : vector<8x128xf32>
    %64 = arith.mulf %48, %56 : vector<8x128xf32>
    %65 = arith.addf %63, %64 : vector<8x128xf32>
    %66 = math.tanh %65 : vector<8x128xf32>
    %67 = arith.mulf %62, %66 : vector<8x128xf32>
    %68 = vector.extract_strided_slice %6 {offsets = [16, 0], sizes = [8, 512], strides = [1, 1]} : vector<64x512xf32> to vector<8x512xf32>
    %69 = arith.truncf %67 : vector<8x128xf32> to vector<8x128xbf16>
    %cst_18 = arith.constant dense<0.000000e+00> : vector<8x512xf32>
    %70 = tpu.matmul %69, %7, %cst_18 {dimension_numbers = #tpu.dot_dimension_numbers<[1], [0], [0], [1], [0, 0, 1, 1], [], []>} : vector<8x128xbf16>, vector<128x512xbf16>, vector<8x512xf32> -> vector<8x512xf32>
    %71 = arith.addf %68, %70 : vector<8x512xf32>
    %72 = vector.extract_strided_slice %71 {offsets = [0, 0], sizes = [8, 128], strides = [1, 1]} : vector<8x512xf32> to vector<8x128xf32>
    %73 = arith.negf %72 : vector<8x128xf32>
    %74 = math.exp %73 : vector<8x128xf32>
    %cst_19 = arith.constant 1.000000e+00 : f32
    %75 = vector.broadcast %cst_19 : f32 to vector<8x128xf32>
    %76 = arith.addf %75, %74 : vector<8x128xf32>
    %77 = arith.divf %75, %76 : vector<8x128xf32>
    %78 = vector.extract_strided_slice %71 {offsets = [0, 128], sizes = [8, 128], strides = [1, 1]} : vector<8x512xf32> to vector<8x128xf32>
    %79 = arith.negf %78 : vector<8x128xf32>
    %80 = math.exp %79 : vector<8x128xf32>
    %cst_20 = arith.constant 1.000000e+00 : f32
    %81 = vector.broadcast %cst_20 : f32 to vector<8x128xf32>
    %82 = arith.addf %81, %80 : vector<8x128xf32>
    %83 = arith.divf %81, %82 : vector<8x128xf32>
    %84 = vector.extract_strided_slice %71 {offsets = [0, 256], sizes = [8, 128], strides = [1, 1]} : vector<8x512xf32> to vector<8x128xf32>
    %85 = math.tanh %84 : vector<8x128xf32>
    %86 = vector.extract_strided_slice %71 {offsets = [0, 384], sizes = [8, 128], strides = [1, 1]} : vector<8x512xf32> to vector<8x128xf32>
    %87 = arith.negf %86 : vector<8x128xf32>
    %88 = math.exp %87 : vector<8x128xf32>
    %cst_21 = arith.constant 1.000000e+00 : f32
    %89 = vector.broadcast %cst_21 : f32 to vector<8x128xf32>
    %90 = arith.addf %89, %88 : vector<8x128xf32>
    %91 = arith.divf %89, %90 : vector<8x128xf32>
    %92 = arith.mulf %83, %65 : vector<8x128xf32>
    %93 = arith.mulf %77, %85 : vector<8x128xf32>
    %94 = arith.addf %92, %93 : vector<8x128xf32>
    %95 = math.tanh %94 : vector<8x128xf32>
    %96 = arith.mulf %91, %95 : vector<8x128xf32>
    %97 = vector.extract_strided_slice %6 {offsets = [24, 0], sizes = [8, 512], strides = [1, 1]} : vector<64x512xf32> to vector<8x512xf32>
    %98 = arith.truncf %96 : vector<8x128xf32> to vector<8x128xbf16>
    %cst_22 = arith.constant dense<0.000000e+00> : vector<8x512xf32>
    %99 = tpu.matmul %98, %7, %cst_22 {dimension_numbers = #tpu.dot_dimension_numbers<[1], [0], [0], [1], [0, 0, 1, 1], [], []>} : vector<8x128xbf16>, vector<128x512xbf16>, vector<8x512xf32> -> vector<8x512xf32>
    %100 = arith.addf %97, %99 : vector<8x512xf32>
    %101 = vector.extract_strided_slice %100 {offsets = [0, 0], sizes = [8, 128], strides = [1, 1]} : vector<8x512xf32> to vector<8x128xf32>
    %102 = arith.negf %101 : vector<8x128xf32>
    %103 = math.exp %102 : vector<8x128xf32>
    %cst_23 = arith.constant 1.000000e+00 : f32
    %104 = vector.broadcast %cst_23 : f32 to vector<8x128xf32>
    %105 = arith.addf %104, %103 : vector<8x128xf32>
    %106 = arith.divf %104, %105 : vector<8x128xf32>
    %107 = vector.extract_strided_slice %100 {offsets = [0, 128], sizes = [8, 128], strides = [1, 1]} : vector<8x512xf32> to vector<8x128xf32>
    %108 = arith.negf %107 : vector<8x128xf32>
    %109 = math.exp %108 : vector<8x128xf32>
    %cst_24 = arith.constant 1.000000e+00 : f32
    %110 = vector.broadcast %cst_24 : f32 to vector<8x128xf32>
    %111 = arith.addf %110, %109 : vector<8x128xf32>
    %112 = arith.divf %110, %111 : vector<8x128xf32>
    %113 = vector.extract_strided_slice %100 {offsets = [0, 256], sizes = [8, 128], strides = [1, 1]} : vector<8x512xf32> to vector<8x128xf32>
    %114 = math.tanh %113 : vector<8x128xf32>
    %115 = vector.extract_strided_slice %100 {offsets = [0, 384], sizes = [8, 128], strides = [1, 1]} : vector<8x512xf32> to vector<8x128xf32>
    %116 = arith.negf %115 : vector<8x128xf32>
    %117 = math.exp %116 : vector<8x128xf32>
    %cst_25 = arith.constant 1.000000e+00 : f32
    %118 = vector.broadcast %cst_25 : f32 to vector<8x128xf32>
    %119 = arith.addf %118, %117 : vector<8x128xf32>
    %120 = arith.divf %118, %119 : vector<8x128xf32>
    %121 = arith.mulf %112, %94 : vector<8x128xf32>
    %122 = arith.mulf %106, %114 : vector<8x128xf32>
    %123 = arith.addf %121, %122 : vector<8x128xf32>
    %124 = math.tanh %123 : vector<8x128xf32>
    %125 = arith.mulf %120, %124 : vector<8x128xf32>
    %126 = vector.extract_strided_slice %6 {offsets = [32, 0], sizes = [8, 512], strides = [1, 1]} : vector<64x512xf32> to vector<8x512xf32>
    %127 = arith.truncf %125 : vector<8x128xf32> to vector<8x128xbf16>
    %cst_26 = arith.constant dense<0.000000e+00> : vector<8x512xf32>
    %128 = tpu.matmul %127, %7, %cst_26 {dimension_numbers = #tpu.dot_dimension_numbers<[1], [0], [0], [1], [0, 0, 1, 1], [], []>} : vector<8x128xbf16>, vector<128x512xbf16>, vector<8x512xf32> -> vector<8x512xf32>
    %129 = arith.addf %126, %128 : vector<8x512xf32>
    %130 = vector.extract_strided_slice %129 {offsets = [0, 0], sizes = [8, 128], strides = [1, 1]} : vector<8x512xf32> to vector<8x128xf32>
    %131 = arith.negf %130 : vector<8x128xf32>
    %132 = math.exp %131 : vector<8x128xf32>
    %cst_27 = arith.constant 1.000000e+00 : f32
    %133 = vector.broadcast %cst_27 : f32 to vector<8x128xf32>
    %134 = arith.addf %133, %132 : vector<8x128xf32>
    %135 = arith.divf %133, %134 : vector<8x128xf32>
    %136 = vector.extract_strided_slice %129 {offsets = [0, 128], sizes = [8, 128], strides = [1, 1]} : vector<8x512xf32> to vector<8x128xf32>
    %137 = arith.negf %136 : vector<8x128xf32>
    %138 = math.exp %137 : vector<8x128xf32>
    %cst_28 = arith.constant 1.000000e+00 : f32
    %139 = vector.broadcast %cst_28 : f32 to vector<8x128xf32>
    %140 = arith.addf %139, %138 : vector<8x128xf32>
    %141 = arith.divf %139, %140 : vector<8x128xf32>
    %142 = vector.extract_strided_slice %129 {offsets = [0, 256], sizes = [8, 128], strides = [1, 1]} : vector<8x512xf32> to vector<8x128xf32>
    %143 = math.tanh %142 : vector<8x128xf32>
    %144 = vector.extract_strided_slice %129 {offsets = [0, 384], sizes = [8, 128], strides = [1, 1]} : vector<8x512xf32> to vector<8x128xf32>
    %145 = arith.negf %144 : vector<8x128xf32>
    %146 = math.exp %145 : vector<8x128xf32>
    %cst_29 = arith.constant 1.000000e+00 : f32
    %147 = vector.broadcast %cst_29 : f32 to vector<8x128xf32>
    %148 = arith.addf %147, %146 : vector<8x128xf32>
    %149 = arith.divf %147, %148 : vector<8x128xf32>
    %150 = arith.mulf %141, %123 : vector<8x128xf32>
    %151 = arith.mulf %135, %143 : vector<8x128xf32>
    %152 = arith.addf %150, %151 : vector<8x128xf32>
    %153 = math.tanh %152 : vector<8x128xf32>
    %154 = arith.mulf %149, %153 : vector<8x128xf32>
    %155 = vector.extract_strided_slice %6 {offsets = [40, 0], sizes = [8, 512], strides = [1, 1]} : vector<64x512xf32> to vector<8x512xf32>
    %156 = arith.truncf %154 : vector<8x128xf32> to vector<8x128xbf16>
    %cst_30 = arith.constant dense<0.000000e+00> : vector<8x512xf32>
    %157 = tpu.matmul %156, %7, %cst_30 {dimension_numbers = #tpu.dot_dimension_numbers<[1], [0], [0], [1], [0, 0, 1, 1], [], []>} : vector<8x128xbf16>, vector<128x512xbf16>, vector<8x512xf32> -> vector<8x512xf32>
    %158 = arith.addf %155, %157 : vector<8x512xf32>
    %159 = vector.extract_strided_slice %158 {offsets = [0, 0], sizes = [8, 128], strides = [1, 1]} : vector<8x512xf32> to vector<8x128xf32>
    %160 = arith.negf %159 : vector<8x128xf32>
    %161 = math.exp %160 : vector<8x128xf32>
    %cst_31 = arith.constant 1.000000e+00 : f32
    %162 = vector.broadcast %cst_31 : f32 to vector<8x128xf32>
    %163 = arith.addf %162, %161 : vector<8x128xf32>
    %164 = arith.divf %162, %163 : vector<8x128xf32>
    %165 = vector.extract_strided_slice %158 {offsets = [0, 128], sizes = [8, 128], strides = [1, 1]} : vector<8x512xf32> to vector<8x128xf32>
    %166 = arith.negf %165 : vector<8x128xf32>
    %167 = math.exp %166 : vector<8x128xf32>
    %cst_32 = arith.constant 1.000000e+00 : f32
    %168 = vector.broadcast %cst_32 : f32 to vector<8x128xf32>
    %169 = arith.addf %168, %167 : vector<8x128xf32>
    %170 = arith.divf %168, %169 : vector<8x128xf32>
    %171 = vector.extract_strided_slice %158 {offsets = [0, 256], sizes = [8, 128], strides = [1, 1]} : vector<8x512xf32> to vector<8x128xf32>
    %172 = math.tanh %171 : vector<8x128xf32>
    %173 = vector.extract_strided_slice %158 {offsets = [0, 384], sizes = [8, 128], strides = [1, 1]} : vector<8x512xf32> to vector<8x128xf32>
    %174 = arith.negf %173 : vector<8x128xf32>
    %175 = math.exp %174 : vector<8x128xf32>
    %cst_33 = arith.constant 1.000000e+00 : f32
    %176 = vector.broadcast %cst_33 : f32 to vector<8x128xf32>
    %177 = arith.addf %176, %175 : vector<8x128xf32>
    %178 = arith.divf %176, %177 : vector<8x128xf32>
    %179 = arith.mulf %170, %152 : vector<8x128xf32>
    %180 = arith.mulf %164, %172 : vector<8x128xf32>
    %181 = arith.addf %179, %180 : vector<8x128xf32>
    %182 = math.tanh %181 : vector<8x128xf32>
    %183 = arith.mulf %178, %182 : vector<8x128xf32>
    %184 = vector.extract_strided_slice %6 {offsets = [48, 0], sizes = [8, 512], strides = [1, 1]} : vector<64x512xf32> to vector<8x512xf32>
    %185 = arith.truncf %183 : vector<8x128xf32> to vector<8x128xbf16>
    %cst_34 = arith.constant dense<0.000000e+00> : vector<8x512xf32>
    %186 = tpu.matmul %185, %7, %cst_34 {dimension_numbers = #tpu.dot_dimension_numbers<[1], [0], [0], [1], [0, 0, 1, 1], [], []>} : vector<8x128xbf16>, vector<128x512xbf16>, vector<8x512xf32> -> vector<8x512xf32>
    %187 = arith.addf %184, %186 : vector<8x512xf32>
    %188 = vector.extract_strided_slice %187 {offsets = [0, 0], sizes = [8, 128], strides = [1, 1]} : vector<8x512xf32> to vector<8x128xf32>
    %189 = arith.negf %188 : vector<8x128xf32>
    %190 = math.exp %189 : vector<8x128xf32>
    %cst_35 = arith.constant 1.000000e+00 : f32
    %191 = vector.broadcast %cst_35 : f32 to vector<8x128xf32>
    %192 = arith.addf %191, %190 : vector<8x128xf32>
    %193 = arith.divf %191, %192 : vector<8x128xf32>
    %194 = vector.extract_strided_slice %187 {offsets = [0, 128], sizes = [8, 128], strides = [1, 1]} : vector<8x512xf32> to vector<8x128xf32>
    %195 = arith.negf %194 : vector<8x128xf32>
    %196 = math.exp %195 : vector<8x128xf32>
    %cst_36 = arith.constant 1.000000e+00 : f32
    %197 = vector.broadcast %cst_36 : f32 to vector<8x128xf32>
    %198 = arith.addf %197, %196 : vector<8x128xf32>
    %199 = arith.divf %197, %198 : vector<8x128xf32>
    %200 = vector.extract_strided_slice %187 {offsets = [0, 256], sizes = [8, 128], strides = [1, 1]} : vector<8x512xf32> to vector<8x128xf32>
    %201 = math.tanh %200 : vector<8x128xf32>
    %202 = vector.extract_strided_slice %187 {offsets = [0, 384], sizes = [8, 128], strides = [1, 1]} : vector<8x512xf32> to vector<8x128xf32>
    %203 = arith.negf %202 : vector<8x128xf32>
    %204 = math.exp %203 : vector<8x128xf32>
    %cst_37 = arith.constant 1.000000e+00 : f32
    %205 = vector.broadcast %cst_37 : f32 to vector<8x128xf32>
    %206 = arith.addf %205, %204 : vector<8x128xf32>
    %207 = arith.divf %205, %206 : vector<8x128xf32>
    %208 = arith.mulf %199, %181 : vector<8x128xf32>
    %209 = arith.mulf %193, %201 : vector<8x128xf32>
    %210 = arith.addf %208, %209 : vector<8x128xf32>
    %211 = math.tanh %210 : vector<8x128xf32>
    %212 = arith.mulf %207, %211 : vector<8x128xf32>
    %213 = vector.extract_strided_slice %6 {offsets = [56, 0], sizes = [8, 512], strides = [1, 1]} : vector<64x512xf32> to vector<8x512xf32>
    %214 = arith.truncf %212 : vector<8x128xf32> to vector<8x128xbf16>
    %cst_38 = arith.constant dense<0.000000e+00> : vector<8x512xf32>
    %215 = tpu.matmul %214, %7, %cst_38 {dimension_numbers = #tpu.dot_dimension_numbers<[1], [0], [0], [1], [0, 0, 1, 1], [], []>} : vector<8x128xbf16>, vector<128x512xbf16>, vector<8x512xf32> -> vector<8x512xf32>
    %216 = arith.addf %213, %215 : vector<8x512xf32>
    %217 = vector.extract_strided_slice %216 {offsets = [0, 0], sizes = [8, 128], strides = [1, 1]} : vector<8x512xf32> to vector<8x128xf32>
    %218 = arith.negf %217 : vector<8x128xf32>
    %219 = math.exp %218 : vector<8x128xf32>
    %cst_39 = arith.constant 1.000000e+00 : f32
    %220 = vector.broadcast %cst_39 : f32 to vector<8x128xf32>
    %221 = arith.addf %220, %219 : vector<8x128xf32>
    %222 = arith.divf %220, %221 : vector<8x128xf32>
    %223 = vector.extract_strided_slice %216 {offsets = [0, 128], sizes = [8, 128], strides = [1, 1]} : vector<8x512xf32> to vector<8x128xf32>
    %224 = arith.negf %223 : vector<8x128xf32>
    %225 = math.exp %224 : vector<8x128xf32>
    %cst_40 = arith.constant 1.000000e+00 : f32
    %226 = vector.broadcast %cst_40 : f32 to vector<8x128xf32>
    %227 = arith.addf %226, %225 : vector<8x128xf32>
    %228 = arith.divf %226, %227 : vector<8x128xf32>
    %229 = vector.extract_strided_slice %216 {offsets = [0, 256], sizes = [8, 128], strides = [1, 1]} : vector<8x512xf32> to vector<8x128xf32>
    %230 = math.tanh %229 : vector<8x128xf32>
    %231 = vector.extract_strided_slice %216 {offsets = [0, 384], sizes = [8, 128], strides = [1, 1]} : vector<8x512xf32> to vector<8x128xf32>
    %232 = arith.negf %231 : vector<8x128xf32>
    %233 = math.exp %232 : vector<8x128xf32>
    %cst_41 = arith.constant 1.000000e+00 : f32
    %234 = vector.broadcast %cst_41 : f32 to vector<8x128xf32>
    %235 = arith.addf %234, %233 : vector<8x128xf32>
    %236 = arith.divf %234, %235 : vector<8x128xf32>
    %237 = arith.mulf %228, %210 : vector<8x128xf32>
    %238 = arith.mulf %222, %230 : vector<8x128xf32>
    %239 = arith.addf %237, %238 : vector<8x128xf32>
    %240 = math.tanh %239 : vector<8x128xf32>
    %241 = arith.mulf %236, %240 : vector<8x128xf32>
    %c0_42 = arith.constant 0 : index
    %c0_43 = arith.constant 0 : index
    %242 = vector.load %arg2[%c0_42, %c0_43] : memref<8x640xbf16, #tpu.memory_space<vmem>>, vector<8x640xbf16>
    %243 = arith.truncf %241 : vector<8x128xf32> to vector<8x128xbf16>
    %c0_44 = arith.constant 0 : index
    %c0_45 = arith.constant 0 : index
    %244 = vector.load %arg6[%c0_44, %c0_45] : memref<128x512xbf16, #tpu.memory_space<vmem>>, vector<128x512xbf16>
    %cst_46 = arith.constant dense<0.000000e+00> : vector<8x512xf32>
    %245 = tpu.matmul %243, %244, %cst_46 {dimension_numbers = #tpu.dot_dimension_numbers<[1], [0], [0], [1], [0, 0, 1, 1], [], []>} : vector<8x128xbf16>, vector<128x512xbf16>, vector<8x512xf32> -> vector<8x512xf32>
    %c0_47 = arith.constant 0 : index
    %c0_48 = arith.constant 0 : index
    %246 = vector.load %arg7[%c0_47, %c0_48] : memref<640x512xbf16, #tpu.memory_space<vmem>>, vector<640x512xbf16>
    %cst_49 = arith.constant dense<0.000000e+00> : vector<8x512xf32>
    %247 = tpu.matmul %242, %246, %cst_49 {dimension_numbers = #tpu.dot_dimension_numbers<[1], [0], [0], [1], [0, 0, 1, 1], [], []>} : vector<8x640xbf16>, vector<640x512xbf16>, vector<8x512xf32> -> vector<8x512xf32>
    %248 = arith.addf %245, %247 : vector<8x512xf32>
    %c0_50 = arith.constant 0 : index
    %c0_51 = arith.constant 0 : index
    %249 = vector.load %arg8[%c0_50, %c0_51] : memref<1x512xf32, #tpu.memory_space<vmem>>, vector<1x512xf32>
    %250 = vector.broadcast %249 : vector<1x512xf32> to vector<8x512xf32>
    %251 = arith.addf %248, %250 : vector<8x512xf32>
    %cst_52 = arith.constant 0.000000e+00 : f32
    %252 = vector.broadcast %cst_52 : f32 to vector<8x512xf32>
    %253 = arith.maximumf %251, %252 : vector<8x512xf32>
    %254 = arith.truncf %253 : vector<8x512xf32> to vector<8x512xbf16>
    %c0_53 = arith.constant 0 : index
    %c0_54 = arith.constant 0 : index
    %255 = vector.load %arg9[%c0_53, %c0_54] : memref<512x512xbf16, #tpu.memory_space<vmem>>, vector<512x512xbf16>
    %cst_55 = arith.constant dense<0.000000e+00> : vector<8x512xf32>
    %256 = tpu.matmul %254, %255, %cst_55 {dimension_numbers = #tpu.dot_dimension_numbers<[1], [0], [0], [1], [0, 0, 1, 1], [], []>} : vector<8x512xbf16>, vector<512x512xbf16>, vector<8x512xf32> -> vector<8x512xf32>
    %c0_56 = arith.constant 0 : index
    %c0_57 = arith.constant 0 : index
    %257 = vector.load %arg10[%c0_56, %c0_57] : memref<1x512xf32, #tpu.memory_space<vmem>>, vector<1x512xf32>
    %258 = vector.broadcast %257 : vector<1x512xf32> to vector<8x512xf32>
    %259 = arith.addf %256, %258 : vector<8x512xf32>
    %cst_58 = arith.constant 0.000000e+00 : f32
    %260 = vector.broadcast %cst_58 : f32 to vector<8x512xf32>
    %261 = arith.maximumf %259, %260 : vector<8x512xf32>
    %262 = arith.truncf %261 : vector<8x512xf32> to vector<8x512xbf16>
    %c0_59 = arith.constant 0 : index
    %c0_60 = arith.constant 0 : index
    %263 = vector.load %arg11[%c0_59, %c0_60] : memref<512x512xbf16, #tpu.memory_space<vmem>>, vector<512x512xbf16>
    %cst_61 = arith.constant dense<0.000000e+00> : vector<8x512xf32>
    %264 = tpu.matmul %262, %263, %cst_61 {dimension_numbers = #tpu.dot_dimension_numbers<[1], [0], [0], [1], [0, 0, 1, 1], [], []>} : vector<8x512xbf16>, vector<512x512xbf16>, vector<8x512xf32> -> vector<8x512xf32>
    %c0_62 = arith.constant 0 : index
    %c0_63 = arith.constant 0 : index
    %265 = vector.load %arg12[%c0_62, %c0_63] : memref<1x512xf32, #tpu.memory_space<vmem>>, vector<1x512xf32>
    %266 = vector.broadcast %265 : vector<1x512xf32> to vector<8x512xf32>
    %267 = arith.addf %264, %266 : vector<8x512xf32>
    %cst_64 = arith.constant 0.000000e+00 : f32
    %268 = vector.broadcast %cst_64 : f32 to vector<8x512xf32>
    %269 = arith.maximumf %267, %268 : vector<8x512xf32>
    %270 = arith.truncf %269 : vector<8x512xf32> to vector<8x512xbf16>
    %c0_65 = arith.constant 0 : index
    %c0_66 = arith.constant 0 : index
    %271 = vector.load %arg13[%c0_65, %c0_66] : memref<512x512xbf16, #tpu.memory_space<vmem>>, vector<512x512xbf16>
    %cst_67 = arith.constant dense<0.000000e+00> : vector<8x512xf32>
    %272 = tpu.matmul %270, %271, %cst_67 {dimension_numbers = #tpu.dot_dimension_numbers<[1], [0], [0], [1], [0, 0, 1, 1], [], []>} : vector<8x512xbf16>, vector<512x512xbf16>, vector<8x512xf32> -> vector<8x512xf32>
    %c0_68 = arith.constant 0 : index
    %c0_69 = arith.constant 0 : index
    %273 = vector.load %arg14[%c0_68, %c0_69] : memref<1x512xf32, #tpu.memory_space<vmem>>, vector<1x512xf32>
    %274 = vector.broadcast %273 : vector<1x512xf32> to vector<8x512xf32>
    %275 = arith.addf %272, %274 : vector<8x512xf32>
    %cst_70 = arith.constant 0.000000e+00 : f32
    %276 = vector.broadcast %cst_70 : f32 to vector<8x512xf32>
    %277 = arith.maximumf %275, %276 : vector<8x512xf32>
    %278 = arith.truncf %277 : vector<8x512xf32> to vector<8x512xbf16>
    %c0_71 = arith.constant 0 : index
    %c0_72 = arith.constant 0 : index
    %279 = vector.load %arg15[%c0_71, %c0_72] : memref<512x512xbf16, #tpu.memory_space<vmem>>, vector<512x512xbf16>
    %cst_73 = arith.constant dense<0.000000e+00> : vector<8x512xf32>
    %280 = tpu.matmul %278, %279, %cst_73 {dimension_numbers = #tpu.dot_dimension_numbers<[1], [0], [0], [1], [0, 0, 1, 1], [], []>} : vector<8x512xbf16>, vector<512x512xbf16>, vector<8x512xf32> -> vector<8x512xf32>
    %c0_74 = arith.constant 0 : index
    %c0_75 = arith.constant 0 : index
    %281 = vector.load %arg16[%c0_74, %c0_75] : memref<1x512xf32, #tpu.memory_space<vmem>>, vector<1x512xf32>
    %282 = vector.broadcast %281 : vector<1x512xf32> to vector<8x512xf32>
    %283 = arith.addf %280, %282 : vector<8x512xf32>
    %cst_76 = arith.constant 0.000000e+00 : f32
    %284 = vector.broadcast %cst_76 : f32 to vector<8x512xf32>
    %285 = arith.maximumf %283, %284 : vector<8x512xf32>
    %c0_77 = arith.constant 0 : index
    %c0_78 = arith.constant 0 : index
    %286 = vector.load %arg17[%c0_77, %c0_78] : memref<1x512xf32, #tpu.memory_space<vmem>>, vector<1x512xf32>
    %287 = vector.broadcast %286 : vector<1x512xf32> to vector<8x512xf32>
    %288 = arith.mulf %285, %287 : vector<8x512xf32>
    %cst_79 = arith.constant dense<0.000000e+00> : vector<8xf32>
    %289 = vector.multi_reduction <add>, %288, %cst_79 [1] : vector<8x512xf32> to vector<8xf32>
    %290 = vector.shape_cast %289 : vector<8xf32> to vector<8x1xf32>
    %c0_80 = arith.constant 0 : index
    %c0_81 = arith.constant 0 : index
    %291 = vector.load %arg18[%c0_80, %c0_81] : memref<1x1xf32, #tpu.memory_space<vmem>>, vector<1x1xf32>
    %292 = vector.broadcast %291 : vector<1x1xf32> to vector<8x1xf32>
    %293 = arith.addf %290, %292 : vector<8x1xf32>
    %c0_82 = arith.constant 0 : index
    %c0_83 = arith.constant 0 : index
    %294 = vector.load %arg19[%c0_82, %c0_83] : memref<8x1xf32, #tpu.memory_space<vmem>>, vector<8x1xf32>
    tpu.vector_store %arg19[%c0_82, %c0_83], %293 {strides = array<i32>} : memref<8x1xf32, #tpu.memory_space<vmem>>, vector<8x1xf32>,
    return
  }
  func.func @transform_0(%arg0: i32) -> (i32, i32, i32) {
    %c0_i32 = arith.constant 0 : i32
    %c0_i32_0 = arith.constant 0 : i32
    %c0_i32_1 = arith.constant 0 : i32
    return %c0_i32, %arg0, %c0_i32_0 : i32, i32, i32
  }
  func.func @transform_1(%arg0: i32) -> (i32, i32) {
    %c0_i32 = arith.constant 0 : i32
    %c0_i32_0 = arith.constant 0 : i32
    return %arg0, %c0_i32 : i32, i32
  }
  func.func @transform_2(%arg0: i32) -> (i32, i32) {
    %c0_i32 = arith.constant 0 : i32
    %c0_i32_0 = arith.constant 0 : i32
    %c0_i32_1 = arith.constant 0 : i32
    return %c0_i32, %c0_i32_0 : i32, i32
  }
  func.func @transform_3(%arg0: i32) -> (i32, i32) {
    %c0_i32 = arith.constant 0 : i32
    %c0_i32_0 = arith.constant 0 : i32
    %c0_i32_1 = arith.constant 0 : i32
    return %c0_i32, %c0_i32_0 : i32, i32
  }
  func.func @transform_4(%arg0: i32) -> (i32, i32) {
    %c0_i32 = arith.constant 0 : i32
    %c0_i32_0 = arith.constant 0 : i32
    %c0_i32_1 = arith.constant 0 : i32
    return %c0_i32, %c0_i32_0 : i32, i32
  }
  func.func @transform_5(%arg0: i32) -> (i32, i32) {
    %c0_i32 = arith.constant 0 : i32
    %c0_i32_0 = arith.constant 0 : i32
    %c0_i32_1 = arith.constant 0 : i32
    return %c0_i32, %c0_i32_0 : i32, i32
  }
  func.func @transform_6(%arg0: i32) -> (i32, i32) {
    %c0_i32 = arith.constant 0 : i32
    %c0_i32_0 = arith.constant 0 : i32
    %c0_i32_1 = arith.constant 0 : i32
    return %c0_i32, %c0_i32_0 : i32, i32
  }
  func.func @transform_7(%arg0: i32) -> (i32, i32) {
    %c0_i32 = arith.constant 0 : i32
    %c0_i32_0 = arith.constant 0 : i32
    %c0_i32_1 = arith.constant 0 : i32
    return %c0_i32, %c0_i32_0 : i32, i32
  }
  func.func @transform_8(%arg0: i32) -> (i32, i32) {
    %c0_i32 = arith.constant 0 : i32
    %c0_i32_0 = arith.constant 0 : i32
    %c0_i32_1 = arith.constant 0 : i32
    return %c0_i32, %c0_i32_0 : i32, i32
  }
  func.func @transform_9(%arg0: i32) -> (i32, i32) {
    %c0_i32 = arith.constant 0 : i32
    %c0_i32_0 = arith.constant 0 : i32
    %c0_i32_1 = arith.constant 0 : i32
    return %c0_i32, %c0_i32_0 : i32, i32
  }
  func.func @transform_10(%arg0: i32) -> (i32, i32) {
    %c0_i32 = arith.constant 0 : i32
    %c0_i32_0 = arith.constant 0 : i32
    %c0_i32_1 = arith.constant 0 : i32
    return %c0_i32, %c0_i32_0 : i32, i32
  }
  func.func @transform_11(%arg0: i32) -> (i32, i32) {
    %c0_i32 = arith.constant 0 : i32
    %c0_i32_0 = arith.constant 0 : i32
    %c0_i32_1 = arith.constant 0 : i32
    return %c0_i32, %c0_i32_0 : i32, i32
  }
  func.func @transform_12(%arg0: i32) -> (i32, i32) {
    %c0_i32 = arith.constant 0 : i32
    %c0_i32_0 = arith.constant 0 : i32
    %c0_i32_1 = arith.constant 0 : i32
    return %c0_i32, %c0_i32_0 : i32, i32
  }
  func.func @transform_13(%arg0: i32) -> (i32, i32) {
    %c0_i32 = arith.constant 0 : i32
    %c0_i32_0 = arith.constant 0 : i32
    %c0_i32_1 = arith.constant 0 : i32
    return %c0_i32, %c0_i32_0 : i32, i32
  }
  func.func @transform_14(%arg0: i32) -> (i32, i32) {
    %c0_i32 = arith.constant 0 : i32
    %c0_i32_0 = arith.constant 0 : i32
    %c0_i32_1 = arith.constant 0 : i32
    return %c0_i32, %c0_i32_0 : i32, i32
  }
  func.func @transform_15(%arg0: i32) -> (i32, i32) {
    %c0_i32 = arith.constant 0 : i32
    %c0_i32_0 = arith.constant 0 : i32
    %c0_i32_1 = arith.constant 0 : i32
    return %c0_i32, %c0_i32_0 : i32, i32
  }
  func.func @transform_16(%arg0: i32) -> (i32, i32) {
    %c0_i32 = arith.constant 0 : i32
    %c0_i32_0 = arith.constant 0 : i32
    %c0_i32_1 = arith.constant 0 : i32
    return %c0_i32, %c0_i32_0 : i32, i32
  }
  func.func @transform_17(%arg0: i32) -> (i32, i32) {
    %c0_i32 = arith.constant 0 : i32
    %c0_i32_0 = arith.constant 0 : i32
    %c0_i32_1 = arith.constant 0 : i32
    return %c0_i32, %c0_i32_0 : i32, i32
  }
  func.func @transform_18(%arg0: i32) -> (i32, i32) {
    %c0_i32 = arith.constant 0 : i32
    %c0_i32_0 = arith.constant 0 : i32
    return %arg0, %c0_i32 : i32, i32
  }
}

</mosaic_0001>

<bundles_post_ra>
// kernel: big2_forward.1
= control target key start
LH: loop header
LB: loop body
LE: loop exit
PB: predicated region body
PF: predicated region fallthrough
CT: control target
= control target key end

     0   :  { %s13004_s0 = inlined_call_operand.vmem [shape: bf16[8,8,208], index: 0, kind: input, shape index: {}]   ;;  %s13005_s1 = inlined_call_operand.vmem [shape: bf16[8,640], index: 1, kind: input, shape index: {}]   ;;  %s13006_s2 = inlined_call_operand.hbm [shape: bf16[208,512], index: 2, kind: input, shape index: {}]   ;;  %s13007_s3 = inlined_call_operand.hbm [shape: bf16[128,512], index: 3, kind: input, shape index: {}]   ;;  %s13008_s4 = inlined_call_operand.vmem [shape: f32[1,512], index: 4, kind: input, shape index: {}]   ;;  %s13009_s5 = inlined_call_operand.hbm [shape: bf16[128,512], index: 5, kind: input, shape index: {}]   ;;  %s13010_s6 = inlined_call_operand.hbm [shape: bf16[640,512], index: 6, kind: input, shape index: {}]   ;;  %s13011_s7 = inlined_call_operand.vmem [shape: f32[1,512], index: 7, kind: input, shape index: {}]   ;;  %s13012_s8 = inlined_call_operand.hbm [shape: bf16[512,512], index: 8, kind: input, shape index: {}]   ;;  %s13013_s9 = inlined_call_operand.vmem [shape: f32[1,512], index: 9, kind: input, shape index: {}]   ;;  %s13014_s10 = inlined_call_operand.hbm [shape: bf16[512,512], index: 10, kind: input, shape index: {}]   ;;  %s13015_s11 = inlined_call_operand.vmem [shape: f32[1,512], index: 11, kind: input, shape index: {}]   ;;  %s13016_s12 = inlined_call_operand.hbm [shape: bf16[512,512], index: 12, kind: input, shape index: {}]   ;;  %s13017_s13 = inlined_call_operand.vmem [shape: f32[1,512], index: 13, kind: input, shape index: {}]   ;;  %s13018_s14 = inlined_call_operand.hbm [shape: bf16[512,512], index: 14, kind: input, shape index: {}]   ;;  %s13019_s15 = inlined_call_operand.vmem [shape: f32[1,512], index: 15, kind: input, shape index: {}]   ;;  %s13020_s16 = inlined_call_operand.vmem [shape: f32[1,512], index: 16, kind: input, shape index: {}]   ;;  %s13021_s17 = inlined_call_operand.<no memory space> [shape: f32[1,1], index: 17, kind: input, shape index: {}]   ;;  %s13022_s18 = inlined_call_operand.vmem [shape: f32[8,1], index: 18, kind: output, shape index: {}]  }
   0x1   :  { %13025 = sst [smem:[#allocation59_spill]] %s13004_s0  ;;  %v23_v0 = vstv %s13021_s17 }
   0x2   :  { %13026 = sst [smem:[#allocation60_spill]] %s13005_s1  ;;  %24 = vst [vmem:[#allocation2] sm:$0x1] %v23_v0 }
   0x3   :  { %13027 = sst [smem:[#allocation61_spill]] %s13006_s2 }
   0x4   :  { %25 = vsyncpa [#allocation4], 0 }
   0x5   :  { %26 = vsyncpa [#allocation6], 0 }
   0x6   :  { %27 = vsyncpa [#allocation9], 0 }
   0x7   :  { %28 = vsyncpa [#allocation12], 0 }
   0x8   :  { %29 = vsyncpa [#allocation15], 0  ;;  %s51_s0 = sshll.u32 %s13007_s3, 4  ;;  %s11826_s19 = smov [#allocation5]   ;;  %s52_s0 = int_to_ptr.hbm [resolvable:$true] %s51_s0 }
   0x9   :  { %s53_s1 = sshll.u32 %s11826_s19, 4  ;;  %s79_s22 = sshll.u32 %s13010_s6, 4  ;;  %s54_s1 = int_to_ptr.vmem [resolvable:$true] %s53_s1  ;;  %s80_s22 = int_to_ptr.hbm [resolvable:$true] %s79_s22 }
   0xa   :  { %s11827_s2 = smov 256   ;;  %s11828_s17 = smov 16  }
   0xb   :  { %59 = dma.hbm_to_vmem [thread:$0]  %s52_s0, 4096, %s54_s1, [#allocation6], %s11827_s2, %s11827_s2, %s11828_s17  }
   0xc   :  { %s11829_s23 = smov [#allocation8]   ;;  %s109_s3 = sshll.u32 %s13014_s10, 4  ;;  %s110_s3 = int_to_ptr.hbm [resolvable:$true] %s109_s3 }
   0xd   :  { %s81_s24 = sshll.u32 %s11829_s23, 4  ;;  %s13028_s28 = sld [smem:[#allocation61_spill]]  ;;  %s82_s24 = int_to_ptr.vmem [resolvable:$true] %s81_s24 }
   0xe   :  { %87 = dma.hbm_to_vmem [thread:$0]  %s80_s22, 20480, %s82_s24, [#allocation9], %s11827_s2, %s11827_s2, %s11828_s17  }
   0xf   :  { %s11830_s30 = smov [#allocation11]   ;;  %s11831_s0 = smov [#allocation3]  }
  0x10   :  { %s111_s19 = sshll.u32 %s11830_s30, 4  ;;  %s40_s10 = sshll.u32 %s11831_s0, 4  ;;  %s112_s19 = int_to_ptr.vmem [resolvable:$true] %s111_s19  ;;  %s41_s10 = int_to_ptr.vmem [resolvable:$true] %s40_s10 }
  0x11   :  { %117 = dma.hbm_to_vmem [thread:$0]  %s110_s3, 16384, %s112_s19, [#allocation12], %s11827_s2, %s11827_s2, %s11828_s17  }
  0x12   :  { %s66_s21 = sshll.u32 %s13009_s5, 4  ;;  %s94_s24 = sshll.u32 %s13012_s8, 4  ;;  %s67_s21 = int_to_ptr.hbm [resolvable:$true] %s66_s21  ;;  %s95_s24 = int_to_ptr.hbm [resolvable:$true] %s94_s24 }
  0x13   :  { %s38_s29 = sshll.u32 %s13028_s28, 4  ;;  %s11832_s25 = smov [#allocation7]   ;;  %s39_s29 = int_to_ptr.hbm [resolvable:$true] %s38_s29 }
  0x14   :  { %46 = dma.hbm_to_vmem [thread:$0]  %s39_s29, 6656, %s41_s10, [#allocation4], %s11827_s2, %s11827_s2, %s11828_s17  }
  0x15   :  { %s68_s26 = sshll.u32 %s11832_s25, 4  ;;  %s11833_s3 = smov [#allocation10]   ;;  %s69_s26 = int_to_ptr.vmem [resolvable:$true] %s68_s26 }
  0x16   :  { %74 = dma.hbm_to_vmem [thread:$0]  %s67_s21, 4096, %s69_s26, [#allocation6], %s11827_s2, %s11827_s2, %s11828_s17  }
  0x17   :  { %s96_s5 = sshll.u32 %s11833_s3, 4  ;;  %s124_s28 = sshll.u32 %s13016_s12, 4  ;;  %s97_s5 = int_to_ptr.vmem [resolvable:$true] %s96_s5  ;;  %s125_s28 = int_to_ptr.hbm [resolvable:$true] %s124_s28 }
  0x18   :  { %102 = dma.hbm_to_vmem [thread:$0]  %s95_s24, 16384, %s97_s5, [#allocation9], %s11827_s2, %s11827_s2, %s11828_s17  }
  0x19   :  { %s139_s30 = sshll.u32 %s13018_s14, 4  ;;  %s11834_s19 = smov [#allocation13]   ;;  %s140_s30 = int_to_ptr.hbm [resolvable:$true] %s139_s30 }
  0x1a   :  { %s126_s0 = sshll.u32 %s11834_s19, 4  ;;  %s11835_s10 = smov [#allocation14]   ;;  %s127_s0 = int_to_ptr.vmem [resolvable:$true] %s126_s0 }
  0x1b   :  { %132 = dma.hbm_to_vmem [thread:$0]  %s125_s28, 16384, %s127_s0, [#allocation12], %s11827_s2, %s11827_s2, %s11828_s17  }
  0x1c   :  { %s141_s12 = sshll.u32 %s11835_s10, 4  ;;  %s142_s12 = int_to_ptr.vmem [resolvable:$true] %s141_s12 }
  0x1d   :  { %147 = dma.hbm_to_vmem [thread:$0]  %s140_s30, 16384, %s142_s12, [#allocation15], %s11827_s2, %s11827_s2, %s11828_s17  }
  0x1e   :  { %11816 = dma.done.wait [#allocation4], 6656  }
  0x1f   :  { %11817 = vsyncadd [#allocation4], 4294960640 }
  0x20   :  { %11818 = dma.done.wait [#allocation6], 8192  }
  0x21   :  { %11819 = vsyncadd [#allocation6], 4294959104 }
  0x22   :  { %11820 = dma.done.wait [#allocation9], 36864  }
  0x23   :  { %11821 = vsyncadd [#allocation9], 4294930432 }
  0x24   :  { %11822 = dma.done.wait [#allocation12], 32768  }
  0x25   :  { %11823 = vsyncadd [#allocation12], 4294934528 }
  0x26   :  { %11824 = dma.done.wait [#allocation15], 16384  }
  0x27   :  { %11825 = vsyncadd [#allocation15], 4294950912  ;;  %v7610_v1 = vld [vmem:[#allocation3 + $0xe0] sm:$0xf]  ;;  %v10726_v2 = vld [vmem:[#allocation3 + $0xec] sm:$0xf0] }
  0x28   :  { %v7690_v3 = vld [vmem:[#allocation3 + $0x180] sm:$0xf]  ;;  %v7611_v4 = vor.u32 %v10726_v2, %v7610_v1  ;;  %v10746_v5 = vld [vmem:[#allocation3 + $0x18c] sm:$0xf0]  ;;  %v10724_v6 = vld [vmem:[#allocation3 + $0xe4] sm:$0xf] }
  0x29   :  { %v7612_v7 = vld [vmem:[#allocation3 + $0xf0] sm:$0xf0]  ;;  %v7691_v8 = vor.u32 %v10746_v5, %v7690_v3  ;;  %v10744_v10 = vld [vmem:[#allocation3 + $0x184] sm:$0xf]  ;;  %v7594_v12 = vld [vmem:[#allocation3 + $0xc0] sm:$0xf] }
  0x2a   :  { %v7615_v9 = vor.u32 %v10724_v6, %v7612_v7  ;;  %v7692_v11 = vld [vmem:[#allocation3 + $0x190] sm:$0xf0]  ;;  %566 = vmatpush.bf16.msra.mxu0 %v7611_v4  ;;  %v10722_v14 = vld [vmem:[#allocation3 + $0xcc] sm:$0xf0]  ;;  %v7674_v15 = vld [vmem:[#allocation3 + $0x160] sm:$0xf] }
  0x2b   :  { %v7695_v13 = vor.u32 %v10744_v10, %v7692_v11  ;;  %v10742_v16 = vld [vmem:[#allocation3 + $0x16c] sm:$0xf0]  ;;  %598 = vmatpush.bf16.msra.mxu1 %v7691_v8  ;;  %v7595_v17 = vor.u32 %v10722_v14, %v7594_v12  ;;  %v10720_v19 = vld [vmem:[#allocation3 + $0xc4] sm:$0xf]  ;;  %v7596_v20 = vld [vmem:[#allocation3 + $0xd0] sm:$0xf0] }
  0x2c   :  { %624 = vmatpush.bf16.msra.mxu2 %v7615_v9  ;;  %v7675_v18 = vor.u32 %v10742_v16, %v7674_v15  ;;  %v10740_v21 = vld [vmem:[#allocation3 + $0x164] sm:$0xf]  ;;  %v7599_v22 = vor.u32 %v10720_v19, %v7596_v20  ;;  %v7676_v23 = vld [vmem:[#allocation3 + $0x170] sm:$0xf0]  ;;  %v7578_v24 = vld [vmem:[#allocation3 + $0xa0] sm:$0xf] }
  0x2d   :  { %656 = vmatpush.bf16.msra.mxu3 %v7695_v13  ;;  %v10718_v25 = vld [vmem:[#allocation3 + $0xac] sm:$0xf0]  ;;  %v7679_v26 = vor.u32 %v10740_v21, %v7676_v23  ;;  %v7658_v27 = vld [vmem:[#allocation3 + $0x140] sm:$0xf]  ;;  %v10716_v29 = vld [vmem:[#allocation3 + $0xa4] sm:$0xf] }
  0x2e   :  { %v10738_v28 = vld [vmem:[#allocation3 + $0x14c] sm:$0xf0]  ;;  %567 = vmatpush.bf16.msra.mxu0 %v7595_v17  ;;  %v7579_v30 = vor.u32 %v10718_v25, %v7578_v24  ;;  %v7580_v31 = vld [vmem:[#allocation3 + $0xb0] sm:$0xf0]  ;;  %v10736_v32 = vld [vmem:[#allocation3 + $0x144] sm:$0xf] }
  0x2f   :  { %v7660_v33 = vld [vmem:[#allocation3 + $0x150] sm:$0xf0]  ;;  %599 = vmatpush.bf16.msra.mxu1 %v7675_v18  ;;  %v7659_v34 = vor.u32 %v10738_v28, %v7658_v27  ;;  %v7583_v35 = vor.u32 %v10716_v29, %v7580_v31  ;;  %v7562_v36 = vld [vmem:[#allocation3 + $0x80] sm:$0xf]  ;;  %v10714_v37 = vld [vmem:[#allocation3 + $0x8c] sm:$0xf0] }
  0x30   :  { %625 = vmatpush.bf16.msra.mxu2 %v7599_v22  ;;  %v7642_v38 = vld [vmem:[#allocation3 + $0x120] sm:$0xf]  ;;  %v7663_v39 = vor.u32 %v10736_v32, %v7660_v33  ;;  %v10734_v40 = vld [vmem:[#allocation3 + $0x12c] sm:$0xf0]  ;;  %v10712_v41 = vld [vmem:[#allocation3 + $0x84] sm:$0xf]  ;;  %v7563_v45 = vor.u32 %v10714_v37, %v7562_v36 }
  0x31   :  { %657 = vmatpush.bf16.msra.mxu3 %v7679_v26  ;;  %v7564_v42 = vld [vmem:[#allocation3 + $0x90] sm:$0xf0]  ;;  %v10732_v43 = vld [vmem:[#allocation3 + $0x124] sm:$0xf]  ;;  %v7643_v46 = vor.u32 %v10734_v40, %v7642_v38  ;;  %v7546_v48 = vld [vmem:[#allocation3 + $0x60] sm:$0xf] }
  0x32   :  { %v7644_v44 = vld [vmem:[#allocation3 + $0x130] sm:$0xf0]  ;;  %568 = vmatpush.bf16.msra.mxu0 %v7579_v30  ;;  %v7567_v47 = vor.u32 %v10712_v41, %v7564_v42  ;;  %v10710_v49 = vld [vmem:[#allocation3 + $0x6c] sm:$0xf0]  ;;  %v7626_v50 = vld [vmem:[#allocation3 + $0x100] sm:$0xf] }
  0x33   :  { %600 = vmatpush.bf16.msra.mxu1 %v7659_v34  ;;  %v7647_v51 = vor.u32 %v10732_v43, %v7644_v44  ;;  %v10730_v52 = vld [vmem:[#allocation3 + $0x10c] sm:$0xf0]  ;;  %v10708_v53 = vld [vmem:[#allocation3 + $0x64] sm:$0xf]  ;;  %v7548_v54 = vld [vmem:[#allocation3 + $0x70] sm:$0xf0]  ;;  %v7547_v57 = vor.u32 %v10710_v49, %v7546_v48 }
  0x34   :  { %626 = vmatpush.bf16.msra.mxu2 %v7583_v35  ;;  %v10728_v55 = vld [vmem:[#allocation3 + $0x104] sm:$0xf]  ;;  %v7628_v56 = vld [vmem:[#allocation3 + $0x110] sm:$0xf0]  ;;  %s13029_s17 = sld [smem:[#allocation59_spill]]  ;;  %v7627_v59 = vor.u32 %v10730_v52, %v7626_v50  ;;  %v7551_v60 = vor.u32 %v10708_v53, %v7548_v54  ;;  %vm553_vm0 = vcmask 654336  }
  0x35   :  { %658 = vmatpush.bf16.msra.mxu3 %v7663_v39  ;;  %v7530_v62 = vld [vmem:[#allocation3 + $0x40] sm:$0xf]  ;;  %v10706_v63 = vld [vmem:[#allocation3 + $0x4c] sm:$0xf0]  ;;  %v7631_v0 = vor.u32 %v10728_v55, %v7628_v56  ;;  %v10704_v1 = vld [vmem:[#allocation3 + $0x44] sm:$0xf] }
  0x36   :  { %569 = vmatpush.bf16.msra.mxu0 %v7563_v45  ;;  %v7532_v2 = vld [vmem:[#allocation3 + $0x50] sm:$0xf0]  ;;  %v7531_v4 = vor.u32 %v10706_v63, %v7530_v62  ;;  %v7514_v6 = vld [vmem:[#allocation3 + $0x20] sm:$0xf]  ;;  %v10702_v7 = vld [vmem:[#allocation3 + $0x2c] sm:$0xf0] }
  0x37   :  { %601 = vmatpush.bf16.msra.mxu1 %v7643_v46  ;;  %v7535_v5 = vor.u32 %v10704_v1, %v7532_v2  ;;  %v10700_v8 = vld [vmem:[#allocation3 + $0x24] sm:$0xf]  ;;  %v7516_v9 = vld [vmem:[#allocation3 + $0x30] sm:$0xf0]  ;;  %v7618_v10 = vld [vmem:[#allocation3 + $0xe8] sm:$0xf]  ;;  %v7515_v12 = vor.u32 %v10702_v7, %v7514_v6 }
  0x38   :  { %627 = vmatpush.bf16.msra.mxu2 %v7567_v47  ;;  %v10727_v11 = vld [vmem:[#allocation3 + $0xf4] sm:$0xf0]  ;;  %v7498_v13 = vld [vmem:[#allocation3] sm:$0xf]  ;;  %v7519_v15 = vor.u32 %v10700_v8, %v7516_v9  ;;  %v10698_v16 = vld [vmem:[#allocation3 + $0xc] sm:$0xf0] }
  0x39   :  { %659 = vmatpush.bf16.msra.mxu3 %v7647_v51  ;;  %v7619_v14 = vor.u32 %v10727_v11, %v7618_v10  ;;  %v7602_v17 = vld [vmem:[#allocation3 + $0xc8] sm:$0xf]  ;;  %v10723_v18 = vld [vmem:[#allocation3 + $0xd4] sm:$0xf0]  ;;  %v10696_v19 = vld [vmem:[#allocation3 + $0x4] sm:$0xf]  ;;  %v7499_v24 = vor.u32 %v10698_v16, %v7498_v13 }
  0x3a   :  { %v10688_v58 = vld [vmem:[%s13029_s17 + $0x4] sm:$0xf]  ;;  %v7468_v61 = vld [vmem:[%s13029_s17 + $0x8] sm:$0xf0]  ;;  %570 = vmatpush.bf16.msra.mxu0 %v7547_v57  ;;  %v7500_v20 = vld [vmem:[#allocation3 + $0x10] sm:$0xf0]  ;;  %v7603_v21 = vor.u32 %v10723_v18, %v7602_v17 }
  0x3b   :  { %v11989_v3 = vor.u32 %v10688_v58, %v7468_v61  ;;  %602 = vmatpush.bf16.msra.mxu1 %v7627_v59  ;;  %v7586_v22 = vld [vmem:[#allocation3 + $0xa8] sm:$0xf]  ;;  %v10719_v23 = vld [vmem:[#allocation3 + $0xb4] sm:$0xf0]  ;;  %v7466_v25 = vld [vmem:[%s13029_s17] sm:$0xf]  ;;  %v7503_v27 = vor.u32 %v10696_v19, %v7500_v20 }
  0x3c   :  { %628 = vmatpush.bf16.msra.mxu2 %v7551_v60  ;;  %v10689_v26 = vld [vmem:[%s13029_s17 + $0x4] sm:$0xf0]  ;;  %v7587_v28 = vor.u32 %v10719_v23, %v7586_v22  ;;  %v10690_v30 = vld [vmem:[%s13029_s17 + $0x14] sm:$0xf]  ;;  %v7476_v31 = vld [vmem:[%s13029_s17 + $0x18] sm:$0xf0] }
  0x3d   :  { %660 = vmatpush.bf16.msra.mxu3 %v7631_v0  ;;  %v12001_v29 = vor.u32 %v10689_v26, %v7466_v25  ;;  %v7570_v32 = vld [vmem:[#allocation3 + $0x88] sm:$0xf]  ;;  %v10715_v33 = vld [vmem:[#allocation3 + $0x94] sm:$0xf0]  ;;  %v12011_v35 = vor.u32 %v10690_v30, %v7476_v31  ;;  %v10725_v38 = vld [vmem:[#allocation3 + $0xec] sm:$0xf] }
  0x3e   :  { %7704 = vmatmul.msk.bf16.vlgmr.msra.gmra.mxu1 %vm553_vm0, %v11989_v3  ;;  %571 = vmatpush.bf16.msra.mxu0 %v7531_v4  ;;  %v7698_v34 = vld [vmem:[#allocation3 + $0x188] sm:$0xf]  ;;  %v7571_v36 = vor.u32 %v10715_v33, %v7570_v32  ;;  %v10747_v37 = vld [vmem:[#allocation3 + $0x194] sm:$0xf0]  ;;  %v7620_v39 = vld [vmem:[#allocation3 + $0xf8] sm:$0xf0] }
  0x3f   :  { %682 = vmatpush.bf16.msrb.mxu1 %v7619_v14  ;;  %v7699_v40 = vor.u32 %v10747_v37, %v7698_v34  ;;  %v7623_v41 = vor.u32 %v10725_v38, %v7620_v39  ;;  %v7554_v42 = vld [vmem:[#allocation3 + $0x68] sm:$0xf]  ;;  %v10711_v43 = vld [vmem:[#allocation3 + $0x74] sm:$0xf0]  ;;  %v10721_v47 = vld [vmem:[#allocation3 + $0xcc] sm:$0xf] }
  0x40   :  { %7708 = vmatmul.msk.bf16.vlgmr.msra.gmra.mxu3 %vm553_vm0, %v11989_v3  ;;  %629 = vmatpush.bf16.msra.mxu2 %v7535_v5  ;;  %v7682_v44 = vld [vmem:[#allocation3 + $0x168] sm:$0xf]  ;;  %v7555_v45 = vor.u32 %v10711_v43, %v7554_v42  ;;  %v10743_v46 = vld [vmem:[#allocation3 + $0x174] sm:$0xf0]  ;;  %v7604_v48 = vld [vmem:[#allocation3 + $0xd8] sm:$0xf0] }
  0x41   :  { %714 = vmatpush.bf16.msrb.mxu3 %v7699_v40  ;;  %v7683_v49 = vor.u32 %v10743_v46, %v7682_v44  ;;  %v7607_v50 = vor.u32 %v10721_v47, %v7604_v48  ;;  %v7538_v51 = vld [vmem:[#allocation3 + $0x48] sm:$0xf]  ;;  %v10707_v52 = vld [vmem:[#allocation3 + $0x54] sm:$0xf0]  ;;  %v7474_v54 = vld [vmem:[%s13029_s17 + $0x10] sm:$0xf] }
  0x42   :  { %572 = vmatpush.bf16.msra.mxu0 %v7515_v12  ;;  %v7666_v53 = vld [vmem:[#allocation3 + $0x148] sm:$0xf]  ;;  %v7539_v55 = vor.u32 %v10707_v52, %v7538_v51  ;;  %v10739_v56 = vld [vmem:[#allocation3 + $0x154] sm:$0xf0]  ;;  %v10717_v57 = vld [vmem:[#allocation3 + $0xac] sm:$0xf] }
  0x43   :  { %683 = vmatpush.bf16.msrb.mxu1 %v7603_v21  ;;  %v7588_v58 = vld [vmem:[#allocation3 + $0xb8] sm:$0xf0]  ;;  %v10691_v59 = vld [vmem:[%s13029_s17 + $0x14] sm:$0xf0]  ;;  %v7667_v60 = vor.u32 %v10739_v56, %v7666_v53  ;;  %v7522_v62 = vld [vmem:[#allocation3 + $0x28] sm:$0xf] }
  0x44   :  { %630 = vmatpush.bf16.msra.mxu2 %v7519_v15  ;;  %v7591_v61 = vor.u32 %v10717_v57, %v7588_v58  ;;  %v10703_v63 = vld [vmem:[#allocation3 + $0x34] sm:$0xf0]  ;;  %v7650_v0 = vld [vmem:[#allocation3 + $0x128] sm:$0xf]  ;;  %v10713_v2 = vld [vmem:[#allocation3 + $0x8c] sm:$0xf]  ;;  %v12023_v9 = vor.u32 %v10691_v59, %v7474_v54 }
  0x45   :  { %715 = vmatpush.bf16.msrb.mxu3 %v7683_v49  ;;  %v10735_v1 = vld [vmem:[#allocation3 + $0x134] sm:$0xf0]  ;;  %v7572_v4 = vld [vmem:[#allocation3 + $0x98] sm:$0xf0]  ;;  %v10745_v5 = vld [vmem:[#allocation3 + $0x18c] sm:$0xf]  ;;  %v7523_v7 = vor.u32 %v10703_v63, %v7522_v62 }
  0x46   :  { %573 = vmatpush.bf16.msra.mxu0 %v7499_v24  ;;  %v7700_v6 = vld [vmem:[#allocation3 + $0x198] sm:$0xf0]  ;;  %v7651_v10 = vor.u32 %v10735_v1, %v7650_v0  ;;  %v7575_v11 = vor.u32 %v10713_v2, %v7572_v4  ;;  %v10692_v12 = vld [vmem:[%s13029_s17 + $0x24] sm:$0xf]  ;;  %v7484_v13 = vld [vmem:[%s13029_s17 + $0x28] sm:$0xf0] }
  0x47   :  { %684 = vmatpush.bf16.msrb.mxu1 %v7587_v28  ;;  %v7703_v8 = vor.u32 %v10745_v5, %v7700_v6  ;;  %v7506_v14 = vld [vmem:[#allocation3 + $0x8] sm:$0xf]  ;;  %v10699_v15 = vld [vmem:[#allocation3 + $0x14] sm:$0xf0]  ;;  %v12033_v17 = vor.u32 %v10692_v12, %v7484_v13  ;;  %v10709_v20 = vld [vmem:[#allocation3 + $0x6c] sm:$0xf] }
  0x48   :  { %631 = vmatpush.bf16.msra.mxu2 %v7503_v27  ;;  %v7634_v16 = vld [vmem:[#allocation3 + $0x108] sm:$0xf]  ;;  %v7507_v18 = vor.u32 %v10699_v15, %v7506_v14  ;;  %v10731_v19 = vld [vmem:[#allocation3 + $0x114] sm:$0xf0]  ;;  %v7556_v21 = vld [vmem:[#allocation3 + $0x78] sm:$0xf0] }
  0x49   :  { %574 = vmatmul.bf16.vlgmr.msra.gmra.mxu0 %v12001_v29  ;;  %716 = vmatpush.bf16.msrb.mxu3 %v7667_v60  ;;  %v7635_v22 = vor.u32 %v10731_v19, %v7634_v16  ;;  %v7559_v23 = vor.u32 %v10709_v20, %v7556_v21  ;;  %v10741_v24 = vld [vmem:[#allocation3 + $0x16c] sm:$0xf]  ;;  %v7684_v25 = vld [vmem:[#allocation3 + $0x178] sm:$0xf0]  ;;  %v10693_v40 = vld [vmem:[%s13029_s17 + $0x24] sm:$0xf0] }
  0x4a   :  { %740 = vmatpush.bf16.msrb.mxu0 %v7623_v41  ;;  %v7687_v26 = vor.u32 %v10741_v24, %v7684_v25  ;;  %v10705_v27 = vld [vmem:[#allocation3 + $0x4c] sm:$0xf]  ;;  %v7540_v28 = vld [vmem:[#allocation3 + $0x58] sm:$0xf0]  ;;  %v10694_v49 = vld [vmem:[%s13029_s17 + $0x34] sm:$0xf] }
  0x4b   :  { %632 = vmatmul.bf16.vlgmr.msra.gmra.mxu2 %v12001_v29  ;;  %685 = vmatpush.bf16.msrb.mxu1 %v7571_v36  ;;  %v10737_v30 = vld [vmem:[#allocation3 + $0x14c] sm:$0xf]  ;;  %v7543_v31 = vor.u32 %v10705_v27, %v7540_v28  ;;  %v7668_v32 = vld [vmem:[#allocation3 + $0x158] sm:$0xf0]  ;;  %v10695_v54 = vld [vmem:[%s13029_s17 + $0x34] sm:$0xf0] }
  0x4c   :  { %772 = vmatpush.bf16.msrb.mxu2 %v7703_v8  ;;  %v7671_v33 = vor.u32 %v10737_v30, %v7668_v32  ;;  %v10701_v34 = vld [vmem:[#allocation3 + $0x2c] sm:$0xf]  ;;  %v7524_v36 = vld [vmem:[#allocation3 + $0x38] sm:$0xf0]  ;;  %v7834_v56 = vld [vmem:[#allocation5 + $0xe0] sm:$0xf] }
  0x4d   :  { %717 = vmatpush.bf16.msrb.mxu3 %v7651_v10  ;;  %v10733_v37 = vld [vmem:[#allocation3 + $0x12c] sm:$0xf]  ;;  %v7652_v38 = vld [vmem:[#allocation3 + $0x138] sm:$0xf0]  ;;  %v7527_v41 = vor.u32 %v10701_v34, %v7524_v36  ;;  %v10778_v57 = vld [vmem:[#allocation5 + $0xec] sm:$0xf0] }
  0x4e   :  { %7705 = vmatmul.msk.bf16.gmra.mxu1 %vm553_vm0, %v12011_v35  ;;  %741 = vmatpush.bf16.msrb.mxu0 %v7607_v50  ;;  %v7482_v39 = vld [vmem:[%s13029_s17 + $0x20] sm:$0xf]  ;;  %v7655_v42 = vor.u32 %v10733_v37, %v7652_v38  ;;  %v10697_v43 = vld [vmem:[#allocation3 + $0xc] sm:$0xf]  ;;  %v7492_v50 = vld [vmem:[%s13029_s17 + $0x38] sm:$0xf0]  ;;  %v12072_v59 = vor.u32 %v10778_v57, %v7834_v56 }
  0x4f   :  { %686 = vmatpush.bf16.msrb.mxu1 %v7555_v45  ;;  %v7508_v44 = vld [vmem:[#allocation3 + $0x18] sm:$0xf0]  ;;  %v10729_v45 = vld [vmem:[#allocation3 + $0x10c] sm:$0xf]  ;;  %v12045_v47 = vor.u32 %v10693_v40, %v7482_v39  ;;  %v12055_v52 = vor.u32 %v10694_v49, %v7492_v50  ;;  %v10776_v58 = vld [vmem:[#allocation5 + $0xe4] sm:$0xf] }
  0x50   :  { %7709 = vmatmul.msk.bf16.gmra.mxu3 %vm553_vm0, %v12011_v35  ;;  %773 = vmatpush.bf16.msrb.mxu2 %v7687_v26  ;;  %v7636_v46 = vld [vmem:[#allocation3 + $0x118] sm:$0xf0]  ;;  %v7511_v48 = vor.u32 %v10697_v43, %v7508_v44  ;;  %v7490_v53 = vld [vmem:[%s13029_s17 + $0x30] sm:$0xf]  ;;  %v7836_v60 = vld [vmem:[#allocation5 + $0xf0] sm:$0xf0] }
  0x51   :  { %718 = vmatpush.bf16.msrb.mxu3 %v7635_v22  ;;  %v7639_v51 = vor.u32 %v10729_v45, %v7636_v46  ;;  %v7818_v62 = vld [vmem:[#allocation5 + $0xc0] sm:$0xf]  ;;  %v10774_v63 = vld [vmem:[#allocation5 + $0xcc] sm:$0xf0]  ;;  %v10772_v0 = vld [vmem:[#allocation5 + $0xc4] sm:$0xf] }
  0x52   :  { %742 = vmatpush.bf16.msrb.mxu0 %v7591_v61  ;;  %v12076_v61 = vor.u32 %v10776_v58, %v7836_v60  ;;  %v12079_v1 = vor.u32 %v10774_v63, %v7818_v62  ;;  %v7820_v2 = vld [vmem:[#allocation5 + $0xd0] sm:$0xf0]  ;;  %v7802_v5 = vld [vmem:[#allocation5 + $0xa0] sm:$0xf]  ;;  %v10770_v6 = vld [vmem:[#allocation5 + $0xac] sm:$0xf0] }
  0x53   :  { %687 = vmatpush.bf16.msrb.mxu1 %v7539_v55  ;;  %v12067_v55 = vor.u32 %v10695_v54, %v7490_v53  ;;  %v12082_v4 = vor.u32 %v10772_v0, %v7820_v2  ;;  %v7804_v8 = vld [vmem:[#allocation5 + $0xb0] sm:$0xf0]  ;;  %v12085_v10 = vor.u32 %v10770_v6, %v7802_v5  ;;  %v7786_v12 = vld [vmem:[#allocation5 + $0x80] sm:$0xf]  ;;  %v10766_v13 = vld [vmem:[#allocation5 + $0x8c] sm:$0xf0] }
  0x54   :  { %774 = vmatpush.bf16.msrb.mxu2 %v7671_v33  ;;  %v10764_v14 = vld [vmem:[#allocation5 + $0x84] sm:$0xf]  ;;  %v12095_v15 = vor.u32 %v10766_v13, %v7786_v12  ;;  %v7788_v16 = vld [vmem:[#allocation5 + $0x90] sm:$0xf0]  ;;  %v10779_v19 = vld [vmem:[#allocation5 + $0xf4] sm:$0xf0] }
  0x55   :  { %1003 = vmatpush.bf16.msra.mxu3 %v12076_v61  ;;  %v12097_v20 = vor.u32 %v10764_v14, %v7788_v16  ;;  %v10777_v22 = vld [vmem:[#allocation5 + $0xec] sm:$0xf]  ;;  %v10762_v24 = vld [vmem:[#allocation5 + $0x6c] sm:$0xf0]  ;;  %v10760_v25 = vld [vmem:[#allocation5 + $0x64] sm:$0xf] }
  0x56   :  { %743 = vmatpush.bf16.msrb.mxu0 %v7575_v11  ;;  %v7772_v27 = vld [vmem:[#allocation5 + $0x70] sm:$0xf0]  ;;  %v7826_v28 = vld [vmem:[#allocation5 + $0xc8] sm:$0xf]  ;;  %v10775_v30 = vld [vmem:[#allocation5 + $0xd4] sm:$0xf0] }
  0x57   :  { %688 = vmatpush.bf16.msrb.mxu1 %v7523_v7  ;;  %v10768_v7 = vld [vmem:[#allocation5 + $0xa4] sm:$0xf]  ;;  %v12114_v32 = vor.u32 %v10775_v30, %v7826_v28  ;;  %v10773_v33 = vld [vmem:[#allocation5 + $0xcc] sm:$0xf]  ;;  %v7828_v34 = vld [vmem:[#allocation5 + $0xd8] sm:$0xf0] }
  0x58   :  { %775 = vmatpush.bf16.msrb.mxu2 %v7655_v42  ;;  %v12088_v11 = vor.u32 %v10768_v7, %v7804_v8  ;;  %v7754_v36 = vld [vmem:[#allocation5 + $0x40] sm:$0xf]  ;;  %v12117_v37 = vor.u32 %v10773_v33, %v7828_v34  ;;  %v10758_v38 = vld [vmem:[#allocation5 + $0x4c] sm:$0xf0]  ;;  %v10756_v39 = vld [vmem:[#allocation5 + $0x44] sm:$0xf] }
  0x59   :  { %579 = vmatmul.bf16.gmra.mxu0 %v12023_v9  ;;  %1004 = vmatpush.bf16.msra.mxu3 %v12082_v4  ;;  %v7756_v40 = vld [vmem:[#allocation5 + $0x50] sm:$0xf0]  ;;  %v7810_v43 = vld [vmem:[#allocation5 + $0xa8] sm:$0xf]  ;;  %v10771_v44 = vld [vmem:[#allocation5 + $0xb4] sm:$0xf0] }
  0x5a   :  { %744 = vmatpush.bf16.msrb.mxu0 %v7559_v23  ;;  %v7844_v23 = vld [vmem:[#allocation5 + $0xf8] sm:$0xf0]  ;;  %v12123_v42 = vor.u32 %v10756_v39, %v7756_v40  ;;  %v10769_v45 = vld [vmem:[#allocation5 + $0xac] sm:$0xf]  ;;  %v12126_v46 = vor.u32 %v10771_v44, %v7810_v43  ;;  %v7738_v49 = vld [vmem:[#allocation5 + $0x20] sm:$0xf] }
  0x5b   :  { %637 = vmatmul.bf16.gmra.mxu2 %v12023_v9  ;;  %689 = vmatpush.bf16.msrb.mxu1 %v7507_v18  ;;  %v7842_v18 = vld [vmem:[#allocation5 + $0xe8] sm:$0xf]  ;;  %v10754_v50 = vld [vmem:[#allocation5 + $0x2c] sm:$0xf0]  ;;  %v10752_v53 = vld [vmem:[#allocation5 + $0x24] sm:$0xf] }
  0x5c   :  { %776 = vmatpush.bf16.msrb.mxu2 %v7639_v51  ;;  %v12099_v21 = vor.u32 %v10779_v19, %v7842_v18  ;;  %v7740_v54 = vld [vmem:[#allocation5 + $0x30] sm:$0xf0]  ;;  %v7794_v56 = vld [vmem:[#allocation5 + $0x88] sm:$0xf]  ;;  %v12131_v57 = vor.u32 %v10754_v50, %v7738_v49  ;;  %v10767_v58 = vld [vmem:[#allocation5 + $0x94] sm:$0xf0] }
  0x5d   :  { %1005 = vmatpush.bf16.msra.mxu3 %v12088_v11  ;;  %v10765_v60 = vld [vmem:[#allocation5 + $0x8c] sm:$0xf]  ;;  %v7796_v62 = vld [vmem:[#allocation5 + $0x98] sm:$0xf0]  ;;  %v12135_v63 = vor.u32 %v10752_v53, %v7740_v54  ;;  %v12138_v0 = vor.u32 %v10767_v58, %v7794_v56  ;;  %v7722_v5 = vld [vmem:[#allocation5] sm:$0xf] }
  0x5e   :  { %7706 = vmatmul.msk.bf16.gmra.mxu1 %vm553_vm0, %v12033_v17  ;;  %745 = vmatpush.bf16.msrb.mxu0 %v7543_v31  ;;  %v12112_v31 = vor.u32 %v10760_v25, %v7772_v27  ;;  %v12140_v2 = vor.u32 %v10765_v60, %v7796_v62  ;;  %v10750_v6 = vld [vmem:[#allocation5 + $0xc] sm:$0xf0]  ;;  %v10748_v7 = vld [vmem:[#allocation5 + $0x4] sm:$0xf]  ;;  %v7724_v12 = vld [vmem:[#allocation5 + $0x10] sm:$0xf0] }
  0x5f   :  { %990 = vmatpush.bf16.msra.mxu1 %v12072_v59  ;;  %v12148_v8 = vor.u32 %v10750_v6, %v7722_v5  ;;  %v7778_v13 = vld [vmem:[#allocation5 + $0x68] sm:$0xf]  ;;  %v10763_v14 = vld [vmem:[#allocation5 + $0x74] sm:$0xf0]  ;;  %v12151_v16 = vor.u32 %v10748_v7, %v7724_v12  ;;  %v10761_v18 = vld [vmem:[#allocation5 + $0x6c] sm:$0xf] }
  0x60   :  { %7710 = vmatmul.msk.bf16.gmra.mxu3 %vm553_vm0, %v12033_v17  ;;  %v7780_v19 = vld [vmem:[#allocation5 + $0x78] sm:$0xf0]  ;;  %v7746_v28 = vld [vmem:[#allocation5 + $0x28] sm:$0xf]  ;;  %v10755_v30 = vld [vmem:[#allocation5 + $0x34] sm:$0xf0] }
  0x61   :  { %1006 = vmatpush.bf16.msra.mxu3 %v12097_v20  ;;  %v7764_v25 = vld [vmem:[#allocation5 + $0x58] sm:$0xf0]  ;;  %v10753_v33 = vld [vmem:[#allocation5 + $0x2c] sm:$0xf]  ;;  %v12172_v34 = vor.u32 %v10755_v30, %v7746_v28  ;;  %v7730_v39 = vld [vmem:[#allocation5 + $0x8] sm:$0xf] }
  0x62   :  { %746 = vmatpush.bf16.msrb.mxu0 %v7527_v41  ;;  %v12121_v41 = vor.u32 %v10758_v38, %v7754_v36  ;;  %v7748_v36 = vld [vmem:[#allocation5 + $0x38] sm:$0xf0]  ;;  %v10751_v40 = vld [vmem:[#allocation5 + $0x14] sm:$0xf0]  ;;  %v10749_v43 = vld [vmem:[#allocation5 + $0xc] sm:$0xf] }
  0x63   :  { %991 = vmatpush.bf16.msra.mxu1 %v12079_v1  ;;  %v12175_v38 = vor.u32 %v10753_v33, %v7748_v36  ;;  %v12180_v44 = vor.u32 %v10751_v40, %v7730_v39  ;;  %s13108_s6 = sld [smem:[#allocation60_spill]] }
  0x65   :  { %1007 = vmatpush.bf16.msra.mxu3 %v12112_v31 }
  0x66   :  { %747 = vmatpush.bf16.msrb.mxu0 %v7511_v48  ;;  %v7812_v48 = vld [vmem:[#allocation5 + $0xb8] sm:$0xf0] }
  0x67   :  { %992 = vmatpush.bf16.msra.mxu1 %v12085_v10  ;;  %v12128_v51 = vor.u32 %v10769_v45, %v7812_v48  ;;  %v7732_v45 = vld [vmem:[#allocation5 + $0x18] sm:$0xf0] }
  0x68   :  { %v12183_v48 = vor.u32 %v10749_v43, %v7732_v45 }
  0x69   :  { %584 = vmatmul.bf16.gmra.mxu0 %v12045_v47  ;;  %1008 = vmatpush.bf16.msra.mxu3 %v12123_v42 }
  0x6a   :  { %1016 = vmatpush.bf16.msra.mxu0 %v12099_v21 }
  0x6b   :  { %642 = vmatmul.bf16.gmra.mxu2 %v12045_v47  ;;  %993 = vmatpush.bf16.msra.mxu1 %v12095_v15 }
  0x6d   :  { %1009 = vmatpush.bf16.msra.mxu3 %v12135_v63 }
  0x6e   :  { %7707 = vmatmul.msk.bf16.gmra.mxu1 %vm553_vm0, %v12055_v52  ;;  %1017 = vmatpush.bf16.msra.mxu0 %v12114_v32 }
  0x70   :  { %7711 = vmatmul.msk.bf16.gmra.mxu3 %vm553_vm0, %v12055_v52 }
  0x71   :  { %1010 = vmatpush.bf16.msra.mxu3 %v12151_v16 }
  0x72   :  { %1018 = vmatpush.bf16.msra.mxu0 %v12126_v46 }
  0x76   :  { %1019 = vmatpush.bf16.msra.mxu0 %v12138_v0 }
  0x79   :  { %589 = vmatmul.bf16.gmra.mxu0 %v12067_v55 }
  0x7b   :  { %647 = vmatmul.bf16.gmra.mxu2 %v12067_v55 }
  0x7e   :  { %690 = vmatmul.bf16.vlgmr.msrb.gmra.mxu1 %v12001_v29 }
  0x80   :  { %7712 = vmatmul.msk.bf16.vlgmr.msrb.gmra.mxu3 %vm553_vm0, %v11989_v3 }
  0x81   :  { %1123 = vmatpush.bf16.msrb.mxu3 %v12076_v61 }
  0x85   :  { %1124 = vmatpush.bf16.msrb.mxu3 %v12082_v4 }
  0x89   :  { %748 = vmatmul.bf16.vlgmr.msrb.gmra.mxu0 %v12001_v29  ;;  %v12102_v29 = vor.u32 %v10777_v22, %v7844_v23  ;;  %v12156_v22 = vor.u32 %v10761_v18, %v7780_v19  ;;  %v10759_v23 = vld [vmem:[#allocation5 + $0x54] sm:$0xf0]  ;;  %1125 = vmatpush.bf16.msrb.mxu3 %v12088_v11 }
  0x8b   :  { %7716 = vmatmul.msk.bf16.vlgmr.msrb.gmra.mxu2 %vm553_vm0, %v11989_v3  ;;  %v7770_v3 = vld [vmem:[#allocation5 + $0x60] sm:$0xf] }
  0x8c   :  { %1029 = vmatpush.bf16.msra.mxu2 %v12102_v29  ;;  %v12108_v26 = vor.u32 %v10762_v24, %v7770_v3  ;;  %v10757_v3 = vld [vmem:[#allocation5 + $0x4c] sm:$0xf] }
  0x8d   :  { %v12167_v27 = vor.u32 %v10757_v3, %v7764_v25  ;;  %1126 = vmatpush.bf16.msrb.mxu3 %v12097_v20 }
  0x8e   :  { %695 = vmatmul.bf16.gmra.mxu1 %v12023_v9 }
  0x8f   :  { %994 = vmatpush.bf16.msra.mxu1 %v12108_v26 }
  0x90   :  { %7713 = vmatmul.msk.bf16.gmra.mxu3 %vm553_vm0, %v12011_v35  ;;  %1030 = vmatpush.bf16.msra.mxu2 %v12117_v37 }
  0x91   :  { %1127 = vmatpush.bf16.msrb.mxu3 %v12112_v31 }
  0x93   :  { %995 = vmatpush.bf16.msra.mxu1 %v12121_v41 }
  0x94   :  { %1031 = vmatpush.bf16.msra.mxu2 %v12128_v51 }
  0x95   :  { %1128 = vmatpush.bf16.msrb.mxu3 %v12123_v42 }
  0x97   :  { %996 = vmatpush.bf16.msra.mxu1 %v12131_v57 }
  0x98   :  { %1032 = vmatpush.bf16.msra.mxu2 %v12140_v2 }
  0x99   :  { %753 = vmatmul.bf16.gmra.mxu0 %v12023_v9  ;;  %v12153_v9 = vor.u32 %v10763_v14, %v7778_v13  ;;  %1129 = vmatpush.bf16.msrb.mxu3 %v12135_v63 }
  0x9b   :  { %7717 = vmatmul.msk.bf16.gmra.mxu2 %vm553_vm0, %v12011_v35  ;;  %997 = vmatpush.bf16.msra.mxu1 %v12148_v8  ;;  %v7762_v35 = vld [vmem:[#allocation5 + $0x48] sm:$0xf] }
  0x9c   :  { %1020 = vmatpush.bf16.msra.mxu0 %v12153_v9  ;;  %v12162_v24 = vor.u32 %v10759_v23, %v7762_v35  ;;  %1033 = vmatpush.bf16.msra.mxu2 %v12156_v22 }
  0x9d   :  { %1130 = vmatpush.bf16.msrb.mxu3 %v12151_v16 }
  0x9e   :  { %700 = vmatmul.bf16.gmra.mxu1 %v12045_v47 }
  0x9f   :  { %1110 = vmatpush.bf16.msrb.mxu1 %v12072_v59 }
  0xa0   :  { %7714 = vmatmul.msk.bf16.gmra.mxu3 %vm553_vm0, %v12033_v17  ;;  %1021 = vmatpush.bf16.msra.mxu0 %v12162_v24 }
  0xa1   :  { %1034 = vmatpush.bf16.msra.mxu2 %v12167_v27 }
  0xa3   :  { %1111 = vmatpush.bf16.msrb.mxu1 %v12079_v1 }
  0xa4   :  { %1022 = vmatpush.bf16.msra.mxu0 %v12172_v34 }
  0xa5   :  { %1035 = vmatpush.bf16.msra.mxu2 %v12175_v38 }
  0xa7   :  { %1112 = vmatpush.bf16.msrb.mxu1 %v12085_v10 }
  0xa8   :  { %1023 = vmatpush.bf16.msra.mxu0 %v12180_v44 }
  0xa9   :  { %758 = vmatmul.bf16.gmra.mxu0 %v12045_v47  ;;  %1036 = vmatpush.bf16.msra.mxu2 %v12183_v48  ;;  %v11836_v47 = vmov 0  }
  0xab   :  { %1113 = vmatpush.bf16.msrb.mxu1 %v12095_v15  ;;  %7718 = vmatmul.msk.bf16.gmra.mxu2 %vm553_vm0, %v12033_v17 }
  0xac   :  { %1136 = vmatpush.bf16.msrb.mxu0 %v12099_v21 }
  0xad   :  { %1149 = vmatpush.bf16.msrb.mxu2 %v12102_v29 }
  0xae   :  { %705 = vmatmul.bf16.gmra.mxu1 %v12067_v55 }
  0xaf   :  { %1114 = vmatpush.bf16.msrb.mxu1 %v12108_v26 }
  0xb0   :  { %7715 = vmatmul.msk.bf16.gmra.mxu3 %vm553_vm0, %v12055_v52  ;;  %1137 = vmatpush.bf16.msrb.mxu0 %v12114_v32 }
  0xb1   :  { %1150 = vmatpush.bf16.msrb.mxu2 %v12117_v37 }
  0xb3   :  { %1115 = vmatpush.bf16.msrb.mxu1 %v12121_v41 }
  0xb4   :  { %1138 = vmatpush.bf16.msrb.mxu0 %v12126_v46 }
  0xb5   :  { %1151 = vmatpush.bf16.msrb.mxu2 %v12128_v51 }
  0xb7   :  { %1116 = vmatpush.bf16.msrb.mxu1 %v12131_v57 }
  0xb8   :  { %1139 = vmatpush.bf16.msrb.mxu0 %v12138_v0 }
  0xb9   :  { %1152 = vmatpush.bf16.msrb.mxu2 %v12140_v2  ;;  %763 = vmatmul.bf16.gmra.mxu0 %v12067_v55  ;;  %v12221_v55 = vld [vmem:[%s13008_s4] sm:$0xf] }
  0xba   :  { %v12229_v50 = vperm.slane %v12221_v55, 0  ;;  %v12245_v60 = vperm.slane %v12221_v55, 1 }
  0xbb   :  { %1117 = vmatpush.bf16.msrb.mxu1 %v12148_v8  ;;  %7719 = vmatmul.msk.bf16.gmra.mxu2 %vm553_vm0, %v12055_v52  ;;  %v604_v17 = vpop.f32.mrf.mxu1 }
  0xbc   :  { %1140 = vmatpush.bf16.msrb.mxu0 %v12153_v9 }
  0xbd   :  { %1153 = vmatpush.bf16.msrb.mxu2 %v12156_v22 }
  0xbe   :  { %998 = vmatmul.bf16.vlgmr.msra.gmra.mxu1 %v11836_v47 }
  0xbf   :  { %1230 = vmatpush.bf16.msra.mxu1 %v12072_v59 }
  0xc0   :  { %1011 = vmatmul.bf16.vlgmr.msra.gmra.mxu3 %v11836_v47  ;;  %1141 = vmatpush.bf16.msrb.mxu0 %v12162_v24 }
  0xc1   :  { %1154 = vmatpush.bf16.msrb.mxu2 %v12167_v27  ;;  %1243 = vmatpush.bf16.msra.mxu3 %v12076_v61 }
  0xc3   :  { %v662_v52 = vpop.f32.mrf.mxu3  ;;  %v12226_v49 = vpop.f32.mrf.mxu1  ;;  %1231 = vmatpush.bf16.msra.mxu1 %v12079_v1 }
  0xc4   :  { %1142 = vmatpush.bf16.msrb.mxu0 %v12172_v34 }
  0xc5   :  { %1155 = vmatpush.bf16.msrb.mxu2 %v12175_v38  ;;  %1244 = vmatpush.bf16.msra.mxu3 %v12082_v4 }
  0xc6   :  { %v575_v53 = vpop.f32.mrf.mxu0 }
  0xc7   :  { %v576_v54 = vadd.f32 %v575_v53, %v12229_v50  ;;  %1232 = vmatpush.bf16.msra.mxu1 %v12085_v10 }
  0xc8   :  { %1143 = vmatpush.bf16.msrb.mxu0 %v12180_v44 }
  0xc9   :  { %1156 = vmatpush.bf16.msrb.mxu2 %v12183_v48  ;;  %1024 = vmatmul.bf16.vlgmr.msra.gmra.mxu0 %v11836_v47  ;;  %v12239_v56 = vadd.f32 %v604_v17, %v576_v54 }
  0xca   :  { %1245 = vmatpush.bf16.msra.mxu3 %v12088_v11 }
  0xcb   :  { %v12242_v58 = vpop.f32.mrf.mxu3  ;;  %1037 = vmatmul.bf16.vlgmr.msra.gmra.mxu2 %v11836_v47  ;;  %v609_v62 = vpop.f32.mrf.mxu1  ;;  %1233 = vmatpush.bf16.msra.mxu1 %v12095_v15 }
  0xcc   :  { %1256 = vmatpush.bf16.msra.mxu0 %v12099_v21 }
  0xcd   :  { %1269 = vmatpush.bf16.msra.mxu2 %v12102_v29 }
  0xce   :  { %v633_v5 = vpop.f32.mrf.mxu2  ;;  %1246 = vmatpush.bf16.msra.mxu3 %v12097_v20  ;;  %v12252_v7 = vpop.f32.mrf.mxu0 }
  0xcf   :  { %v634_v6 = vadd.f32 %v633_v5, %v12245_v60  ;;  %1234 = vmatpush.bf16.msra.mxu1 %v12108_v26 }
  0xd0   :  { %1257 = vmatpush.bf16.msra.mxu0 %v12114_v32 }
  0xd1   :  { %1270 = vmatpush.bf16.msra.mxu2 %v12117_v37  ;;  %v12256_v12 = vadd.f32 %v662_v52, %v634_v6 }
  0xd2   :  { %1247 = vmatpush.bf16.msra.mxu3 %v12112_v31 }
  0xd3   :  { %v667_v13 = vpop.f32.mrf.mxu3  ;;  %v12261_v14 = vpop.f32.mrf.mxu1  ;;  %1235 = vmatpush.bf16.msra.mxu1 %v12121_v41 }
  0xd4   :  { %1258 = vmatpush.bf16.msra.mxu0 %v12126_v46  ;;  %13030 = vst [vmem:[#allocation21_spill] sm:$0xff] %v12261_v14 }
  0xd5   :  { %1271 = vmatpush.bf16.msra.mxu2 %v12128_v51 }
  0xd6   :  { %v12265_v18 = vpop.f32.mrf.mxu2  ;;  %1248 = vmatpush.bf16.msra.mxu3 %v12123_v42  ;;  %v580_v19 = vpop.f32.mrf.mxu0 }
  0xd7   :  { %v581_v35 = vadd.f32 %v580_v19, %v12229_v50  ;;  %1236 = vmatpush.bf16.msra.mxu1 %v12131_v57 }
  0xd8   :  { %1259 = vmatpush.bf16.msra.mxu0 %v12138_v0 }
  0xd9   :  { %1272 = vmatpush.bf16.msra.mxu2 %v12140_v2  ;;  %v12273_v23 = vadd.f32 %v609_v62, %v581_v35 }
  0xda   :  { %1249 = vmatpush.bf16.msra.mxu3 %v12135_v63 }
  0xdb   :  { %13031 = vst [vmem:[#allocation22_spill] sm:$0xff] %v12273_v23  ;;  %v12275_v3 = vpop.f32.mrf.mxu3  ;;  %v614_v25 = vpop.f32.mrf.mxu1  ;;  %1237 = vmatpush.bf16.msra.mxu1 %v12148_v8 }
  0xdc   :  { %13032 = vst [vmem:[#allocation23_spill] sm:$0xff] %v12275_v3  ;;  %1260 = vmatpush.bf16.msra.mxu0 %v12153_v9 }
  0xdd   :  { %1273 = vmatpush.bf16.msra.mxu2 %v12156_v22 }
  0xde   :  { %v638_v28 = vpop.f32.mrf.mxu2  ;;  %1250 = vmatpush.bf16.msra.mxu3 %v12151_v16  ;;  %v12282_v33 = vpop.f32.mrf.mxu0 }
  0xdf   :  { %v639_v30 = vadd.f32 %v638_v28, %v12245_v60  ;;  %13033 = vst [vmem:[#allocation24_spill] sm:$0xff] %v12282_v33 }
  0xe0   :  { %1261 = vmatpush.bf16.msra.mxu0 %v12162_v24 }
  0xe1   :  { %1274 = vmatpush.bf16.msra.mxu2 %v12167_v27  ;;  %v12286_v36 = vadd.f32 %v667_v13, %v639_v30 }
  0xe3   :  { %13034 = vst [vmem:[#allocation25_spill] sm:$0xff] %v12286_v36  ;;  %v672_v39 = vpop.f32.mrf.mxu3  ;;  %v12289_v40 = vpop.f32.mrf.mxu1 }
  0xe4   :  { %1262 = vmatpush.bf16.msra.mxu0 %v12172_v34  ;;  %13035 = vst [vmem:[#allocation26_spill] sm:$0xff] %v12289_v40 }
  0xe5   :  { %1275 = vmatpush.bf16.msra.mxu2 %v12175_v38 }
  0xe6   :  { %v12292_v43 = vpop.f32.mrf.mxu2  ;;  %v585_v45 = vpop.f32.mrf.mxu0 }
  0xe7   :  { %13036 = vst [vmem:[#allocation27_spill] sm:$0xff] %v12292_v43  ;;  %v586_v17 = vadd.f32 %v585_v45, %v12229_v50 }
  0xe8   :  { %1263 = vmatpush.bf16.msra.mxu0 %v12180_v44 }
  0xe9   :  { %1276 = vmatpush.bf16.msra.mxu2 %v12183_v48  ;;  %v12297_v47 = vadd.f32 %v614_v25, %v586_v17  ;;  %v12316_v17 = vperm.slane %v12221_v55, 2 }
  0xeb   :  { %13037 = vst [vmem:[#allocation28_spill] sm:$0xff] %v12297_v47  ;;  %v12299_v52 = vpop.f32.mrf.mxu3  ;;  %v619_v53 = vpop.f32.mrf.mxu1 }
  0xec   :  { %13038 = vst [vmem:[#allocation29_spill] sm:$0xff] %v12299_v52 }
  0xee   :  { %v643_v54 = vpop.f32.mrf.mxu2  ;;  %v12302_v5 = vpop.f32.mrf.mxu0 }
  0xef   :  { %v644_v62 = vadd.f32 %v643_v54, %v12245_v60  ;;  %13039 = vst [vmem:[#allocation30_spill] sm:$0xff] %v12302_v5 }
  0xf1   :  { %v12304_v6 = vadd.f32 %v672_v39, %v644_v62 }
  0xf3   :  { %13040 = vst [vmem:[#allocation31_spill] sm:$0xff] %v12304_v6  ;;  %v677_v13 = vpop.f32.mrf.mxu3  ;;  %v12306_v19 = vpop.f32.mrf.mxu1 }
  0xf4   :  { %13041 = vst [vmem:[#allocation32_spill] sm:$0xff] %v12306_v19 }
  0xf6   :  { %v12308_v35 = vpop.f32.mrf.mxu2  ;;  %v590_v28 = vpop.f32.mrf.mxu0 }
  0xf7   :  { %13042 = vst [vmem:[#allocation33_spill] sm:$0xff] %v12308_v35  ;;  %v591_v30 = vadd.f32 %v590_v28, %v12229_v50 }
  0xf9   :  { %v12311_v25 = vadd.f32 %v619_v53, %v591_v30 }
  0xfb   :  { %13043 = vst [vmem:[#allocation34_spill] sm:$0xff] %v12311_v25  ;;  %v12313_v45 = vpop.f32.mrf.mxu3  ;;  %v691_v54 = vpop.f32.mrf.mxu1 }
  0xfc   :  { %13044 = vst [vmem:[#allocation35_spill] sm:$0xff] %v12313_v45  ;;  %v692_v19 = vadd.f32 %v691_v54, %v12316_v17 }
  0xfe   :  { %v648_v52 = vpop.f32.mrf.mxu2  ;;  %v12319_v62 = vpop.f32.mrf.mxu0 }
  0xff   :  { %v649_v39 = vadd.f32 %v648_v52, %v12245_v60  ;;  %13045 = vst [vmem:[#allocation36_spill] sm:$0xff] %v12319_v62 }
 0x101   :  { %v12322_v40 = vadd.f32 %v677_v13, %v649_v39 }
 0x103   :  { %13046 = vst [vmem:[#allocation37_spill] sm:$0xff] %v12322_v40  ;;  %v720_v35 = vpop.f32.mrf.mxu3  ;;  %v12326_v53 = vpop.f32.mrf.mxu1 }
 0x104   :  { %v12324_v5 = vadd.f32 %v720_v35, %v692_v19  ;;  %13047 = vst [vmem:[#allocation38_spill] sm:$0xff] %v12326_v53  ;;  %v12340_v19 = vperm.slane %v12221_v55, 3 }
 0x106   :  { %v12328_v28 = vpop.f32.mrf.mxu2  ;;  %v749_v30 = vpop.f32.mrf.mxu0 }
 0x107   :  { %13048 = vst [vmem:[#allocation39_spill] sm:$0xff] %v12328_v28 }
 0x10b   :  { %v12330_v45 = vpop.f32.mrf.mxu3  ;;  %v696_v25 = vpop.f32.mrf.mxu1 }
 0x10c   :  { %13049 = vst [vmem:[#allocation40_spill] sm:$0xff] %v12330_v45  ;;  %v697_v6 = vadd.f32 %v696_v25, %v12316_v17 }
 0x10e   :  { %v778_v52 = vpop.f32.mrf.mxu2  ;;  %v12333_v47 = vpop.f32.mrf.mxu0 }
 0x113   :  { %v725_v62 = vpop.f32.mrf.mxu3  ;;  %v12337_v13 = vpop.f32.mrf.mxu1 }
 0x114   :  { %v12335_v54 = vadd.f32 %v725_v62, %v697_v6  ;;  %13051 = vst [vmem:[#allocation42_spill] sm:$0xff] %v12337_v13 }
 0x116   :  { %13050 = vst [vmem:[#allocation41_spill] sm:$0xff] %v12335_v54  ;;  %v12342_v35 = vpop.f32.mrf.mxu2  ;;  %v754_v39 = vpop.f32.mrf.mxu0 }
 0x117   :  { %v755_v28 = vadd.f32 %v754_v39, %v12340_v19 }
 0x11b   :  { %v12345_v40 = vpop.f32.mrf.mxu3  ;;  %v701_v3 = vpop.f32.mrf.mxu1 }
 0x11c   :  { %13052 = vst [vmem:[#allocation43_spill] sm:$0xff] %v12345_v40  ;;  %v702_v25 = vadd.f32 %v701_v3, %v12316_v17 }
 0x11e   :  { %v783_v43 = vpop.f32.mrf.mxu2  ;;  %v12350_v6 = vpop.f32.mrf.mxu0 }
 0x11f   :  { %v12348_v14 = vadd.f32 %v783_v43, %v755_v28  ;;  %13054 = vst [vmem:[#allocation45_spill] sm:$0xff] %v12350_v6 }
 0x121   :  { %13053 = vst [vmem:[#allocation44_spill] sm:$0xff] %v12348_v14 }
 0x123   :  { %v730_v62 = vpop.f32.mrf.mxu3  ;;  %v12354_v55 = vpop.f32.mrf.mxu1 }
 0x124   :  { %v12352_v13 = vadd.f32 %v730_v62, %v702_v25  ;;  %13056 = vst [vmem:[#allocation47_spill] sm:$0xff] %v12354_v55 }
 0x126   :  { %13055 = vst [vmem:[#allocation46_spill] sm:$0xff] %v12352_v13  ;;  %v12356_v33 = vpop.f32.mrf.mxu2  ;;  %v759_v54 = vpop.f32.mrf.mxu0 }
 0x127   :  { %13057 = vst [vmem:[#allocation48_spill] sm:$0xff] %v12356_v33  ;;  %v760_v39 = vadd.f32 %v759_v54, %v12340_v19 }
 0x12b   :  { %v12359_v36 = vpop.f32.mrf.mxu3  ;;  %v706_v40 = vpop.f32.mrf.mxu1 }
 0x12c   :  { %13058 = vst [vmem:[#allocation49_spill] sm:$0xff] %v12359_v36  ;;  %v707_v3 = vadd.f32 %v706_v40, %v12316_v17 }
 0x12e   :  { %v788_v23 = vpop.f32.mrf.mxu2  ;;  %v12364_v28 = vpop.f32.mrf.mxu0 }
 0x12f   :  { %v12362_v43 = vadd.f32 %v788_v23, %v760_v39  ;;  %13060 = vst [vmem:[#allocation51_spill] sm:$0xff] %v12364_v28 }
 0x131   :  { %13059 = vst [vmem:[#allocation50_spill] sm:$0xff] %v12362_v43 }
 0x133   :  { %v735_v6 = vpop.f32.mrf.mxu3  ;;  %v12368_v62 = vpop.f32.mrf.mxu1 }
 0x134   :  { %v12366_v25 = vadd.f32 %v735_v6, %v707_v3  ;;  %13062 = vst [vmem:[#allocation53_spill] sm:$0xff] %v12368_v62 }
 0x136   :  { %13061 = vst [vmem:[#allocation52_spill] sm:$0xff] %v12366_v25  ;;  %v12370_v55 = vpop.f32.mrf.mxu2  ;;  %v764_v13 = vpop.f32.mrf.mxu0 }
 0x137   :  { %13063 = vst [vmem:[#allocation54_spill] sm:$0xff] %v12370_v55  ;;  %v765_v54 = vadd.f32 %v764_v13, %v12340_v19 }
 0x13b   :  { %v12373_v33 = vpop.f32.mrf.mxu3  ;;  %v999_v36 = vpop.f32.mrf.mxu1 }
 0x13c   :  { %13064 = vst [vmem:[#allocation55_spill] sm:$0xff] %v12373_v33  ;;  %v1042_v40 = vadd.f32 %v999_v36, %v12239_v56  ;;  %v750_v56 = vadd.f32 %v749_v30, %v12340_v19 }
 0x13e   :  { %v793_v14 = vpop.f32.mrf.mxu2  ;;  %v7848_v23 = vmul.f32 -1.442695, %v1042_v40  ;;  %v12378_v28 = vpop.f32.mrf.mxu0 }
 0x13f   :  { %v12376_v39 = vadd.f32 %v793_v14, %v765_v54  ;;  %13066 = vst [vmem:[#allocation57_spill] sm:$0xff] %v12378_v28  ;;  %v779_v14 = vadd.f32 %v778_v52, %v750_v56 }
 0x140   :  { %11496 = vpow2.f32 %v7848_v23 }
 0x141   :  { %13065 = vst [vmem:[#allocation56_spill] sm:$0xff] %v12376_v39 }
 0x143   :  { %v1012_v6 = vpop.f32.mrf.mxu3  ;;  %v1001_v62 = vpop.f32.mrf.mxu1 }
 0x144   :  { %v1043_v3 = vadd.f32 %v1012_v6, %v12256_v12 }
 0x146   :  { %v7849_v25 = vmul.f32 -1.442695, %v1043_v3  ;;  %v12381_v55 = vpop.f32.mrf.mxu2  ;;  %v11497_v13 = vpop.eup %11496 }
 0x147   :  { %13067 = vst [vmem:[#allocation58_spill] sm:$0xff] %v12381_v55  ;;  %v1025_v43 = vpop.f32.mrf.mxu0  ;;  %v1049_v33 = vadd.f32 1.0, %v11497_v13 }
 0x148   :  { %11498 = vpow2.f32 %v7849_v25  ;;  %v1044_v23 = vadd.f32 %v1025_v43, %v12324_v5 }
 0x149   :  { %11500 = vrcp.f32 %v1049_v33  ;;  %v1061_v13 = vand.u32 2147483648, %v1049_v33  ;;  %v1059_v30 = vand.u32 2147483647, %v1049_v33  ;;  %vm1055_vm2 = vweird.f32 %v1049_v33 }
 0x14b   :  { %v1014_v36 = vpop.f32.mrf.mxu3  ;;  %v1062_v5 = vor.u32 1.1754944e-38, %v1061_v13  ;;  %vm1060_vm4 = vcmp.eq.f32.partialorder %v1059_v30, 8.507059e+37 }
 0x14e   :  { %v11499_v54 = vpop.eup %11498  ;;  %v1038_v40 = vpop.f32.mrf.mxu2 }
 0x14f   :  { %v1068_v28 = vadd.f32 1.0, %v11499_v54  ;;  %v1045_v39 = vadd.f32 %v1038_v40, %v779_v14  ;;  %v1027_v12 = vpop.f32.mrf.mxu0  ;;  %v11501_v62 = vpop.eup %11500 }
 0x150   :  { %v1051_v6 = vmul.f32 %v11501_v62, %v1049_v33  ;;  %vm1056_vm1 = vweird.f32 %v11501_v62 }
 0x151   :  { %11502 = vrcp.f32 %v1068_v28  ;;  %v7850_v3 = vmul.f32 -1.442695, %v1045_v39  ;;  %vm1057_vm3 = vmor %vm1055_vm2, %vm1056_vm1  ;;  %vm1074_vm6 = vweird.f32 %v1068_v28 }
 0x152   :  { %v1052_v55 = vsub.f32 1.0, %v1051_v6  ;;  %11504 = vtanh.f32 %v1044_v23  ;;  %v1080_v6 = vand.u32 2147483648, %v1068_v28 }
 0x153   :  { %11506 = vpow2.f32 %v7850_v3 }
 0x154   :  { %v1053_v25 = vmul.f32 %v11501_v62, %v1052_v55  ;;  %v1078_v55 = vand.u32 2147483647, %v1068_v28 }
 0x156   :  { %v1040_v36 = vpop.f32.mrf.mxu2  ;;  %v1054_v56 = vadd.f32 %v11501_v62, %v1053_v25  ;;  %v1081_v25 = vor.u32 1.1754944e-38, %v1080_v6  ;;  %vm1079_vm8 = vcmp.eq.f32.partialorder %v1078_v55, 8.507059e+37  ;;  %v636_v55 = vadd.f32 %v12265_v18, %v12245_v60 }
 0x157   :  { %v11503_v52 = vpop.eup %11502 }
 0x158   :  { %v1070_v54 = vmul.f32 %v11503_v52, %v1068_v28  ;;  %v11505_v43 = vpop.eup %11504  ;;  %v1058_v14 = vsel %vm1057_vm3, %v11501_v62, %v1054_v56  ;;  %vm1075_vm5 = vweird.f32 %v11503_v52 }
 0x159   :  { %v11507_v40 = vpop.eup %11506  ;;  %v1063_v39 = vsel %vm1060_vm4, %v1062_v5, %v1058_v14  ;;  %vm1076_vm7 = vmor %vm1074_vm6, %vm1075_vm5 }
 0x15a   :  { %v1071_v12 = vsub.f32 1.0, %v1070_v54  ;;  %v1105_v23 = vmul.f32 %v11505_v43, %v1063_v39  ;;  %v1088_v45 = vadd.f32 1.0, %v11507_v40 }
 0x15c   :  { %v1072_v3 = vmul.f32 %v11503_v52, %v1071_v12  ;;  %11508 = vrcp.f32 %v1088_v45  ;;  %v1100_v5 = vand.u32 2147483648, %v1088_v45  ;;  %v1098_v14 = vand.u32 2147483647, %v1088_v45 }
 0x15d   :  { %vm1094_vm10 = vweird.f32 %v1088_v45 }
 0x15e   :  { %v1073_v36 = vadd.f32 %v11503_v52, %v1072_v3  ;;  %v1101_v28 = vor.u32 1.1754944e-38, %v1100_v5  ;;  %vm1099_vm12 = vcmp.eq.f32.partialorder %v1098_v14, 8.507059e+37 }
 0x160   :  { %v1077_v33 = vsel %vm1076_vm7, %v11503_v52, %v1073_v36 }
 0x161   :  { %v1082_v13 = vsel %vm1079_vm8, %v1081_v25, %v1077_v33  ;;  %v752_v33 = vadd.f32 %v12333_v47, %v12340_v19 }
 0x162   :  { %v1104_v53 = vmul.f32 0.0, %v1082_v13  ;;  %v11509_v62 = vpop.eup %11508 }
 0x163   :  { %v1090_v56 = vmul.f32 %v11509_v62, %v1088_v45  ;;  %vm1095_vm9 = vweird.f32 %v11509_v62  ;;  %v578_v45 = vadd.f32 %v12252_v7, %v12229_v50 }
 0x164   :  { %v12385_v30 = vadd.f32 %v1105_v23, %v1104_v53  ;;  %vm1096_vm11 = vmor %vm1094_vm10, %vm1095_vm9 }
 0x165   :  { %v1091_v54 = vsub.f32 1.0, %v1090_v56  ;;  %v607_v53 = vadd.f32 %v12226_v49, %v578_v45  ;;  %v781_v56 = vadd.f32 %v12342_v35, %v752_v33 }
 0x166   :  { %11510 = vtanh.f32 %v12385_v30 }
 0x167   :  { %v1092_v43 = vmul.f32 %v11509_v62, %v1091_v54 }
 0x169   :  { %v1093_v40 = vadd.f32 %v11509_v62, %v1092_v43 }
 0x16b   :  { %v1097_v52 = vsel %vm1096_vm11, %v11509_v62, %v1093_v40  ;;  %v665_v62 = vadd.f32 %v12242_v58, %v636_v55 }
 0x16c   :  { %v11511_v12 = vpop.eup %11510  ;;  %v1102_v39 = vsel %vm1099_vm12, %v1101_v28, %v1097_v52 }
 0x16d   :  { %v1108_v6 = vmul.f32 %v11511_v12, %v1102_v39  ;;  %v13068_v39 = vld [vmem:[#allocation38_spill] sm:$0xff] }
 0x16e   :  { %v694_v58 = vadd.f32 %v13068_v39, %v12316_v17 }
 0x16f   :  { %v1109_v3 = vpack.c.bf16 %v1108_v6, %v1108_v6 }
 0x171   :  { %1118 = vmatmul.bf16.vlgmr.msrb.gmra.mxu1 %v1109_v3  ;;  %1131 = vmatmul.bf16.vlgmr.msrb.gmra.mxu3 %v1109_v3 }
 0x172   :  { %1144 = vmatmul.bf16.vlgmr.msrb.gmra.mxu0 %v1109_v3  ;;  %1157 = vmatmul.bf16.vlgmr.msrb.gmra.mxu2 %v1109_v3  ;;  %v13069_v3 = vld [vmem:[#allocation40_spill] sm:$0xff] }
 0x173   :  { %1350 = vmatpush.bf16.msrb.mxu1 %v12072_v59  ;;  %1363 = vmatpush.bf16.msrb.mxu3 %v12076_v61  ;;  %v723_v45 = vadd.f32 %v13069_v3, %v694_v58 }
 0x174   :  { %1376 = vmatpush.bf16.msrb.mxu0 %v12099_v21  ;;  %1389 = vmatpush.bf16.msrb.mxu2 %v12102_v29 }
 0x177   :  { %1351 = vmatpush.bf16.msrb.mxu1 %v12079_v1  ;;  %1364 = vmatpush.bf16.msrb.mxu3 %v12082_v4 }
 0x178   :  { %1377 = vmatpush.bf16.msrb.mxu0 %v12114_v32  ;;  %1390 = vmatpush.bf16.msrb.mxu2 %v12117_v37 }
 0x17b   :  { %1352 = vmatpush.bf16.msrb.mxu1 %v12085_v10  ;;  %1365 = vmatpush.bf16.msrb.mxu3 %v12088_v11 }
 0x17c   :  { %1378 = vmatpush.bf16.msrb.mxu0 %v12126_v46  ;;  %1391 = vmatpush.bf16.msrb.mxu2 %v12128_v51 }
 0x17f   :  { %1353 = vmatpush.bf16.msrb.mxu1 %v12095_v15  ;;  %1366 = vmatpush.bf16.msrb.mxu3 %v12097_v20 }
 0x180   :  { %1379 = vmatpush.bf16.msrb.mxu0 %v12138_v0  ;;  %1392 = vmatpush.bf16.msrb.mxu2 %v12140_v2 }
 0x183   :  { %1354 = vmatpush.bf16.msrb.mxu1 %v12108_v26  ;;  %1367 = vmatpush.bf16.msrb.mxu3 %v12112_v31 }
 0x184   :  { %1380 = vmatpush.bf16.msrb.mxu0 %v12153_v9  ;;  %1393 = vmatpush.bf16.msrb.mxu2 %v12156_v22 }
 0x187   :  { %1355 = vmatpush.bf16.msrb.mxu1 %v12121_v41  ;;  %1368 = vmatpush.bf16.msrb.mxu3 %v12123_v42 }
 0x188   :  { %1381 = vmatpush.bf16.msrb.mxu0 %v12162_v24  ;;  %1394 = vmatpush.bf16.msrb.mxu2 %v12167_v27 }
 0x18b   :  { %1356 = vmatpush.bf16.msrb.mxu1 %v12131_v57  ;;  %1369 = vmatpush.bf16.msrb.mxu3 %v12135_v63 }
 0x18c   :  { %1382 = vmatpush.bf16.msrb.mxu0 %v12172_v34  ;;  %1395 = vmatpush.bf16.msrb.mxu2 %v12175_v38 }
 0x18f   :  { %1357 = vmatpush.bf16.msrb.mxu1 %v12148_v8  ;;  %1370 = vmatpush.bf16.msrb.mxu3 %v12151_v16 }
 0x190   :  { %1383 = vmatpush.bf16.msrb.mxu0 %v12180_v44  ;;  %1396 = vmatpush.bf16.msrb.mxu2 %v12183_v48 }
 0x1ee   :  { %v1119_v23 = vpop.f32.mrf.mxu1 }
 0x1ef   :  { %v1162_v36 = vadd.f32 %v1119_v23, %v607_v53  ;;  %v1145_v25 = vpop.f32.mrf.mxu0 }
 0x1f1   :  { %v7851_v13 = vmul.f32 -1.442695, %v1162_v36  ;;  %v1164_v36 = vadd.f32 %v1145_v25, %v723_v45 }
 0x1f3   :  { %11512 = vpow2.f32 %v7851_v13 }
 0x1f4   :  { %v1132_v54 = vpop.f32.mrf.mxu3 }
 0x1f5   :  { %v1163_v5 = vadd.f32 %v1132_v54, %v665_v62  ;;  %v1158_v7 = vpop.f32.mrf.mxu2 }
 0x1f6   :  { %v1165_v43 = vadd.f32 %v1158_v7, %v781_v56  ;;  %v1121_v49 = vpop.f32.mrf.mxu1 }
 0x1f7   :  { %v7852_v14 = vmul.f32 -1.442695, %v1163_v5  ;;  %v1147_v40 = vpop.f32.mrf.mxu0 }
 0x1f8   :  { %v7853_v28 = vmul.f32 -1.442695, %v1165_v43 }
 0x1f9   :  { %v11513_v18 = vpop.eup %11512  ;;  %11514 = vpow2.f32 %v7852_v14 }
 0x1fa   :  { %v1169_v12 = vadd.f32 1.0, %v11513_v18  ;;  %11516 = vpow2.f32 %v7853_v28 }
 0x1fc   :  { %11518 = vrcp.f32 %v1169_v12  ;;  %v1134_v47 = vpop.f32.mrf.mxu3  ;;  %v1181_v62 = vand.u32 2147483648, %v1169_v12  ;;  %v1179_v54 = vand.u32 2147483647, %v1169_v12  ;;  %vm1175_vm14 = vweird.f32 %v1169_v12 }
 0x1fd   :  { %v1160_v52 = vpop.f32.mrf.mxu2 }
 0x1fe   :  { %v1182_v14 = vor.u32 1.1754944e-38, %v1181_v62  ;;  %vm1180_vm0 = vcmp.eq.f32.partialorder %v1179_v54, 8.507059e+37 }
 0x1ff   :  { %v11515_v6 = vpop.eup %11514 }
 0x200   :  { %v11517_v35 = vpop.eup %11516  ;;  %v1188_v53 = vadd.f32 1.0, %v11515_v6 }
 0x201   :  { %v1208_v23 = vadd.f32 1.0, %v11517_v35 }
 0x202   :  { %v11519_v55 = vpop.eup %11518  ;;  %11520 = vrcp.f32 %v1188_v53  ;;  %v1200_v52 = vand.u32 2147483648, %v1188_v53  ;;  %v1198_v6 = vand.u32 2147483647, %v1188_v53  ;;  %vm1194_vm2 = vweird.f32 %v1188_v53 }
 0x203   :  { %v1171_v33 = vmul.f32 %v11519_v55, %v1169_v12  ;;  %11522 = vrcp.f32 %v1208_v23  ;;  %vm1176_vm13 = vweird.f32 %v11519_v55  ;;  %vm1214_vm6 = vweird.f32 %v1208_v23 }
 0x204   :  { %11524 = vtanh.f32 %v1164_v36  ;;  %vm1177_vm15 = vmor %vm1175_vm14, %vm1176_vm13  ;;  %v1201_v45 = vor.u32 1.1754944e-38, %v1200_v52  ;;  %vm1199_vm4 = vcmp.eq.f32.partialorder %v1198_v6, 8.507059e+37  ;;  %v1218_v54 = vand.u32 2147483647, %v1208_v23 }
 0x205   :  { %v1172_v13 = vsub.f32 1.0, %v1171_v33 }
 0x206   :  { %vm1219_vm8 = vcmp.eq.f32.partialorder %v1218_v54, 8.507059e+37 }
 0x207   :  { %v1173_v56 = vmul.f32 %v11519_v55, %v1172_v13 }
 0x208   :  { %v11521_v5 = vpop.eup %11520 }
 0x209   :  { %v11523_v7 = vpop.eup %11522  ;;  %v1174_v43 = vadd.f32 %v11519_v55, %v1173_v56  ;;  %v1190_v49 = vmul.f32 %v11521_v5, %v1188_v53  ;;  %vm1195_vm1 = vweird.f32 %v11521_v5  ;;  %v1220_v56 = vand.u32 2147483648, %v1208_v23 }
 0x20a   :  { %v1210_v40 = vmul.f32 %v11523_v7, %v1208_v23  ;;  %v11525_v18 = vpop.eup %11524  ;;  %vm1196_vm3 = vmor %vm1194_vm2, %vm1195_vm1  ;;  %vm1215_vm5 = vweird.f32 %v11523_v7  ;;  %v13070_v23 = vld [vmem:[#allocation22_spill] sm:$0xff] }
 0x20b   :  { %v1178_v28 = vsel %vm1177_vm15, %v11519_v55, %v1174_v43  ;;  %v1191_v25 = vsub.f32 1.0, %v1190_v49  ;;  %vm1216_vm7 = vmor %vm1214_vm6, %vm1215_vm5  ;;  %v1221_v53 = vor.u32 1.1754944e-38, %v1220_v56 }
 0x20c   :  { %v1183_v47 = vsel %vm1180_vm0, %v1182_v14, %v1178_v28  ;;  %v1211_v35 = vsub.f32 1.0, %v1210_v40 }
 0x20d   :  { %v1225_v39 = vmul.f32 %v11525_v18, %v1183_v47  ;;  %v1192_v58 = vmul.f32 %v11521_v5, %v1191_v25  ;;  %v13071_v47 = vld [vmem:[#allocation25_spill] sm:$0xff] }
 0x20e   :  { %v1212_v33 = vmul.f32 %v11523_v7, %v1211_v35 }
 0x20f   :  { %v1193_v3 = vadd.f32 %v11521_v5, %v1192_v58  ;;  %v13072_v58 = vld [vmem:[#allocation44_spill] sm:$0xff] }
 0x210   :  { %v1213_v62 = vadd.f32 %v11523_v7, %v1212_v33 }
 0x211   :  { %v1197_v12 = vsel %vm1196_vm3, %v11521_v5, %v1193_v3 }
 0x212   :  { %v1202_v36 = vsel %vm1199_vm4, %v1201_v45, %v1197_v12  ;;  %v1217_v43 = vsel %vm1216_vm7, %v11523_v7, %v1213_v62 }
 0x213   :  { %v1224_v55 = vmul.f32 %v1202_v36, %v12385_v30  ;;  %v1222_v5 = vsel %vm1219_vm8, %v1221_v53, %v1217_v43 }
 0x215   :  { %v12433_v13 = vadd.f32 %v1225_v39, %v1224_v55 }
 0x217   :  { %11526 = vtanh.f32 %v12433_v13 }
 0x21d   :  { %v11527_v49 = vpop.eup %11526 }
 0x21e   :  { %v1228_v14 = vmul.f32 %v11527_v49, %v1222_v5  ;;  %v13073_v5 = vld [vmem:[#allocation41_spill] sm:$0xff] }
 0x220   :  { %v1229_v40 = vpack.c.bf16 %v1228_v14, %v1228_v14 }
 0x222   :  { %1238 = vmatmul.bf16.vlgmr.msra.gmra.mxu1 %v1229_v40  ;;  %1251 = vmatmul.bf16.vlgmr.msra.gmra.mxu3 %v1229_v40 }
 0x223   :  { %1264 = vmatmul.bf16.vlgmr.msra.gmra.mxu0 %v1229_v40  ;;  %1277 = vmatmul.bf16.vlgmr.msra.gmra.mxu2 %v1229_v40 }
 0x224   :  { %1470 = vmatpush.bf16.msra.mxu1 %v12072_v59  ;;  %1483 = vmatpush.bf16.msra.mxu3 %v12076_v61 }
 0x225   :  { %1496 = vmatpush.bf16.msra.mxu0 %v12099_v21  ;;  %1509 = vmatpush.bf16.msra.mxu2 %v12102_v29 }
 0x228   :  { %1471 = vmatpush.bf16.msra.mxu1 %v12079_v1  ;;  %1484 = vmatpush.bf16.msra.mxu3 %v12082_v4 }
 0x229   :  { %1497 = vmatpush.bf16.msra.mxu0 %v12114_v32  ;;  %1510 = vmatpush.bf16.msra.mxu2 %v12117_v37 }
 0x22c   :  { %1472 = vmatpush.bf16.msra.mxu1 %v12085_v10  ;;  %1485 = vmatpush.bf16.msra.mxu3 %v12088_v11 }
 0x22d   :  { %1498 = vmatpush.bf16.msra.mxu0 %v12126_v46  ;;  %1511 = vmatpush.bf16.msra.mxu2 %v12128_v51 }
 0x230   :  { %1473 = vmatpush.bf16.msra.mxu1 %v12095_v15  ;;  %1486 = vmatpush.bf16.msra.mxu3 %v12097_v20 }
 0x231   :  { %1499 = vmatpush.bf16.msra.mxu0 %v12138_v0  ;;  %1512 = vmatpush.bf16.msra.mxu2 %v12140_v2 }
 0x234   :  { %1474 = vmatpush.bf16.msra.mxu1 %v12108_v26  ;;  %1487 = vmatpush.bf16.msra.mxu3 %v12112_v31 }
 0x235   :  { %1500 = vmatpush.bf16.msra.mxu0 %v12153_v9  ;;  %1513 = vmatpush.bf16.msra.mxu2 %v12156_v22 }
 0x238   :  { %1475 = vmatpush.bf16.msra.mxu1 %v12121_v41  ;;  %1488 = vmatpush.bf16.msra.mxu3 %v12123_v42 }
 0x239   :  { %1501 = vmatpush.bf16.msra.mxu0 %v12162_v24  ;;  %1514 = vmatpush.bf16.msra.mxu2 %v12167_v27 }
 0x23c   :  { %1476 = vmatpush.bf16.msra.mxu1 %v12131_v57  ;;  %1489 = vmatpush.bf16.msra.mxu3 %v12135_v63 }
 0x23d   :  { %1502 = vmatpush.bf16.msra.mxu0 %v12172_v34  ;;  %1515 = vmatpush.bf16.msra.mxu2 %v12175_v38 }
 0x240   :  { %1477 = vmatpush.bf16.msra.mxu1 %v12148_v8  ;;  %1490 = vmatpush.bf16.msra.mxu3 %v12151_v16 }
 0x241   :  { %1503 = vmatpush.bf16.msra.mxu0 %v12180_v44  ;;  %1516 = vmatpush.bf16.msra.mxu2 %v12183_v48 }
 0x29f   :  { %v1239_v30 = vpop.f32.mrf.mxu1 }
 0x2a0   :  { %v1282_v7 = vadd.f32 %v1239_v30, %v13070_v23  ;;  %v1265_v28 = vpop.f32.mrf.mxu0 }
 0x2a1   :  { %v1284_v14 = vadd.f32 %v1265_v28, %v13073_v5 }
 0x2a2   :  { %v7854_v25 = vmul.f32 -1.442695, %v1282_v7 }
 0x2a4   :  { %11528 = vpow2.f32 %v7854_v25 }
 0x2a5   :  { %v1252_v18 = vpop.f32.mrf.mxu3 }
 0x2a6   :  { %v1283_v52 = vadd.f32 %v1252_v18, %v13071_v47  ;;  %v1278_v39 = vpop.f32.mrf.mxu2 }
 0x2a7   :  { %v1285_v6 = vadd.f32 %v1278_v39, %v13072_v58  ;;  %v1241_v35 = vpop.f32.mrf.mxu1 }
 0x2a8   :  { %v7855_v3 = vmul.f32 -1.442695, %v1283_v52  ;;  %v1267_v45 = vpop.f32.mrf.mxu0 }
 0x2a9   :  { %v7856_v12 = vmul.f32 -1.442695, %v1285_v6 }
 0x2aa   :  { %v11529_v36 = vpop.eup %11528  ;;  %11530 = vpow2.f32 %v7855_v3 }
 0x2ab   :  { %v1289_v33 = vadd.f32 1.0, %v11529_v36  ;;  %11532 = vpow2.f32 %v7856_v12 }
 0x2ad   :  { %11534 = vrcp.f32 %v1289_v33  ;;  %v1254_v55 = vpop.f32.mrf.mxu3  ;;  %v1301_v23 = vand.u32 2147483648, %v1289_v33  ;;  %v1299_v25 = vand.u32 2147483647, %v1289_v33  ;;  %vm1295_vm10 = vweird.f32 %v1289_v33 }
 0x2ae   :  { %v1280_v62 = vpop.f32.mrf.mxu2 }
 0x2af   :  { %v1302_v58 = vor.u32 1.1754944e-38, %v1301_v23  ;;  %vm1300_vm12 = vcmp.eq.f32.partialorder %v1299_v25, 8.507059e+37 }
 0x2b0   :  { %v11531_v56 = vpop.eup %11530 }
 0x2b1   :  { %v11533_v54 = vpop.eup %11532  ;;  %v1308_v43 = vadd.f32 1.0, %v11531_v56 }
 0x2b2   :  { %v1328_v53 = vadd.f32 1.0, %v11533_v54 }
 0x2b3   :  { %v11535_v49 = vpop.eup %11534  ;;  %11536 = vrcp.f32 %v1308_v43  ;;  %v1320_v12 = vand.u32 2147483648, %v1308_v43  ;;  %v1318_v62 = vand.u32 2147483647, %v1308_v43  ;;  %vm1314_vm14 = vweird.f32 %v1308_v43 }
 0x2b4   :  { %v1291_v40 = vmul.f32 %v11535_v49, %v1289_v33  ;;  %11538 = vrcp.f32 %v1328_v53  ;;  %vm1296_vm9 = vweird.f32 %v11535_v49  ;;  %vm1334_vm2 = vweird.f32 %v1328_v53 }
 0x2b5   :  { %11540 = vtanh.f32 %v1284_v14  ;;  %vm1297_vm11 = vmor %vm1295_vm10, %vm1296_vm9  ;;  %v1321_v5 = vor.u32 1.1754944e-38, %v1320_v12  ;;  %vm1319_vm0 = vcmp.eq.f32.partialorder %v1318_v62, 8.507059e+37  ;;  %v1338_v25 = vand.u32 2147483647, %v1328_v53 }
 0x2b6   :  { %v1292_v30 = vsub.f32 1.0, %v1291_v40 }
 0x2b7   :  { %vm1339_vm4 = vcmp.eq.f32.partialorder %v1338_v25, 8.507059e+37 }
 0x2b8   :  { %v1293_v7 = vmul.f32 %v11535_v49, %v1292_v30 }
 0x2b9   :  { %v11537_v18 = vpop.eup %11536 }
 0x2ba   :  { %v11539_v47 = vpop.eup %11538  ;;  %v1294_v52 = vadd.f32 %v11535_v49, %v1293_v7  ;;  %v1310_v39 = vmul.f32 %v11537_v18, %v1308_v43  ;;  %vm1315_vm13 = vweird.f32 %v11537_v18  ;;  %v1340_v7 = vand.u32 2147483648, %v1328_v53 }
 0x2bb   :  { %v1330_v6 = vmul.f32 %v11539_v47, %v1328_v53  ;;  %v11541_v3 = vpop.eup %11540  ;;  %vm1316_vm15 = vmor %vm1314_vm14, %vm1315_vm13  ;;  %vm1335_vm1 = vweird.f32 %v11539_v47 }
 0x2bc   :  { %v1298_v35 = vsel %vm1297_vm11, %v11535_v49, %v1294_v52  ;;  %v1311_v28 = vsub.f32 1.0, %v1310_v39  ;;  %vm1336_vm3 = vmor %vm1334_vm2, %vm1335_vm1  ;;  %v1341_v43 = vor.u32 1.1754944e-38, %v1340_v7 }
 0x2bd   :  { %v1303_v45 = vsel %vm1300_vm12, %v1302_v58, %v1298_v35  ;;  %v1331_v56 = vsub.f32 1.0, %v1330_v6 }
 0x2be   :  { %v1345_v36 = vmul.f32 %v11541_v3, %v1303_v45  ;;  %v1312_v55 = vmul.f32 %v11537_v18, %v1311_v28  ;;  %v13076_v3 = vld [vmem:[#allocation27_spill] sm:$0xff] }
 0x2bf   :  { %v1332_v40 = vmul.f32 %v11539_v47, %v1331_v56  ;;  %v641_v45 = vadd.f32 %v13076_v3, %v12245_v60  ;;  %v13081_v3 = vld [vmem:[#allocation43_spill] sm:$0xff] }
 0x2c0   :  { %v1313_v54 = vadd.f32 %v11537_v18, %v1312_v55  ;;  %v13077_v55 = vld [vmem:[#allocation45_spill] sm:$0xff] }
 0x2c1   :  { %v1333_v23 = vadd.f32 %v11539_v47, %v1332_v40  ;;  %v757_v62 = vadd.f32 %v13077_v55, %v12340_v19 }
 0x2c2   :  { %v1317_v33 = vsel %vm1316_vm15, %v11537_v18, %v1313_v54  ;;  %v13078_v54 = vld [vmem:[#allocation23_spill] sm:$0xff] }
 0x2c3   :  { %v1322_v14 = vsel %vm1319_vm0, %v1321_v5, %v1317_v33  ;;  %v1337_v52 = vsel %vm1336_vm3, %v11539_v47, %v1333_v23  ;;  %v13075_v47 = vld [vmem:[#allocation21_spill] sm:$0xff]  ;;  %v670_v5 = vadd.f32 %v13078_v54, %v641_v45  ;;  %v13079_v33 = vld [vmem:[#allocation48_spill] sm:$0xff] }
 0x2c4   :  { %v1344_v49 = vmul.f32 %v1322_v14, %v12433_v13  ;;  %v1342_v18 = vsel %vm1339_vm4, %v1341_v43, %v1337_v52  ;;  %v13074_v13 = vld [vmem:[#allocation24_spill] sm:$0xff]  ;;  %v786_v14 = vadd.f32 %v13079_v33, %v757_v62 }
 0x2c5   :  { %v583_v53 = vadd.f32 %v13074_v13, %v12229_v50 }
 0x2c6   :  { %v12473_v30 = vadd.f32 %v1345_v36, %v1344_v49 }
 0x2c7   :  { %v612_v35 = vadd.f32 %v13075_v47, %v583_v53  ;;  %v13080_v53 = vld [vmem:[#allocation42_spill] sm:$0xff] }
 0x2c8   :  { %11542 = vtanh.f32 %v12473_v30  ;;  %v699_v47 = vadd.f32 %v13080_v53, %v12316_v17 }
 0x2ca   :  { %v728_v45 = vadd.f32 %v13081_v3, %v699_v47 }
 0x2ce   :  { %v11543_v39 = vpop.eup %11542 }
 0x2cf   :  { %v1348_v58 = vmul.f32 %v11543_v39, %v1342_v18 }
 0x2d1   :  { %v1349_v6 = vpack.c.bf16 %v1348_v58, %v1348_v58 }
 0x2d3   :  { %1358 = vmatmul.bf16.vlgmr.msrb.gmra.mxu1 %v1349_v6  ;;  %1371 = vmatmul.bf16.vlgmr.msrb.gmra.mxu3 %v1349_v6 }
 0x2d4   :  { %1384 = vmatmul.bf16.vlgmr.msrb.gmra.mxu0 %v1349_v6  ;;  %1397 = vmatmul.bf16.vlgmr.msrb.gmra.mxu2 %v1349_v6 }
 0x2d5   :  { %1590 = vmatpush.bf16.msrb.mxu1 %v12072_v59  ;;  %1603 = vmatpush.bf16.msrb.mxu3 %v12076_v61 }
 0x2d6   :  { %1616 = vmatpush.bf16.msrb.mxu0 %v12099_v21  ;;  %1629 = vmatpush.bf16.msrb.mxu2 %v12102_v29 }
 0x2d9   :  { %1591 = vmatpush.bf16.msrb.mxu1 %v12079_v1  ;;  %1604 = vmatpush.bf16.msrb.mxu3 %v12082_v4 }
 0x2da   :  { %1617 = vmatpush.bf16.msrb.mxu0 %v12114_v32  ;;  %1630 = vmatpush.bf16.msrb.mxu2 %v12117_v37 }
 0x2dd   :  { %1592 = vmatpush.bf16.msrb.mxu1 %v12085_v10  ;;  %1605 = vmatpush.bf16.msrb.mxu3 %v12088_v11 }
 0x2de   :  { %1618 = vmatpush.bf16.msrb.mxu0 %v12126_v46  ;;  %1631 = vmatpush.bf16.msrb.mxu2 %v12128_v51 }
 0x2e1   :  { %1593 = vmatpush.bf16.msrb.mxu1 %v12095_v15  ;;  %1606 = vmatpush.bf16.msrb.mxu3 %v12097_v20 }
 0x2e2   :  { %1619 = vmatpush.bf16.msrb.mxu0 %v12138_v0  ;;  %1632 = vmatpush.bf16.msrb.mxu2 %v12140_v2 }
 0x2e5   :  { %1594 = vmatpush.bf16.msrb.mxu1 %v12108_v26  ;;  %1607 = vmatpush.bf16.msrb.mxu3 %v12112_v31 }
 0x2e6   :  { %1620 = vmatpush.bf16.msrb.mxu0 %v12153_v9  ;;  %1633 = vmatpush.bf16.msrb.mxu2 %v12156_v22 }
 0x2e9   :  { %1595 = vmatpush.bf16.msrb.mxu1 %v12121_v41  ;;  %1608 = vmatpush.bf16.msrb.mxu3 %v12123_v42 }
 0x2ea   :  { %1621 = vmatpush.bf16.msrb.mxu0 %v12162_v24  ;;  %1634 = vmatpush.bf16.msrb.mxu2 %v12167_v27 }
 0x2ed   :  { %1596 = vmatpush.bf16.msrb.mxu1 %v12131_v57  ;;  %1609 = vmatpush.bf16.msrb.mxu3 %v12135_v63 }
 0x2ee   :  { %1622 = vmatpush.bf16.msrb.mxu0 %v12172_v34  ;;  %1635 = vmatpush.bf16.msrb.mxu2 %v12175_v38 }
 0x2f1   :  { %1597 = vmatpush.bf16.msrb.mxu1 %v12148_v8  ;;  %1610 = vmatpush.bf16.msrb.mxu3 %v12151_v16 }
 0x2f2   :  { %1623 = vmatpush.bf16.msrb.mxu0 %v12180_v44  ;;  %1636 = vmatpush.bf16.msrb.mxu2 %v12183_v48 }
 0x350   :  { %v1359_v28 = vpop.f32.mrf.mxu1 }
 0x351   :  { %v1402_v12 = vadd.f32 %v1359_v28, %v612_v35  ;;  %v1385_v36 = vpop.f32.mrf.mxu0 }
 0x353   :  { %v7857_v56 = vmul.f32 -1.442695, %v1402_v12 }
 0x355   :  { %11544 = vpow2.f32 %v7857_v56  ;;  %v1404_v56 = vadd.f32 %v1385_v36, %v728_v45 }
 0x356   :  { %v1372_v40 = vpop.f32.mrf.mxu3 }
 0x357   :  { %v1403_v49 = vadd.f32 %v1372_v40, %v670_v5  ;;  %v1398_v23 = vpop.f32.mrf.mxu2 }
 0x358   :  { %v1405_v7 = vadd.f32 %v1398_v23, %v786_v14  ;;  %v1361_v25 = vpop.f32.mrf.mxu1 }
 0x359   :  { %v7858_v52 = vmul.f32 -1.442695, %v1403_v49  ;;  %v1387_v43 = vpop.f32.mrf.mxu0 }
 0x35a   :  { %v7859_v39 = vmul.f32 -1.442695, %v1405_v7 }
 0x35b   :  { %v11545_v18 = vpop.eup %11544  ;;  %11546 = vpow2.f32 %v7858_v52 }
 0x35c   :  { %v1409_v58 = vadd.f32 1.0, %v11545_v18  ;;  %11548 = vpow2.f32 %v7859_v39 }
 0x35e   :  { %11550 = vrcp.f32 %v1409_v58  ;;  %v1374_v6 = vpop.f32.mrf.mxu3  ;;  %v1421_v33 = vand.u32 2147483648, %v1409_v58  ;;  %v1419_v40 = vand.u32 2147483647, %v1409_v58  ;;  %vm1415_vm6 = vweird.f32 %v1409_v58 }
 0x35f   :  { %v1400_v13 = vpop.f32.mrf.mxu2 }
 0x360   :  { %v1422_v52 = vor.u32 1.1754944e-38, %v1421_v33  ;;  %vm1420_vm8 = vcmp.eq.f32.partialorder %v1419_v40, 8.507059e+37 }
 0x361   :  { %v11547_v35 = vpop.eup %11546 }
 0x362   :  { %v11549_v28 = vpop.eup %11548  ;;  %v1428_v12 = vadd.f32 1.0, %v11547_v35 }
 0x363   :  { %v1448_v55 = vadd.f32 1.0, %v11549_v28 }
 0x364   :  { %v11551_v62 = vpop.eup %11550  ;;  %11552 = vrcp.f32 %v1428_v12  ;;  %v1440_v13 = vand.u32 2147483648, %v1428_v12  ;;  %v1438_v35 = vand.u32 2147483647, %v1428_v12  ;;  %vm1434_vm10 = vweird.f32 %v1428_v12 }
 0x365   :  { %v1411_v54 = vmul.f32 %v11551_v62, %v1409_v58  ;;  %11554 = vrcp.f32 %v1448_v55  ;;  %vm1416_vm5 = vweird.f32 %v11551_v62  ;;  %vm1454_vm14 = vweird.f32 %v1448_v55 }
 0x366   :  { %11556 = vtanh.f32 %v1404_v56  ;;  %vm1417_vm7 = vmor %vm1415_vm6, %vm1416_vm5  ;;  %v1441_v45 = vor.u32 1.1754944e-38, %v1440_v13  ;;  %vm1439_vm12 = vcmp.eq.f32.partialorder %v1438_v35, 8.507059e+37  ;;  %v1458_v40 = vand.u32 2147483647, %v1448_v55 }
 0x367   :  { %v1412_v5 = vsub.f32 1.0, %v1411_v54 }
 0x368   :  { %vm1459_vm0 = vcmp.eq.f32.partialorder %v1458_v40, 8.507059e+37 }
 0x369   :  { %v1413_v14 = vmul.f32 %v11551_v62, %v1412_v5 }
 0x36a   :  { %v11553_v49 = vpop.eup %11552 }
 0x36b   :  { %v11555_v23 = vpop.eup %11554  ;;  %v1414_v7 = vadd.f32 %v11551_v62, %v1413_v14  ;;  %v1430_v25 = vmul.f32 %v11553_v49, %v1428_v12  ;;  %vm1435_vm9 = vweird.f32 %v11553_v49  ;;  %v1460_v14 = vand.u32 2147483648, %v1448_v55 }
 0x36c   :  { %v1450_v43 = vmul.f32 %v11555_v23, %v1448_v55  ;;  %v11557_v18 = vpop.eup %11556  ;;  %vm1436_vm11 = vmor %vm1434_vm10, %vm1435_vm9  ;;  %vm1455_vm13 = vweird.f32 %v11555_v23  ;;  %v13082_v55 = vld [vmem:[#allocation28_spill] sm:$0xff] }
 0x36d   :  { %v1418_v39 = vsel %vm1417_vm7, %v11551_v62, %v1414_v7  ;;  %v1431_v36 = vsub.f32 1.0, %v1430_v25  ;;  %vm1456_vm15 = vmor %vm1454_vm14, %vm1455_vm13  ;;  %v1461_v12 = vor.u32 1.1754944e-38, %v1460_v14 }
 0x36e   :  { %v1423_v6 = vsel %vm1420_vm8, %v1422_v52, %v1418_v39  ;;  %v1451_v28 = vsub.f32 1.0, %v1450_v43 }
 0x36f   :  { %v1465_v53 = vmul.f32 %v11557_v18, %v1423_v6  ;;  %v1432_v47 = vmul.f32 %v11553_v49, %v1431_v36  ;;  %v13083_v6 = vld [vmem:[#allocation31_spill] sm:$0xff] }
 0x370   :  { %v1452_v54 = vmul.f32 %v11555_v23, %v1451_v28 }
 0x371   :  { %v1433_v3 = vadd.f32 %v11553_v49, %v1432_v47  ;;  %v13084_v47 = vld [vmem:[#allocation50_spill] sm:$0xff] }
 0x372   :  { %v1453_v33 = vadd.f32 %v11555_v23, %v1452_v54 }
 0x373   :  { %v1437_v58 = vsel %vm1436_vm11, %v11553_v49, %v1433_v3 }
 0x374   :  { %v1442_v56 = vsel %vm1439_vm12, %v1441_v45, %v1437_v58  ;;  %v1457_v7 = vsel %vm1456_vm15, %v11555_v23, %v1453_v33 }
 0x375   :  { %v1464_v62 = vmul.f32 %v1442_v56, %v12473_v30  ;;  %v1462_v49 = vsel %vm1459_vm0, %v1461_v12, %v1457_v7 }
 0x377   :  { %v12521_v5 = vadd.f32 %v1465_v53, %v1464_v62 }
 0x379   :  { %11558 = vtanh.f32 %v12521_v5 }
 0x37f   :  { %v11559_v25 = vpop.eup %11558 }
 0x380   :  { %v1468_v52 = vmul.f32 %v11559_v25, %v1462_v49  ;;  %v13085_v49 = vld [vmem:[#allocation46_spill] sm:$0xff] }
 0x382   :  { %v1469_v43 = vpack.c.bf16 %v1468_v52, %v1468_v52 }
 0x384   :  { %1478 = vmatmul.bf16.vlgmr.msra.gmra.mxu1 %v1469_v43  ;;  %1491 = vmatmul.bf16.vlgmr.msra.gmra.mxu3 %v1469_v43 }
 0x385   :  { %1504 = vmatmul.bf16.vlgmr.msra.gmra.mxu0 %v1469_v43  ;;  %1517 = vmatmul.bf16.vlgmr.msra.gmra.mxu2 %v1469_v43 }
 0x386   :  { %1710 = vmatpush.bf16.msra.mxu1 %v12072_v59  ;;  %1723 = vmatpush.bf16.msra.mxu3 %v12076_v61 }
 0x387   :  { %1736 = vmatpush.bf16.msra.mxu0 %v12099_v21  ;;  %1749 = vmatpush.bf16.msra.mxu2 %v12102_v29 }
 0x38a   :  { %1711 = vmatpush.bf16.msra.mxu1 %v12079_v1  ;;  %1724 = vmatpush.bf16.msra.mxu3 %v12082_v4 }
 0x38b   :  { %1737 = vmatpush.bf16.msra.mxu0 %v12114_v32  ;;  %1750 = vmatpush.bf16.msra.mxu2 %v12117_v37 }
 0x38e   :  { %1712 = vmatpush.bf16.msra.mxu1 %v12085_v10  ;;  %1725 = vmatpush.bf16.msra.mxu3 %v12088_v11 }
 0x38f   :  { %1738 = vmatpush.bf16.msra.mxu0 %v12126_v46  ;;  %1751 = vmatpush.bf16.msra.mxu2 %v12128_v51 }
 0x392   :  { %1713 = vmatpush.bf16.msra.mxu1 %v12095_v15  ;;  %1726 = vmatpush.bf16.msra.mxu3 %v12097_v20 }
 0x393   :  { %1739 = vmatpush.bf16.msra.mxu0 %v12138_v0  ;;  %1752 = vmatpush.bf16.msra.mxu2 %v12140_v2 }
 0x396   :  { %1714 = vmatpush.bf16.msra.mxu1 %v12108_v26  ;;  %1727 = vmatpush.bf16.msra.mxu3 %v12112_v31 }
 0x397   :  { %1740 = vmatpush.bf16.msra.mxu0 %v12153_v9  ;;  %1753 = vmatpush.bf16.msra.mxu2 %v12156_v22 }
 0x39a   :  { %1715 = vmatpush.bf16.msra.mxu1 %v12121_v41  ;;  %1728 = vmatpush.bf16.msra.mxu3 %v12123_v42 }
 0x39b   :  { %1741 = vmatpush.bf16.msra.mxu0 %v12162_v24  ;;  %1754 = vmatpush.bf16.msra.mxu2 %v12167_v27 }
 0x39e   :  { %1716 = vmatpush.bf16.msra.mxu1 %v12131_v57  ;;  %1729 = vmatpush.bf16.msra.mxu3 %v12135_v63 }
 0x39f   :  { %1742 = vmatpush.bf16.msra.mxu0 %v12172_v34  ;;  %1755 = vmatpush.bf16.msra.mxu2 %v12175_v38 }
 0x3a2   :  { %1717 = vmatpush.bf16.msra.mxu1 %v12148_v8  ;;  %1730 = vmatpush.bf16.msra.mxu3 %v12151_v16 }
 0x3a3   :  { %1743 = vmatpush.bf16.msra.mxu0 %v12180_v44  ;;  %1756 = vmatpush.bf16.msra.mxu2 %v12183_v48 }
 0x401   :  { %v1479_v30 = vpop.f32.mrf.mxu1 }
 0x402   :  { %v1522_v23 = vadd.f32 %v1479_v30, %v13082_v55  ;;  %v1505_v39 = vpop.f32.mrf.mxu0 }
 0x403   :  { %v1524_v52 = vadd.f32 %v1505_v39, %v13085_v49 }
 0x404   :  { %v7860_v36 = vmul.f32 -1.442695, %v1522_v23 }
 0x406   :  { %11560 = vpow2.f32 %v7860_v36 }
 0x407   :  { %v1492_v18 = vpop.f32.mrf.mxu3 }
 0x408   :  { %v1523_v13 = vadd.f32 %v1492_v18, %v13083_v6  ;;  %v1518_v53 = vpop.f32.mrf.mxu2 }
 0x409   :  { %v1525_v35 = vadd.f32 %v1518_v53, %v13084_v47  ;;  %v1481_v28 = vpop.f32.mrf.mxu1 }
 0x40a   :  { %v7861_v3 = vmul.f32 -1.442695, %v1523_v13  ;;  %v1507_v45 = vpop.f32.mrf.mxu0 }
 0x40b   :  { %v7862_v58 = vmul.f32 -1.442695, %v1525_v35 }
 0x40c   :  { %v11561_v56 = vpop.eup %11560  ;;  %11562 = vpow2.f32 %v7861_v3 }
 0x40d   :  { %v1529_v54 = vadd.f32 1.0, %v11561_v56  ;;  %11564 = vpow2.f32 %v7862_v58 }
 0x40f   :  { %11566 = vrcp.f32 %v1529_v54  ;;  %v1494_v62 = vpop.f32.mrf.mxu3  ;;  %v1541_v55 = vand.u32 2147483648, %v1529_v54  ;;  %v1539_v36 = vand.u32 2147483647, %v1529_v54  ;;  %vm1535_vm2 = vweird.f32 %v1529_v54 }
 0x410   :  { %v1520_v33 = vpop.f32.mrf.mxu2 }
 0x411   :  { %v1542_v47 = vor.u32 1.1754944e-38, %v1541_v55  ;;  %vm1540_vm4 = vcmp.eq.f32.partialorder %v1539_v36, 8.507059e+37 }
 0x412   :  { %v11563_v14 = vpop.eup %11562 }
 0x413   :  { %v11565_v40 = vpop.eup %11564  ;;  %v1548_v7 = vadd.f32 1.0, %v11563_v14 }
 0x414   :  { %v1568_v12 = vadd.f32 1.0, %v11565_v40 }
 0x415   :  { %v11567_v25 = vpop.eup %11566  ;;  %11568 = vrcp.f32 %v1548_v7  ;;  %v1560_v58 = vand.u32 2147483648, %v1548_v7  ;;  %v1558_v33 = vand.u32 2147483647, %v1548_v7  ;;  %vm1554_vm6 = vweird.f32 %v1548_v7 }
 0x416   :  { %v1531_v43 = vmul.f32 %v11567_v25, %v1529_v54  ;;  %11570 = vrcp.f32 %v1568_v12  ;;  %vm1536_vm1 = vweird.f32 %v11567_v25  ;;  %vm1574_vm10 = vweird.f32 %v1568_v12 }
 0x417   :  { %11572 = vtanh.f32 %v1524_v52  ;;  %vm1537_vm3 = vmor %vm1535_vm2, %vm1536_vm1  ;;  %v1561_v49 = vor.u32 1.1754944e-38, %v1560_v58  ;;  %vm1559_vm8 = vcmp.eq.f32.partialorder %v1558_v33, 8.507059e+37  ;;  %v1578_v36 = vand.u32 2147483647, %v1568_v12 }
 0x418   :  { %v1532_v30 = vsub.f32 1.0, %v1531_v43 }
 0x419   :  { %vm1579_vm12 = vcmp.eq.f32.partialorder %v1578_v36, 8.507059e+37 }
 0x41a   :  { %v1533_v23 = vmul.f32 %v11567_v25, %v1532_v30 }
 0x41b   :  { %v11569_v18 = vpop.eup %11568 }
 0x41c   :  { %v11571_v6 = vpop.eup %11570  ;;  %v1534_v13 = vadd.f32 %v11567_v25, %v1533_v23  ;;  %v1550_v53 = vmul.f32 %v11569_v18, %v1548_v7  ;;  %vm1555_vm5 = vweird.f32 %v11569_v18  ;;  %v1580_v23 = vand.u32 2147483648, %v1568_v12 }
 0x41d   :  { %v1570_v35 = vmul.f32 %v11571_v6, %v1568_v12  ;;  %v11573_v3 = vpop.eup %11572  ;;  %vm1556_vm7 = vmor %vm1554_vm6, %vm1555_vm5  ;;  %vm1575_vm9 = vweird.f32 %v11571_v6 }
 0x41e   :  { %v1538_v28 = vsel %vm1537_vm3, %v11567_v25, %v1534_v13  ;;  %v1551_v39 = vsub.f32 1.0, %v1550_v53  ;;  %vm1576_vm11 = vmor %vm1574_vm10, %vm1575_vm9  ;;  %v1581_v7 = vor.u32 1.1754944e-38, %v1580_v23 }
 0x41f   :  { %v1543_v45 = vsel %vm1540_vm4, %v1542_v47, %v1538_v28  ;;  %v1571_v14 = vsub.f32 1.0, %v1570_v35 }
 0x420   :  { %v1585_v56 = vmul.f32 %v11573_v3, %v1543_v45  ;;  %v1552_v62 = vmul.f32 %v11569_v18, %v1551_v39 }
 0x421   :  { %v1572_v43 = vmul.f32 %v11571_v6, %v1571_v14 }
 0x422   :  { %v1553_v40 = vadd.f32 %v11569_v18, %v1552_v62 }
 0x423   :  { %v1573_v55 = vadd.f32 %v11571_v6, %v1572_v43 }
 0x424   :  { %v1557_v54 = vsel %vm1556_vm7, %v11569_v18, %v1553_v40 }
 0x425   :  { %v1562_v52 = vsel %vm1559_vm8, %v1561_v49, %v1557_v54  ;;  %v1577_v13 = vsel %vm1576_vm11, %v11571_v6, %v1573_v55 }
 0x426   :  { %v1584_v25 = vmul.f32 %v1562_v52, %v12521_v5  ;;  %v1582_v18 = vsel %vm1579_vm12, %v1581_v7, %v1577_v13  ;;  %v13093_v5 = vld [vmem:[#allocation49_spill] sm:$0xff] }
 0x428   :  { %v12561_v30 = vadd.f32 %v1585_v56, %v1584_v25 }
 0x42a   :  { %11574 = vtanh.f32 %v12561_v30 }
 0x430   :  { %v11575_v53 = vpop.eup %11574 }
 0x431   :  { %v1588_v47 = vmul.f32 %v11575_v53, %v1582_v18 }
 0x433   :  { %v1589_v35 = vpack.c.bf16 %v1588_v47, %v1588_v47 }
 0x435   :  { %1598 = vmatmul.bf16.vlgmr.msrb.gmra.mxu1 %v1589_v35  ;;  %1611 = vmatmul.bf16.vlgmr.msrb.gmra.mxu3 %v1589_v35 }
 0x436   :  { %1624 = vmatmul.bf16.vlgmr.msrb.gmra.mxu0 %v1589_v35  ;;  %1637 = vmatmul.bf16.vlgmr.msrb.gmra.mxu2 %v1589_v35 }
 0x437   :  { %1830 = vmatpush.bf16.msrb.mxu1 %v12072_v59  ;;  %1843 = vmatpush.bf16.msrb.mxu3 %v12076_v61  ;;  %v13086_v59 = vld [vmem:[#allocation30_spill] sm:$0xff] }
 0x438   :  { %1856 = vmatpush.bf16.msrb.mxu0 %v12099_v21  ;;  %1869 = vmatpush.bf16.msrb.mxu2 %v12102_v29  ;;  %v588_v61 = vadd.f32 %v13086_v59, %v12229_v50  ;;  %v13089_v29 = vld [vmem:[#allocation51_spill] sm:$0xff] }
 0x43b   :  { %1831 = vmatpush.bf16.msrb.mxu1 %v12079_v1  ;;  %1844 = vmatpush.bf16.msrb.mxu3 %v12082_v4  ;;  %v13087_v1 = vld [vmem:[#allocation26_spill] sm:$0xff] }
 0x43c   :  { %1857 = vmatpush.bf16.msrb.mxu0 %v12114_v32  ;;  %1870 = vmatpush.bf16.msrb.mxu2 %v12117_v37  ;;  %v617_v4 = vadd.f32 %v13087_v1, %v588_v61  ;;  %v13090_v32 = vld [vmem:[#allocation29_spill] sm:$0xff] }
 0x43f   :  { %1832 = vmatpush.bf16.msrb.mxu1 %v12085_v10  ;;  %1845 = vmatpush.bf16.msrb.mxu3 %v12088_v11  ;;  %v13088_v11 = vld [vmem:[#allocation33_spill] sm:$0xff] }
 0x440   :  { %1858 = vmatpush.bf16.msrb.mxu0 %v12126_v46  ;;  %1871 = vmatpush.bf16.msrb.mxu2 %v12128_v51 }
 0x443   :  { %1833 = vmatpush.bf16.msrb.mxu1 %v12095_v15  ;;  %1846 = vmatpush.bf16.msrb.mxu3 %v12097_v20  ;;  %v646_v15 = vadd.f32 %v13088_v11, %v12245_v60 }
 0x444   :  { %1859 = vmatpush.bf16.msrb.mxu0 %v12138_v0  ;;  %1872 = vmatpush.bf16.msrb.mxu2 %v12140_v2 }
 0x445   :  { %v675_v37 = vadd.f32 %v13090_v32, %v646_v15 }
 0x447   :  { %1834 = vmatpush.bf16.msrb.mxu1 %v12108_v26  ;;  %1847 = vmatpush.bf16.msrb.mxu3 %v12112_v31  ;;  %v762_v26 = vadd.f32 %v13089_v29, %v12340_v19 }
 0x448   :  { %1860 = vmatpush.bf16.msrb.mxu0 %v12153_v9  ;;  %1873 = vmatpush.bf16.msrb.mxu2 %v12156_v22 }
 0x44b   :  { %1835 = vmatpush.bf16.msrb.mxu1 %v12121_v41  ;;  %1848 = vmatpush.bf16.msrb.mxu3 %v12123_v42  ;;  %v13091_v41 = vld [vmem:[#allocation54_spill] sm:$0xff] }
 0x44c   :  { %1861 = vmatpush.bf16.msrb.mxu0 %v12162_v24  ;;  %1874 = vmatpush.bf16.msrb.mxu2 %v12167_v27  ;;  %v791_v42 = vadd.f32 %v13091_v41, %v762_v26 }
 0x44f   :  { %1836 = vmatpush.bf16.msrb.mxu1 %v12131_v57  ;;  %1849 = vmatpush.bf16.msrb.mxu3 %v12135_v63 }
 0x450   :  { %1862 = vmatpush.bf16.msrb.mxu0 %v12172_v34  ;;  %1875 = vmatpush.bf16.msrb.mxu2 %v12175_v38  ;;  %v13092_v34 = vld [vmem:[#allocation47_spill] sm:$0xff] }
 0x451   :  { %v704_v38 = vadd.f32 %v13092_v34, %v12316_v17 }
 0x453   :  { %1837 = vmatpush.bf16.msrb.mxu1 %v12148_v8  ;;  %1850 = vmatpush.bf16.msrb.mxu3 %v12151_v16  ;;  %v733_v12 = vadd.f32 %v13093_v5, %v704_v38 }
 0x454   :  { %1863 = vmatpush.bf16.msrb.mxu0 %v12180_v44  ;;  %1876 = vmatpush.bf16.msrb.mxu2 %v12183_v48 }
 0x4b2   :  { %v1599_v10 = vpop.f32.mrf.mxu1 }
 0x4b3   :  { %v1642_v20 = vadd.f32 %v1599_v10, %v617_v4  ;;  %v1625_v21 = vpop.f32.mrf.mxu0 }
 0x4b4   :  { %v1644_v3 = vadd.f32 %v1625_v21, %v733_v12 }
 0x4b5   :  { %v7863_v31 = vmul.f32 -1.442695, %v1642_v20 }
 0x4b7   :  { %11576 = vpow2.f32 %v7863_v31 }
 0x4b8   :  { %v1612_v46 = vpop.f32.mrf.mxu3 }
 0x4b9   :  { %v1643_v51 = vadd.f32 %v1612_v46, %v675_v37  ;;  %v1638_v57 = vpop.f32.mrf.mxu2 }
 0x4ba   :  { %v1645_v63 = vadd.f32 %v1638_v57, %v791_v42  ;;  %v1601_v0 = vpop.f32.mrf.mxu1  ;;  %v13094_v42 = vld [vmem:[#allocation34_spill] sm:$0xff] }
 0x4bb   :  { %v7864_v2 = vmul.f32 -1.442695, %v1643_v51  ;;  %v1627_v8 = vpop.f32.mrf.mxu0  ;;  %v13095_v0 = vld [vmem:[#allocation37_spill] sm:$0xff] }
 0x4bc   :  { %v7865_v16 = vmul.f32 -1.442695, %v1645_v63 }
 0x4bd   :  { %v11577_v9 = vpop.eup %11576  ;;  %11578 = vpow2.f32 %v7864_v2 }
 0x4be   :  { %v1649_v22 = vadd.f32 1.0, %v11577_v9  ;;  %11580 = vpow2.f32 %v7865_v16  ;;  %v13096_v16 = vld [vmem:[#allocation56_spill] sm:$0xff] }
 0x4c0   :  { %11582 = vrcp.f32 %v1649_v22  ;;  %v1614_v24 = vpop.f32.mrf.mxu3  ;;  %v1661_v56 = vand.u32 2147483648, %v1649_v22  ;;  %v1659_v33 = vand.u32 2147483647, %v1649_v22  ;;  %vm1655_vm14 = vweird.f32 %v1649_v22 }
 0x4c1   :  { %v1640_v27 = vpop.f32.mrf.mxu2 }
 0x4c2   :  { %v1662_v52 = vor.u32 1.1754944e-38, %v1661_v56  ;;  %vm1660_vm0 = vcmp.eq.f32.partialorder %v1659_v33, 8.507059e+37  ;;  %v7986_v33 = vld [vmem:[#allocation8 + $0xe0] sm:$0xf] }
 0x4c3   :  { %v11579_v44 = vpop.eup %11578 }
 0x4c4   :  { %v11581_v48 = vpop.eup %11580  ;;  %v1668_v6 = vadd.f32 1.0, %v11579_v44 }
 0x4c5   :  { %v1688_v28 = vadd.f32 1.0, %v11581_v48 }
 0x4c6   :  { %v11583_v39 = vpop.eup %11582  ;;  %11584 = vrcp.f32 %v1668_v6  ;;  %v1680_v13 = vand.u32 2147483648, %v1668_v6  ;;  %v1678_v18 = vand.u32 2147483647, %v1668_v6  ;;  %vm1674_vm2 = vweird.f32 %v1668_v6 }
 0x4c7   :  { %v1651_v45 = vmul.f32 %v11583_v39, %v1649_v22  ;;  %11586 = vrcp.f32 %v1688_v28  ;;  %vm1656_vm13 = vweird.f32 %v11583_v39  ;;  %v1700_v20 = vand.u32 2147483648, %v1688_v28 }
 0x4c8   :  { %11588 = vtanh.f32 %v1644_v3  ;;  %vm1657_vm15 = vmor %vm1655_vm14, %vm1656_vm13  ;;  %v1681_v59 = vor.u32 1.1754944e-38, %v1680_v13  ;;  %vm1679_vm4 = vcmp.eq.f32.partialorder %v1678_v18, 8.507059e+37  ;;  %vm1694_vm6 = vweird.f32 %v1688_v28  ;;  %v10906_v13 = vld [vmem:[#allocation8 + $0x2ec] sm:$0xf0] }
 0x4c9   :  { %v1652_v58 = vsub.f32 1.0, %v1651_v45  ;;  %v1698_v21 = vand.u32 2147483647, %v1688_v28  ;;  %v1701_v26 = vor.u32 1.1754944e-38, %v1700_v20 }
 0x4cb   :  { %v1653_v62 = vmul.f32 %v11583_v39, %v1652_v58  ;;  %vm1699_vm8 = vcmp.eq.f32.partialorder %v1698_v21, 8.507059e+37  ;;  %v13097_v58 = vld [vmem:[#allocation52_spill] sm:$0xff]  ;;  %v10870_v21 = vld [vmem:[#allocation8 + $0x1cc] sm:$0xf0] }
 0x4cc   :  { %v11585_v14 = vpop.eup %11584 }
 0x4cd   :  { %v11587_v40 = vpop.eup %11586  ;;  %v1654_v49 = vadd.f32 %v11583_v39, %v1653_v62  ;;  %v1670_v54 = vmul.f32 %v11585_v14, %v1668_v6  ;;  %vm1675_vm1 = vweird.f32 %v11585_v14 }
 0x4ce   :  { %v1690_v43 = vmul.f32 %v11587_v40, %v1688_v28  ;;  %v11589_v23 = vpop.eup %11588  ;;  %vm1676_vm3 = vmor %vm1674_vm2, %vm1675_vm1  ;;  %vm1695_vm5 = vweird.f32 %v11587_v40 }
 0x4cf   :  { %v1658_v25 = vsel %vm1657_vm15, %v11583_v39, %v1654_v49  ;;  %v1671_v55 = vsub.f32 1.0, %v1670_v54  ;;  %vm1696_vm7 = vmor %vm1694_vm6, %vm1695_vm5  ;;  %v8114_v49 = vld [vmem:[#allocation8 + $0x1e0] sm:$0xf]  ;;  %v10874_v54 = vld [vmem:[#allocation8 + $0x1ec] sm:$0xf0] }
 0x4d0   :  { %v1663_v36 = vsel %vm1660_vm0, %v1662_v52, %v1658_v25  ;;  %v1691_v47 = vsub.f32 1.0, %v1690_v43 }
 0x4d1   :  { %v1705_v7 = vmul.f32 %v11589_v23, %v1663_v36  ;;  %v1672_v53 = vmul.f32 %v11585_v14, %v1671_v55  ;;  %v8115_v23 = vor.u32 %v10874_v54, %v8114_v49  ;;  %v8242_v36 = vld [vmem:[#allocation8 + $0x2e0] sm:$0xf]  ;;  %v10862_v54 = vld [vmem:[#allocation8 + $0x18c] sm:$0xf0] }
 0x4d2   :  { %v1692_v4 = vmul.f32 %v11587_v40, %v1691_v47  ;;  %v8243_v18 = vor.u32 %v10906_v13, %v8242_v36  ;;  %v8370_v47 = vld [vmem:[#allocation8 + $0x3e0] sm:$0xf]  ;;  %v10926_v13 = vld [vmem:[#allocation8 + $0x38c] sm:$0xf0] }
 0x4d3   :  { %v1673_v35 = vadd.f32 %v11585_v14, %v1672_v53  ;;  %v8322_v36 = vld [vmem:[#allocation8 + $0x380] sm:$0xf] }
 0x4d4   :  { %v1693_v15 = vadd.f32 %v11587_v40, %v1692_v4  ;;  %v10838_v4 = vld [vmem:[#allocation8 + $0xcc] sm:$0xf0] }
 0x4d5   :  { %v1677_v61 = vsel %vm1676_vm3, %v11585_v14, %v1673_v35  ;;  %v10938_v35 = vld [vmem:[#allocation8 + $0x3ec] sm:$0xf0] }
 0x4d6   :  { %v1682_v1 = vsel %vm1679_vm4, %v1681_v59, %v1677_v61  ;;  %v1697_v29 = vsel %vm1696_vm7, %v11587_v40, %v1693_v15  ;;  %v10842_v40 = vld [vmem:[#allocation8 + $0xec] sm:$0xf0]  ;;  %v8371_v61 = vor.u32 %v10938_v35, %v8370_v47  ;;  %v8050_v47 = vld [vmem:[#allocation8 + $0x160] sm:$0xf] }
 0x4d7   :  { %v1704_v10 = vmul.f32 %v1682_v1, %v12561_v30  ;;  %v1702_v32 = vsel %vm1699_vm8, %v1701_v26, %v1697_v29  ;;  %v7987_v55 = vor.u32 %v10842_v40, %v7986_v33  ;;  %v7970_v1 = vld [vmem:[#allocation8 + $0xc0] sm:$0xf]  ;;  %v10902_v26 = vld [vmem:[#allocation8 + $0x2cc] sm:$0xf0] }
 0x4d8   :  { %v7971_v20 = vor.u32 %v10838_v4, %v7970_v1  ;;  %v8226_v29 = vld [vmem:[#allocation8 + $0x2c0] sm:$0xf]  ;;  %v10930_v33 = vld [vmem:[#allocation8 + $0x3ac] sm:$0xf0] }
 0x4d9   :  { %v12609_v11 = vadd.f32 %v1705_v7, %v1704_v10  ;;  %v8098_v10 = vld [vmem:[#allocation8 + $0x1c0] sm:$0xf]  ;;  %v10830_v40 = vld [vmem:[#allocation8 + $0x8c] sm:$0xf0] }
 0x4da   :  { %v8178_v1 = vld [vmem:[#allocation8 + $0x260] sm:$0xf]  ;;  %v10890_v4 = vld [vmem:[#allocation8 + $0x26c] sm:$0xf0] }
 0x4db   :  { %11590 = vtanh.f32 %v12609_v11 }
 0x4e1   :  { %v11591_v31 = vpop.eup %11590 }
 0x4e2   :  { %v1708_v37 = vmul.f32 %v11591_v31, %v1702_v32 }
 0x4e4   :  { %v1709_v41 = vpack.c.bf16 %v1708_v37, %v1708_v37 }
 0x4e6   :  { %1718 = vmatmul.bf16.vlgmr.msra.gmra.mxu1 %v1709_v41  ;;  %1731 = vmatmul.bf16.vlgmr.msra.gmra.mxu3 %v1709_v41 }
 0x4e7   :  { %1744 = vmatmul.bf16.vlgmr.msra.gmra.mxu0 %v1709_v41  ;;  %1757 = vmatmul.bf16.vlgmr.msra.gmra.mxu2 %v1709_v41  ;;  %v8099_v41 = vor.u32 %v10870_v21, %v8098_v10  ;;  %v8306_v21 = vld [vmem:[#allocation8 + $0x360] sm:$0xf] }
 0x4e8   :  { %2963 = vmatpush.bf16.msra.mxu1 %v7987_v55  ;;  %2976 = vmatpush.bf16.msra.mxu3 %v8115_v23  ;;  %v10894_v23 = vld [vmem:[#allocation8 + $0x28c] sm:$0xf0] }
 0x4e9   :  { %2989 = vmatpush.bf16.msra.mxu0 %v8243_v18  ;;  %3002 = vmatpush.bf16.msra.mxu2 %v8371_v61  ;;  %v10826_v18 = vld [vmem:[#allocation8 + $0x6c] sm:$0xf0] }
 0x4ea   :  { %v10858_v61 = vld [vmem:[#allocation8 + $0x16c] sm:$0xf0] }
 0x4ec   :  { %2964 = vmatpush.bf16.msra.mxu1 %v7971_v20  ;;  %2977 = vmatpush.bf16.msra.mxu3 %v8099_v41  ;;  %v7906_v41 = vld [vmem:[#allocation8 + $0x40] sm:$0xf] }
 0x563   :  { %v1719_v30 = vpop.f32.mrf.mxu1 }
 0x564   :  { %v1762_v46 = vadd.f32 %v1719_v30, %v13094_v42  ;;  %v1745_v51 = vpop.f32.mrf.mxu0  ;;  %v8354_v30 = vld [vmem:[#allocation8 + $0x3c0] sm:$0xf]  ;;  %v10934_v42 = vld [vmem:[#allocation8 + $0x3cc] sm:$0xf0] }
 0x565   :  { %v1764_v56 = vadd.f32 %v1745_v51, %v13097_v58 }
 0x566   :  { %v7866_v57 = vmul.f32 -1.442695, %v1762_v46  ;;  %v7954_v46 = vld [vmem:[#allocation8 + $0xa0] sm:$0xf] }
 0x568   :  { %11592 = vpow2.f32 %v7866_v57 }
 0x569   :  { %v1732_v63 = vpop.f32.mrf.mxu3 }
 0x56a   :  { %v1763_v2 = vadd.f32 %v1732_v63, %v13095_v0  ;;  %v1758_v8 = vpop.f32.mrf.mxu2  ;;  %v8227_v63 = vor.u32 %v10902_v26, %v8226_v29  ;;  %v8355_v0 = vor.u32 %v10934_v42, %v8354_v30  ;;  %v10922_v29 = vld [vmem:[#allocation8 + $0x36c] sm:$0xf0]  ;;  %v8034_v42 = vld [vmem:[#allocation8 + $0x140] sm:$0xf] }
 0x56b   :  { %v1765_v9 = vadd.f32 %v1758_v8, %v13096_v16  ;;  %v1721_v22 = vpop.f32.mrf.mxu1  ;;  %v8082_v8 = vld [vmem:[#allocation8 + $0x1a0] sm:$0xf]  ;;  %v10822_v30 = vld [vmem:[#allocation8 + $0x4c] sm:$0xf0] }
 0x56c   :  { %v7867_v24 = vmul.f32 -1.442695, %v1763_v2  ;;  %v1747_v27 = vpop.f32.mrf.mxu0  ;;  %v10834_v2 = vld [vmem:[#allocation8 + $0xac] sm:$0xf0]  ;;  %2990 = vmatpush.bf16.msra.mxu0 %v8227_v63  ;;  %3003 = vmatpush.bf16.msra.mxu2 %v8355_v0  ;;  %v8162_v63 = vld [vmem:[#allocation8 + $0x240] sm:$0xf]  ;;  %v7907_v22 = vor.u32 %v10822_v30, %v7906_v41 }
 0x56d   :  { %v7868_v34 = vmul.f32 -1.442695, %v1765_v9  ;;  %v10866_v27 = vld [vmem:[#allocation8 + $0x1ac] sm:$0xf0] }
 0x56e   :  { %v11593_v38 = vpop.eup %11592  ;;  %11594 = vpow2.f32 %v7867_v24  ;;  %v7955_v24 = vor.u32 %v10834_v2, %v7954_v46  ;;  %v10854_v46 = vld [vmem:[#allocation8 + $0x14c] sm:$0xf0] }
 0x56f   :  { %v1769_v44 = vadd.f32 1.0, %v11593_v38  ;;  %11596 = vpow2.f32 %v7868_v34  ;;  %v8210_v34 = vld [vmem:[#allocation8 + $0x2a0] sm:$0xf]  ;;  %v10886_v0 = vld [vmem:[#allocation8 + $0x24c] sm:$0xf0] }
 0x570   :  { %2965 = vmatpush.bf16.msra.mxu1 %v7955_v24  ;;  %v8035_v24 = vor.u32 %v10854_v46, %v8034_v42  ;;  %v10966_v41 = vld [vmem:[#allocation8 + $0x4cc] sm:$0xf0]  ;;  %v10836_v42 = vld [vmem:[#allocation8 + $0xc4] sm:$0xf]  ;;  %v7972_v46 = vld [vmem:[#allocation8 + $0xd0] sm:$0xf0] }
 0x571   :  { %11598 = vrcp.f32 %v1769_v44  ;;  %v1734_v48 = vpop.f32.mrf.mxu3  ;;  %v1779_v39 = vand.u32 2147483647, %v1769_v44  ;;  %v1781_v62 = vand.u32 2147483648, %v1769_v44  ;;  %vm1775_vm11 = vweird.f32 %v1769_v44 }
 0x572   :  { %v1760_v5 = vpop.f32.mrf.mxu2  ;;  %v10850_v48 = vld [vmem:[#allocation8 + $0x12c] sm:$0xf0] }
 0x573   :  { %vm12626_vm9 = vcmp.eq.f32.partialorder %v1779_v39, 8.507059e+37  ;;  %v1782_v7 = vor.u32 1.1754944e-38, %v1781_v62  ;;  %v10898_v39 = vld [vmem:[#allocation8 + $0x2ac] sm:$0xf0] }
 0x574   :  { %v11595_v12 = vpop.eup %11594  ;;  %v8211_v62 = vor.u32 %v10898_v39, %v8210_v34  ;;  %v8163_v34 = vor.u32 %v10886_v0, %v8162_v63  ;;  %v10882_v39 = vld [vmem:[#allocation8 + $0x22c] sm:$0xf0]  ;;  %v8100_v63 = vld [vmem:[#allocation8 + $0x1d0] sm:$0xf0]  ;;  %v10900_v0 = vld [vmem:[#allocation8 + $0x2c4] sm:$0xf] }
 0x575   :  { %v11597_v6 = vpop.eup %11596  ;;  %v12615_v28 = vadd.f32 1.0, %v11595_v12 }
 0x576   :  { %v12617_v3 = vadd.f32 1.0, %v11597_v6  ;;  %v8083_v6 = vor.u32 %v10866_v27, %v8082_v8  ;;  %2991 = vmatpush.bf16.msra.mxu0 %v8211_v62  ;;  %v8290_v8 = vld [vmem:[#allocation8 + $0x340] sm:$0xf] }
 0x577   :  { %v12619_v45 = vpop.eup %11598  ;;  %11600 = vrcp.f32 %v12615_v28  ;;  %v1798_v52 = vand.u32 2147483647, %v12615_v28  ;;  %v1800_v53 = vand.u32 2147483648, %v12615_v28  ;;  %vm1794_vm14 = vweird.f32 %v12615_v28  ;;  %v7890_v27 = vld [vmem:[#allocation8 + $0x20] sm:$0xf] }
 0x578   :  { %v1771_v14 = vmul.f32 %v12619_v45, %v1769_v44  ;;  %11602 = vrcp.f32 %v12617_v3  ;;  %vm1776_vm10 = vweird.f32 %v12619_v45  ;;  %2978 = vmatpush.bf16.msra.mxu3 %v8083_v6  ;;  %vm1814_vm2 = vweird.f32 %v12617_v3  ;;  %v8146_v6 = vld [vmem:[#allocation8 + $0x220] sm:$0xf] }
 0x579   :  { %11604 = vtanh.f32 %v1764_v56  ;;  %vm12644_vm13 = vmor %vm1775_vm11, %vm1776_vm10  ;;  %vm12654_vm15 = vcmp.eq.f32.partialorder %v1798_v52, 8.507059e+37  ;;  %v1801_v5 = vor.u32 1.1754944e-38, %v1800_v53  ;;  %v8194_v52 = vld [vmem:[#allocation8 + $0x280] sm:$0xf] }
 0x57a   :  { %v1772_v43 = vsub.f32 1.0, %v1771_v14  ;;  %v7938_v14 = vld [vmem:[#allocation8 + $0x80] sm:$0xf] }
 0x57b   :  { %v7939_v25 = vor.u32 %v10830_v40, %v7938_v14  ;;  %v7922_v53 = vld [vmem:[#allocation8 + $0x60] sm:$0xf]  ;;  %v8147_v40 = vor.u32 %v10882_v39, %v8146_v6 }
 0x57c   :  { %v1773_v59 = vmul.f32 %v12619_v45, %v1772_v43  ;;  %v7874_v14 = vld [vmem:[#allocation8] sm:$0xf] }
 0x57d   :  { %v12633_v15 = vpop.eup %11600  ;;  %2966 = vmatpush.bf16.msra.mxu1 %v7939_v25  ;;  %v8450_v39 = vld [vmem:[#allocation8 + $0x480] sm:$0xf] }
 0x57e   :  { %v12635_v31 = vpop.eup %11602  ;;  %v1774_v32 = vadd.f32 %v12619_v45, %v1773_v59  ;;  %v1790_v37 = vmul.f32 %v12633_v15, %v12615_v28  ;;  %vm1795_vm12 = vweird.f32 %v12633_v15  ;;  %v8066_v28 = vld [vmem:[#allocation8 + $0x180] sm:$0xf]  ;;  %v8323_v59 = vor.u32 %v10926_v13, %v8322_v36  ;;  %v10910_v13 = vld [vmem:[#allocation8 + $0x30c] sm:$0xf0] }
 0x57f   :  { %v1810_v57 = vmul.f32 %v12635_v31, %v12617_v3  ;;  %v11605_v38 = vpop.eup %11604  ;;  %vm12664_vm0 = vmor %vm1794_vm14, %vm1795_vm12  ;;  %v8067_v55 = vor.u32 %v10862_v54, %v8066_v28  ;;  %vm1815_vm1 = vweird.f32 %v12635_v31  ;;  %v8002_v28 = vld [vmem:[#allocation8 + $0x100] sm:$0xf]  ;;  %v10846_v54 = vld [vmem:[#allocation8 + $0x10c] sm:$0xf0] }
 0x580   :  { %v1778_v16 = vsel %vm12644_vm13, %v12619_v45, %v1774_v32  ;;  %v1791_v9 = vsub.f32 1.0, %v1790_v37  ;;  %v8338_v45 = vld [vmem:[#allocation8 + $0x3a0] sm:$0xf]  ;;  %v7923_v32 = vor.u32 %v10826_v18, %v7922_v53  ;;  %v8051_v37 = vor.u32 %v10858_v61, %v8050_v47  ;;  %vm12687_vm3 = vmor %vm1814_vm2, %vm1815_vm1  ;;  %v10970_v53 = vld [vmem:[#allocation8 + $0x4ec] sm:$0xf0] }
 0x581   :  { %v1783_v44 = vsel %vm12626_vm9, %v1782_v7, %v1778_v16  ;;  %v1811_v12 = vsub.f32 1.0, %v1810_v57  ;;  %v8339_v49 = vor.u32 %v10930_v33, %v8338_v45  ;;  %v8195_v7 = vor.u32 %v10894_v23, %v8194_v52  ;;  %2979 = vmatpush.bf16.msra.mxu3 %v8067_v55  ;;  %v10918_v16 = vld [vmem:[#allocation8 + $0x34c] sm:$0xf0]  ;;  %v8130_v55 = vld [vmem:[#allocation8 + $0x200] sm:$0xf] }
 0x582   :  { %v1825_v58 = vmul.f32 %v11605_v38, %v1783_v44  ;;  %v1792_v56 = vmul.f32 %v12633_v15, %v1791_v9  ;;  %v8307_v57 = vor.u32 %v10922_v29, %v8306_v21  ;;  %v1820_v9 = vand.u32 2147483648, %v12617_v3  ;;  %2967 = vmatpush.bf16.msra.mxu1 %v7923_v32  ;;  %v10818_v38 = vld [vmem:[#allocation8 + $0x2c] sm:$0xf0]  ;;  %v8018_v44 = vld [vmem:[#allocation8 + $0x120] sm:$0xf] }
 0x583   :  { %3004 = vmatpush.bf16.msra.mxu2 %v8339_v49  ;;  %v1812_v20 = vmul.f32 %v12635_v31, %v1811_v12  ;;  %2992 = vmatpush.bf16.msra.mxu0 %v8195_v7  ;;  %v8291_v12 = vor.u32 %v10918_v16, %v8290_v8  ;;  %v7891_v62 = vor.u32 %v10818_v38, %v7890_v27  ;;  %v10814_v49 = vld [vmem:[#allocation8 + $0xc] sm:$0xf0]  ;;  %v8258_v23 = vld [vmem:[#allocation8 + $0x300] sm:$0xf]  ;;  %v10840_v18 = vld [vmem:[#allocation8 + $0xe4] sm:$0xf] }
 0x584   :  { %v1793_v43 = vadd.f32 %v12633_v15, %v1792_v56  ;;  %v1821_v56 = vor.u32 1.1754944e-38, %v1820_v9  ;;  %v8019_v33 = vor.u32 %v10850_v48, %v8018_v44  ;;  %v8498_v7 = vld [vmem:[#allocation8 + $0x4e0] sm:$0xf]  ;;  %v7988_v47 = vld [vmem:[#allocation8 + $0xf0] sm:$0xf0]  ;;  %v7875_v61 = vor.u32 %v10814_v49, %v7874_v14 }
 0x585   :  { %v1813_v2 = vadd.f32 %v12635_v31, %v1812_v20  ;;  %2980 = vmatpush.bf16.msra.mxu3 %v8051_v37  ;;  %v8244_v20 = vld [vmem:[#allocation8 + $0x2f0] sm:$0xf0]  ;;  %v8259_v29 = vor.u32 %v10910_v13, %v8258_v23  ;;  %v7991_v32 = vor.u32 %v10840_v18, %v7988_v47  ;;  %v8482_v37 = vld [vmem:[#allocation8 + $0x4c0] sm:$0xf]  ;;  %v7975_v8 = vor.u32 %v10836_v42, %v7972_v46  ;;  %v10962_v9 = vld [vmem:[#allocation8 + $0x4ac] sm:$0xf0] }
 0x586   :  { %v1797_v35 = vsel %vm12664_vm0, %v12633_v15, %v1793_v43  ;;  %v8179_v15 = vor.u32 %v10890_v4, %v8178_v1  ;;  %2968 = vmatpush.bf16.msra.mxu1 %v7907_v22  ;;  %v8003_v1 = vor.u32 %v10846_v54, %v8002_v28  ;;  %v8116_v4 = vld [vmem:[#allocation8 + $0x1f0] sm:$0xf0]  ;;  %v8466_v16 = vld [vmem:[#allocation8 + $0x4a0] sm:$0xf]  ;;  %v10832_v27 = vld [vmem:[#allocation8 + $0xa4] sm:$0xf] }
 0x587   :  { %v1802_v10 = vsel %vm12654_vm15, %v1801_v5, %v1797_v35  ;;  %3005 = vmatpush.bf16.msra.mxu2 %v8323_v59  ;;  %v1817_v45 = vsel %vm12687_vm3, %v12635_v31, %v1813_v2  ;;  %v10878_v31 = vld [vmem:[#allocation8 + $0x20c] sm:$0xf0]  ;;  %v10872_v35 = vld [vmem:[#allocation8 + $0x1e4] sm:$0xf]  ;;  %v8483_v2 = vor.u32 %v10966_v41, %v8482_v37  ;;  %v8084_v44 = vld [vmem:[#allocation8 + $0x1b0] sm:$0xf0] }
 0x588   :  { %v1824_v26 = vmul.f32 %v1802_v10, %v12609_v11  ;;  %v1818_v11 = vand.u32 2147483647, %v12617_v3  ;;  %2993 = vmatpush.bf16.msra.mxu0 %v8179_v15  ;;  %v8274_v3 = vld [vmem:[#allocation8 + $0x320] sm:$0xf]  ;;  %v10904_v10 = vld [vmem:[#allocation8 + $0x2e4] sm:$0xf]  ;;  %v8131_v21 = vor.u32 %v10878_v31, %v8130_v55  ;;  %v8119_v15 = vor.u32 %v10872_v35, %v8116_v4 }
 0x589   :  { %2981 = vmatpush.bf16.msra.mxu3 %v8035_v24  ;;  %v8247_v30 = vor.u32 %v10904_v10, %v8244_v20  ;;  %v10864_v38 = vld [vmem:[#allocation8 + $0x1a4] sm:$0xf]  ;;  %v8212_v5 = vld [vmem:[#allocation8 + $0x2b0] sm:$0xf0]  ;;  %v8434_v31 = vld [vmem:[#allocation8 + $0x460] sm:$0xf] }
 0x58a   :  { %v12677_v51 = vadd.f32 %v1825_v58, %v1824_v26  ;;  %v10914_v58 = vld [vmem:[#allocation8 + $0x32c] sm:$0xf0]  ;;  %vm1819_vm4 = vcmp.eq.f32.partialorder %v1818_v11, 8.507059e+37  ;;  %2969 = vmatpush.bf16.msra.mxu1 %v7891_v62  ;;  %v8499_v26 = vor.u32 %v10970_v53, %v8498_v7  ;;  %v8228_v11 = vld [vmem:[#allocation8 + $0x2d0] sm:$0xf0]  ;;  %vm7453_vm1 = vcmask 7168  }
 0x58b   :  { %3006 = vmatpush.bf16.msra.mxu2 %v8307_v57  ;;  %v1822_v43 = vsel %vm1819_vm4, %v1821_v56, %v1817_v45  ;;  %v8275_v25 = vor.u32 %v10914_v58, %v8274_v3  ;;  %v10868_v57 = vld [vmem:[#allocation8 + $0x1c4] sm:$0xf]  ;;  %v8231_v24 = vor.u32 %v10900_v0, %v8228_v11  ;;  %v10958_v45 = vld [vmem:[#allocation8 + $0x48c] sm:$0xf0]  ;;  %v8087_v58 = vor.u32 %v10864_v38, %v8084_v44  ;;  %v8196_v28 = vld [vmem:[#allocation8 + $0x290] sm:$0xf0] }
 0x58c   :  { %11606 = vtanh.f32 %v12677_v51  ;;  %2994 = vmatpush.bf16.msra.mxu0 %v8163_v34  ;;  %v8103_v22 = vor.u32 %v10868_v57, %v8100_v63  ;;  %v7956_v34 = vld [vmem:[#allocation8 + $0xb0] sm:$0xf0]  ;;  %v10896_v48 = vld [vmem:[#allocation8 + $0x2a4] sm:$0xf]  ;;  %v10954_v23 = vld [vmem:[#allocation8 + $0x46c] sm:$0xf0] }
 0x58d   :  { %2982 = vmatpush.bf16.msra.mxu3 %v8019_v33  ;;  %v7959_v6 = vor.u32 %v10832_v27, %v7956_v34  ;;  %v1949_v3 = vld [vmem:[%s13108_s6] sm:$0xff]  ;;  %v8215_v56 = vor.u32 %v10896_v48, %v8212_v5  ;;  %v7940_v33 = vld [vmem:[#allocation8 + $0x90] sm:$0xf0]  ;;  %v10950_v37 = vld [vmem:[#allocation8 + $0x44c] sm:$0xf0] }
 0x58e   :  { %2970 = vmatpush.bf16.msra.mxu1 %v7875_v61  ;;  %v10828_v62 = vld [vmem:[#allocation8 + $0x84] sm:$0xf]  ;;  %v2149_v54 = vunpack.c.h.b16 %v1949_v3  ;;  %v7924_v47 = vld [vmem:[#allocation8 + $0x70] sm:$0xf0]  ;;  %v8386_v5 = vld [vmem:[#allocation8 + $0x400] sm:$0xf] }
 0x58f   :  { %3007 = vmatpush.bf16.msra.mxu2 %v8291_v12  ;;  %v8467_v12 = vor.u32 %v10962_v9, %v8466_v16  ;;  %v10860_v14 = vld [vmem:[#allocation8 + $0x184] sm:$0xf]  ;;  %v7943_v55 = vor.u32 %v10828_v62, %v7940_v33  ;;  %v7908_v42 = vld [vmem:[#allocation8 + $0x50] sm:$0xf0]  ;;  %v10946_v16 = vld [vmem:[#allocation8 + $0x42c] sm:$0xf0] }
 0x590   :  { %2995 = vmatpush.bf16.msra.mxu0 %v8147_v40  ;;  %v8068_v40 = vld [vmem:[#allocation8 + $0x190] sm:$0xf0]  ;;  %v10892_v49 = vld [vmem:[#allocation8 + $0x284] sm:$0xf]  ;;  %v12700_v4 = vpack.c.b16 %v2149_v54, %v2149_v54 }
 0x591   :  { %2983 = vmatpush.bf16.msra.mxu3 %v8003_v1  ;;  %v8071_v7 = vor.u32 %v10860_v14, %v8068_v40  ;;  %v8199_v53 = vor.u32 %v10892_v49, %v8196_v28  ;;  %v10824_v18 = vld [vmem:[#allocation8 + $0x64] sm:$0xf]  ;;  %v8180_v1 = vld [vmem:[#allocation8 + $0x270] sm:$0xf0]  ;;  %v1951_v40 = vld [vmem:[%s13108_s6 + $0x10] sm:$0xf] }
 0x592   :  { %v11607_v52 = vpop.eup %11606  ;;  %v10856_v35 = vld [vmem:[#allocation8 + $0x164] sm:$0xf]  ;;  %v8036_v57 = vld [vmem:[#allocation8 + $0x150] sm:$0xf0] }
 0x593   :  { %v1828_v36 = vmul.f32 %v11607_v52, %v1822_v43  ;;  %3008 = vmatpush.bf16.msra.mxu2 %v8275_v25  ;;  %v2148_v52 = vunpack.c.l.b16 %v1949_v3  ;;  %v1950_v43 = vld [vmem:[%s13108_s6 + $0x8] sm:$0xff]  ;;  %v8451_v25 = vor.u32 %v10958_v45, %v8450_v39  ;;  %v8164_v0 = vld [vmem:[#allocation8 + $0x250] sm:$0xf0] }
 0x594   :  { %2996 = vmatpush.bf16.msra.mxu0 %v8131_v21  ;;  %v2150_v13 = vunpack.c.l.b16 %v1950_v43  ;;  %v10888_v61 = vld [vmem:[#allocation8 + $0x264] sm:$0xf]  ;;  %v7892_v27 = vld [vmem:[#allocation8 + $0x30] sm:$0xf0] }
 0x595   :  { %v1829_v59 = vpack.c.bf16 %v1828_v36, %v1828_v36  ;;  %v2151_v36 = vunpack.c.h.b16 %v1950_v43  ;;  %v12702_v10 = vpack.c.b16 %v2148_v52, %v2148_v52  ;;  %v10852_v46 = vld [vmem:[#allocation8 + $0x144] sm:$0xf]  ;;  %v8020_v38 = vld [vmem:[#allocation8 + $0x130] sm:$0xf0] }
 0x596   :  { %v12706_v21 = vpack.c.b16 %v2150_v13, %v2150_v13  ;;  %v10884_v63 = vld [vmem:[#allocation8 + $0x244] sm:$0xf]  ;;  %v8039_v9 = vor.u32 %v10852_v46, %v8036_v57  ;;  %v8148_v48 = vld [vmem:[#allocation8 + $0x230] sm:$0xf0]  ;;  %v10875_v13 = vld [vmem:[#allocation8 + $0x1f4] sm:$0xf0] }
 0x597   :  { %1838 = vmatmul.bf16.vlgmr.msrb.gmra.mxu1 %v1829_v59  ;;  %1851 = vmatmul.bf16.vlgmr.msrb.gmra.mxu3 %v1829_v59  ;;  %v12704_v20 = vpack.c.b16 %v2151_v36, %v2151_v36  ;;  %v10848_v34 = vld [vmem:[#allocation8 + $0x124] sm:$0xf]  ;;  %v7876_v3 = vld [vmem:[#allocation8 + $0x10] sm:$0xf0]  ;;  %v8122_v36 = vld [vmem:[#allocation8 + $0x1e8] sm:$0xf] }
 0x598   :  { %1864 = vmatmul.bf16.vlgmr.msrb.gmra.mxu0 %v1829_v59  ;;  %1877 = vmatmul.bf16.vlgmr.msrb.gmra.mxu2 %v1829_v59  ;;  %v8052_v59 = vld [vmem:[#allocation8 + $0x170] sm:$0xf0]  ;;  %v10880_v44 = vld [vmem:[#allocation8 + $0x224] sm:$0xf] }
 0x599   :  { %3009 = vmatpush.bf16.msra.mxu2 %v8259_v29  ;;  %3015 = vmatpush.bf16.msrb.mxu1 %v8499_v26  ;;  %v8435_v29 = vor.u32 %v10954_v23, %v8434_v31  ;;  %v7927_v26 = vor.u32 %v10824_v18, %v7924_v47  ;;  %v8055_v41 = vor.u32 %v10856_v35, %v8052_v59  ;;  %v10812_v45 = vld [vmem:[#allocation8 + $0x4] sm:$0xf]  ;;  %v8004_v33 = vld [vmem:[#allocation8 + $0x110] sm:$0xf0]  ;;  %v10843_v23 = vld [vmem:[#allocation8 + $0xf4] sm:$0xf0] }
 0x59a   :  { %3028 = vmatpush.bf16.msrb.mxu3 %v7991_v32  ;;  %3041 = vmatpush.bf16.msrb.mxu0 %v8119_v15  ;;  %v8418_v32 = vld [vmem:[#allocation8 + $0x440] sm:$0xf]  ;;  %v8183_v15 = vor.u32 %v10888_v61, %v8180_v1  ;;  %v8151_v62 = vor.u32 %v10880_v44, %v8148_v48  ;;  %v10876_v14 = vld [vmem:[#allocation8 + $0x204] sm:$0xf]  ;;  %v8132_v49 = vld [vmem:[#allocation8 + $0x210] sm:$0xf0]  ;;  %v7879_v31 = vor.u32 %v10812_v45, %v7876_v3 }
 0x59b   :  { %v8419_v11 = vor.u32 %v10950_v37, %v8418_v32  ;;  %v10936_v28 = vld [vmem:[#allocation8 + $0x3e4] sm:$0xf]  ;;  %v8372_v54 = vld [vmem:[#allocation8 + $0x3f0] sm:$0xf0]  ;;  %v8135_v18 = vor.u32 %v10876_v14, %v8132_v49  ;;  %v7978_v37 = vld [vmem:[#allocation8 + $0xc8] sm:$0xf] }
 0x59c   :  { %v10968_v52 = vld [vmem:[#allocation8 + $0x4e4] sm:$0xf]  ;;  %v8500_v43 = vld [vmem:[#allocation8 + $0x4f0] sm:$0xf0]  ;;  %v8375_v47 = vor.u32 %v10936_v28, %v8372_v54  ;;  %v7946_v45 = vld [vmem:[#allocation8 + $0x88] sm:$0xf] }
 0x59d   :  { %3054 = vmatpush.bf16.msrb.mxu2 %v8247_v30  ;;  %3016 = vmatpush.bf16.msrb.mxu1 %v8483_v2  ;;  %v10820_v30 = vld [vmem:[#allocation8 + $0x44] sm:$0xf]  ;;  %v8503_v35 = vor.u32 %v10968_v52, %v8500_v43  ;;  %v8356_v61 = vld [vmem:[#allocation8 + $0x3d0] sm:$0xf0]  ;;  %v10831_v3 = vld [vmem:[#allocation8 + $0x94] sm:$0xf0] }
 0x59e   :  { %3029 = vmatpush.bf16.msrb.mxu3 %v7975_v8  ;;  %3042 = vmatpush.bf16.msrb.mxu0 %v8103_v22  ;;  %v7911_v2 = vor.u32 %v10820_v30, %v7908_v42  ;;  %v8402_v8 = vld [vmem:[#allocation8 + $0x420] sm:$0xf]  ;;  %v8167_v22 = vor.u32 %v10884_v63, %v8164_v0  ;;  %v10932_v59 = vld [vmem:[#allocation8 + $0x3c4] sm:$0xf]  ;;  %v8484_v32 = vld [vmem:[#allocation8 + $0x4d0] sm:$0xf0]  ;;  %v7947_v49 = vor.u32 %v10831_v3, %v7946_v45 }
 0x59f   :  { %v10871_v30 = vld [vmem:[#allocation8 + $0x1d4] sm:$0xf0]  ;;  %v8359_v46 = vor.u32 %v10932_v59, %v8356_v61  ;;  %v10928_v63 = vld [vmem:[#allocation8 + $0x3a4] sm:$0xf]  ;;  %v8340_v0 = vld [vmem:[#allocation8 + $0x3b0] sm:$0xf0] }
 0x5a0   :  { %v10924_v44 = vld [vmem:[#allocation8 + $0x384] sm:$0xf]  ;;  %v8324_v48 = vld [vmem:[#allocation8 + $0x390] sm:$0xf0]  ;;  %v7930_v43 = vld [vmem:[#allocation8 + $0x68] sm:$0xf] }
 0x5a1   :  { %3055 = vmatpush.bf16.msrb.mxu2 %v8231_v24  ;;  %3017 = vmatpush.bf16.msrb.mxu1 %v8467_v12  ;;  %v10816_v24 = vld [vmem:[#allocation8 + $0x24] sm:$0xf]  ;;  %v10942_v12 = vld [vmem:[#allocation8 + $0x40c] sm:$0xf0]  ;;  %v8436_v52 = vld [vmem:[#allocation8 + $0x470] sm:$0xf0] }
 0x5a2   :  { %3030 = vmatpush.bf16.msrb.mxu3 %v7959_v6  ;;  %3043 = vmatpush.bf16.msrb.mxu0 %v8087_v58  ;;  %v8403_v6 = vor.u32 %v10946_v16, %v8402_v8  ;;  %v7895_v39 = vor.u32 %v10816_v24, %v7892_v27  ;;  %v10844_v58 = vld [vmem:[#allocation8 + $0x104] sm:$0xf]  ;;  %v8468_v16 = vld [vmem:[#allocation8 + $0x4b0] sm:$0xf0]  ;;  %v8090_v24 = vld [vmem:[#allocation8 + $0x1a8] sm:$0xf] }
 0x5a3   :  { %v10960_v8 = vld [vmem:[#allocation8 + $0x4a4] sm:$0xf]  ;;  %v10867_v27 = vld [vmem:[#allocation8 + $0x1b4] sm:$0xf0]  ;;  %v7914_v59 = vld [vmem:[#allocation8 + $0x48] sm:$0xf] }
 0x5a4   :  { %v10920_v14 = vld [vmem:[#allocation8 + $0x364] sm:$0xf]  ;;  %v10823_v61 = vld [vmem:[#allocation8 + $0x54] sm:$0xf0]  ;;  %v8378_v45 = vld [vmem:[#allocation8 + $0x3e8] sm:$0xf] }
 0x5a5   :  { %3056 = vmatpush.bf16.msrb.mxu2 %v8215_v56  ;;  %3018 = vmatpush.bf16.msrb.mxu1 %v8451_v25  ;;  %v8023_v56 = vor.u32 %v10848_v34, %v8020_v38  ;;  %v7994_v25 = vld [vmem:[#allocation8 + $0xe8] sm:$0xf]  ;;  %v8343_v34 = vor.u32 %v10928_v63, %v8340_v0  ;;  %v8471_v38 = vor.u32 %v10960_v8, %v8468_v16  ;;  %v10952_v54 = vld [vmem:[#allocation8 + $0x464] sm:$0xf]  ;;  %v10819_v0 = vld [vmem:[#allocation8 + $0x34] sm:$0xf0] }
 0x5a6   :  { %3031 = vmatpush.bf16.msrb.mxu3 %v7943_v55  ;;  %3044 = vmatpush.bf16.msrb.mxu0 %v8071_v7  ;;  %v8387_v55 = vor.u32 %v10942_v12, %v8386_v5  ;;  %v2152_v7 = vunpack.c.l.b16 %v1951_v40  ;;  %v7995_v1 = vor.u32 %v10843_v23, %v7994_v25  ;;  %v8091_v12 = vor.u32 %v10867_v27, %v8090_v24  ;;  %v8308_v40 = vld [vmem:[#allocation8 + $0x370] sm:$0xf0]  ;;  %v10827_v25 = vld [vmem:[#allocation8 + $0x74] sm:$0xf0]  ;;  %v7898_v63 = vld [vmem:[#allocation8 + $0x28] sm:$0xf] }
 0x5a7   :  { %2984 = vmatmul.bf16.vlgmr.msra.gmra.mxu3 %v12700_v4  ;;  %2971 = vmatmul.bf16.vlgmr.msra.gmra.mxu1 %v12702_v10  ;;  %v8311_v23 = vor.u32 %v10920_v14, %v8308_v40  ;;  %v10908_v8 = vld [vmem:[#allocation8 + $0x304] sm:$0xf]  ;;  %v8388_v27 = vld [vmem:[#allocation8 + $0x410] sm:$0xf0]  ;;  %v10939_v3 = vld [vmem:[#allocation8 + $0x3f4] sm:$0xf0] }
 0x5a8   :  { %3010 = vmatmul.bf16.vlgmr.msra.gmra.mxu2 %v12704_v20  ;;  %2997 = vmatmul.bf16.vlgmr.msra.gmra.mxu0 %v12706_v21  ;;  %v12715_v42 = vpack.c.b16 %v2152_v7, %v2152_v7  ;;  %v8292_v7 = vld [vmem:[#allocation8 + $0x350] sm:$0xf0]  ;;  %v10940_v24 = vld [vmem:[#allocation8 + $0x404] sm:$0xf]  ;;  %v10841_v14 = vld [vmem:[#allocation8 + $0xec] sm:$0xf] }
 0x5a9   :  { %3057 = vmatpush.bf16.msrb.mxu2 %v8199_v53  ;;  %3019 = vmatpush.bf16.msrb.mxu1 %v8435_v29  ;;  %v8007_v53 = vor.u32 %v10844_v58, %v8004_v33  ;;  %v8123_v29 = vor.u32 %v10875_v13, %v8122_v36  ;;  %v8074_v58 = vld [vmem:[#allocation8 + $0x188] sm:$0xf]  ;;  %v8439_v36 = vor.u32 %v10952_v54, %v8436_v52  ;;  %v10916_v13 = vld [vmem:[#allocation8 + $0x344] sm:$0xf]  ;;  %v7996_v40 = vld [vmem:[#allocation8 + $0xf8] sm:$0xf0] }
 0x5aa   :  { %3032 = vmatpush.bf16.msrb.mxu3 %v7927_v26  ;;  %3045 = vmatpush.bf16.msrb.mxu0 %v8055_v41  ;;  %v10964_v26 = vld [vmem:[#allocation8 + $0x4c4] sm:$0xf]  ;;  %v10839_v41 = vld [vmem:[#allocation8 + $0xd4] sm:$0xf0]  ;;  %v8379_v52 = vor.u32 %v10939_v3, %v8378_v45  ;;  %v8442_v45 = vld [vmem:[#allocation8 + $0x468] sm:$0xf] }
 0x5ab   :  { %v8487_v57 = vor.u32 %v10964_v26, %v8484_v32  ;;  %v8295_v26 = vor.u32 %v10916_v13, %v8292_v7  ;;  %v8490_v13 = vld [vmem:[#allocation8 + $0x4c8] sm:$0xf]  ;;  %v10967_v7 = vld [vmem:[#allocation8 + $0x4d4] sm:$0xf0] }
 0x5ac   :  { %v10955_v3 = vld [vmem:[#allocation8 + $0x474] sm:$0xf0] }
 0x5ad   :  { %3058 = vmatpush.bf16.msrb.mxu2 %v8183_v15  ;;  %3020 = vmatpush.bf16.msrb.mxu1 %v8419_v11  ;;  %v8106_v15 = vld [vmem:[#allocation8 + $0x1c8] sm:$0xf]  ;;  %v7979_v11 = vor.u32 %v10839_v41, %v7978_v37  ;;  %v10912_v37 = vld [vmem:[#allocation8 + $0x324] sm:$0xf]  ;;  %v8276_v41 = vld [vmem:[#allocation8 + $0x330] sm:$0xf0] }
 0x5ae   :  { %3033 = vmatpush.bf16.msrb.mxu3 %v7911_v2  ;;  %3046 = vmatpush.bf16.msrb.mxu0 %v8039_v9  ;;  %v8107_v2 = vor.u32 %v10871_v30, %v8106_v15  ;;  %v7962_v9 = vld [vmem:[#allocation8 + $0xa8] sm:$0xf]  ;;  %v7915_v15 = vor.u32 %v10823_v61, %v7914_v59  ;;  %v8279_v16 = vor.u32 %v10912_v37, %v8276_v41  ;;  %v10899_v61 = vld [vmem:[#allocation8 + $0x2b4] sm:$0xf0] }
 0x5af   :  { %v8218_v59 = vld [vmem:[#allocation8 + $0x2a8] sm:$0xf]  ;;  %v10963_v41 = vld [vmem:[#allocation8 + $0x4b4] sm:$0xf0] }
 0x5b0   :  { %v8474_v37 = vld [vmem:[#allocation8 + $0x4a8] sm:$0xf] }
 0x5b1   :  { %3059 = vmatpush.bf16.msrb.mxu2 %v8167_v22  ;;  %3021 = vmatpush.bf16.msrb.mxu1 %v8403_v6  ;;  %v10835_v22 = vld [vmem:[#allocation8 + $0xb4] sm:$0xf0]  ;;  %v10956_v6 = vld [vmem:[#allocation8 + $0x484] sm:$0xf] }
 0x5b2   :  { %3034 = vmatpush.bf16.msrb.mxu3 %v7895_v39  ;;  %3047 = vmatpush.bf16.msrb.mxu0 %v8023_v56  ;;  %v7963_v5 = vor.u32 %v10835_v22, %v7962_v9  ;;  %v8452_v39 = vld [vmem:[#allocation8 + $0x490] sm:$0xf0]  ;;  %v10863_v56 = vld [vmem:[#allocation8 + $0x194] sm:$0xf0] }
 0x5b3   :  { %v8455_v33 = vor.u32 %v10956_v6, %v8452_v39  ;;  %v8075_v28 = vor.u32 %v10863_v56, %v8074_v58  ;;  %v8260_v22 = vld [vmem:[#allocation8 + $0x310] sm:$0xf0]  ;;  %v8250_v6 = vld [vmem:[#allocation8 + $0x2e8] sm:$0xf]  ;;  %v10907_v39 = vld [vmem:[#allocation8 + $0x2f4] sm:$0xf0] }
 0x5b4   :  { %v8506_v58 = vld [vmem:[#allocation8 + $0x4e8] sm:$0xf]  ;;  %v8263_v56 = vor.u32 %v10908_v8, %v8260_v22  ;;  %v8251_v54 = vor.u32 %v10907_v39, %v8250_v6  ;;  %v10959_v22 = vld [vmem:[#allocation8 + $0x494] sm:$0xf0] }
 0x5b5   :  { %3060 = vmatpush.bf16.msrb.mxu2 %v8151_v62  ;;  %3022 = vmatpush.bf16.msrb.mxu1 %v8387_v55  ;;  %v8327_v62 = vor.u32 %v10924_v44, %v8324_v48  ;;  %v8058_v55 = vld [vmem:[#allocation8 + $0x168] sm:$0xf]  ;;  %v10815_v48 = vld [vmem:[#allocation8 + $0x14] sm:$0xf0] }
 0x5b6   :  { %3035 = vmatpush.bf16.msrb.mxu3 %v7879_v31  ;;  %3048 = vmatpush.bf16.msrb.mxu0 %v8007_v53  ;;  %v10859_v31 = vld [vmem:[#allocation8 + $0x174] sm:$0xf0]  ;;  %v7931_v53 = vor.u32 %v10827_v25, %v7930_v43  ;;  %v7882_v44 = vld [vmem:[#allocation8 + $0x8] sm:$0xf] }
 0x5b7   :  { %v8234_v43 = vld [vmem:[#allocation8 + $0x2c8] sm:$0xf]  ;;  %v10903_v25 = vld [vmem:[#allocation8 + $0x2d4] sm:$0xf0] }
 0x5b8   :  { %3023 = vmatmul.bf16.vlgmr.msrb.gmra.mxu1 %v12715_v42  ;;  %v8330_v8 = vld [vmem:[#allocation8 + $0x388] sm:$0xf]  ;;  %v10923_v39 = vld [vmem:[#allocation8 + $0x374] sm:$0xf0] }
 0x5b9   :  { %3061 = vmatpush.bf16.msrb.mxu2 %v8135_v18  ;;  %3067 = vmatpush.bf16.msra.mxu1 %v8375_v47  ;;  %v8059_v18 = vor.u32 %v10859_v31, %v8058_v55  ;;  %v10948_v47 = vld [vmem:[#allocation8 + $0x444] sm:$0xf]  ;;  %v7999_v31 = vor.u32 %v10841_v14, %v7996_v40  ;;  %v8314_v6 = vld [vmem:[#allocation8 + $0x368] sm:$0xf]  ;;  %v10887_v40 = vld [vmem:[#allocation8 + $0x254] sm:$0xf0] }
 0x5ba   :  { %3080 = vmatpush.bf16.msra.mxu3 %v8503_v35  ;;  %3093 = vmatpush.bf16.msra.mxu0 %v7995_v1  ;;  %v8420_v35 = vld [vmem:[#allocation8 + $0x450] sm:$0xf0]  ;;  %v8042_v1 = vld [vmem:[#allocation8 + $0x148] sm:$0xf] }
 0x5bb   :  { %3036 = vmatmul.bf16.vlgmr.msrb.gmra.mxu3 %v12702_v10  ;;  %3049 = vmatmul.bf16.vlgmr.msrb.gmra.mxu0 %v12700_v4  ;;  %v8423_v32 = vor.u32 %v10948_v47, %v8420_v35  ;;  %v8235_v47 = vor.u32 %v10903_v25, %v8234_v43  ;;  %v8170_v14 = vld [vmem:[#allocation8 + $0x248] sm:$0xf]  ;;  %v10951_v25 = vld [vmem:[#allocation8 + $0x454] sm:$0xf0] }
 0x5bc   :  { %3062 = vmatmul.bf16.vlgmr.msrb.gmra.mxu2 %v12706_v21  ;;  %v8426_v43 = vld [vmem:[#allocation8 + $0x448] sm:$0xf] }
 0x5bd   :  { %3106 = vmatpush.bf16.msra.mxu2 %v8123_v29  ;;  %3068 = vmatpush.bf16.msra.mxu1 %v8359_v46  ;;  %v10855_v29 = vld [vmem:[#allocation8 + $0x154] sm:$0xf0]  ;;  %v10944_v46 = vld [vmem:[#allocation8 + $0x424] sm:$0xf] }
 0x5be   :  { %3081 = vmatpush.bf16.msra.mxu3 %v8487_v57  ;;  %3094 = vmatpush.bf16.msra.mxu0 %v7979_v11  ;;  %v8043_v30 = vor.u32 %v10855_v29, %v8042_v1  ;;  %v8404_v57 = vld [vmem:[#allocation8 + $0x430] sm:$0xf0]  ;;  %v8026_v11 = vld [vmem:[#allocation8 + $0x128] sm:$0xf]  ;;  %v8491_v1 = vor.u32 %v10967_v7, %v8490_v13  ;;  %v10883_v7 = vld [vmem:[#allocation8 + $0x234] sm:$0xf0] }
 0x5bf   :  { %v8407_v9 = vor.u32 %v10944_v46, %v8404_v57  ;;  %v8219_v46 = vor.u32 %v10899_v61, %v8218_v59  ;;  %v8154_v13 = vld [vmem:[#allocation8 + $0x228] sm:$0xf]  ;;  %v10947_v61 = vld [vmem:[#allocation8 + $0x434] sm:$0xf0] }
 0x5c0   :  { %v8410_v59 = vld [vmem:[#allocation8 + $0x428] sm:$0xf] }
 0x5c1   :  { %3107 = vmatpush.bf16.msra.mxu2 %v8107_v2  ;;  %3069 = vmatpush.bf16.msra.mxu1 %v8343_v34  ;;  %v10851_v2 = vld [vmem:[#allocation8 + $0x134] sm:$0xf0]  ;;  %v7899_v34 = vor.u32 %v10819_v0, %v7898_v63  ;;  %v8202_v63 = vld [vmem:[#allocation8 + $0x288] sm:$0xf] }
 0x5c2   :  { %3082 = vmatpush.bf16.msra.mxu3 %v8471_v38  ;;  %3095 = vmatpush.bf16.msra.mxu0 %v7963_v5  ;;  %v8027_v38 = vor.u32 %v10851_v2, %v8026_v11  ;;  %v8010_v5 = vld [vmem:[#allocation8 + $0x108] sm:$0xf]  ;;  %v10895_v0 = vld [vmem:[#allocation8 + $0x294] sm:$0xf0]  ;;  %v8475_v11 = vor.u32 %v10963_v41, %v8474_v37 }
 0x5c3   :  { %v10879_v41 = vld [vmem:[#allocation8 + $0x214] sm:$0xf0] }
 0x5c5   :  { %3108 = vmatpush.bf16.msra.mxu2 %v8091_v12  ;;  %3070 = vmatpush.bf16.msra.mxu1 %v8327_v62  ;;  %v10847_v12 = vld [vmem:[#allocation8 + $0x114] sm:$0xf0]  ;;  %v8391_v62 = vor.u32 %v10940_v24, %v8388_v27  ;;  %v10829_v24 = vld [vmem:[#allocation8 + $0x8c] sm:$0xf]  ;;  %v7948_v27 = vld [vmem:[#allocation8 + $0x98] sm:$0xf0] }
 0x5c6   :  { %3083 = vmatpush.bf16.msra.mxu3 %v8455_v33  ;;  %3096 = vmatpush.bf16.msra.mxu0 %v7947_v49  ;;  %v10971_v33 = vld [vmem:[#allocation8 + $0x4f4] sm:$0xf0]  ;;  %v7883_v49 = vor.u32 %v10815_v48, %v7882_v44  ;;  %v8186_v44 = vld [vmem:[#allocation8 + $0x268] sm:$0xf] }
 0x5c7   :  { %v8507_v55 = vor.u32 %v10971_v33, %v8506_v58  ;;  %v10891_v48 = vld [vmem:[#allocation8 + $0x274] sm:$0xf0]  ;;  %v10825_v58 = vld [vmem:[#allocation8 + $0x6c] sm:$0xf]  ;;  %v8315_v33 = vor.u32 %v10923_v39, %v8314_v6 }
 0x5c9   :  { %3109 = vmatpush.bf16.msra.mxu2 %v8075_v28  ;;  %3071 = vmatpush.bf16.msra.mxu1 %v8311_v23  ;;  %v8011_v28 = vor.u32 %v10847_v12, %v8010_v5  ;;  %v8362_v23 = vld [vmem:[#allocation8 + $0x3c8] sm:$0xf]  ;;  %v7951_v12 = vor.u32 %v10829_v24, %v7948_v27  ;;  %v10937_v24 = vld [vmem:[#allocation8 + $0x3ec] sm:$0xf] }
 0x5ca   :  { %3084 = vmatpush.bf16.msra.mxu3 %v8439_v36  ;;  %3097 = vmatpush.bf16.msra.mxu0 %v7931_v53  ;;  %v10935_v36 = vld [vmem:[#allocation8 + $0x3d4] sm:$0xf0]  ;;  %v10837_v53 = vld [vmem:[#allocation8 + $0xcc] sm:$0xf] }
 0x5cb   :  { %v8363_v35 = vor.u32 %v10935_v36, %v8362_v23  ;;  %v8171_v23 = vor.u32 %v10887_v40, %v8170_v14  ;;  %v10933_v14 = vld [vmem:[#allocation8 + $0x3cc] sm:$0xf]  ;;  %v8364_v40 = vld [vmem:[#allocation8 + $0x3d8] sm:$0xf0] }
 0x5cd   :  { %3110 = vmatpush.bf16.msra.mxu2 %v8059_v18  ;;  %3072 = vmatpush.bf16.msra.mxu1 %v8295_v26  ;;  %v7980_v18 = vld [vmem:[#allocation8 + $0xd8] sm:$0xf0]  ;;  %v8346_v26 = vld [vmem:[#allocation8 + $0x3a8] sm:$0xf] }
 0x5ce   :  { %3085 = vmatpush.bf16.msra.mxu3 %v8423_v32  ;;  %3098 = vmatpush.bf16.msra.mxu0 %v7915_v15  ;;  %v7983_v29 = vor.u32 %v10837_v53, %v7980_v18  ;;  %v10931_v32 = vld [vmem:[#allocation8 + $0x3b4] sm:$0xf0]  ;;  %v10833_v15 = vld [vmem:[#allocation8 + $0xac] sm:$0xf]  ;;  %v8427_v53 = vor.u32 %v10951_v25, %v8426_v43  ;;  %v8092_v25 = vld [vmem:[#allocation8 + $0x1b8] sm:$0xf0] }
 0x5cf   :  { %v8347_v57 = vor.u32 %v10931_v32, %v8346_v26  ;;  %v8138_v26 = vld [vmem:[#allocation8 + $0x208] sm:$0xf]  ;;  %v8155_v32 = vor.u32 %v10883_v7, %v8154_v13  ;;  %v10865_v43 = vld [vmem:[#allocation8 + $0x1ac] sm:$0xf]  ;;  %v8348_v7 = vld [vmem:[#allocation8 + $0x3b8] sm:$0xf0] }
 0x5d0   :  { %v8139_v27 = vor.u32 %v10879_v41, %v8138_v26  ;;  %v10929_v13 = vld [vmem:[#allocation8 + $0x3ac] sm:$0xf]  ;;  %v8332_v41 = vld [vmem:[#allocation8 + $0x398] sm:$0xf0] }
 0x5d1   :  { %3111 = vmatpush.bf16.msra.mxu2 %v8043_v30  ;;  %3073 = vmatpush.bf16.msra.mxu1 %v8279_v16  ;;  %v7964_v30 = vld [vmem:[#allocation8 + $0xb8] sm:$0xf0]  ;;  %v10927_v16 = vld [vmem:[#allocation8 + $0x394] sm:$0xf0]  ;;  %v10893_v26 = vld [vmem:[#allocation8 + $0x28c] sm:$0xf] }
 0x5d2   :  { %3086 = vmatpush.bf16.msra.mxu3 %v8407_v9  ;;  %3099 = vmatpush.bf16.msra.mxu0 %v7899_v34  ;;  %v7967_v2 = vor.u32 %v10833_v15, %v7964_v30  ;;  %v8458_v9 = vld [vmem:[#allocation8 + $0x488] sm:$0xf]  ;;  %v8203_v34 = vor.u32 %v10895_v0, %v8202_v63  ;;  %v10911_v30 = vld [vmem:[#allocation8 + $0x314] sm:$0xf0] }
 0x5d3   :  { %v8459_v5 = vor.u32 %v10959_v22, %v8458_v9  ;;  %v8266_v15 = vld [vmem:[#allocation8 + $0x308] sm:$0xf]  ;;  %v10943_v0 = vld [vmem:[#allocation8 + $0x414] sm:$0xf0]  ;;  %v10905_v9 = vld [vmem:[#allocation8 + $0x2ec] sm:$0xf] }
 0x5d4   :  { %v8394_v63 = vld [vmem:[#allocation8 + $0x408] sm:$0xf]  ;;  %v8252_v22 = vld [vmem:[#allocation8 + $0x2f8] sm:$0xf0] }
 0x5d5   :  { %3112 = vmatpush.bf16.msra.mxu2 %v8027_v38  ;;  %3074 = vmatpush.bf16.msra.mxu1 %v8263_v56  ;;  %v8331_v38 = vor.u32 %v10927_v16, %v8330_v8  ;;  %v7932_v56 = vld [vmem:[#allocation8 + $0x78] sm:$0xf0]  ;;  %v10873_v8 = vld [vmem:[#allocation8 + $0x1ec] sm:$0xf]  ;;  %v8255_v39 = vor.u32 %v10905_v9, %v8252_v22 }
 0x5d6   :  { %3087 = vmatpush.bf16.msra.mxu3 %v8391_v62  ;;  %3100 = vmatpush.bf16.msra.mxu0 %v7883_v49  ;;  %v8187_v62 = vor.u32 %v10891_v48, %v8186_v44  ;;  %v8443_v49 = vor.u32 %v10955_v3, %v8442_v45  ;;  %v8124_v16 = vld [vmem:[#allocation8 + $0x1f8] sm:$0xf0]  ;;  %v10969_v44 = vld [vmem:[#allocation8 + $0x4ec] sm:$0xf] }
 0x5d7   :  { %v8508_v48 = vld [vmem:[#allocation8 + $0x4f8] sm:$0xf0]  ;;  %v8127_v6 = vor.u32 %v10873_v8, %v8124_v16  ;;  %v10869_v45 = vld [vmem:[#allocation8 + $0x1cc] sm:$0xf] }
 0x5d8   :  { %3075 = vmatmul.bf16.vlgmr.msra.gmra.mxu1 %v12704_v20  ;;  %v8108_v3 = vld [vmem:[#allocation8 + $0x1d8] sm:$0xf0]  ;;  %v10921_v16 = vld [vmem:[#allocation8 + $0x36c] sm:$0xf] }
 0x5d9   :  { %3113 = vmatpush.bf16.msra.mxu2 %v8011_v28  ;;  %3119 = vmatpush.bf16.msrb.mxu1 %v8251_v54  ;;  %v7935_v28 = vor.u32 %v10825_v58, %v7932_v56  ;;  %v8298_v54 = vld [vmem:[#allocation8 + $0x348] sm:$0xf]  ;;  %v8511_v56 = vor.u32 %v10969_v44, %v8508_v48  ;;  %v8188_v8 = vld [vmem:[#allocation8 + $0x278] sm:$0xf0]  ;;  %v10953_v22 = vld [vmem:[#allocation8 + $0x46c] sm:$0xf] }
 0x5da   :  { %3132 = vmatpush.bf16.msrb.mxu3 %v8379_v52  ;;  %3145 = vmatpush.bf16.msrb.mxu0 %v8507_v55  ;;  %v10919_v52 = vld [vmem:[#allocation8 + $0x354] sm:$0xf0]  ;;  %v10821_v55 = vld [vmem:[#allocation8 + $0x4c] sm:$0xf]  ;;  %v8316_v9 = vld [vmem:[#allocation8 + $0x378] sm:$0xf0] }
 0x5db   :  { %3088 = vmatmul.bf16.vlgmr.msra.gmra.mxu3 %v12715_v42  ;;  %3101 = vmatmul.bf16.vlgmr.msra.gmra.mxu0 %v12702_v10  ;;  %v8299_v36 = vor.u32 %v10919_v52, %v8298_v54  ;;  %v8111_v54 = vor.u32 %v10869_v45, %v8108_v3  ;;  %v8044_v44 = vld [vmem:[#allocation8 + $0x158] sm:$0xf0]  ;;  %v8319_v48 = vor.u32 %v10921_v16, %v8316_v9  ;;  %v10949_v3 = vld [vmem:[#allocation8 + $0x44c] sm:$0xf]  ;;  %v8610_v9 = vld [vmem:[#allocation7 + $0xc0] sm:$0xf] }
 0x5dc   :  { %3114 = vmatmul.bf16.vlgmr.msra.gmra.mxu2 %v12700_v4  ;;  %v8300_v45 = vld [vmem:[#allocation8 + $0x358] sm:$0xf0] }
 0x5dd   :  { %3158 = vmatpush.bf16.msrb.mxu2 %v7999_v31  ;;  %3120 = vmatpush.bf16.msrb.mxu1 %v8235_v47  ;;  %v7916_v31 = vld [vmem:[#allocation8 + $0x58] sm:$0xf0]  ;;  %v8282_v47 = vld [vmem:[#allocation8 + $0x328] sm:$0xf] }
 0x5de   :  { %3133 = vmatpush.bf16.msrb.mxu3 %v8363_v35  ;;  %3146 = vmatpush.bf16.msrb.mxu0 %v8491_v1  ;;  %v7919_v18 = vor.u32 %v10821_v55, %v7916_v31  ;;  %v10915_v35 = vld [vmem:[#allocation8 + $0x334] sm:$0xf0]  ;;  %v10817_v1 = vld [vmem:[#allocation8 + $0x2c] sm:$0xf]  ;;  %v8367_v55 = vor.u32 %v10933_v14, %v8364_v40  ;;  %v8028_v14 = vld [vmem:[#allocation8 + $0x138] sm:$0xf0] }
 0x5df   :  { %v8283_v37 = vor.u32 %v10915_v35, %v8282_v47  ;;  %v8095_v47 = vor.u32 %v10865_v43, %v8092_v25  ;;  %v8284_v43 = vld [vmem:[#allocation8 + $0x338] sm:$0xf0]  ;;  %v10945_v25 = vld [vmem:[#allocation8 + $0x42c] sm:$0xf] }
 0x5e1   :  { %3159 = vmatpush.bf16.msrb.mxu2 %v7983_v29  ;;  %3121 = vmatpush.bf16.msrb.mxu1 %v8219_v46  ;;  %v7900_v29 = vld [vmem:[#allocation8 + $0x38] sm:$0xf0]  ;;  %v8411_v46 = vor.u32 %v10947_v61, %v8410_v59  ;;  %v10861_v59 = vld [vmem:[#allocation8 + $0x18c] sm:$0xf] }
 0x5e2   :  { %3134 = vmatpush.bf16.msrb.mxu3 %v8347_v57  ;;  %3147 = vmatpush.bf16.msrb.mxu0 %v8475_v11  ;;  %v7903_v57 = vor.u32 %v10817_v1, %v7900_v29  ;;  %v10813_v11 = vld [vmem:[#allocation8 + $0xc] sm:$0xf]  ;;  %v8076_v61 = vld [vmem:[#allocation8 + $0x198] sm:$0xf0]  ;;  %v8351_v1 = vor.u32 %v10929_v13, %v8348_v7 }
 0x5e3   :  { %v8012_v13 = vld [vmem:[#allocation8 + $0x118] sm:$0xf0]  ;;  %v10877_v7 = vld [vmem:[#allocation8 + $0x20c] sm:$0xf] }
 0x5e5   :  { %3160 = vmatpush.bf16.msrb.mxu2 %v7967_v2  ;;  %3122 = vmatpush.bf16.msrb.mxu1 %v8203_v34  ;;  %v7884_v2 = vld [vmem:[#allocation8 + $0x18] sm:$0xf0]  ;;  %v8267_v34 = vor.u32 %v10911_v30, %v8266_v15  ;;  %v10957_v15 = vld [vmem:[#allocation8 + $0x48c] sm:$0xf] }
 0x5e6   :  { %3135 = vmatpush.bf16.msrb.mxu3 %v8331_v38  ;;  %3148 = vmatpush.bf16.msrb.mxu0 %v8459_v5  ;;  %v8380_v38 = vld [vmem:[#allocation8 + $0x3f8] sm:$0xf0]  ;;  %v8395_v5 = vor.u32 %v10943_v0, %v8394_v63 }
 0x5e7   :  { %v8383_v58 = vor.u32 %v10937_v24, %v8380_v38  ;;  %v8460_v30 = vld [vmem:[#allocation8 + $0x498] sm:$0xf0]  ;;  %v10853_v38 = vld [vmem:[#allocation8 + $0x14c] sm:$0xf] }
 0x5e8   :  { %v8060_v63 = vld [vmem:[#allocation8 + $0x178] sm:$0xf0] }
 0x5e9   :  { %3161 = vmatpush.bf16.msrb.mxu2 %v7951_v12  ;;  %3123 = vmatpush.bf16.msrb.mxu1 %v8187_v62  ;;  %v7887_v12 = vor.u32 %v10813_v11, %v7884_v2  ;;  %v10901_v62 = vld [vmem:[#allocation8 + $0x2cc] sm:$0xf]  ;;  %v8463_v11 = vor.u32 %v10957_v15, %v8460_v30  ;;  %v8444_v24 = vld [vmem:[#allocation8 + $0x478] sm:$0xf0] }
 0x5ea   :  { %3136 = vmatpush.bf16.msrb.mxu3 %v8315_v33  ;;  %3149 = vmatpush.bf16.msrb.mxu0 %v8443_v49  ;;  %v8236_v33 = vld [vmem:[#allocation8 + $0x2d8] sm:$0xf0]  ;;  %v10965_v49 = vld [vmem:[#allocation8 + $0x4cc] sm:$0xf] }
 0x5eb   :  { %v8239_v52 = vor.u32 %v10901_v62, %v8236_v33  ;;  %v10889_v2 = vld [vmem:[#allocation8 + $0x26c] sm:$0xf] }
 0x5ec   :  { %v10849_v33 = vld [vmem:[#allocation8 + $0x12c] sm:$0xf] }
 0x5ed   :  { %3162 = vmatpush.bf16.msrb.mxu2 %v7935_v28  ;;  %3124 = vmatpush.bf16.msrb.mxu1 %v8171_v23  ;;  %v8492_v28 = vld [vmem:[#allocation8 + $0x4d8] sm:$0xf0]  ;;  %v10897_v23 = vld [vmem:[#allocation8 + $0x2ac] sm:$0xf] }
 0x5ee   :  { %3137 = vmatpush.bf16.msrb.mxu3 %v8299_v36  ;;  %3150 = vmatpush.bf16.msrb.mxu0 %v8427_v53  ;;  %v8495_v31 = vor.u32 %v10965_v49, %v8492_v28  ;;  %v8220_v36 = vld [vmem:[#allocation8 + $0x2b8] sm:$0xf0]  ;;  %v10961_v53 = vld [vmem:[#allocation8 + $0x4ac] sm:$0xf] }
 0x5ef   :  { %v8223_v35 = vor.u32 %v10897_v23, %v8220_v36  ;;  %v10881_v28 = vld [vmem:[#allocation8 + $0x22c] sm:$0xf]  ;;  %v8031_v23 = vor.u32 %v10849_v33, %v8028_v14  ;;  %v10800_v14 = vld [vmem:[#allocation7 + $0xa4] sm:$0xf] }
 0x5f1   :  { %3163 = vmatpush.bf16.msrb.mxu2 %v7919_v18  ;;  %3125 = vmatpush.bf16.msrb.mxu1 %v8155_v32  ;;  %v8476_v18 = vld [vmem:[#allocation8 + $0x4b8] sm:$0xf0] }
 0x5f2   :  { %3138 = vmatpush.bf16.msrb.mxu3 %v8283_v37  ;;  %3151 = vmatpush.bf16.msrb.mxu0 %v8411_v46  ;;  %v8479_v29 = vor.u32 %v10961_v53, %v8476_v18  ;;  %v8204_v32 = vld [vmem:[#allocation8 + $0x298] sm:$0xf0]  ;;  %v10925_v37 = vld [vmem:[#allocation8 + $0x38c] sm:$0xf]  ;;  %v8079_v46 = vor.u32 %v10861_v59, %v8076_v61 }
 0x5f3   :  { %v8335_v0 = vor.u32 %v10925_v37, %v8332_v41  ;;  %v8140_v53 = vld [vmem:[#allocation8 + $0x218] sm:$0xf0]  ;;  %v10941_v61 = vld [vmem:[#allocation8 + $0x40c] sm:$0xf]  ;;  %v8628_v37 = vld [vmem:[#allocation7 + $0xf0] sm:$0xf0] }
 0x5f4   :  { %v8268_v59 = vld [vmem:[#allocation8 + $0x318] sm:$0xf0]  ;;  %v8634_v41 = vld [vmem:[#allocation7 + $0xe8] sm:$0xf]  ;;  %v8143_v30 = vor.u32 %v10877_v7, %v8140_v53  ;;  %v8578_v53 = vld [vmem:[#allocation7 + $0x80] sm:$0xf] }
 0x5f5   :  { %3164 = vmatpush.bf16.msrb.mxu2 %v7903_v57  ;;  %3126 = vmatpush.bf16.msrb.mxu1 %v8139_v27  ;;  %v10857_v57 = vld [vmem:[#allocation8 + $0x16c] sm:$0xf] }
 0x5f6   :  { %3139 = vmatpush.bf16.msrb.mxu3 %v8267_v34  ;;  %3152 = vmatpush.bf16.msrb.mxu0 %v8395_v5  ;;  %v8063_v27 = vor.u32 %v10857_v57, %v8060_v63  ;;  %v8191_v34 = vor.u32 %v10889_v2, %v8188_v8  ;;  %v8447_v5 = vor.u32 %v10953_v22, %v8444_v24  ;;  %v8636_v57 = vld [vmem:[#allocation7 + $0xf8] sm:$0xf0]  ;;  %v10806_v22 = vld [vmem:[#allocation7 + $0xcc] sm:$0xf0] }
 0x5f8   :  { %3127 = vmatmul.bf16.vlgmr.msrb.gmra.mxu1 %v12706_v21 }
 0x5f9   :  { %3165 = vmatpush.bf16.msrb.mxu2 %v7887_v12  ;;  %3171 = vmatpush.bf16.msra.mxu1 %v8127_v6  ;;  %v10885_v12 = vld [vmem:[#allocation8 + $0x24c] sm:$0xf]  ;;  %v8172_v6 = vld [vmem:[#allocation8 + $0x258] sm:$0xf0] }
 0x5fa   :  { %3184 = vmatpush.bf16.msra.mxu3 %v8255_v39  ;;  %3197 = vmatpush.bf16.msra.mxu0 %v8383_v58  ;;  %v10917_v39 = vld [vmem:[#allocation8 + $0x34c] sm:$0xf]  ;;  %v8428_v58 = vld [vmem:[#allocation8 + $0x458] sm:$0xf0]  ;;  %v8175_v62 = vor.u32 %v10885_v12, %v8172_v6 }
 0x5fb   :  { %3140 = vmatmul.bf16.vlgmr.msrb.gmra.mxu3 %v12704_v20  ;;  %3153 = vmatmul.bf16.vlgmr.msrb.gmra.mxu0 %v12715_v42  ;;  %v8303_v40 = vor.u32 %v10917_v39, %v8300_v45  ;;  %v8431_v49 = vor.u32 %v10949_v3, %v8428_v58  ;;  %v8620_v12 = vld [vmem:[#allocation7 + $0xd8] sm:$0xf0]  ;;  %v8594_v3 = vld [vmem:[#allocation7 + $0xa0] sm:$0xf]  ;;  %v10802_v58 = vld [vmem:[#allocation7 + $0xac] sm:$0xf0] }
 0x5fc   :  { %3166 = vmatmul.bf16.vlgmr.msrb.gmra.mxu2 %v12702_v10  ;;  %v8207_v10 = vor.u32 %v10893_v26, %v8204_v32  ;;  %v10810_v26 = vld [vmem:[#allocation7 + $0xec] sm:$0xf0]  ;;  %v10808_v32 = vld [vmem:[#allocation7 + $0xe4] sm:$0xf]  ;;  %v13110_v6 = vld [vmem:[#allocation32_spill] sm:$0xff] }
 0x5fd   :  { %3210 = vmatpush.bf16.msra.mxu2 %v8511_v56  ;;  %3172 = vmatpush.bf16.msra.mxu1 %v8111_v54  ;;  %v8047_v56 = vor.u32 %v10853_v38, %v8044_v44  ;;  %v8156_v54 = vld [vmem:[#allocation8 + $0x238] sm:$0xf0]  ;;  %v8631_v16 = vor.u32 %v10808_v32, %v8628_v37  ;;  %v8612_v38 = vld [vmem:[#allocation7 + $0xd0] sm:$0xf0]  ;;  %v8618_v44 = vld [vmem:[#allocation7 + $0xc8] sm:$0xf] }
 0x5fe   :  { %3185 = vmatpush.bf16.msra.mxu3 %v8239_v52  ;;  %3198 = vmatpush.bf16.msra.mxu0 %v8367_v55  ;;  %v10913_v52 = vld [vmem:[#allocation8 + $0x32c] sm:$0xf]  ;;  %v8412_v55 = vld [vmem:[#allocation8 + $0x438] sm:$0xf0]  ;;  %v8159_v36 = vor.u32 %v10881_v28, %v8156_v54  ;;  %v13111_v28 = vld [vmem:[#allocation39_spill] sm:$0xff] }
 0x5ff   :  { %v8287_v18 = vor.u32 %v10913_v52, %v8284_v43  ;;  %v651_v54 = vadd.f32 %v13111_v28, %v12245_v60  ;;  %v8595_v60 = vor.u32 %v10802_v58, %v8594_v3  ;;  %v8548_v58 = vld [vmem:[#allocation7 + $0x50] sm:$0xf0] }
 0x601   :  { %3211 = vmatpush.bf16.msra.mxu2 %v8495_v31  ;;  %3173 = vmatpush.bf16.msra.mxu1 %v8095_v47  ;;  %v10845_v31 = vld [vmem:[#allocation8 + $0x10c] sm:$0xf]  ;;  %v8415_v47 = vor.u32 %v10945_v25, %v8412_v55  ;;  %v10803_v25 = vld [vmem:[#allocation7 + $0xb4] sm:$0xf0] }
 0x602   :  { %3186 = vmatpush.bf16.msra.mxu3 %v8223_v35  ;;  %3199 = vmatpush.bf16.msra.mxu0 %v8351_v1  ;;  %v10909_v35 = vld [vmem:[#allocation8 + $0x30c] sm:$0xf]  ;;  %v8396_v1 = vld [vmem:[#allocation8 + $0x418] sm:$0xf0]  ;;  %v8015_v15 = vor.u32 %v10845_v31, %v8012_v13 }
 0x603   :  { %v8271_v63 = vor.u32 %v10909_v35, %v8268_v59  ;;  %v10801_v55 = vld [vmem:[#allocation7 + $0xac] sm:$0xf]  ;;  %v8604_v31 = vld [vmem:[#allocation7 + $0xb8] sm:$0xf0]  ;;  %v10796_v35 = vld [vmem:[#allocation7 + $0x84] sm:$0xf] }
 0x604   :  { %v8586_v59 = vld [vmem:[#allocation7 + $0x88] sm:$0xf] }
 0x605   :  { %3212 = vmatpush.bf16.msra.mxu2 %v8479_v29  ;;  %3174 = vmatpush.bf16.msra.mxu1 %v8079_v46  ;;  %v8626_v29 = vld [vmem:[#allocation7 + $0xe0] sm:$0xf]  ;;  %v10811_v46 = vld [vmem:[#allocation7 + $0xf4] sm:$0xf0] }
 0x606   :  { %3187 = vmatpush.bf16.msra.mxu3 %v8207_v10  ;;  %3200 = vmatpush.bf16.msra.mxu0 %v8335_v0  ;;  %v10809_v10 = vld [vmem:[#allocation7 + $0xec] sm:$0xf]  ;;  %v8399_v0 = vor.u32 %v10941_v61, %v8396_v1  ;;  %v8627_v8 = vor.u32 %v10810_v26, %v8626_v29  ;;  %v8635_v24 = vor.u32 %v10811_v46, %v8634_v41  ;;  %v8562_v46 = vld [vmem:[#allocation7 + $0x60] sm:$0xf] }
 0x607   :  { %v10797_v1 = vld [vmem:[#allocation7 + $0x8c] sm:$0xf] }
 0x608   :  { %v13114_v29 = vld [vmem:[#allocation58_spill] sm:$0xff] }
 0x609   :  { %3213 = vmatpush.bf16.msra.mxu2 %v8463_v11  ;;  %3175 = vmatpush.bf16.msra.mxu1 %v8063_v27  ;;  %v13109_v11 = vld [vmem:[#allocation36_spill] sm:$0xff]  ;;  %v8639_v27 = vor.u32 %v10809_v10, %v8636_v57  ;;  %v10794_v10 = vld [vmem:[#allocation7 + $0x6c] sm:$0xf0]  ;;  %v10792_v57 = vld [vmem:[#allocation7 + $0x64] sm:$0xf] }
 0x60a   :  { %3188 = vmatpush.bf16.msra.mxu3 %v8191_v34  ;;  %3201 = vmatpush.bf16.msra.mxu0 %v8319_v48  ;;  %v593_v2 = vadd.f32 %v13109_v11, %v12229_v50  ;;  %v10804_v34 = vld [vmem:[#allocation7 + $0xc4] sm:$0xf]  ;;  %v10807_v48 = vld [vmem:[#allocation7 + $0xd4] sm:$0xf0]  ;;  %v8611_v50 = vor.u32 %v10806_v22, %v8610_v9 }
 0x60b   :  { %v8615_v45 = vor.u32 %v10804_v34, %v8612_v38  ;;  %v10795_v9 = vld [vmem:[#allocation7 + $0x74] sm:$0xf0]  ;;  %v8572_v34 = vld [vmem:[#allocation7 + $0x78] sm:$0xf0] }
 0x60c   :  { %v622_v39 = vadd.f32 %v13110_v6, %v593_v2  ;;  %v10790_v6 = vld [vmem:[#allocation7 + $0x4c] sm:$0xf0] }
 0x60d   :  { %3214 = vmatpush.bf16.msra.mxu2 %v8447_v5  ;;  %3176 = vmatpush.bf16.msra.mxu1 %v8047_v56  ;;  %v10805_v5 = vld [vmem:[#allocation7 + $0xcc] sm:$0xf] }
 0x60e   :  { %3189 = vmatpush.bf16.msra.mxu3 %v8175_v62  ;;  %3202 = vmatpush.bf16.msra.mxu0 %v8303_v40  ;;  %v8619_v62 = vor.u32 %v10807_v48, %v8618_v44  ;;  %v8623_v33 = vor.u32 %v10805_v5, %v8620_v12  ;;  %v8596_v40 = vld [vmem:[#allocation7 + $0xb0] sm:$0xf0]  ;;  %v8563_v48 = vor.u32 %v10794_v10, %v8562_v46  ;;  %v8546_v12 = vld [vmem:[#allocation7 + $0x40] sm:$0xf]  ;;  %v10783_v10 = vld [vmem:[#allocation7 + $0x14] sm:$0xf0] }
 0x60f   :  { %v8599_v7 = vor.u32 %v10800_v14, %v8596_v40  ;;  %v8556_v14 = vld [vmem:[#allocation7 + $0x58] sm:$0xf0]  ;;  %v8547_v28 = vor.u32 %v10790_v6, %v8546_v12 }
 0x611   :  { %3215 = vmatpush.bf16.msra.mxu2 %v8431_v49  ;;  %3177 = vmatpush.bf16.msra.mxu1 %v8031_v23  ;;  %v8602_v49 = vld [vmem:[#allocation7 + $0xa8] sm:$0xf]  ;;  %v13112_v23 = vld [vmem:[#allocation57_spill] sm:$0xff] }
 0x612   :  { %3190 = vmatpush.bf16.msra.mxu3 %v8159_v36  ;;  %3203 = vmatpush.bf16.msra.mxu0 %v8287_v18  ;;  %v767_v36 = vadd.f32 %v13112_v23, %v12340_v19  ;;  %v10798_v18 = vld [vmem:[#allocation7 + $0x8c] sm:$0xf0] }
 0x613   :  { %v13113_v19 = vld [vmem:[#allocation35_spill] sm:$0xff] }
 0x614   :  { %v1839_v56 = vpop.f32.mrf.mxu1  ;;  %v680_v61 = vadd.f32 %v13113_v19, %v651_v54  ;;  %v796_v26 = vadd.f32 %v13114_v29, %v767_v36 }
 0x615   :  { %3216 = vmatpush.bf16.msra.mxu2 %v8415_v47  ;;  %3178 = vmatpush.bf16.msra.mxu1 %v8015_v15  ;;  %v1882_v52 = vadd.f32 %v1839_v56, %v622_v39  ;;  %v12734_v43 = vpop.f32.mrf.mxu0  ;;  %v8607_v47 = vor.u32 %v10801_v55, %v8604_v31  ;;  %v8579_v15 = vor.u32 %v10798_v18, %v8578_v53  ;;  %v10788_v39 = vld [vmem:[#allocation7 + $0x44] sm:$0xf]  ;;  %v8554_v56 = vld [vmem:[#allocation7 + $0x48] sm:$0xf]  ;;  %v10787_v18 = vld [vmem:[#allocation7 + $0x34] sm:$0xf0] }
 0x616   :  { %3191 = vmatpush.bf16.msra.mxu3 %v8143_v30  ;;  %3204 = vmatpush.bf16.msra.mxu0 %v8271_v63  ;;  %v8551_v54 = vor.u32 %v10788_v39, %v8548_v58  ;;  %v13115_v55 = vld [vmem:[#allocation53_spill] sm:$0xff] }
 0x617   :  { %v7869_v13 = vmul.f32 -1.442695, %v1882_v52  ;;  %v8530_v52 = vld [vmem:[#allocation7 + $0x20] sm:$0xf]  ;;  %v709_v31 = vadd.f32 %v13115_v55, %v12316_v17 }
 0x618   :  { %3179 = vmatmul.bf16.vlgmr.msra.gmra.mxu1 %v12700_v4  ;;  %v8580_v4 = vld [vmem:[#allocation7 + $0x90] sm:$0xf0] }
 0x619   :  { %3217 = vmatpush.bf16.msra.mxu2 %v8399_v0  ;;  %3383 = vmatpush.bf16.msrb.mxu1 %v8627_v8  ;;  %11608 = vpow2.f32 %v7869_v13  ;;  %v8583_v30 = vor.u32 %v10796_v35, %v8580_v4  ;;  %v8564_v8 = vld [vmem:[#allocation7 + $0x70] sm:$0xf0]  ;;  %v10784_v13 = vld [vmem:[#allocation7 + $0x24] sm:$0xf] }
 0x61a   :  { %3396 = vmatpush.bf16.msrb.mxu3 %v8631_v16  ;;  %3409 = vmatpush.bf16.msrb.mxu0 %v8635_v24  ;;  %v1852_v32 = vpop.f32.mrf.mxu3  ;;  %v8570_v16 = vld [vmem:[#allocation7 + $0x68] sm:$0xf]  ;;  %v8567_v5 = vor.u32 %v10792_v57, %v8564_v8  ;;  %v13116_v4 = vld [vmem:[#allocation55_spill] sm:$0xff]  ;;  %v10781_v57 = vld [vmem:[#allocation7 + $0xc] sm:$0xf] }
 0x61b   :  { %3192 = vmatmul.bf16.vlgmr.msra.gmra.mxu3 %v12706_v21  ;;  %3205 = vmatmul.bf16.vlgmr.msra.gmra.mxu0 %v12704_v20  ;;  %v8603_v21 = vor.u32 %v10803_v25, %v8602_v49  ;;  %v8588_v20 = vld [vmem:[#allocation7 + $0x98] sm:$0xf0]  ;;  %v1883_v37 = vadd.f32 %v1852_v32, %v680_v61  ;;  %v1878_v41 = vpop.f32.mrf.mxu2  ;;  %v10786_v25 = vld [vmem:[#allocation7 + $0x2c] sm:$0xf0] }
 0x61c   :  { %3218 = vmatmul.bf16.vlgmr.msra.gmra.mxu2 %v12715_v42  ;;  %v10799_v42 = vld [vmem:[#allocation7 + $0x94] sm:$0xf0]  ;;  %v1885_v63 = vadd.f32 %v1878_v41, %v796_v26  ;;  %v1841_v0 = vpop.f32.mrf.mxu1  ;;  %v8591_v2 = vor.u32 %v10797_v1, %v8588_v20  ;;  %v8531_v17 = vor.u32 %v10786_v25, %v8530_v52  ;;  %v8514_v1 = vld [vmem:[#allocation7] sm:$0xf]  ;;  %v10782_v20 = vld [vmem:[#allocation7 + $0xc] sm:$0xf0] }
 0x61d   :  { %3422 = vmatpush.bf16.msrb.mxu2 %v8639_v27  ;;  %3384 = vmatpush.bf16.msrb.mxu1 %v8611_v50  ;;  %v8587_v11 = vor.u32 %v10799_v42, %v8586_v59  ;;  %v7870_v22 = vmul.f32 -1.442695, %v1883_v37  ;;  %v1867_v24 = vpop.f32.mrf.mxu0  ;;  %v10793_v27 = vld [vmem:[#allocation7 + $0x6c] sm:$0xf]  ;;  %v738_v59 = vadd.f32 %v13116_v4, %v709_v31  ;;  %v10780_v41 = vld [vmem:[#allocation7 + $0x4] sm:$0xf] }
 0x61e   :  { %3397 = vmatpush.bf16.msrb.mxu3 %v8615_v45  ;;  %3410 = vmatpush.bf16.msrb.mxu0 %v8619_v62  ;;  %v7871_v38 = vmul.f32 -1.442695, %v1885_v63  ;;  %v8571_v45 = vor.u32 %v10795_v9, %v8570_v16  ;;  %v8575_v3 = vor.u32 %v10793_v27, %v8572_v34  ;;  %v10791_v62 = vld [vmem:[#allocation7 + $0x54] sm:$0xf0]  ;;  %v8524_v63 = vld [vmem:[#allocation7 + $0x18] sm:$0xf0] }
 0x61f   :  { %v11609_v44 = vpop.eup %11608  ;;  %11610 = vpow2.f32 %v7870_v22  ;;  %v8555_v23 = vor.u32 %v10791_v62, %v8554_v56  ;;  %v1884_v26 = vadd.f32 %v12734_v43, %v738_v59  ;;  %v8515_v43 = vor.u32 %v10782_v20, %v8514_v1 }
 0x620   :  { %v12744_v50 = vadd.f32 1.0, %v11609_v44  ;;  %11612 = vpow2.f32 %v7871_v38  ;;  %v8527_v22 = vor.u32 %v10781_v57, %v8524_v63 }
 0x621   :  { %3423 = vmatpush.bf16.msrb.mxu2 %v8623_v33  ;;  %3385 = vmatpush.bf16.msrb.mxu1 %v8595_v60  ;;  %v10789_v33 = vld [vmem:[#allocation7 + $0x4c] sm:$0xf]  ;;  %v8532_v60 = vld [vmem:[#allocation7 + $0x30] sm:$0xf0] }
 0x622   :  { %3398 = vmatpush.bf16.msrb.mxu3 %v8599_v7  ;;  %3411 = vmatpush.bf16.msrb.mxu0 %v8603_v21  ;;  %11614 = vrcp.f32 %v12744_v50  ;;  %v1854_v40 = vpop.f32.mrf.mxu3  ;;  %v8559_v36 = vor.u32 %v10789_v33, %v8556_v14  ;;  %v8538_v7 = vld [vmem:[#allocation7 + $0x28] sm:$0xf]  ;;  %v10785_v21 = vld [vmem:[#allocation7 + $0x2c] sm:$0xf]  ;;  %v8535_v42 = vor.u32 %v10784_v13, %v8532_v60  ;;  %v1901_v16 = vand.u32 2147483648, %v12744_v50 }
 0x623   :  { %v1880_v49 = vpop.f32.mrf.mxu2  ;;  %v8539_v32 = vor.u32 %v10787_v18, %v8538_v7  ;;  %v1899_v34 = vand.u32 2147483647, %v12744_v50  ;;  %vm1895_vm6 = vweird.f32 %v12744_v50 }
 0x624   :  { %v2972_v0 = vpop.f32.mrf.mxu1 }
 0x625   :  { %3424 = vmatpush.bf16.msrb.mxu2 %v8607_v47  ;;  %3386 = vmatpush.bf16.msrb.mxu1 %v8579_v15  ;;  %v11611_v53 = vpop.eup %11610  ;;  %v8540_v47 = vld [vmem:[#allocation7 + $0x38] sm:$0xf0]  ;;  %v8516_v15 = vld [vmem:[#allocation7 + $0x10] sm:$0xf0]  ;;  %vm1900_vm8 = vcmp.eq.f32.partialorder %v1899_v34, 8.507059e+37 }
 0x626   :  { %3399 = vmatpush.bf16.msrb.mxu3 %v8583_v30  ;;  %3412 = vmatpush.bf16.msrb.mxu0 %v8587_v11  ;;  %v11613_v35 = vpop.eup %11612  ;;  %v12750_v19 = vadd.f32 1.0, %v11611_v53  ;;  %v8543_v37 = vor.u32 %v10785_v21, %v8540_v47  ;;  %v8522_v30 = vld [vmem:[#allocation7 + $0x8] sm:$0xf]  ;;  %v2998_v11 = vpop.f32.mrf.mxu0  ;;  %v8519_v8 = vor.u32 %v10780_v41, %v8516_v15 }
 0x627   :  { %v12752_v61 = vadd.f32 1.0, %v11613_v35  ;;  %v8523_v9 = vor.u32 %v10783_v10, %v8522_v30  ;;  %v8754_v30 = vld [vmem:[#allocation10 + $0xe0] sm:$0xf] }
 0x628   :  { %v11615_v29 = vpop.eup %11614  ;;  %11616 = vrcp.f32 %v12750_v19  ;;  %v1918_v52 = vand.u32 2147483647, %v12750_v19  ;;  %vm1914_vm10 = vweird.f32 %v12750_v19  ;;  %v9010_v10 = vld [vmem:[#allocation10 + $0x2e0] sm:$0xf] }
 0x629   :  { %3425 = vmatpush.bf16.msrb.mxu2 %v8591_v2  ;;  %3387 = vmatpush.bf16.msrb.mxu1 %v8563_v48  ;;  %v1891_v46 = vmul.f32 %v11615_v29, %v12744_v50  ;;  %11618 = vrcp.f32 %v12752_v61  ;;  %vm1896_vm5 = vweird.f32 %v11615_v29  ;;  %v1920_v50 = vand.u32 2147483648, %v12750_v19 }
 0x62a   :  { %3400 = vmatpush.bf16.msrb.mxu3 %v8567_v5  ;;  %3413 = vmatpush.bf16.msrb.mxu0 %v8571_v45  ;;  %11620 = vtanh.f32 %v1884_v26  ;;  %v2985_v24 = vpop.f32.mrf.mxu3  ;;  %vm1897_vm7 = vmor %vm1895_vm6, %vm1896_vm5  ;;  %v1902_v45 = vor.u32 1.1754944e-38, %v1901_v16  ;;  %vm1919_vm12 = vcmp.eq.f32.partialorder %v1918_v52, 8.507059e+37  ;;  %v1940_v59 = vand.u32 2147483648, %v12752_v61 }
 0x62b   :  { %v1892_v2 = vsub.f32 1.0, %v1891_v46  ;;  %v2986_v38 = vadd.f32 %v2985_v24, %v2972_v0  ;;  %v3011_v44 = vpop.f32.mrf.mxu2  ;;  %vm1934_vm14 = vweird.f32 %v12752_v61  ;;  %v11002_v46 = vld [vmem:[#allocation10 + $0xec] sm:$0xf0]  ;;  %v8994_v24 = vld [vmem:[#allocation10 + $0x2c0] sm:$0xf] }
 0x62c   :  { %v2974_v62 = vpop.f32.mrf.mxu1  ;;  %v8755_v0 = vor.u32 %v11002_v46, %v8754_v30  ;;  %v9090_v30 = vld [vmem:[#allocation10 + $0x380] sm:$0xf]  ;;  %v11086_v46 = vld [vmem:[#allocation10 + $0x38c] sm:$0xf0] }
 0x62d   :  { %3426 = vmatpush.bf16.msrb.mxu2 %v8575_v3  ;;  %3388 = vmatpush.bf16.msrb.mxu1 %v8547_v28  ;;  %v1893_v27 = vmul.f32 %v11615_v29, %v1892_v2  ;;  %v2999_v39 = vadd.f32 %v2998_v11, %v2986_v38  ;;  %v11062_v38 = vld [vmem:[#allocation10 + $0x2cc] sm:$0xf0]  ;;  %v8722_v62 = vld [vmem:[#allocation10 + $0xa0] sm:$0xf] }
 0x62e   :  { %3401 = vmatpush.bf16.msrb.mxu3 %v8551_v54  ;;  %3414 = vmatpush.bf16.msrb.mxu0 %v8555_v23  ;;  %v11617_v48 = vpop.eup %11616  ;;  %v3000_v14 = vpop.f32.mrf.mxu0 }
 0x62f   :  { %v11619_v5 = vpop.eup %11618  ;;  %v1894_v12 = vadd.f32 %v11615_v29, %v1893_v27  ;;  %v1910_v6 = vmul.f32 %v11617_v48, %v12750_v19  ;;  %v3012_v33 = vadd.f32 %v3011_v44, %v2999_v39  ;;  %vm1915_vm9 = vweird.f32 %v11617_v48  ;;  %v9138_v39 = vld [vmem:[#allocation10 + $0x3e0] sm:$0xf] }
 0x630   :  { %v1930_v3 = vmul.f32 %v11619_v5, %v12752_v61  ;;  %v11621_v40 = vpop.eup %11620  ;;  %vm1916_vm11 = vmor %vm1914_vm10, %vm1915_vm9  ;;  %vm1935_vm13 = vweird.f32 %v11619_v5  ;;  %v1938_v19 = vand.u32 2147483647, %v12752_v61  ;;  %v11066_v61 = vld [vmem:[#allocation10 + $0x2ec] sm:$0xf0] }
 0x631   :  { %3427 = vmatpush.bf16.msrb.mxu2 %v8559_v36  ;;  %3389 = vmatpush.bf16.msrb.mxu1 %v8531_v17  ;;  %v1898_v58 = vsel %vm1897_vm7, %v11615_v29, %v1894_v12  ;;  %v1911_v56 = vsub.f32 1.0, %v1910_v6  ;;  %v1921_v36 = vor.u32 1.1754944e-38, %v1920_v50  ;;  %vm1936_vm15 = vmor %vm1934_vm14, %vm1935_vm13  ;;  %v9011_v2 = vor.u32 %v11066_v61, %v9010_v10  ;;  %v8882_v12 = vld [vmem:[#allocation10 + $0x1e0] sm:$0xf]  ;;  %v11034_v6 = vld [vmem:[#allocation10 + $0x1ec] sm:$0xf0] }
 0x632   :  { %3402 = vmatpush.bf16.msrb.mxu3 %v8535_v42  ;;  %3415 = vmatpush.bf16.msrb.mxu0 %v8539_v32  ;;  %v1903_v49 = vsel %vm1900_vm8, %v1902_v45, %v1898_v58  ;;  %v1931_v25 = vsub.f32 1.0, %v1930_v3  ;;  %v2987_v55 = vpop.f32.mrf.mxu3  ;;  %vm1939_vm0 = vcmp.eq.f32.partialorder %v1938_v19, 8.507059e+37  ;;  %v8883_v58 = vor.u32 %v11034_v6, %v8882_v12  ;;  %v8978_v50 = vld [vmem:[#allocation10 + $0x2a0] sm:$0xf]  ;;  %v11090_v19 = vld [vmem:[#allocation10 + $0x3ac] sm:$0xf0] }
 0x633   :  { %v1945_v28 = vmul.f32 %v11621_v40, %v1903_v49  ;;  %v1912_v54 = vmul.f32 %v11617_v48, %v1911_v56  ;;  %v3013_v23 = vpop.f32.mrf.mxu2  ;;  %v11098_v56 = vld [vmem:[#allocation10 + $0x3ec] sm:$0xf0]  ;;  %v9122_v55 = vld [vmem:[#allocation10 + $0x3c0] sm:$0xf] }
 0x634   :  { %v1932_v7 = vmul.f32 %v11619_v5, %v1931_v25  ;;  %v9139_v40 = vor.u32 %v11098_v56, %v9138_v39  ;;  %v11030_v25 = vld [vmem:[#allocation10 + $0x1cc] sm:$0xf0]  ;;  %v8930_v61 = vld [vmem:[#allocation10 + $0x240] sm:$0xf] }
 0x635   :  { %3428 = vmatpush.bf16.msrb.mxu2 %v8543_v37  ;;  %3390 = vmatpush.bf16.msrb.mxu1 %v8515_v43  ;;  %v1913_v31 = vadd.f32 %v11617_v48, %v1912_v54  ;;  %v3024_v18 = vpop.f32.mrf.mxu1  ;;  %v8866_v54 = vld [vmem:[#allocation10 + $0x1c0] sm:$0xf]  ;;  %v11014_v39 = vld [vmem:[#allocation10 + $0x14c] sm:$0xf0] }
 0x636   :  { %3403 = vmatpush.bf16.msrb.mxu3 %v8519_v8  ;;  %3416 = vmatpush.bf16.msrb.mxu0 %v8523_v9  ;;  %v12767_v47 = vadd.f32 %v3024_v18, %v3012_v33  ;;  %v1933_v4 = vadd.f32 %v11619_v5, %v1932_v7  ;;  %v8738_v9 = vld [vmem:[#allocation10 + $0xc0] sm:$0xf]  ;;  %v10994_v33 = vld [vmem:[#allocation10 + $0xac] sm:$0xf0]  ;;  %v8867_v23 = vor.u32 %v11030_v25, %v8866_v54 }
 0x637   :  { %v1917_v13 = vsel %vm1916_vm11, %v11617_v48, %v1913_v31  ;;  %v8723_v49 = vor.u32 %v10994_v33, %v8722_v62  ;;  %v11094_v31 = vld [vmem:[#allocation10 + $0x3cc] sm:$0xf0]  ;;  %v8962_v7 = vld [vmem:[#allocation10 + $0x280] sm:$0xf] }
 0x638   :  { %v1922_v60 = vsel %vm1919_vm12, %v1921_v36, %v1917_v13  ;;  %v3050_v21 = vpop.f32.mrf.mxu0  ;;  %v1937_v20 = vsel %vm1936_vm15, %v11619_v5, %v1933_v4  ;;  %v8995_v5 = vor.u32 %v11062_v38, %v8994_v24  ;;  %v9123_v36 = vor.u32 %v11094_v31, %v9122_v55  ;;  %v8706_v13 = vld [vmem:[#allocation10 + $0x80] sm:$0xf]  ;;  %v11054_v18 = vld [vmem:[#allocation10 + $0x28c] sm:$0xf0] }
 0x639   :  { %3429 = vmatpush.bf16.msrb.mxu2 %v8527_v22  ;;  %v1944_v53 = vmul.f32 %v1922_v60, %v12677_v51  ;;  %v1941_v51 = vor.u32 1.1754944e-38, %v1940_v59  ;;  %4235 = vmatpush.bf16.msra.mxu1 %v8755_v0  ;;  %v10998_v22 = vld [vmem:[#allocation10 + $0xcc] sm:$0xf0]  ;;  %v8963_v4 = vor.u32 %v11054_v18, %v8962_v7  ;;  %v9106_v59 = vld [vmem:[#allocation10 + $0x3a0] sm:$0xf] }
 0x63a   :  { %4261 = vmatpush.bf16.msra.mxu0 %v9011_v2  ;;  %v8739_v34 = vor.u32 %v10998_v22, %v8738_v9  ;;  %4248 = vmatpush.bf16.msra.mxu3 %v8883_v58  ;;  %v10990_v60 = vld [vmem:[#allocation10 + $0x8c] sm:$0xf0]  ;;  %v9091_v2 = vor.u32 %v11086_v46, %v9090_v30  ;;  %v9074_v9 = vld [vmem:[#allocation10 + $0x360] sm:$0xf] }
 0x63b   :  { %v1946_v35 = vadd.f32 %v1945_v28, %v1944_v53  ;;  %v1942_v41 = vsel %vm1939_vm0, %v1941_v51, %v1937_v20  ;;  %v11058_v28 = vld [vmem:[#allocation10 + $0x2ac] sm:$0xf0]  ;;  %v8707_v53 = vor.u32 %v10990_v60, %v8706_v13  ;;  %v8946_v51 = vld [vmem:[#allocation10 + $0x260] sm:$0xf]  ;;  %v11064_v13 = vld [vmem:[#allocation10 + $0x2e4] sm:$0xf] }
 0x63c   :  { %v8979_v52 = vor.u32 %v11058_v28, %v8978_v50  ;;  %v10986_v20 = vld [vmem:[#allocation10 + $0x6c] sm:$0xf0]  ;;  %v8802_v6 = vld [vmem:[#allocation10 + $0x140] sm:$0xf] }
 0x63d   :  { %11622 = vtanh.f32 %v1946_v35  ;;  %v3026_v29 = vpop.f32.mrf.mxu1  ;;  %4236 = vmatpush.bf16.msra.mxu1 %v8739_v34  ;;  %4274 = vmatpush.bf16.msra.mxu2 %v9139_v40  ;;  %v11026_v35 = vld [vmem:[#allocation10 + $0x1ac] sm:$0xf0]  ;;  %v9058_v58 = vld [vmem:[#allocation10 + $0x340] sm:$0xf]  ;;  %v8803_v33 = vor.u32 %v11014_v39, %v8802_v6 }
 0x63e   :  { %v3037_v17 = vpop.f32.mrf.mxu3  ;;  %4262 = vmatpush.bf16.msra.mxu0 %v8995_v5  ;;  %4249 = vmatpush.bf16.msra.mxu3 %v8867_v23  ;;  %v11050_v29 = vld [vmem:[#allocation10 + $0x26c] sm:$0xf0]  ;;  %v8642_v40 = vld [vmem:[#allocation10] sm:$0xf]  ;;  %v11000_v23 = vld [vmem:[#allocation10 + $0xe4] sm:$0xf] }
 0x63f   :  { %v3063_v42 = vpop.f32.mrf.mxu2  ;;  %v3051_v1 = vadd.f32 %v3050_v21, %v3037_v17  ;;  %v8850_v21 = vld [vmem:[#allocation10 + $0x1a0] sm:$0xf]  ;;  %v8947_v10 = vor.u32 %v11050_v29, %v8946_v51  ;;  %v11082_v22 = vld [vmem:[#allocation10 + $0x36c] sm:$0xf0]  ;;  %v10996_v29 = vld [vmem:[#allocation10 + $0xc4] sm:$0xf] }
 0x640   :  { %v3052_v32 = vpop.f32.mrf.mxu0  ;;  %v8690_v17 = vld [vmem:[#allocation10 + $0x60] sm:$0xf]  ;;  %v10978_v34 = vld [vmem:[#allocation10 + $0x2c] sm:$0xf0]  ;;  %v9075_v12 = vor.u32 %v11082_v22, %v9074_v9  ;;  %v10992_v9 = vld [vmem:[#allocation10 + $0xa4] sm:$0xf] }
 0x641   :  { %v3064_v26 = vadd.f32 %v3063_v42, %v3051_v1  ;;  %4237 = vmatpush.bf16.msra.mxu1 %v8723_v49  ;;  %v8851_v1 = vor.u32 %v11026_v35, %v8850_v21  ;;  %4275 = vmatpush.bf16.msra.mxu2 %v9123_v36  ;;  %v9107_v32 = vor.u32 %v11090_v19, %v9106_v59  ;;  %v11042_v5 = vld [vmem:[#allocation10 + $0x22c] sm:$0xf0]  ;;  %v8898_v50 = vld [vmem:[#allocation10 + $0x200] sm:$0xf]  ;;  %v8756_v36 = vld [vmem:[#allocation10 + $0xf0] sm:$0xf0] }
 0x642   :  { %4263 = vmatpush.bf16.msra.mxu0 %v8979_v52  ;;  %v11078_v56 = vld [vmem:[#allocation10 + $0x34c] sm:$0xf0]  ;;  %v8759_v7 = vor.u32 %v11000_v23, %v8756_v36  ;;  %v8786_v18 = vld [vmem:[#allocation10 + $0x120] sm:$0xf]  ;;  %v8724_v22 = vld [vmem:[#allocation10 + $0xb0] sm:$0xf0] }
 0x643   :  { %v11623_v37 = vpop.eup %11622  ;;  %4250 = vmatpush.bf16.msra.mxu3 %v8851_v1  ;;  %v10974_v49 = vld [vmem:[#allocation10 + $0xc] sm:$0xf0] }
 0x644   :  { %v1948_v15 = vmul.f32 %v11623_v37, %v1942_v41  ;;  %v8834_v37 = vld [vmem:[#allocation10 + $0x180] sm:$0xf]  ;;  %v11022_v41 = vld [vmem:[#allocation10 + $0x18c] sm:$0xf0]  ;;  %v8643_v54 = vor.u32 %v10974_v49, %v8642_v40  ;;  %v8964_v40 = vld [vmem:[#allocation10 + $0x290] sm:$0xf0] }
 0x645   :  { %4238 = vmatpush.bf16.msra.mxu1 %v8707_v53  ;;  %v8835_v0 = vor.u32 %v11022_v41, %v8834_v37  ;;  %4276 = vmatpush.bf16.msra.mxu2 %v9107_v32  ;;  %v11038_v52 = vld [vmem:[#allocation10 + $0x20c] sm:$0xf0]  ;;  %v9012_v53 = vld [vmem:[#allocation10 + $0x2f0] sm:$0xf0]  ;;  %v11060_v32 = vld [vmem:[#allocation10 + $0x2c4] sm:$0xf] }
 0x646   :  { %v1952_v57 = vpack.c.bf16 %v1948_v15, %v1948_v15  ;;  %v3039_v63 = vpop.f32.mrf.mxu3  ;;  %v8691_v15 = vor.u32 %v10986_v20, %v8690_v17  ;;  %4264 = vmatpush.bf16.msra.mxu0 %v8963_v4  ;;  %v8899_v31 = vor.u32 %v11038_v52, %v8898_v50  ;;  %v11010_v21 = vld [vmem:[#allocation10 + $0x12c] sm:$0xf0]  ;;  %v9015_v59 = vor.u32 %v11064_v13, %v9012_v53  ;;  %v9042_v17 = vld [vmem:[#allocation10 + $0x320] sm:$0xf]  ;;  %v8996_v41 = vld [vmem:[#allocation10 + $0x2d0] sm:$0xf0] }
 0x647   :  { %v3065_v11 = vpop.f32.mrf.mxu2  ;;  %v10982_v63 = vld [vmem:[#allocation10 + $0x4c] sm:$0xf0]  ;;  %4251 = vmatpush.bf16.msra.mxu3 %v8835_v0  ;;  %v8787_v19 = vor.u32 %v11010_v21, %v8786_v18  ;;  %v8999_v46 = vor.u32 %v11060_v32, %v8996_v41  ;;  %v11032_v0 = vld [vmem:[#allocation10 + $0x1e4] sm:$0xf]  ;;  %v8836_v18 = vld [vmem:[#allocation10 + $0x190] sm:$0xf0] }
 0x648   :  { %3391 = vmatmul.bf16.vlgmr.msrb.gmra.mxu1 %v1952_v57  ;;  %3404 = vmatmul.bf16.vlgmr.msrb.gmra.mxu3 %v1952_v57  ;;  %v11046_v11 = vld [vmem:[#allocation10 + $0x24c] sm:$0xf0]  ;;  %v11088_v52 = vld [vmem:[#allocation10 + $0x3a4] sm:$0xf] }
 0x649   :  { %3417 = vmatmul.bf16.vlgmr.msrb.gmra.mxu0 %v1952_v57  ;;  %3430 = vmatmul.bf16.vlgmr.msrb.gmra.mxu2 %v1952_v57  ;;  %v8674_v57 = vld [vmem:[#allocation10 + $0x40] sm:$0xf]  ;;  %v8931_v24 = vor.u32 %v11046_v11, %v8930_v61  ;;  %v11006_v30 = vld [vmem:[#allocation10 + $0x10c] sm:$0xf0]  ;;  %v8884_v11 = vld [vmem:[#allocation10 + $0x1f0] sm:$0xf0] }
 0x64a   :  { %4239 = vmatpush.bf16.msra.mxu1 %v8691_v15  ;;  %4265 = vmatpush.bf16.msra.mxu0 %v8947_v10  ;;  %v8770_v15 = vld [vmem:[#allocation10 + $0x100] sm:$0xf]  ;;  %v11048_v13 = vld [vmem:[#allocation10 + $0x264] sm:$0xf] }
 0x64b   :  { %4277 = vmatpush.bf16.msra.mxu2 %v9091_v2  ;;  %v8771_v10 = vor.u32 %v11006_v30, %v8770_v15  ;;  %v11096_v2 = vld [vmem:[#allocation10 + $0x3e4] sm:$0xf]  ;;  %v8676_v15 = vld [vmem:[#allocation10 + $0x50] sm:$0xf0] }
 0x64c   :  { %v11084_v21 = vld [vmem:[#allocation10 + $0x384] sm:$0xf] }
 0x64d   :  { %v10980_v41 = vld [vmem:[#allocation10 + $0x44] sm:$0xf] }
 0x64e   :  { %4266 = vmatpush.bf16.msra.mxu0 %v8931_v24  ;;  %v11056_v24 = vld [vmem:[#allocation10 + $0x2a4] sm:$0xf] }
 0x64f   :  { %4278 = vmatpush.bf16.msra.mxu2 %v9075_v12  ;;  %v11044_v30 = vld [vmem:[#allocation10 + $0x244] sm:$0xf] }
 0x655   :  { %v3076_v43 = vpop.f32.mrf.mxu1 }
 0x656   :  { %v3077_v8 = vadd.f32 %v3076_v43, %v3064_v26  ;;  %v8818_v43 = vld [vmem:[#allocation10 + $0x160] sm:$0xf] }
 0x658   :  { %v3102_v16 = vpop.f32.mrf.mxu0 }
 0x65d   :  { %v3078_v3 = vpop.f32.mrf.mxu1 }
 0x65e   :  { %v3089_v27 = vpop.f32.mrf.mxu3 }
 0x65f   :  { %v12772_v44 = vadd.f32 %v3089_v27, %v3077_v8  ;;  %v3115_v48 = vpop.f32.mrf.mxu2  ;;  %v11018_v8 = vld [vmem:[#allocation10 + $0x16c] sm:$0xf0]  ;;  %v8658_v27 = vld [vmem:[#allocation10 + $0x20] sm:$0xf] }
 0x660   :  { %v12774_v45 = vadd.f32 %v3115_v48, %v3102_v16  ;;  %v3104_v14 = vpop.f32.mrf.mxu0  ;;  %v8675_v16 = vor.u32 %v10982_v63, %v8674_v57  ;;  %v8819_v38 = vor.u32 %v11018_v8, %v8818_v43  ;;  %v8914_v48 = vld [vmem:[#allocation10 + $0x220] sm:$0xf]  ;;  %v8659_v3 = vor.u32 %v10978_v34, %v8658_v27  ;;  %v11070_v63 = vld [vmem:[#allocation10 + $0x30c] sm:$0xf0]  ;;  %v9140_v43 = vld [vmem:[#allocation10 + $0x3f0] sm:$0xf0] }
 0x661   :  { %v8915_v62 = vor.u32 %v11042_v5, %v8914_v48  ;;  %v9059_v14 = vor.u32 %v11078_v56, %v9058_v58  ;;  %v9026_v57 = vld [vmem:[#allocation10 + $0x300] sm:$0xf]  ;;  %v8887_v8 = vor.u32 %v11032_v0, %v8884_v11  ;;  %v8727_v34 = vor.u32 %v10992_v9, %v8724_v22  ;;  %v11028_v48 = vld [vmem:[#allocation10 + $0x1c4] sm:$0xf]  ;;  %v8868_v5 = vld [vmem:[#allocation10 + $0x1d0] sm:$0xf0] }
 0x662   :  { %4240 = vmatpush.bf16.msra.mxu1 %v8675_v16  ;;  %4252 = vmatpush.bf16.msra.mxu3 %v8819_v38  ;;  %v9027_v61 = vor.u32 %v11070_v63, %v9026_v57  ;;  %v9143_v16 = vor.u32 %v11096_v2, %v9140_v43  ;;  %v8980_v38 = vld [vmem:[#allocation10 + $0x2b0] sm:$0xf0]  ;;  %v8871_v39 = vor.u32 %v11028_v48, %v8868_v5  ;;  %v10988_v56 = vld [vmem:[#allocation10 + $0x84] sm:$0xf] }
 0x663   :  { %4267 = vmatpush.bf16.msra.mxu0 %v8915_v62  ;;  %4279 = vmatpush.bf16.msra.mxu2 %v9059_v14  ;;  %v8983_v6 = vor.u32 %v11056_v24, %v8980_v38  ;;  %v9124_v58 = vld [vmem:[#allocation10 + $0x3d0] sm:$0xf0]  ;;  %v11052_v14 = vld [vmem:[#allocation10 + $0x284] sm:$0xf] }
 0x664   :  { %v8967_v50 = vor.u32 %v11052_v14, %v8964_v40  ;;  %v11016_v63 = vld [vmem:[#allocation10 + $0x164] sm:$0xf]  ;;  %v8820_v0 = vld [vmem:[#allocation10 + $0x170] sm:$0xf0] }
 0x665   :  { %v11080_v11 = vld [vmem:[#allocation10 + $0x364] sm:$0xf]  ;;  %v9076_v2 = vld [vmem:[#allocation10 + $0x370] sm:$0xf0] }
 0x666   :  { %v3091_v42 = vpop.f32.mrf.mxu3  ;;  %4241 = vmatpush.bf16.msra.mxu1 %v8659_v3  ;;  %4253 = vmatpush.bf16.msra.mxu3 %v8803_v33  ;;  %v11092_v3 = vld [vmem:[#allocation10 + $0x3c4] sm:$0xf]  ;;  %v8708_v33 = vld [vmem:[#allocation10 + $0x90] sm:$0xf0]  ;;  %v9079_v43 = vor.u32 %v11080_v11, %v9076_v2 }
 0x667   :  { %v3117_v26 = vpop.f32.mrf.mxu2  ;;  %4268 = vmatpush.bf16.msra.mxu0 %v8899_v31  ;;  %v9127_v62 = vor.u32 %v11092_v3, %v9124_v58  ;;  %v8711_v49 = vor.u32 %v10988_v56, %v8708_v33  ;;  %v8692_v31 = vld [vmem:[#allocation10 + $0x70] sm:$0xf0]  ;;  %v11040_v22 = vld [vmem:[#allocation10 + $0x224] sm:$0xf] }
 0x668   :  { %v8740_v26 = vld [vmem:[#allocation10 + $0xd0] sm:$0xf0]  ;;  %v11076_v48 = vld [vmem:[#allocation10 + $0x344] sm:$0xf] }
 0x669   :  { %v8743_v37 = vor.u32 %v10996_v29, %v8740_v26  ;;  %v8916_v24 = vld [vmem:[#allocation10 + $0x230] sm:$0xf0]  ;;  %v11036_v58 = vld [vmem:[#allocation10 + $0x204] sm:$0xf] }
 0x66a   :  { %4242 = vmatpush.bf16.msra.mxu1 %v8643_v54  ;;  %4254 = vmatpush.bf16.msra.mxu3 %v8787_v19  ;;  %v8852_v54 = vld [vmem:[#allocation10 + $0x1b0] sm:$0xf0]  ;;  %v11008_v14 = vld [vmem:[#allocation10 + $0x124] sm:$0xf] }
 0x66b   :  { %4313 = vmatpush.bf16.msrb.mxu0 %v9015_v59  ;;  %v8804_v38 = vld [vmem:[#allocation10 + $0x150] sm:$0xf0] }
 0x66c   :  { %v8644_v3 = vld [vmem:[#allocation10 + $0x10] sm:$0xf0] }
 0x66d   :  { %v8788_v40 = vld [vmem:[#allocation10 + $0x130] sm:$0xf0] }
 0x66e   :  { %4287 = vmatpush.bf16.msrb.mxu1 %v8759_v7  ;;  %4255 = vmatpush.bf16.msra.mxu3 %v8771_v10  ;;  %v11020_v7 = vld [vmem:[#allocation10 + $0x184] sm:$0xf]  ;;  %v8932_v10 = vld [vmem:[#allocation10 + $0x250] sm:$0xf0] }
 0x66f   :  { %4314 = vmatpush.bf16.msrb.mxu0 %v8999_v46  ;;  %v8839_v19 = vor.u32 %v11020_v7, %v8836_v18  ;;  %v8679_v46 = vor.u32 %v10980_v41, %v8676_v15  ;;  %v8935_v57 = vor.u32 %v11044_v30, %v8932_v10 }
 0x672   :  { %4288 = vmatpush.bf16.msrb.mxu1 %v8743_v37  ;;  %4300 = vmatpush.bf16.msrb.mxu3 %v8887_v8  ;;  %v10976_v8 = vld [vmem:[#allocation10 + $0x24] sm:$0xf] }
 0x673   :  { %4315 = vmatpush.bf16.msrb.mxu0 %v8983_v6 }
 0x675   :  { %v3128_v28 = vpop.f32.mrf.mxu1 }
 0x676   :  { %v3129_v25 = vadd.f32 %v3128_v28, %v12774_v45  ;;  %v11074_v45 = vld [vmem:[#allocation10 + $0x32c] sm:$0xf0]  ;;  %4289 = vmatpush.bf16.msrb.mxu1 %v8727_v34  ;;  %v11024_v28 = vld [vmem:[#allocation10 + $0x1a4] sm:$0xf]  ;;  %4301 = vmatpush.bf16.msrb.mxu3 %v8871_v39 }
 0x677   :  { %v9043_v1 = vor.u32 %v11074_v45, %v9042_v17  ;;  %v8855_v23 = vor.u32 %v11024_v28, %v8852_v54  ;;  %4316 = vmatpush.bf16.msrb.mxu0 %v8967_v50  ;;  %v11012_v34 = vld [vmem:[#allocation10 + $0x144] sm:$0xf]  ;;  %v9044_v28 = vld [vmem:[#allocation10 + $0x330] sm:$0xf0] }
 0x678   :  { %v3154_v55 = vpop.f32.mrf.mxu0  ;;  %v8807_v5 = vor.u32 %v11012_v34, %v8804_v38  ;;  %v10972_v39 = vld [vmem:[#allocation10 + $0x4] sm:$0xf]  ;;  %v9146_v34 = vld [vmem:[#allocation10 + $0x3e8] sm:$0xf]  ;;  %v11099_v38 = vld [vmem:[#allocation10 + $0x3f4] sm:$0xf0] }
 0x679   :  { %4280 = vmatpush.bf16.msra.mxu2 %v9043_v1  ;;  %v8647_v56 = vor.u32 %v10972_v39, %v8644_v3  ;;  %v11072_v50 = vld [vmem:[#allocation10 + $0x324] sm:$0xf] }
 0x67a   :  { %4290 = vmatpush.bf16.msrb.mxu1 %v8711_v49  ;;  %4302 = vmatpush.bf16.msrb.mxu3 %v8855_v23  ;;  %v8791_v49 = vor.u32 %v11008_v14, %v8788_v40  ;;  %v9047_v54 = vor.u32 %v11072_v50, %v9044_v28  ;;  %v9028_v23 = vld [vmem:[#allocation10 + $0x310] sm:$0xf0]  ;;  %v8874_v14 = vld [vmem:[#allocation10 + $0x1c8] sm:$0xf]  ;;  %v11031_v40 = vld [vmem:[#allocation10 + $0x1d4] sm:$0xf0] }
 0x67d   :  { %v3130_v42 = vpop.f32.mrf.mxu1  ;;  %4281 = vmatpush.bf16.msra.mxu2 %v9027_v61  ;;  %v8823_v61 = vor.u32 %v11016_v63, %v8820_v0  ;;  %v8746_v0 = vld [vmem:[#allocation10 + $0xc8] sm:$0xf] }
 0x67e   :  { %v3141_v60 = vpop.f32.mrf.mxu3  ;;  %4303 = vmatpush.bf16.msrb.mxu3 %v8839_v19 }
 0x67f   :  { %v3142_v35 = vadd.f32 %v3141_v60, %v3129_v25  ;;  %v12777_v4 = vpop.f32.mrf.mxu2  ;;  %v9108_v25 = vld [vmem:[#allocation10 + $0x3b0] sm:$0xf0] }
 0x680   :  { %v3156_v51 = vpop.f32.mrf.mxu0  ;;  %v9111_v36 = vor.u32 %v11088_v52, %v9108_v25  ;;  %v8948_v60 = vld [vmem:[#allocation10 + $0x270] sm:$0xf0]  ;;  %v11004_v52 = vld [vmem:[#allocation10 + $0x104] sm:$0xf] }
 0x681   :  { %v12779_v20 = vadd.f32 %v3154_v55, %v3142_v35  ;;  %4326 = vmatpush.bf16.msrb.mxu2 %v9143_v16  ;;  %v10984_v55 = vld [vmem:[#allocation10 + $0x64] sm:$0xf]  ;;  %v9092_v35 = vld [vmem:[#allocation10 + $0x390] sm:$0xf0]  ;;  %v8951_v59 = vor.u32 %v11048_v13, %v8948_v60  ;;  %v3435_v60 = vld [vmem:[%s13011_s7] sm:$0xf] }
 0x682   :  { %v8695_v53 = vor.u32 %v10984_v55, %v8692_v31  ;;  %v9095_v17 = vor.u32 %v11084_v21, %v9092_v35  ;;  %v8660_v16 = vld [vmem:[#allocation10 + $0x30] sm:$0xf0]  ;;  %4304 = vmatpush.bf16.msrb.mxu3 %v8823_v61  ;;  %v11068_v31 = vld [vmem:[#allocation10 + $0x304] sm:$0xf]  ;;  %v3439_v21 = vperm.slane %v3435_v60, 2  ;;  %v3438_v15 = vperm.slane %v3435_v60, 1 }
 0x683   :  { %4317 = vmatpush.bf16.msrb.mxu0 %v8951_v59  ;;  %v8663_v9 = vor.u32 %v10976_v8, %v8660_v16  ;;  %v8772_v25 = vld [vmem:[#allocation10 + $0x110] sm:$0xf0]  ;;  %v3440_v10 = vperm.slane %v3435_v60, 3  ;;  %v10999_v61 = vld [vmem:[#allocation10 + $0xd4] sm:$0xf0] }
 0x684   :  { %4291 = vmatpush.bf16.msrb.mxu1 %v8695_v53  ;;  %v8775_v55 = vor.u32 %v11004_v52, %v8772_v25  ;;  %v3437_v53 = vperm.slane %v3435_v60, 0  ;;  %v9002_v8 = vld [vmem:[#allocation10 + $0x2c8] sm:$0xf]  ;;  %v11063_v16 = vld [vmem:[#allocation10 + $0x2d4] sm:$0xf0] }
 0x685   :  { %4327 = vmatpush.bf16.msrb.mxu2 %v9127_v62  ;;  %v8900_v62 = vld [vmem:[#allocation10 + $0x210] sm:$0xf0]  ;;  %v11095_v52 = vld [vmem:[#allocation10 + $0x3d4] sm:$0xf0] }
 0x686   :  { %v3143_v27 = vpop.f32.mrf.mxu3  ;;  %4305 = vmatpush.bf16.msrb.mxu3 %v8807_v5  ;;  %v8903_v33 = vor.u32 %v11036_v58, %v8900_v62  ;;  %v9003_v5 = vor.u32 %v11063_v16, %v9002_v8  ;;  %v8986_v58 = vld [vmem:[#allocation10 + $0x2a8] sm:$0xf]  ;;  %v11055_v60 = vld [vmem:[#allocation10 + $0x294] sm:$0xf0] }
 0x687   :  { %v3169_v12 = vpop.f32.mrf.mxu2  ;;  %4318 = vmatpush.bf16.msrb.mxu0 %v8935_v57  ;;  %v8919_v27 = vor.u32 %v11040_v22, %v8916_v24  ;;  %v8890_v22 = vld [vmem:[#allocation10 + $0x1e8] sm:$0xf]  ;;  %v11035_v24 = vld [vmem:[#allocation10 + $0x1f4] sm:$0xf0] }
 0x688   :  { %4292 = vmatpush.bf16.msrb.mxu1 %v8679_v46  ;;  %v9060_v12 = vld [vmem:[#allocation10 + $0x350] sm:$0xf0]  ;;  %v8891_v3 = vor.u32 %v11035_v24, %v8890_v22  ;;  %v9082_v8 = vld [vmem:[#allocation10 + $0x368] sm:$0xf]  ;;  %v11083_v16 = vld [vmem:[#allocation10 + $0x374] sm:$0xf0] }
 0x689   :  { %4328 = vmatpush.bf16.msrb.mxu2 %v9111_v36  ;;  %v9063_v6 = vor.u32 %v11076_v48, %v9060_v12  ;;  %v9031_v36 = vor.u32 %v11068_v31, %v9028_v23  ;;  %v8730_v12 = vld [vmem:[#allocation10 + $0xa8] sm:$0xf]  ;;  %v10991_v23 = vld [vmem:[#allocation10 + $0x94] sm:$0xf0] }
 0x68a   :  { %4306 = vmatpush.bf16.msrb.mxu3 %v8791_v49  ;;  %v8714_v31 = vld [vmem:[#allocation10 + $0x88] sm:$0xf]  ;;  %v10979_v22 = vld [vmem:[#allocation10 + $0x34] sm:$0xf0] }
 0x68b   :  { %4319 = vmatpush.bf16.msrb.mxu0 %v8919_v27 }
 0x68c   :  { %4293 = vmatpush.bf16.msrb.mxu1 %v8663_v9 }
 0x68d   :  { %4329 = vmatpush.bf16.msrb.mxu2 %v9095_v17 }
 0x68e   :  { %4307 = vmatpush.bf16.msrb.mxu3 %v8775_v55 }
 0x68f   :  { %4320 = vmatpush.bf16.msrb.mxu0 %v8903_v33  ;;  %v9147_v33 = vor.u32 %v11099_v38, %v9146_v34  ;;  %v9083_v34 = vor.u32 %v11083_v16, %v9082_v8  ;;  %v8810_v38 = vld [vmem:[#allocation10 + $0x148] sm:$0xf]  ;;  %v11093_v8 = vld [vmem:[#allocation10 + $0x3cc] sm:$0xf]  ;;  %v9132_v16 = vld [vmem:[#allocation10 + $0x3d8] sm:$0xf0] }
 0x690   :  { %4294 = vmatpush.bf16.msrb.mxu1 %v8647_v56  ;;  %v11059_v56 = vld [vmem:[#allocation10 + $0x2b4] sm:$0xf0] }
 0x691   :  { %4330 = vmatpush.bf16.msrb.mxu2 %v9079_v43  ;;  %v8987_v55 = vor.u32 %v11059_v56, %v8986_v58  ;;  %v10975_v58 = vld [vmem:[#allocation10 + $0x14] sm:$0xf0]  ;;  %v8906_v56 = vld [vmem:[#allocation10 + $0x208] sm:$0xf] }
 0x695   :  { %v12781_v45 = vpop.f32.mrf.mxu1  ;;  %4331 = vmatpush.bf16.msrb.mxu2 %v9063_v6  ;;  %v10995_v6 = vld [vmem:[#allocation10 + $0xb4] sm:$0xf0] }
 0x696   :  { %v3181_v13 = vadd.f32 %v12781_v45, %v12777_v4  ;;  %v9018_v45 = vld [vmem:[#allocation10 + $0x2e8] sm:$0xf]  ;;  %v8731_v28 = vor.u32 %v10995_v6, %v8730_v12  ;;  %v11079_v6 = vld [vmem:[#allocation10 + $0x354] sm:$0xf0] }
 0x697   :  { %v9066_v12 = vld [vmem:[#allocation10 + $0x348] sm:$0xf] }
 0x698   :  { %v12783_v42 = vpop.f32.mrf.mxu0 }
 0x699   :  { %4332 = vmatpush.bf16.msrb.mxu2 %v9047_v54  ;;  %v9130_v54 = vld [vmem:[#allocation10 + $0x3c8] sm:$0xf] }
 0x69d   :  { %v3182_v29 = vpop.f32.mrf.mxu1  ;;  %4333 = vmatpush.bf16.msrb.mxu2 %v9031_v36  ;;  %v8875_v36 = vor.u32 %v11031_v40, %v8874_v14  ;;  %v11001_v40 = vld [vmem:[#allocation10 + $0xec] sm:$0xf] }
 0x69e   :  { %v12785_v1 = vpop.f32.mrf.mxu3 }
 0x69f   :  { %v12787_v51 = vpop.f32.mrf.mxu2  ;;  %v3194_v7 = vadd.f32 %v12785_v1, %v3181_v13  ;;  %v8970_v13 = vld [vmem:[#allocation10 + $0x288] sm:$0xf] }
 0x6a0   :  { %v3208_v26 = vpop.f32.mrf.mxu0 }
 0x6a1   :  { %v3207_v19 = vadd.f32 %v12783_v42, %v3194_v7  ;;  %v8762_v26 = vld [vmem:[#allocation10 + $0xe8] sm:$0xf]  ;;  %v9131_v7 = vor.u32 %v11095_v52, %v9130_v54  ;;  %v9067_v54 = vor.u32 %v11079_v6, %v9066_v12  ;;  %v9020_v52 = vld [vmem:[#allocation10 + $0x2f8] sm:$0xf0]  ;;  %v11089_v12 = vld [vmem:[#allocation10 + $0x3ac] sm:$0xf] }
 0x6a2   :  { %v9116_v6 = vld [vmem:[#allocation10 + $0x3b8] sm:$0xf0] }
 0x6a3   :  { %v3220_v1 = vadd.f32 %v12787_v51, %v3207_v19  ;;  %v8971_v19 = vor.u32 %v11055_v60, %v8970_v13 }
 0x6a6   :  { %v3195_v32 = vpop.f32.mrf.mxu3 }
 0x6a7   :  { %v3221_v37 = vpop.f32.mrf.mxu2  ;;  %v11003_v32 = vld [vmem:[#allocation10 + $0xf4] sm:$0xf0] }
 0x6a8   :  { %v11067_v37 = vld [vmem:[#allocation10 + $0x2f4] sm:$0xf0]  ;;  %v8763_v57 = vor.u32 %v11003_v32, %v8762_v26  ;;  %v8954_v32 = vld [vmem:[#allocation10 + $0x268] sm:$0xf] }
 0x6c5   :  { %v3392_v18 = vpop.f32.mrf.mxu1 }
 0x6c6   :  { %v3393_v35 = vadd.f32 %v3392_v18, %v12767_v47  ;;  %v3418_v59 = vpop.f32.mrf.mxu0  ;;  %v11027_v18 = vld [vmem:[#allocation10 + $0x1b4] sm:$0xf0] }
 0x6c7   :  { %v3419_v17 = vadd.f32 %v3418_v59, %v12779_v20  ;;  %v9019_v20 = vor.u32 %v11067_v37, %v9018_v45  ;;  %v11091_v59 = vld [vmem:[#allocation10 + $0x3b4] sm:$0xf0]  ;;  %v8842_v37 = vld [vmem:[#allocation10 + $0x188] sm:$0xf] }
 0x6c8   :  { %v3445_v29 = vadd.f32 %v3437_v53, %v3393_v35  ;;  %v8858_v53 = vld [vmem:[#allocation10 + $0x1a8] sm:$0xf] }
 0x6c9   :  { %v3447_v4 = vadd.f32 %v3439_v21, %v3419_v17  ;;  %v8715_v21 = vor.u32 %v10991_v23, %v8714_v31  ;;  %v9114_v35 = vld [vmem:[#allocation10 + $0x3a8] sm:$0xf]  ;;  %v8859_v26 = vor.u32 %v11027_v18, %v8858_v53 }
 0x6ca   :  { %v3449_v41 = vmax.f32 %v3445_v29, 0.0  ;;  %v8698_v17 = vld [vmem:[#allocation10 + $0x68] sm:$0xf]  ;;  %v10987_v29 = vld [vmem:[#allocation10 + $0x74] sm:$0xf0]  ;;  %v9115_v45 = vor.u32 %v11091_v59, %v9114_v35 }
 0x6cb   :  { %v3451_v30 = vmax.f32 %v3447_v4, 0.0  ;;  %v3405_v46 = vpop.f32.mrf.mxu3  ;;  %v11051_v4 = vld [vmem:[#allocation10 + $0x274] sm:$0xf0]  ;;  %v9050_v23 = vld [vmem:[#allocation10 + $0x328] sm:$0xf] }
 0x6cc   :  { %v12799_v47 = vpack.c.bf16 %v3449_v41, %v3449_v41  ;;  %v3406_v42 = vadd.f32 %v3405_v46, %v12772_v44  ;;  %v3431_v63 = vpop.f32.mrf.mxu2  ;;  %v8747_v44 = vor.u32 %v10999_v61, %v8746_v0  ;;  %v11023_v41 = vld [vmem:[#allocation10 + $0x194] sm:$0xf0]  ;;  %v8955_v46 = vor.u32 %v11051_v4, %v8954_v32  ;;  %v8826_v61 = vld [vmem:[#allocation10 + $0x168] sm:$0xf]  ;;  %v11061_v35 = vld [vmem:[#allocation10 + $0x2cc] sm:$0xf] }
 0x6cd   :  { %v12802_v11 = vpack.c.bf16 %v3451_v30, %v3451_v30  ;;  %v3432_v2 = vadd.f32 %v3431_v63, %v3220_v1  ;;  %v3394_v43 = vpop.f32.mrf.mxu1  ;;  %v9098_v1 = vld [vmem:[#allocation10 + $0x388] sm:$0xf]  ;;  %v11087_v30 = vld [vmem:[#allocation10 + $0x394] sm:$0xf0]  ;;  %v9004_v59 = vld [vmem:[#allocation10 + $0x2d8] sm:$0xf0] }
 0x6ce   :  { %v3446_v9 = vadd.f32 %v3438_v15, %v3406_v42  ;;  %v3420_v51 = vpop.f32.mrf.mxu0  ;;  %4243 = vmatmul.bf16.vlgmr.msra.gmra.mxu1 %v12799_v47  ;;  %v8699_v15 = vor.u32 %v10987_v29, %v8698_v17  ;;  %v8843_v42 = vor.u32 %v11023_v41, %v8842_v37  ;;  %v8938_v63 = vld [vmem:[#allocation10 + $0x248] sm:$0xf]  ;;  %v9099_v0 = vor.u32 %v11087_v30, %v9098_v1  ;;  %v11007_v29 = vld [vmem:[#allocation10 + $0x114] sm:$0xf0]  ;;  %v11033_v4 = vld [vmem:[#allocation10 + $0x1ec] sm:$0xf] }
 0x6cf   :  { %v3448_v27 = vadd.f32 %v3440_v10, %v3432_v2  ;;  %4269 = vmatmul.bf16.vlgmr.msra.gmra.mxu0 %v12802_v11  ;;  %4339 = vmatpush.bf16.msra.mxu1 %v8763_v57  ;;  %v8682_v10 = vld [vmem:[#allocation10 + $0x48] sm:$0xf]  ;;  %v10983_v57 = vld [vmem:[#allocation10 + $0x54] sm:$0xf0]  ;;  %v11097_v41 = vld [vmem:[#allocation10 + $0x3ec] sm:$0xf]  ;;  %v9007_v1 = vor.u32 %v11061_v35, %v9004_v59 }
 0x6d0   :  { %v3450_v48 = vmax.f32 %v3446_v9, 0.0  ;;  %4365 = vmatpush.bf16.msra.mxu0 %v9019_v20  ;;  %v11047_v20 = vld [vmem:[#allocation10 + $0x254] sm:$0xf0]  ;;  %v8683_v43 = vor.u32 %v10983_v57, %v8682_v10  ;;  %v8666_v51 = vld [vmem:[#allocation10 + $0x28] sm:$0xf] }
 0x6d1   :  { %v3452_v39 = vmax.f32 %v3448_v27, 0.0  ;;  %v11019_v2 = vld [vmem:[#allocation10 + $0x174] sm:$0xf0]  ;;  %v8939_v9 = vor.u32 %v11047_v20, %v8938_v63  ;;  %v8922_v27 = vld [vmem:[#allocation10 + $0x228] sm:$0xf] }
 0x6d2   :  { %v12806_v62 = vpack.c.bf16 %v3450_v48, %v3450_v48  ;;  %v8827_v24 = vor.u32 %v11019_v2, %v8826_v61  ;;  %v11015_v48 = vld [vmem:[#allocation10 + $0x154] sm:$0xf0]  ;;  %v8778_v17 = vld [vmem:[#allocation10 + $0x108] sm:$0xf]  ;;  %v8732_v10 = vld [vmem:[#allocation10 + $0xb8] sm:$0xf0] }
 0x6d3   :  { %v12808_v49 = vpack.c.bf16 %v3452_v39, %v3452_v39  ;;  %4340 = vmatpush.bf16.msra.mxu1 %v8747_v44  ;;  %v3407_v50 = vpop.f32.mrf.mxu3  ;;  %v11043_v44 = vld [vmem:[#allocation10 + $0x234] sm:$0xf0]  ;;  %v8650_v39 = vld [vmem:[#allocation10 + $0x8] sm:$0xf]  ;;  %v8811_v14 = vor.u32 %v11015_v48, %v8810_v38  ;;  %v8779_v30 = vor.u32 %v11007_v29, %v8778_v17  ;;  %v11057_v63 = vld [vmem:[#allocation10 + $0x2ac] sm:$0xf] }
 0x6d4   :  { %4366 = vmatpush.bf16.msra.mxu0 %v9003_v5  ;;  %v3433_v25 = vpop.f32.mrf.mxu2  ;;  %4256 = vmatmul.bf16.vlgmr.msra.gmra.mxu3 %v12806_v62  ;;  %v8667_v5 = vor.u32 %v10979_v22, %v8666_v51  ;;  %v8764_v50 = vld [vmem:[#allocation10 + $0xf8] sm:$0xf0]  ;;  %v8651_v31 = vor.u32 %v10975_v58, %v8650_v39  ;;  %v11071_v32 = vld [vmem:[#allocation10 + $0x314] sm:$0xf0]  ;;  %v11029_v61 = vld [vmem:[#allocation10 + $0x1cc] sm:$0xf] }
 0x6d5   :  { %4282 = vmatmul.bf16.vlgmr.msra.gmra.mxu2 %v12808_v49  ;;  %4352 = vmatpush.bf16.msra.mxu3 %v8891_v3  ;;  %v8923_v3 = vor.u32 %v11043_v44, %v8922_v27  ;;  %v8794_v25 = vld [vmem:[#allocation10 + $0x128] sm:$0xf]  ;;  %v8767_v60 = vor.u32 %v11001_v40, %v8764_v50  ;;  %v8988_v20 = vld [vmem:[#allocation10 + $0x2b8] sm:$0xf0]  ;;  %v10989_v51 = vld [vmem:[#allocation10 + $0x8c] sm:$0xf]  ;;  %v9119_v40 = vor.u32 %v11089_v12, %v9116_v6 }
 0x6d6   :  { %4378 = vmatpush.bf16.msra.mxu2 %v9147_v33  ;;  %v11039_v33 = vld [vmem:[#allocation10 + $0x214] sm:$0xf0]  ;;  %v8876_v2 = vld [vmem:[#allocation10 + $0x1d8] sm:$0xf0]  ;;  %v11053_v27 = vld [vmem:[#allocation10 + $0x28c] sm:$0xf] }
 0x6d7   :  { %4341 = vmatpush.bf16.msra.mxu1 %v8731_v28  ;;  %v11065_v28 = vld [vmem:[#allocation10 + $0x2ec] sm:$0xf]  ;;  %v8907_v13 = vor.u32 %v11039_v33, %v8906_v56  ;;  %v8716_v22 = vld [vmem:[#allocation10 + $0x98] sm:$0xf0]  ;;  %v9522_v6 = vld [vmem:[#allocation11 + $0x2e0] sm:$0xf] }
 0x6d8   :  { %4367 = vmatpush.bf16.msra.mxu0 %v8987_v55  ;;  %v11011_v55 = vld [vmem:[#allocation10 + $0x134] sm:$0xf0]  ;;  %v9023_v53 = vor.u32 %v11065_v28, %v9020_v52  ;;  %v8972_v44 = vld [vmem:[#allocation10 + $0x298] sm:$0xf0]  ;;  %v11025_v38 = vld [vmem:[#allocation10 + $0x1ac] sm:$0xf] }
 0x6d9   :  { %4353 = vmatpush.bf16.msra.mxu3 %v8875_v36  ;;  %v11075_v36 = vld [vmem:[#allocation10 + $0x334] sm:$0xf0]  ;;  %v8795_v18 = vor.u32 %v11011_v55, %v8794_v25  ;;  %v8860_v48 = vld [vmem:[#allocation10 + $0x1b8] sm:$0xf0]  ;;  %v8975_v39 = vor.u32 %v11053_v27, %v8972_v44  ;;  %v11049_v33 = vld [vmem:[#allocation10 + $0x26c] sm:$0xf] }
 0x6da   :  { %4379 = vmatpush.bf16.msra.mxu2 %v9131_v7  ;;  %v10997_v7 = vld [vmem:[#allocation10 + $0xcc] sm:$0xf]  ;;  %v8700_v58 = vld [vmem:[#allocation10 + $0x78] sm:$0xf0]  ;;  %v8863_v56 = vor.u32 %v11025_v38, %v8860_v48  ;;  %v9250_v38 = vld [vmem:[#allocation11 + $0xc0] sm:$0xf] }
 0x6db   :  { %4342 = vmatpush.bf16.msra.mxu1 %v8715_v21  ;;  %v8748_v21 = vld [vmem:[#allocation10 + $0xd8] sm:$0xf0]  ;;  %v11021_v50 = vld [vmem:[#allocation10 + $0x18c] sm:$0xf]  ;;  %v11126_v48 = vld [vmem:[#allocation11 + $0xcc] sm:$0xf0] }
 0x6dc   :  { %4368 = vmatpush.bf16.msra.mxu0 %v8971_v19  ;;  %v9051_v19 = vor.u32 %v11075_v36, %v9050_v23  ;;  %v8751_v37 = vor.u32 %v10997_v7, %v8748_v21  ;;  %v8844_v28 = vld [vmem:[#allocation10 + $0x198] sm:$0xf0]  ;;  %v11085_v52 = vld [vmem:[#allocation10 + $0x38c] sm:$0xf] }
 0x6dd   :  { %4354 = vmatpush.bf16.msra.mxu3 %v8859_v26  ;;  %v9034_v26 = vld [vmem:[#allocation10 + $0x308] sm:$0xf]  ;;  %v9100_v25 = vld [vmem:[#allocation10 + $0x398] sm:$0xf0]  ;;  %v8847_v36 = vor.u32 %v11021_v50, %v8844_v28  ;;  %v11081_v35 = vld [vmem:[#allocation10 + $0x36c] sm:$0xf] }
 0x6de   :  { %4380 = vmatpush.bf16.msra.mxu2 %v9115_v45  ;;  %4295 = vmatmul.bf16.vlgmr.msrb.gmra.mxu1 %v12799_v47  ;;  %v8892_v45 = vld [vmem:[#allocation10 + $0x1f8] sm:$0xf0]  ;;  %v9035_v57 = vor.u32 %v11071_v32, %v9034_v26  ;;  %v9103_v7 = vor.u32 %v11085_v52, %v9100_v25  ;;  %v10977_v17 = vld [vmem:[#allocation10 + $0x2c] sm:$0xf]  ;;  %v9234_v50 = vld [vmem:[#allocation11 + $0xa0] sm:$0xf] }
 0x6df   :  { %4321 = vmatmul.bf16.vlgmr.msrb.gmra.mxu0 %v12802_v11  ;;  %4343 = vmatpush.bf16.msra.mxu1 %v8699_v15  ;;  %v9148_v15 = vld [vmem:[#allocation10 + $0x3f8] sm:$0xf0]  ;;  %v11041_v32 = vld [vmem:[#allocation10 + $0x22c] sm:$0xf]  ;;  %v11122_v28 = vld [vmem:[#allocation11 + $0xac] sm:$0xf0] }
 0x6e0   :  { %4369 = vmatpush.bf16.msra.mxu0 %v8955_v46  ;;  %v10993_v46 = vld [vmem:[#allocation10 + $0xac] sm:$0xf]  ;;  %v8684_v23 = vld [vmem:[#allocation10 + $0x58] sm:$0xf0]  ;;  %v9378_v25 = vld [vmem:[#allocation11 + $0x1c0] sm:$0xf] }
 0x6e1   :  { %4355 = vmatpush.bf16.msra.mxu3 %v8843_v42  ;;  %v8895_v42 = vor.u32 %v11033_v4, %v8892_v45  ;;  %v9084_v59 = vld [vmem:[#allocation10 + $0x378] sm:$0xf0]  ;;  %v11069_v12 = vld [vmem:[#allocation10 + $0x30c] sm:$0xf] }
 0x6e2   :  { %4381 = vmatpush.bf16.msra.mxu2 %v9099_v0  ;;  %v9151_v0 = vor.u32 %v11097_v41, %v9148_v15  ;;  %v8668_v29 = vld [vmem:[#allocation10 + $0x38] sm:$0xf0]  ;;  %v9087_v45 = vor.u32 %v11081_v35, %v9084_v59  ;;  %v11150_v35 = vld [vmem:[#allocation11 + $0x18c] sm:$0xf0] }
 0x6e3   :  { %4344 = vmatpush.bf16.msra.mxu1 %v8683_v43  ;;  %v8735_v43 = vor.u32 %v10993_v46, %v8732_v10  ;;  %v8924_v4 = vld [vmem:[#allocation10 + $0x238] sm:$0xf0]  ;;  %v8671_v15 = vor.u32 %v10977_v17, %v8668_v29  ;;  %v10973_v10 = vld [vmem:[#allocation10 + $0xc] sm:$0xf]  ;;  %v11110_v17 = vld [vmem:[#allocation11 + $0x4c] sm:$0xf0] }
 0x6e4   :  { %4370 = vmatpush.bf16.msra.mxu0 %v8939_v9  ;;  %4308 = vmatmul.bf16.vlgmr.msrb.gmra.mxu3 %v12806_v62  ;;  %v8991_v9 = vor.u32 %v11057_v63, %v8988_v20  ;;  %v8812_v41 = vld [vmem:[#allocation10 + $0x158] sm:$0xf0]  ;;  %v8927_v46 = vor.u32 %v11041_v32, %v8924_v4  ;;  %v11146_v32 = vld [vmem:[#allocation11 + $0x16c] sm:$0xf0]  ;;  %v9170_v4 = vld [vmem:[#allocation11 + $0x20] sm:$0xf] }
 0x6e5   :  { %4334 = vmatmul.bf16.vlgmr.msrb.gmra.mxu2 %v12808_v49  ;;  %4356 = vmatpush.bf16.msra.mxu3 %v8827_v24  ;;  %v8879_v24 = vor.u32 %v11029_v61, %v8876_v2  ;;  %v8908_v20 = vld [vmem:[#allocation10 + $0x218] sm:$0xf0]  ;;  %v11130_v61 = vld [vmem:[#allocation11 + $0xec] sm:$0xf0] }
 0x6e6   :  { %4382 = vmatpush.bf16.msra.mxu2 %v9083_v34  ;;  %v9135_v34 = vor.u32 %v11093_v8, %v9132_v16  ;;  %v8796_v8 = vld [vmem:[#allocation10 + $0x138] sm:$0xf0] }
 0x6e7   :  { %4345 = vmatpush.bf16.msra.mxu1 %v8667_v5  ;;  %v8719_v5 = vor.u32 %v10989_v51, %v8716_v22  ;;  %v9052_v51 = vld [vmem:[#allocation10 + $0x338] sm:$0xf0] }
 0x6e8   :  { %4371 = vmatpush.bf16.msra.mxu0 %v8923_v3  ;;  %v10985_v3 = vld [vmem:[#allocation10 + $0x6c] sm:$0xf] }
 0x6e9   :  { %4357 = vmatpush.bf16.msra.mxu3 %v8811_v14  ;;  %v8956_v14 = vld [vmem:[#allocation10 + $0x278] sm:$0xf0] }
 0x6ea   :  { %4383 = vmatpush.bf16.msra.mxu2 %v9067_v54  ;;  %v8703_v54 = vor.u32 %v10985_v3, %v8700_v58  ;;  %v8959_v55 = vor.u32 %v11049_v33, %v8956_v14  ;;  %v9036_v3 = vld [vmem:[#allocation10 + $0x318] sm:$0xf0]  ;;  %v9394_v58 = vld [vmem:[#allocation11 + $0x1e0] sm:$0xf]  ;;  %v9251_v14 = vor.u32 %v11126_v48, %v9250_v38  ;;  %v11116_v38 = vld [vmem:[#allocation11 + $0x84] sm:$0xf] }
 0x6eb   :  { %4346 = vmatpush.bf16.msra.mxu1 %v8651_v31  ;;  %v10981_v31 = vld [vmem:[#allocation10 + $0x4c] sm:$0xf]  ;;  %v9220_v48 = vld [vmem:[#allocation11 + $0x90] sm:$0xf0] }
 0x6ec   :  { %4372 = vmatpush.bf16.msra.mxu0 %v8907_v13  ;;  %v11045_v13 = vld [vmem:[#allocation10 + $0x24c] sm:$0xf]  ;;  %v8687_v21 = vor.u32 %v10981_v31, %v8684_v23  ;;  %v9235_v31 = vor.u32 %v11122_v28, %v9234_v50  ;;  %v9218_v23 = vld [vmem:[#allocation11 + $0x80] sm:$0xf]  ;;  %v11160_v28 = vld [vmem:[#allocation11 + $0x1e4] sm:$0xf] }
 0x6ed   :  { %4358 = vmatpush.bf16.msra.mxu3 %v8795_v18  ;;  %v8828_v18 = vld [vmem:[#allocation10 + $0x178] sm:$0xf0] }
 0x6ee   :  { %4384 = vmatpush.bf16.msra.mxu2 %v9051_v19  ;;  %4347 = vmatmul.bf16.vlgmr.msra.gmra.mxu1 %v12799_v47 }
 0x6ef   :  { %4391 = vmatpush.bf16.msrb.mxu1 %v8767_v60  ;;  %4373 = vmatmul.bf16.vlgmr.msra.gmra.mxu0 %v12802_v11  ;;  %v8940_v60 = vld [vmem:[#allocation10 + $0x258] sm:$0xf0] }
 0x6f0   :  { %4417 = vmatpush.bf16.msrb.mxu0 %v9023_v53  ;;  %v11017_v53 = vld [vmem:[#allocation10 + $0x16c] sm:$0xf]  ;;  %v8943_v19 = vor.u32 %v11045_v13, %v8940_v60  ;;  %v9362_v60 = vld [vmem:[#allocation11 + $0x1a0] sm:$0xf] }
 0x6f1   :  { %4359 = vmatpush.bf16.msra.mxu3 %v8779_v30  ;;  %v8831_v26 = vor.u32 %v11017_v53, %v8828_v18  ;;  %v9068_v30 = vld [vmem:[#allocation10 + $0x358] sm:$0xf0]  ;;  %v9202_v53 = vld [vmem:[#allocation11 + $0x60] sm:$0xf] }
 0x6f2   :  { %4385 = vmatpush.bf16.msra.mxu2 %v9035_v57  ;;  %v8652_v57 = vld [vmem:[#allocation10 + $0x18] sm:$0xf0] }
 0x6f3   :  { %4392 = vmatpush.bf16.msrb.mxu1 %v8751_v37  ;;  %v11013_v37 = vld [vmem:[#allocation10 + $0x14c] sm:$0xf]  ;;  %v8655_v16 = vor.u32 %v10973_v10, %v8652_v57  ;;  %v11124_v57 = vld [vmem:[#allocation11 + $0xc4] sm:$0xf] }
 0x6f4   :  { %4418 = vmatpush.bf16.msrb.mxu0 %v9007_v1  ;;  %4360 = vmatmul.bf16.vlgmr.msra.gmra.mxu3 %v12806_v62  ;;  %v11077_v1 = vld [vmem:[#allocation10 + $0x34c] sm:$0xf]  ;;  %v8815_v63 = vor.u32 %v11013_v37, %v8812_v41  ;;  %v9154_v41 = vld [vmem:[#allocation11] sm:$0xf] }
 0x6f5   :  { %4404 = vmatpush.bf16.msrb.mxu3 %v8895_v42  ;;  %4386 = vmatmul.bf16.vlgmr.msra.gmra.mxu2 %v12808_v49  ;;  %v11037_v42 = vld [vmem:[#allocation10 + $0x20c] sm:$0xf]  ;;  %v9071_v2 = vor.u32 %v11077_v1, %v9068_v30  ;;  %v11128_v1 = vld [vmem:[#allocation11 + $0xe4] sm:$0xf]  ;;  %v9268_v30 = vld [vmem:[#allocation11 + $0xf0] sm:$0xf0] }
 0x6f6   :  { %4430 = vmatpush.bf16.msrb.mxu2 %v9151_v0  ;;  %v9266_v0 = vld [vmem:[#allocation11 + $0xe0] sm:$0xf]  ;;  %v8911_v22 = vor.u32 %v11037_v42, %v8908_v20  ;;  %v9271_v10 = vor.u32 %v11128_v1, %v9268_v30  ;;  %v9252_v42 = vld [vmem:[#allocation11 + $0xd0] sm:$0xf0]  ;;  %v11166_v30 = vld [vmem:[#allocation11 + $0x20c] sm:$0xf0] }
 0x6f7   :  { %4393 = vmatpush.bf16.msrb.mxu1 %v8735_v43  ;;  %v11009_v43 = vld [vmem:[#allocation10 + $0x12c] sm:$0xf]  ;;  %v9267_v27 = vor.u32 %v11130_v61, %v9266_v0  ;;  %v9314_v20 = vld [vmem:[#allocation11 + $0x140] sm:$0xf]  ;;  %v11142_v0 = vld [vmem:[#allocation11 + $0x14c] sm:$0xf0] }
 0x6f8   :  { %4419 = vmatpush.bf16.msrb.mxu0 %v8991_v9  ;;  %v11073_v9 = vld [vmem:[#allocation10 + $0x32c] sm:$0xf]  ;;  %v8799_v44 = vor.u32 %v11009_v43, %v8796_v8  ;;  %v9506_v61 = vld [vmem:[#allocation11 + $0x2c0] sm:$0xf]  ;;  %v11190_v43 = vld [vmem:[#allocation11 + $0x2cc] sm:$0xf0] }
 0x6f9   :  { %4405 = vmatpush.bf16.msrb.mxu3 %v8879_v24  ;;  %v11005_v24 = vld [vmem:[#allocation10 + $0x10c] sm:$0xf]  ;;  %v11120_v8 = vld [vmem:[#allocation11 + $0xa4] sm:$0xf]  ;;  %v9410_v1 = vld [vmem:[#allocation11 + $0x200] sm:$0xf] }
 0x6fa   :  { %4431 = vmatpush.bf16.msrb.mxu2 %v9135_v34  ;;  %v8780_v34 = vld [vmem:[#allocation10 + $0x118] sm:$0xf0] }
 0x6fb   :  { %4394 = vmatpush.bf16.msrb.mxu1 %v8719_v5  ;;  %v9055_v5 = vor.u32 %v11073_v9, %v9052_v51  ;;  %v9507_v9 = vor.u32 %v11190_v43, %v9506_v61  ;;  %v11192_v61 = vld [vmem:[#allocation11 + $0x2e4] sm:$0xf] }
 0x6fc   :  { %4420 = vmatpush.bf16.msrb.mxu0 %v8975_v39  ;;  %v11194_v39 = vld [vmem:[#allocation11 + $0x2ec] sm:$0xf0] }
 0x6fd   :  { %4406 = vmatpush.bf16.msrb.mxu3 %v8863_v56  ;;  %v11162_v56 = vld [vmem:[#allocation11 + $0x1ec] sm:$0xf0]  ;;  %v9523_v33 = vor.u32 %v11194_v39, %v9522_v6  ;;  %v9282_v6 = vld [vmem:[#allocation11 + $0x100] sm:$0xf] }
 0x6fe   :  { %4432 = vmatpush.bf16.msrb.mxu2 %v9119_v40  ;;  %v8783_v40 = vor.u32 %v11005_v24, %v8780_v34  ;;  %v9395_v52 = vor.u32 %v11162_v56, %v9394_v58  ;;  %v11138_v24 = vld [vmem:[#allocation11 + $0x12c] sm:$0xf0] }
 0x6ff   :  { %4395 = vmatpush.bf16.msrb.mxu1 %v8703_v54  ;;  %v9039_v54 = vor.u32 %v11069_v12, %v9036_v3  ;;  %v11186_v34 = vld [vmem:[#allocation11 + $0x2ac] sm:$0xf0]  ;;  %v9223_v12 = vor.u32 %v11116_v38, %v9220_v48  ;;  %v9474_v3 = vld [vmem:[#allocation11 + $0x280] sm:$0xf] }
 0x700   :  { %4421 = vmatpush.bf16.msrb.mxu0 %v8959_v55  ;;  %v11158_v55 = vld [vmem:[#allocation11 + $0x1cc] sm:$0xf0]  ;;  %v9618_v48 = vld [vmem:[#allocation11 + $0x3a0] sm:$0xf] }
 0x701   :  { %4407 = vmatpush.bf16.msrb.mxu3 %v8847_v36  ;;  %v11118_v36 = vld [vmem:[#allocation11 + $0x8c] sm:$0xf0]  ;;  %v9379_v13 = vor.u32 %v11158_v55, %v9378_v25  ;;  %v9458_v25 = vld [vmem:[#allocation11 + $0x260] sm:$0xf] }
 0x702   :  { %4433 = vmatpush.bf16.msrb.mxu2 %v9103_v7  ;;  %v11154_v7 = vld [vmem:[#allocation11 + $0x1ac] sm:$0xf0] }
 0x703   :  { %4396 = vmatpush.bf16.msrb.mxu1 %v8687_v21  ;;  %v9363_v18 = vor.u32 %v11154_v7, %v9362_v60  ;;  %v9346_v21 = vld [vmem:[#allocation11 + $0x180] sm:$0xf]  ;;  %v11134_v39 = vld [vmem:[#allocation11 + $0x10c] sm:$0xf0]  ;;  %v9380_v7 = vld [vmem:[#allocation11 + $0x1d0] sm:$0xf0] }
 0x704   :  { %4422 = vmatpush.bf16.msrb.mxu0 %v8943_v19  ;;  %v9186_v19 = vld [vmem:[#allocation11 + $0x40] sm:$0xf]  ;;  %v9347_v29 = vor.u32 %v11150_v35, %v9346_v21  ;;  %v9283_v58 = vor.u32 %v11134_v39, %v9282_v6  ;;  %v11182_v56 = vld [vmem:[#allocation11 + $0x28c] sm:$0xf0]  ;;  %v11104_v21 = vld [vmem:[#allocation11 + $0x24] sm:$0xf] }
 0x705   :  { %4408 = vmatpush.bf16.msrb.mxu3 %v8831_v26  ;;  %v9330_v26 = vld [vmem:[#allocation11 + $0x160] sm:$0xf]  ;;  %v11178_v55 = vld [vmem:[#allocation11 + $0x26c] sm:$0xf0]  ;;  %v9172_v35 = vld [vmem:[#allocation11 + $0x30] sm:$0xf0] }
 0x706   :  { %4434 = vmatpush.bf16.msrb.mxu2 %v9087_v45  ;;  %v11106_v45 = vld [vmem:[#allocation11 + $0x2c] sm:$0xf0]  ;;  %v11136_v39 = vld [vmem:[#allocation11 + $0x124] sm:$0xf] }
 0x707   :  { %4397 = vmatpush.bf16.msrb.mxu1 %v8671_v15  ;;  %v9171_v37 = vor.u32 %v11106_v45, %v9170_v4  ;;  %v11102_v15 = vld [vmem:[#allocation11 + $0xc] sm:$0xf0]  ;;  %v11100_v4 = vld [vmem:[#allocation11 + $0x4] sm:$0xf]  ;;  %v9156_v45 = vld [vmem:[#allocation11 + $0x10] sm:$0xf0] }
 0x708   :  { %4423 = vmatpush.bf16.msrb.mxu0 %v8927_v46  ;;  %v9155_v46 = vor.u32 %v11102_v15, %v9154_v41  ;;  %v9348_v41 = vld [vmem:[#allocation11 + $0x190] sm:$0xf0] }
 0x709   :  { %4409 = vmatpush.bf16.msrb.mxu3 %v8815_v63  ;;  %v9255_v63 = vor.u32 %v11124_v57, %v9252_v42  ;;  %v11226_v57 = vld [vmem:[#allocation11 + $0x3ec] sm:$0xf0]  ;;  %v11144_v42 = vld [vmem:[#allocation11 + $0x164] sm:$0xf] }
 0x70a   :  { %4435 = vmatpush.bf16.msrb.mxu2 %v9071_v2  ;;  %v9315_v2 = vor.u32 %v11142_v0, %v9314_v20 }
 0x70b   :  { %4398 = vmatpush.bf16.msrb.mxu1 %v8655_v16  ;;  %v9236_v16 = vld [vmem:[#allocation11 + $0xb0] sm:$0xf0] }
 0x70c   :  { %4424 = vmatpush.bf16.msrb.mxu0 %v8911_v22  ;;  %v9239_v51 = vor.u32 %v11120_v8, %v9236_v16  ;;  %v9298_v22 = vld [vmem:[#allocation11 + $0x120] sm:$0xf]  ;;  %v11222_v16 = vld [vmem:[#allocation11 + $0x3cc] sm:$0xf0] }
 0x70d   :  { %4410 = vmatpush.bf16.msrb.mxu3 %v8799_v44  ;;  %v9299_v44 = vor.u32 %v11138_v24, %v9298_v22  ;;  %v9634_v8 = vld [vmem:[#allocation11 + $0x3c0] sm:$0xf]  ;;  %v9316_v22 = vld [vmem:[#allocation11 + $0x150] sm:$0xf0]  ;;  %v11188_v24 = vld [vmem:[#allocation11 + $0x2c4] sm:$0xf] }
 0x70e   :  { %4436 = vmatpush.bf16.msrb.mxu2 %v9055_v5  ;;  %4399 = vmatmul.bf16.vlgmr.msrb.gmra.mxu1 %v12799_v47  ;;  %v9219_v47 = vor.u32 %v11118_v36, %v9218_v23  ;;  %v11108_v23 = vld [vmem:[#allocation11 + $0x44] sm:$0xf]  ;;  %v9188_v36 = vld [vmem:[#allocation11 + $0x50] sm:$0xf0] }
 0x70f   :  { %5229 = vmatpush.bf16.msra.mxu1 %v9267_v27  ;;  %4425 = vmatmul.bf16.vlgmr.msrb.gmra.mxu0 %v12802_v11  ;;  %v11114_v11 = vld [vmem:[#allocation11 + $0x6c] sm:$0xf0]  ;;  %v9490_v27 = vld [vmem:[#allocation11 + $0x2a0] sm:$0xf]  ;;  %v9191_v60 = vor.u32 %v11108_v23, %v9188_v36  ;;  %v9476_v23 = vld [vmem:[#allocation11 + $0x290] sm:$0xf0] }
 0x710   :  { %5255 = vmatpush.bf16.msra.mxu0 %v9523_v33  ;;  %v9203_v59 = vor.u32 %v11114_v11, %v9202_v53  ;;  %v9491_v5 = vor.u32 %v11186_v34, %v9490_v27  ;;  %v11112_v33 = vld [vmem:[#allocation11 + $0x64] sm:$0xf]  ;;  %v9442_v53 = vld [vmem:[#allocation11 + $0x240] sm:$0xf]  ;;  %v11174_v11 = vld [vmem:[#allocation11 + $0x24c] sm:$0xf0] }
 0x711   :  { %4411 = vmatpush.bf16.msrb.mxu3 %v8783_v40  ;;  %v9475_v40 = vor.u32 %v11182_v56, %v9474_v3  ;;  %v9300_v3 = vld [vmem:[#allocation11 + $0x130] sm:$0xf0]  ;;  %v11184_v56 = vld [vmem:[#allocation11 + $0x2a4] sm:$0xf] }
 0x712   :  { %4437 = vmatpush.bf16.msrb.mxu2 %v9039_v54  ;;  %v9396_v54 = vld [vmem:[#allocation11 + $0x1f0] sm:$0xf0] }
 0x713   :  { %5230 = vmatpush.bf16.msra.mxu1 %v9251_v14  ;;  %v9204_v14 = vld [vmem:[#allocation11 + $0x70] sm:$0xf0] }
 0x714   :  { %4412 = vmatmul.bf16.vlgmr.msrb.gmra.mxu3 %v12806_v62  ;;  %v9187_v62 = vor.u32 %v11110_v17, %v9186_v19  ;;  %5256 = vmatpush.bf16.msra.mxu0 %v9507_v9  ;;  %v9207_v50 = vor.u32 %v11112_v33, %v9204_v14  ;;  %v11152_v19 = vld [vmem:[#allocation11 + $0x1a4] sm:$0xf]  ;;  %v9364_v17 = vld [vmem:[#allocation11 + $0x1b0] sm:$0xf0]  ;;  %v9635_v9 = vor.u32 %v11222_v16, %v9634_v8  ;;  %v11127_v16 = vld [vmem:[#allocation11 + $0xd4] sm:$0xf0] }
 0x715   :  { %5242 = vmatpush.bf16.msra.mxu3 %v9395_v52  ;;  %4438 = vmatmul.bf16.vlgmr.msrb.gmra.mxu2 %v12808_v49  ;;  %v9331_v49 = vor.u32 %v11146_v32, %v9330_v26  ;;  %v9399_v52 = vor.u32 %v11160_v28, %v9396_v54  ;;  %v9426_v26 = vld [vmem:[#allocation11 + $0x220] sm:$0xf]  ;;  %v11170_v32 = vld [vmem:[#allocation11 + $0x22c] sm:$0xf0]  ;;  %v9492_v33 = vld [vmem:[#allocation11 + $0x2b0] sm:$0xf0] }
 0x716   :  { %v9495_v14 = vor.u32 %v11184_v56, %v9492_v33  ;;  %v11214_v28 = vld [vmem:[#allocation11 + $0x38c] sm:$0xf0]  ;;  %v11123_v33 = vld [vmem:[#allocation11 + $0xb4] sm:$0xf0] }
 0x717   :  { %5231 = vmatpush.bf16.msra.mxu1 %v9235_v31  ;;  %v9459_v31 = vor.u32 %v11178_v55, %v9458_v25  ;;  %v9284_v25 = vld [vmem:[#allocation11 + $0x110] sm:$0xf0]  ;;  %v11180_v55 = vld [vmem:[#allocation11 + $0x284] sm:$0xf] }
 0x718   :  { %5257 = vmatpush.bf16.msra.mxu0 %v9491_v5  ;;  %v11218_v5 = vld [vmem:[#allocation11 + $0x3ac] sm:$0xf0] }
 0x719   :  { %5243 = vmatpush.bf16.msra.mxu3 %v9379_v13  ;;  %v11156_v13 = vld [vmem:[#allocation11 + $0x1c4] sm:$0xf]  ;;  %v9619_v6 = vor.u32 %v11218_v5, %v9618_v48  ;;  %v9652_v5 = vld [vmem:[#allocation11 + $0x3f0] sm:$0xf0] }
 0x71b   :  { %5232 = vmatpush.bf16.msra.mxu1 %v9219_v47  ;;  %v9383_v47 = vor.u32 %v11156_v13, %v9380_v7  ;;  %v9479_v13 = vor.u32 %v11180_v55, %v9476_v23  ;;  %v9586_v7 = vld [vmem:[#allocation11 + $0x360] sm:$0xf]  ;;  %v9226_v55 = vld [vmem:[#allocation11 + $0x88] sm:$0xf] }
 0x71c   :  { %5258 = vmatpush.bf16.msra.mxu0 %v9475_v40  ;;  %v12827_v40 = vld [vmem:[%s13013_s9] sm:$0xf] }
 0x71d   :  { %5244 = vmatpush.bf16.msra.mxu3 %v9363_v18  ;;  %v9443_v18 = vor.u32 %v11174_v11, %v9442_v53  ;;  %v3587_v36 = vperm.slane %v12827_v40, 0 }
 0x71f   :  { %5233 = vmatpush.bf16.msra.mxu1 %v9203_v59  ;;  %v9175_v59 = vor.u32 %v11104_v21, %v9172_v35  ;;  %v9460_v21 = vld [vmem:[#allocation11 + $0x270] sm:$0xf0] }
 0x720   :  { %5259 = vmatpush.bf16.msra.mxu0 %v9459_v31 }
 0x721   :  { %5245 = vmatpush.bf16.msra.mxu3 %v9347_v29  ;;  %v9367_v29 = vor.u32 %v11152_v19, %v9364_v17  ;;  %v9570_v17 = vld [vmem:[#allocation11 + $0x340] sm:$0xf] }
 0x723   :  { %5234 = vmatpush.bf16.msra.mxu1 %v9187_v62  ;;  %v9427_v62 = vor.u32 %v11170_v32, %v9426_v26 }
 0x724   :  { %5260 = vmatpush.bf16.msra.mxu0 %v9443_v18  ;;  %v11176_v18 = vld [vmem:[#allocation11 + $0x264] sm:$0xf] }
 0x725   :  { %5246 = vmatpush.bf16.msra.mxu3 %v9331_v49  ;;  %v11148_v49 = vld [vmem:[#allocation11 + $0x184] sm:$0xf]  ;;  %v9463_v35 = vor.u32 %v11176_v18, %v9460_v21  ;;  %v9210_v18 = vld [vmem:[#allocation11 + $0x68] sm:$0xf]  ;;  %v11115_v21 = vld [vmem:[#allocation11 + $0x74] sm:$0xf0] }
 0x726   :  { %v9351_v15 = vor.u32 %v11148_v49, %v9348_v41 }
 0x727   :  { %5235 = vmatpush.bf16.msra.mxu1 %v9171_v37  ;;  %v9159_v37 = vor.u32 %v11100_v4, %v9156_v45  ;;  %v11172_v4 = vld [vmem:[#allocation11 + $0x244] sm:$0xf]  ;;  %v9444_v45 = vld [vmem:[#allocation11 + $0x250] sm:$0xf0] }
 0x728   :  { %5261 = vmatpush.bf16.msra.mxu0 %v9427_v62  ;;  %v9447_v49 = vor.u32 %v11172_v4, %v9444_v45  ;;  %v9211_v45 = vor.u32 %v11115_v21, %v9210_v18 }
 0x729   :  { %5247 = vmatpush.bf16.msra.mxu3 %v9315_v2  ;;  %v9524_v2 = vld [vmem:[#allocation11 + $0x2f0] sm:$0xf0] }
 0x72a   :  { %v9527_v43 = vor.u32 %v11192_v61, %v9524_v2  ;;  %v9258_v2 = vld [vmem:[#allocation11 + $0xc8] sm:$0xf] }
 0x72b   :  { %5236 = vmatpush.bf16.msra.mxu1 %v9155_v46  ;;  %v9650_v46 = vld [vmem:[#allocation11 + $0x3e0] sm:$0xf] }
 0x72c   :  { %v9651_v20 = vor.u32 %v11226_v57, %v9650_v46  ;;  %v11131_v57 = vld [vmem:[#allocation11 + $0xf4] sm:$0xf0] }
 0x72d   :  { %5248 = vmatpush.bf16.msra.mxu3 %v9299_v44  ;;  %v9508_v44 = vld [vmem:[#allocation11 + $0x2d0] sm:$0xf0] }
 0x72e   :  { %5268 = vmatpush.bf16.msra.mxu2 %v9651_v20  ;;  %v9511_v34 = vor.u32 %v11188_v24, %v9508_v44  ;;  %v9428_v20 = vld [vmem:[#allocation11 + $0x230] sm:$0xf0]  ;;  %v11164_v44 = vld [vmem:[#allocation11 + $0x204] sm:$0xf] }
 0x72f   :  { %5281 = vmatpush.bf16.msrb.mxu1 %v9271_v10  ;;  %v9411_v10 = vor.u32 %v11166_v30, %v9410_v1  ;;  %v9554_v1 = vld [vmem:[#allocation11 + $0x320] sm:$0xf]  ;;  %v11202_v30 = vld [vmem:[#allocation11 + $0x32c] sm:$0xf0] }
 0x731   :  { %5249 = vmatpush.bf16.msra.mxu3 %v9283_v58  ;;  %5262 = vmatpush.bf16.msra.mxu0 %v9411_v10  ;;  %v9303_v58 = vor.u32 %v11136_v39, %v9300_v3  ;;  %v9259_v3 = vor.u32 %v11127_v16, %v9258_v2  ;;  %v9178_v2 = vld [vmem:[#allocation11 + $0x28] sm:$0xf] }
 0x732   :  { %5269 = vmatpush.bf16.msra.mxu2 %v9635_v9  ;;  %v9538_v9 = vld [vmem:[#allocation11 + $0x300] sm:$0xf] }
 0x733   :  { %5282 = vmatpush.bf16.msrb.mxu1 %v9255_v63  ;;  %v9332_v63 = vld [vmem:[#allocation11 + $0x170] sm:$0xf0] }
 0x734   :  { %v9335_v0 = vor.u32 %v11144_v42, %v9332_v63  ;;  %v9555_v42 = vor.u32 %v11202_v30, %v9554_v1  ;;  %v11168_v63 = vld [vmem:[#allocation11 + $0x224] sm:$0xf] }
 0x735   :  { %5294 = vmatpush.bf16.msrb.mxu3 %v9399_v52  ;;  %5307 = vmatpush.bf16.msrb.mxu0 %v9527_v43  ;;  %v11132_v52 = vld [vmem:[#allocation11 + $0x104] sm:$0xf] }
 0x736   :  { %5270 = vmatpush.bf16.msra.mxu2 %v9619_v6  ;;  %v9287_v31 = vor.u32 %v11132_v52, %v9284_v25 }
 0x737   :  { %5283 = vmatpush.bf16.msrb.mxu1 %v9239_v51  ;;  %v11140_v51 = vld [vmem:[#allocation11 + $0x144] sm:$0xf] }
 0x738   :  { %v9319_v27 = vor.u32 %v11140_v51, %v9316_v22  ;;  %v11198_v51 = vld [vmem:[#allocation11 + $0x30c] sm:$0xf0] }
 0x739   :  { %5295 = vmatpush.bf16.msrb.mxu3 %v9383_v47  ;;  %5308 = vmatpush.bf16.msrb.mxu0 %v9511_v34  ;;  %v11210_v47 = vld [vmem:[#allocation11 + $0x36c] sm:$0xf0]  ;;  %v9412_v34 = vld [vmem:[#allocation11 + $0x210] sm:$0xf0] }
 0x73a   :  { %v9587_v11 = vor.u32 %v11210_v47, %v9586_v7  ;;  %v9415_v48 = vor.u32 %v11164_v44, %v9412_v34 }
 0x73b   :  { %5284 = vmatpush.bf16.msrb.mxu1 %v9223_v12 }
 0x73d   :  { %5296 = vmatpush.bf16.msrb.mxu3 %v9367_v29  ;;  %5309 = vmatpush.bf16.msrb.mxu0 %v9495_v14  ;;  %v11206_v29 = vld [vmem:[#allocation11 + $0x34c] sm:$0xf0]  ;;  %v11220_v14 = vld [vmem:[#allocation11 + $0x3c4] sm:$0xf] }
 0x73e   :  { %v9571_v62 = vor.u32 %v11206_v29, %v9570_v17  ;;  %v11163_v17 = vld [vmem:[#allocation11 + $0x1f4] sm:$0xf0]  ;;  %v11212_v29 = vld [vmem:[#allocation11 + $0x384] sm:$0xf] }
 0x73f   :  { %5285 = vmatpush.bf16.msrb.mxu1 %v9207_v50  ;;  %v9602_v50 = vld [vmem:[#allocation11 + $0x380] sm:$0xf] }
 0x740   :  { %v9603_v54 = vor.u32 %v11214_v28, %v9602_v50  ;;  %v9636_v50 = vld [vmem:[#allocation11 + $0x3d0] sm:$0xf0] }
 0x741   :  { %5297 = vmatpush.bf16.msrb.mxu3 %v9351_v15  ;;  %5310 = vmatpush.bf16.msrb.mxu0 %v9479_v13  ;;  %v9274_v15 = vld [vmem:[#allocation11 + $0xe8] sm:$0xf]  ;;  %v9639_v28 = vor.u32 %v11220_v14, %v9636_v50  ;;  %v11216_v13 = vld [vmem:[#allocation11 + $0x3a4] sm:$0xf]  ;;  %v11129_v14 = vld [vmem:[#allocation11 + $0xec] sm:$0xf] }
 0x742   :  { %5271 = vmatpush.bf16.msra.mxu2 %v9603_v54  ;;  %v9275_v8 = vor.u32 %v11131_v57, %v9274_v15  ;;  %v9386_v15 = vld [vmem:[#allocation11 + $0x1c8] sm:$0xf]  ;;  %v9588_v57 = vld [vmem:[#allocation11 + $0x370] sm:$0xf0]  ;;  %v9276_v50 = vld [vmem:[#allocation11 + $0xf8] sm:$0xf0] }
 0x743   :  { %5286 = vmatpush.bf16.msrb.mxu1 %v9191_v60 }
 0x745   :  { %5298 = vmatpush.bf16.msrb.mxu3 %v9335_v0  ;;  %5311 = vmatpush.bf16.msrb.mxu0 %v9463_v35  ;;  %v9431_v0 = vor.u32 %v11168_v63, %v9428_v20  ;;  %v9402_v35 = vld [vmem:[#allocation11 + $0x1e8] sm:$0xf]  ;;  %v3589_v63 = vperm.slane %v12827_v40, 2 }
 0x746   :  { %5272 = vmatpush.bf16.msra.mxu2 %v9587_v11 }
 0x747   :  { %5287 = vmatpush.bf16.msrb.mxu1 %v9175_v59 }
 0x749   :  { %5299 = vmatpush.bf16.msrb.mxu3 %v9319_v27  ;;  %5312 = vmatpush.bf16.msrb.mxu0 %v9447_v49  ;;  %v9539_v27 = vor.u32 %v11198_v51, %v9538_v9  ;;  %v9403_v49 = vor.u32 %v11163_v17, %v9402_v35  ;;  %v11155_v9 = vld [vmem:[#allocation11 + $0x1b4] sm:$0xf0]  ;;  %v11204_v51 = vld [vmem:[#allocation11 + $0x344] sm:$0xf] }
 0x74a   :  { %5273 = vmatpush.bf16.msra.mxu2 %v9571_v62 }
 0x74b   :  { %5288 = vmatpush.bf16.msrb.mxu1 %v9159_v37  ;;  %v4244_v38 = vpop.f32.mrf.mxu1 }
 0x74c   :  { %v4270_v12 = vpop.f32.mrf.mxu0  ;;  %v4245_v59 = vadd.f32 %v4244_v38, %v3587_v36  ;;  %v11224_v38 = vld [vmem:[#allocation11 + $0x3e4] sm:$0xf]  ;;  %v11119_v36 = vld [vmem:[#allocation11 + $0x94] sm:$0xf0] }
 0x74d   :  { %5300 = vmatpush.bf16.msrb.mxu3 %v9303_v58  ;;  %5313 = vmatpush.bf16.msrb.mxu0 %v9431_v0  ;;  %v9655_v6 = vor.u32 %v11224_v38, %v9652_v5  ;;  %v9242_v58 = vld [vmem:[#allocation11 + $0xa8] sm:$0xf]  ;;  %v9227_v11 = vor.u32 %v11119_v36, %v9226_v55  ;;  %v9279_v36 = vor.u32 %v11129_v14, %v9276_v50  ;;  %v9388_v14 = vld [vmem:[#allocation11 + $0x1d8] sm:$0xf0]  ;;  %v3590_v50 = vperm.slane %v12827_v40, 3 }
 0x74e   :  { %5274 = vmatpush.bf16.msra.mxu2 %v9555_v42  ;;  %v9243_v25 = vor.u32 %v11123_v33, %v9242_v58  ;;  %v9162_v5 = vld [vmem:[#allocation11 + $0x8] sm:$0xf]  ;;  %v11151_v58 = vld [vmem:[#allocation11 + $0x194] sm:$0xf0]  ;;  %v9556_v33 = vld [vmem:[#allocation11 + $0x330] sm:$0xf0] }
 0x74f   :  { %v9338_v55 = vld [vmem:[#allocation11 + $0x168] sm:$0xf] }
 0x751   :  { %5301 = vmatpush.bf16.msrb.mxu3 %v9287_v31  ;;  %5314 = vmatpush.bf16.msrb.mxu0 %v9415_v48 }
 0x752   :  { %5275 = vmatpush.bf16.msra.mxu2 %v9539_v27 }
 0x753   :  { %v4246_v60 = vpop.f32.mrf.mxu1 }
 0x754   :  { %v4272_v53 = vpop.f32.mrf.mxu0  ;;  %v9620_v60 = vld [vmem:[#allocation11 + $0x3b0] sm:$0xf0] }
 0x755   :  { %v9623_v7 = vor.u32 %v11216_v13, %v9620_v60  ;;  %v9530_v13 = vld [vmem:[#allocation11 + $0x2e8] sm:$0xf]  ;;  %v11196_v60 = vld [vmem:[#allocation11 + $0x304] sm:$0xf] }
 0x756   :  { %5320 = vmatpush.bf16.msrb.mxu2 %v9655_v6  ;;  %v9354_v6 = vld [vmem:[#allocation11 + $0x188] sm:$0xf] }
 0x757   :  { %v4257_v19 = vpop.f32.mrf.mxu3 }
 0x758   :  { %v4258_v26 = vadd.f32 %v4257_v19, %v4245_v59  ;;  %v4283_v32 = vpop.f32.mrf.mxu2 }
 0x75a   :  { %v4271_v37 = vadd.f32 %v4270_v12, %v4258_v26  ;;  %v3588_v12 = vperm.slane %v12827_v40, 1  ;;  %5321 = vmatpush.bf16.msrb.mxu2 %v9639_v28  ;;  %v9604_v26 = vld [vmem:[#allocation11 + $0x390] sm:$0xf0] }
 0x75b   :  { %v4296_v41 = vpop.f32.mrf.mxu1 }
 0x75c   :  { %v4284_v46 = vadd.f32 %v4283_v32, %v4271_v37  ;;  %v4322_v10 = vpop.f32.mrf.mxu0  ;;  %v4297_v54 = vadd.f32 %v4296_v41, %v3588_v12  ;;  %v9607_v32 = vor.u32 %v11212_v29, %v9604_v26  ;;  %v9194_v37 = vld [vmem:[#allocation11 + $0x48] sm:$0xf]  ;;  %v11111_v41 = vld [vmem:[#allocation11 + $0x54] sm:$0xf0] }
 0x75d   :  { %v9195_v0 = vor.u32 %v11111_v41, %v9194_v37  ;;  %v11103_v12 = vld [vmem:[#allocation11 + $0x14] sm:$0xf0]  ;;  %v9244_v37 = vld [vmem:[#allocation11 + $0xb8] sm:$0xf0] }
 0x75e   :  { %v4443_v61 = vmax.f32 %v4284_v46, 0.0  ;;  %5322 = vmatpush.bf16.msrb.mxu2 %v9623_v7  ;;  %v11159_v46 = vld [vmem:[#allocation11 + $0x1d4] sm:$0xf0]  ;;  %v9540_v7 = vld [vmem:[#allocation11 + $0x310] sm:$0xf0] }
 0x75f   :  { %v4259_v43 = vpop.f32.mrf.mxu3  ;;  %v9543_v18 = vor.u32 %v11196_v60, %v9540_v7  ;;  %v11153_v60 = vld [vmem:[#allocation11 + $0x1ac] sm:$0xf]  ;;  %v9372_v7 = vld [vmem:[#allocation11 + $0x1b8] sm:$0xf0] }
 0x760   :  { %v12830_v22 = vpack.c.bf16 %v4443_v61, %v4443_v61  ;;  %v4285_v24 = vpop.f32.mrf.mxu2  ;;  %v9387_v61 = vor.u32 %v11159_v46, %v9386_v15  ;;  %v11107_v43 = vld [vmem:[#allocation11 + $0x34] sm:$0xf0]  ;;  %v9306_v46 = vld [vmem:[#allocation11 + $0x128] sm:$0xf] }
 0x761   :  { %v9572_v24 = vld [vmem:[#allocation11 + $0x350] sm:$0xf0]  ;;  %v9179_v38 = vor.u32 %v11107_v43, %v9178_v2 }
 0x762   :  { %5237 = vmatmul.bf16.vlgmr.msra.gmra.mxu1 %v12830_v22  ;;  %5323 = vmatpush.bf16.msrb.mxu2 %v9607_v32  ;;  %v9575_v27 = vor.u32 %v11204_v51, %v9572_v24  ;;  %v9322_v32 = vld [vmem:[#allocation11 + $0x148] sm:$0xf]  ;;  %v11183_v24 = vld [vmem:[#allocation11 + $0x294] sm:$0xf0] }
 0x763   :  { %5333 = vmatpush.bf16.msra.mxu1 %v9275_v8  ;;  %v4298_v39 = vpop.f32.mrf.mxu1  ;;  %v9370_v8 = vld [vmem:[#allocation11 + $0x1a8] sm:$0xf] }
 0x764   :  { %v4324_v56 = vpop.f32.mrf.mxu0  ;;  %v9371_v48 = vor.u32 %v11155_v9, %v9370_v8  ;;  %v9290_v8 = vld [vmem:[#allocation11 + $0x108] sm:$0xf] }
 0x765   :  { %v11200_v56 = vld [vmem:[#allocation11 + $0x324] sm:$0xf]  ;;  %v9482_v9 = vld [vmem:[#allocation11 + $0x288] sm:$0xf] }
 0x766   :  { %v9559_v28 = vor.u32 %v11200_v56, %v9556_v33  ;;  %v9196_v56 = vld [vmem:[#allocation11 + $0x58] sm:$0xf0]  ;;  %v11157_v33 = vld [vmem:[#allocation11 + $0x1cc] sm:$0xf] }
 0x767   :  { %5334 = vmatpush.bf16.msra.mxu1 %v9259_v3  ;;  %v4309_v52 = vpop.f32.mrf.mxu3 }
 0x768   :  { %v4310_v31 = vadd.f32 %v4309_v52, %v4297_v54  ;;  %v4335_v23 = vpop.f32.mrf.mxu2  ;;  %v9163_v52 = vor.u32 %v11103_v12, %v9162_v5  ;;  %v9483_v5 = vor.u32 %v11183_v24, %v9482_v9  ;;  %v9642_v24 = vld [vmem:[#allocation11 + $0x3c8] sm:$0xf] }
 0x76a   :  { %v4323_v47 = vadd.f32 %v4322_v10, %v4310_v31  ;;  %v11208_v10 = vld [vmem:[#allocation11 + $0x364] sm:$0xf]  ;;  %v11147_v31 = vld [vmem:[#allocation11 + $0x174] sm:$0xf0] }
 0x76b   :  { %5335 = vmatpush.bf16.msra.mxu1 %v9243_v25  ;;  %v4348_v53 = vpop.f32.mrf.mxu1  ;;  %v9591_v42 = vor.u32 %v11208_v10, %v9588_v57  ;;  %v9355_v25 = vor.u32 %v11151_v58, %v9354_v6  ;;  %v11139_v10 = vld [vmem:[#allocation11 + $0x134] sm:$0xf0]  ;;  %v9498_v57 = vld [vmem:[#allocation11 + $0x2a8] sm:$0xf]  ;;  %v11109_v58 = vld [vmem:[#allocation11 + $0x4c] sm:$0xf] }
 0x76c   :  { %v4336_v59 = vadd.f32 %v4335_v23, %v4323_v47  ;;  %v4374_v19 = vpop.f32.mrf.mxu0  ;;  %v4349_v44 = vadd.f32 %v4348_v53, %v3589_v63  ;;  %v11195_v47 = vld [vmem:[#allocation11 + $0x2f4] sm:$0xf0]  ;;  %v11125_v53 = vld [vmem:[#allocation11 + $0xcc] sm:$0xf]  ;;  %v9466_v6 = vld [vmem:[#allocation11 + $0x268] sm:$0xf] }
 0x76d   :  { %5324 = vmatpush.bf16.msrb.mxu2 %v9591_v42  ;;  %v9531_v29 = vor.u32 %v11195_v47, %v9530_v13  ;;  %v11187_v42 = vld [vmem:[#allocation11 + $0x2b4] sm:$0xf0]  ;;  %v11117_v63 = vld [vmem:[#allocation11 + $0x8c] sm:$0xf]  ;;  %v9180_v13 = vld [vmem:[#allocation11 + $0x38] sm:$0xf0] }
 0x76e   :  { %v4444_v62 = vmax.f32 %v4336_v59, 0.0  ;;  %v9339_v59 = vor.u32 %v11147_v31, %v9338_v55  ;;  %v9499_v2 = vor.u32 %v11187_v42, %v9498_v57  ;;  %v9391_v31 = vor.u32 %v11157_v33, %v9388_v14  ;;  %v11145_v57 = vld [vmem:[#allocation11 + $0x16c] sm:$0xf]  ;;  %v9340_v42 = vld [vmem:[#allocation11 + $0x178] sm:$0xf0] }
 0x76f   :  { %5336 = vmatpush.bf16.msra.mxu1 %v9227_v11  ;;  %v4311_v4 = vpop.f32.mrf.mxu3  ;;  %v9260_v11 = vld [vmem:[#allocation11 + $0xd8] sm:$0xf0]  ;;  %v9343_v9 = vor.u32 %v11145_v57, %v9340_v42  ;;  %v11185_v33 = vld [vmem:[#allocation11 + $0x2ac] sm:$0xf] }
 0x770   :  { %v12834_v1 = vpack.c.bf16 %v4444_v62, %v4444_v62  ;;  %v4337_v30 = vpop.f32.mrf.mxu2  ;;  %v9263_v26 = vor.u32 %v11125_v53, %v9260_v11  ;;  %v11143_v62 = vld [vmem:[#allocation11 + $0x154] sm:$0xf0]  ;;  %v9514_v4 = vld [vmem:[#allocation11 + $0x2c8] sm:$0xf]  ;;  %v9500_v14 = vld [vmem:[#allocation11 + $0x2b8] sm:$0xf0] }
 0x771   :  { %5325 = vmatpush.bf16.msrb.mxu2 %v9575_v27  ;;  %v9323_v41 = vor.u32 %v11143_v62, %v9322_v32  ;;  %v11113_v27 = vld [vmem:[#allocation11 + $0x6c] sm:$0xf]  ;;  %v9356_v62 = vld [vmem:[#allocation11 + $0x198] sm:$0xf0] }
 0x772   :  { %5250 = vmatmul.bf16.vlgmr.msra.gmra.mxu3 %v12834_v1  ;;  %5289 = vmatmul.bf16.vlgmr.msrb.gmra.mxu1 %v12830_v22  ;;  %v11149_v32 = vld [vmem:[#allocation11 + $0x18c] sm:$0xf]  ;;  %v9660_v57 = vld [vmem:[#allocation11 + $0x3f8] sm:$0xf0] }
 0x773   :  { %5337 = vmatpush.bf16.msra.mxu1 %v9211_v45  ;;  %5346 = vmatpush.bf16.msra.mxu3 %v9403_v49  ;;  %v4350_v20 = vpop.f32.mrf.mxu1  ;;  %v11191_v45 = vld [vmem:[#allocation11 + $0x2d4] sm:$0xf0]  ;;  %v11121_v49 = vld [vmem:[#allocation11 + $0xac] sm:$0xf] }
 0x774   :  { %v4376_v16 = vpop.f32.mrf.mxu0  ;;  %v9515_v15 = vor.u32 %v11191_v45, %v9514_v4  ;;  %v9247_v30 = vor.u32 %v11121_v49, %v9244_v37  ;;  %v9228_v20 = vld [vmem:[#allocation11 + $0x98] sm:$0xf0]  ;;  %v9418_v37 = vld [vmem:[#allocation11 + $0x208] sm:$0xf] }
 0x775   :  { %5326 = vmatpush.bf16.msrb.mxu2 %v9559_v28  ;;  %v9231_v43 = vor.u32 %v11117_v63, %v9228_v20  ;;  %v11135_v16 = vld [vmem:[#allocation11 + $0x114] sm:$0xf0]  ;;  %v11193_v63 = vld [vmem:[#allocation11 + $0x2ec] sm:$0xf]  ;;  %v9532_v20 = vld [vmem:[#allocation11 + $0x2f8] sm:$0xf0] }
 0x777   :  { %5338 = vmatpush.bf16.msra.mxu1 %v9195_v0  ;;  %5347 = vmatpush.bf16.msra.mxu3 %v9387_v61  ;;  %v4361_v34 = vpop.f32.mrf.mxu3  ;;  %v9307_v0 = vor.u32 %v11139_v10, %v9306_v46  ;;  %v9658_v46 = vld [vmem:[#allocation11 + $0x3e8] sm:$0xf]  ;;  %v11227_v10 = vld [vmem:[#allocation11 + $0x3f4] sm:$0xf0] }
 0x778   :  { %v4362_v39 = vadd.f32 %v4361_v34, %v4349_v44  ;;  %v4387_v3 = vpop.f32.mrf.mxu2  ;;  %v9212_v44 = vld [vmem:[#allocation11 + $0x78] sm:$0xf0]  ;;  %v11161_v34 = vld [vmem:[#allocation11 + $0x1ec] sm:$0xf] }
 0x779   :  { %5327 = vmatpush.bf16.msrb.mxu2 %v9543_v18  ;;  %v9215_v12 = vor.u32 %v11113_v27, %v9212_v44  ;;  %v9434_v18 = vld [vmem:[#allocation11 + $0x228] sm:$0xf]  ;;  %v11223_v27 = vld [vmem:[#allocation11 + $0x3d4] sm:$0xf0]  ;;  %v11141_v44 = vld [vmem:[#allocation11 + $0x14c] sm:$0xf] }
 0x77a   :  { %v4375_v54 = vadd.f32 %v4374_v19, %v4362_v39 }
 0x77b   :  { %5339 = vmatpush.bf16.msra.mxu1 %v9179_v38  ;;  %5348 = vmatpush.bf16.msra.mxu3 %v9371_v48  ;;  %v9404_v38 = vld [vmem:[#allocation11 + $0x1f8] sm:$0xf0]  ;;  %v9291_v48 = vor.u32 %v11135_v16, %v9290_v8 }
 0x77c   :  { %v4388_v23 = vadd.f32 %v4387_v3, %v4375_v54  ;;  %v9407_v39 = vor.u32 %v11161_v34, %v9404_v38  ;;  %v11179_v3 = vld [vmem:[#allocation11 + $0x274] sm:$0xf0]  ;;  %v9324_v34 = vld [vmem:[#allocation11 + $0x158] sm:$0xf0]  ;;  %v11189_v38 = vld [vmem:[#allocation11 + $0x2cc] sm:$0xf] }
 0x77d   :  { %v9467_v54 = vor.u32 %v11179_v3, %v9466_v6  ;;  %v11219_v3 = vld [vmem:[#allocation11 + $0x3b4] sm:$0xf0] }
 0x77e   :  { %v4445_v21 = vmax.f32 %v4388_v23, 0.0  ;;  %v11175_v23 = vld [vmem:[#allocation11 + $0x254] sm:$0xf0] }
 0x77f   :  { %5340 = vmatpush.bf16.msra.mxu1 %v9163_v52  ;;  %5349 = vmatpush.bf16.msra.mxu3 %v9355_v25  ;;  %v4363_v35 = vpop.f32.mrf.mxu3  ;;  %v9199_v52 = vor.u32 %v11109_v58, %v9196_v56  ;;  %v9450_v25 = vld [vmem:[#allocation11 + $0x248] sm:$0xf]  ;;  %v11137_v58 = vld [vmem:[#allocation11 + $0x12c] sm:$0xf]  ;;  %v9308_v56 = vld [vmem:[#allocation11 + $0x138] sm:$0xf0] }
 0x780   :  { %v12839_v19 = vpack.c.bf16 %v4445_v21, %v4445_v21  ;;  %v4389_v17 = vpop.f32.mrf.mxu2  ;;  %v9451_v53 = vor.u32 %v11175_v23, %v9450_v25  ;;  %v11133_v25 = vld [vmem:[#allocation11 + $0x10c] sm:$0xf]  ;;  %v9484_v23 = vld [vmem:[#allocation11 + $0x298] sm:$0xf0] }
 0x781   :  { %v11171_v17 = vld [vmem:[#allocation11 + $0x234] sm:$0xf0] }
 0x782   :  { %5263 = vmatmul.bf16.vlgmr.msra.gmra.mxu0 %v12839_v19  ;;  %5302 = vmatmul.bf16.vlgmr.msrb.gmra.mxu3 %v12834_v1  ;;  %v9435_v45 = vor.u32 %v11171_v17, %v9434_v18  ;;  %v9452_v17 = vld [vmem:[#allocation11 + $0x258] sm:$0xf0] }
 0x783   :  { %5385 = vmatpush.bf16.msrb.mxu1 %v9279_v36  ;;  %5350 = vmatpush.bf16.msra.mxu3 %v9339_v59  ;;  %v11105_v36 = vld [vmem:[#allocation11 + $0x2c] sm:$0xf]  ;;  %v9375_v59 = vor.u32 %v11153_v60, %v9372_v7  ;;  %v9594_v7 = vld [vmem:[#allocation11 + $0x368] sm:$0xf] }
 0x784   :  { %5341 = vmatmul.bf16.vlgmr.msra.gmra.mxu1 %v12830_v22  ;;  %5359 = vmatpush.bf16.msra.mxu0 %v9531_v29  ;;  %v9183_v11 = vor.u32 %v11105_v36, %v9180_v13  ;;  %v11101_v29 = vld [vmem:[#allocation11 + $0xc] sm:$0xf] }
 0x787   :  { %5386 = vmatpush.bf16.msrb.mxu1 %v9263_v26  ;;  %5351 = vmatpush.bf16.msra.mxu3 %v9323_v41  ;;  %v9164_v26 = vld [vmem:[#allocation11 + $0x18] sm:$0xf0]  ;;  %v11167_v41 = vld [vmem:[#allocation11 + $0x214] sm:$0xf0] }
 0x788   :  { %5360 = vmatpush.bf16.msra.mxu0 %v9515_v15  ;;  %v9167_v49 = vor.u32 %v11101_v29, %v9164_v26 }
 0x78b   :  { %v4400_v61 = vpop.f32.mrf.mxu1  ;;  %5387 = vmatpush.bf16.msrb.mxu1 %v9247_v30  ;;  %5352 = vmatpush.bf16.msra.mxu3 %v9307_v0  ;;  %v9359_v30 = vor.u32 %v11149_v32, %v9356_v62  ;;  %v9562_v32 = vld [vmem:[#allocation11 + $0x328] sm:$0xf]  ;;  %v11203_v62 = vld [vmem:[#allocation11 + $0x334] sm:$0xf0] }
 0x78c   :  { %v4426_v51 = vpop.f32.mrf.mxu0  ;;  %5361 = vmatpush.bf16.msra.mxu0 %v9499_v2  ;;  %v4401_v40 = vadd.f32 %v4400_v61, %v3590_v50  ;;  %v9419_v2 = vor.u32 %v11167_v41, %v9418_v37  ;;  %v9546_v41 = vld [vmem:[#allocation11 + $0x308] sm:$0xf] }
 0x78f   :  { %5388 = vmatpush.bf16.msrb.mxu1 %v9231_v43  ;;  %5353 = vmatpush.bf16.msra.mxu3 %v9291_v48  ;;  %v9659_v43 = vor.u32 %v11227_v10, %v9658_v46  ;;  %v9516_v48 = vld [vmem:[#allocation11 + $0x2d8] sm:$0xf0]  ;;  %v11225_v10 = vld [vmem:[#allocation11 + $0x3ec] sm:$0xf] }
 0x790   :  { %5362 = vmatpush.bf16.msra.mxu0 %v9483_v5  ;;  %v9643_v5 = vor.u32 %v11223_v27, %v9642_v24  ;;  %v9519_v6 = vor.u32 %v11189_v38, %v9516_v48  ;;  %v9420_v46 = vld [vmem:[#allocation11 + $0x218] sm:$0xf0]  ;;  %v11209_v27 = vld [vmem:[#allocation11 + $0x36c] sm:$0xf]  ;;  %v11258_v38 = vld [vmem:[#allocation13 + $0xec] sm:$0xf0] }
 0x792   :  { %5315 = vmatmul.bf16.vlgmr.msrb.gmra.mxu0 %v12839_v19  ;;  %5354 = vmatmul.bf16.vlgmr.msra.gmra.mxu3 %v12834_v1 }
 0x793   :  { %v4402_v28 = vpop.f32.mrf.mxu1  ;;  %5389 = vmatpush.bf16.msrb.mxu1 %v9215_v12  ;;  %5398 = vmatpush.bf16.msrb.mxu3 %v9407_v39  ;;  %v9327_v12 = vor.u32 %v11141_v44, %v9324_v34  ;;  %v9626_v39 = vld [vmem:[#allocation11 + $0x3a8] sm:$0xf]  ;;  %v9596_v44 = vld [vmem:[#allocation11 + $0x378] sm:$0xf0]  ;;  %v9778_v34 = vld [vmem:[#allocation13 + $0xe0] sm:$0xf] }
 0x794   :  { %v4428_v55 = vpop.f32.mrf.mxu0  ;;  %5363 = vmatpush.bf16.msra.mxu0 %v9467_v54  ;;  %v9627_v50 = vor.u32 %v11219_v3, %v9626_v39  ;;  %v9503_v28 = vor.u32 %v11185_v33, %v9500_v14  ;;  %v9610_v54 = vld [vmem:[#allocation11 + $0x388] sm:$0xf]  ;;  %v9779_v48 = vor.u32 %v11258_v38, %v9778_v34  ;;  %v11201_v3 = vld [vmem:[#allocation11 + $0x32c] sm:$0xf]  ;;  %v11318_v38 = vld [vmem:[#allocation13 + $0x2cc] sm:$0xf0] }
 0x795   :  { %v9292_v55 = vld [vmem:[#allocation11 + $0x118] sm:$0xf0] }
 0x796   :  { %v9295_v13 = vor.u32 %v11133_v25, %v9292_v55  ;;  %v9730_v55 = vld [vmem:[#allocation13 + $0x80] sm:$0xf] }
 0x797   :  { %v4413_v47 = vpop.f32.mrf.mxu3  ;;  %5390 = vmatpush.bf16.msrb.mxu1 %v9199_v52  ;;  %5399 = vmatpush.bf16.msrb.mxu3 %v9391_v31  ;;  %v11215_v52 = vld [vmem:[#allocation11 + $0x394] sm:$0xf0]  ;;  %v11181_v31 = vld [vmem:[#allocation11 + $0x28c] sm:$0xf] }
 0x798   :  { %v4414_v21 = vadd.f32 %v4413_v47, %v4401_v40  ;;  %v4439_v35 = vpop.f32.mrf.mxu2  ;;  %5364 = vmatpush.bf16.msra.mxu0 %v9451_v53  ;;  %v9611_v36 = vor.u32 %v11215_v52, %v9610_v54  ;;  %v9487_v60 = vor.u32 %v11181_v31, %v9484_v23  ;;  %v11211_v40 = vld [vmem:[#allocation11 + $0x374] sm:$0xf0]  ;;  %v11177_v47 = vld [vmem:[#allocation11 + $0x26c] sm:$0xf]  ;;  %v9468_v53 = vld [vmem:[#allocation11 + $0x278] sm:$0xf0] }
 0x799   :  { %v9471_v18 = vor.u32 %v11177_v47, %v9468_v53  ;;  %v9746_v54 = vld [vmem:[#allocation13 + $0xa0] sm:$0xf]  ;;  %v11250_v52 = vld [vmem:[#allocation13 + $0xac] sm:$0xf0] }
 0x79a   :  { %v4427_v4 = vadd.f32 %v4426_v51, %v4414_v21  ;;  %v9535_v51 = vor.u32 %v11193_v63, %v9532_v20  ;;  %v9578_v21 = vld [vmem:[#allocation11 + $0x348] sm:$0xf]  ;;  %v9663_v63 = vor.u32 %v11225_v10, %v9660_v57  ;;  %v11221_v20 = vld [vmem:[#allocation11 + $0x3cc] sm:$0xf]  ;;  %v9747_v25 = vor.u32 %v11250_v52, %v9746_v54  ;;  %v11246_v31 = vld [vmem:[#allocation13 + $0x8c] sm:$0xf0] }
 0x79b   :  { %5391 = vmatpush.bf16.msrb.mxu1 %v9183_v11  ;;  %5400 = vmatpush.bf16.msrb.mxu3 %v9375_v59  ;;  %v9595_v11 = vor.u32 %v11211_v40, %v9594_v7  ;;  %v11173_v59 = vld [vmem:[#allocation11 + $0x24c] sm:$0xf]  ;;  %v9731_v23 = vor.u32 %v11246_v31, %v9730_v55  ;;  %v11290_v40 = vld [vmem:[#allocation13 + $0x1ec] sm:$0xf0]  ;;  %v9780_v10 = vld [vmem:[#allocation13 + $0xf0] sm:$0xf0] }
 0x79c   :  { %v4440_v15 = vadd.f32 %v4439_v35, %v4427_v4  ;;  %5365 = vmatpush.bf16.msra.mxu0 %v9435_v45  ;;  %v11207_v35 = vld [vmem:[#allocation11 + $0x354] sm:$0xf0]  ;;  %v9455_v26 = vor.u32 %v11173_v59, %v9452_v17  ;;  %v11169_v4 = vld [vmem:[#allocation11 + $0x22c] sm:$0xf]  ;;  %v9436_v45 = vld [vmem:[#allocation11 + $0x238] sm:$0xf0] }
 0x79d   :  { %v9579_v29 = vor.u32 %v11207_v35, %v9578_v21  ;;  %v9439_v37 = vor.u32 %v11169_v4, %v9436_v45  ;;  %v9890_v21 = vld [vmem:[#allocation13 + $0x1c0] sm:$0xf]  ;;  %v11286_v59 = vld [vmem:[#allocation13 + $0x1cc] sm:$0xf0] }
 0x79e   :  { %v4446_v0 = vmax.f32 %v4440_v15, 0.0  ;;  %v11199_v15 = vld [vmem:[#allocation11 + $0x314] sm:$0xf0]  ;;  %v9891_v17 = vor.u32 %v11286_v59, %v9890_v21  ;;  %v9794_v52 = vld [vmem:[#allocation13 + $0x100] sm:$0xf] }
 0x79f   :  { %v4415_v61 = vpop.f32.mrf.mxu3  ;;  %5392 = vmatpush.bf16.msrb.mxu1 %v9167_v49  ;;  %5401 = vmatpush.bf16.msrb.mxu3 %v9359_v30  ;;  %v9563_v49 = vor.u32 %v11203_v62, %v9562_v32  ;;  %v11165_v30 = vld [vmem:[#allocation11 + $0x20c] sm:$0xf]  ;;  %v9547_v42 = vor.u32 %v11199_v15, %v9546_v41  ;;  %v11282_v62 = vld [vmem:[#allocation13 + $0x1ac] sm:$0xf0]  ;;  %v9858_v41 = vld [vmem:[#allocation13 + $0x180] sm:$0xf] }
 0x7a0   :  { %v12847_v8 = vpack.c.bf16 %v4446_v0, %v4446_v0  ;;  %v4441_v16 = vpop.f32.mrf.mxu2  ;;  %5366 = vmatpush.bf16.msra.mxu0 %v9419_v2  ;;  %v9644_v0 = vld [vmem:[#allocation11 + $0x3d8] sm:$0xf0]  ;;  %v11217_v2 = vld [vmem:[#allocation11 + $0x3ac] sm:$0xf]  ;;  %v9986_v55 = vld [vmem:[#allocation13 + $0x280] sm:$0xf] }
 0x7a1   :  { %v9647_v61 = vor.u32 %v11221_v20, %v9644_v0  ;;  %v10034_v20 = vld [vmem:[#allocation13 + $0x2e0] sm:$0xf]  ;;  %v11310_v31 = vld [vmem:[#allocation13 + $0x28c] sm:$0xf0] }
 0x7a2   :  { %5276 = vmatmul.bf16.vlgmr.msra.gmra.mxu2 %v12847_v8  ;;  %5393 = vmatmul.bf16.vlgmr.msrb.gmra.mxu1 %v12830_v22  ;;  %v9311_v22 = vor.u32 %v11137_v58, %v9308_v56  ;;  %v9762_v58 = vld [vmem:[#allocation13 + $0xc0] sm:$0xf]  ;;  %v11254_v56 = vld [vmem:[#allocation13 + $0xcc] sm:$0xf0] }
 0x7a3   :  { %5372 = vmatpush.bf16.msra.mxu2 %v9659_v43  ;;  %5402 = vmatpush.bf16.msrb.mxu3 %v9343_v9  ;;  %v9628_v43 = vld [vmem:[#allocation11 + $0x3b8] sm:$0xf0]  ;;  %v11213_v9 = vld [vmem:[#allocation11 + $0x38c] sm:$0xf]  ;;  %v9763_v14 = vor.u32 %v11254_v56, %v9762_v58  ;;  %v10002_v58 = vld [vmem:[#allocation13 + $0x2a0] sm:$0xf] }
 0x7a4   :  { %5411 = vmatpush.bf16.msrb.mxu0 %v9535_v51  ;;  %v9631_v16 = vor.u32 %v11217_v2, %v9628_v43  ;;  %v9612_v51 = vld [vmem:[#allocation11 + $0x398] sm:$0xf0]  ;;  %6223 = vmatpush.bf16.msra.mxu1 %v9779_v48  ;;  %v11252_v2 = vld [vmem:[#allocation13 + $0xc4] sm:$0xf]  ;;  %v9764_v43 = vld [vmem:[#allocation13 + $0xd0] sm:$0xf0] }
 0x7a5   :  { %5367 = vmatmul.bf16.vlgmr.msra.gmra.mxu0 %v12839_v19  ;;  %v9615_v24 = vor.u32 %v11213_v9, %v9612_v51  ;;  %v9767_v51 = vor.u32 %v11252_v2, %v9764_v43  ;;  %v11248_v48 = vld [vmem:[#allocation13 + $0xa4] sm:$0xf]  ;;  %v9970_v21 = vld [vmem:[#allocation13 + $0x260] sm:$0xf]  ;;  %v9668_v2 = vld [vmem:[#allocation13 + $0x10] sm:$0xf0] }
 0x7a6   :  { %v11276_v43 = vld [vmem:[#allocation13 + $0x184] sm:$0xf] }
 0x7a7   :  { %5373 = vmatpush.bf16.msra.mxu2 %v9643_v5  ;;  %5403 = vmatpush.bf16.msrb.mxu3 %v9327_v12  ;;  %v9599_v5 = vor.u32 %v11209_v27, %v9596_v44  ;;  %v11205_v12 = vld [vmem:[#allocation11 + $0x34c] sm:$0xf]  ;;  %v11270_v27 = vld [vmem:[#allocation13 + $0x14c] sm:$0xf0]  ;;  %v10018_v44 = vld [vmem:[#allocation13 + $0x2c0] sm:$0xf] }
 0x7a8   :  { %5412 = vmatpush.bf16.msrb.mxu0 %v9519_v6  ;;  %v9580_v6 = vld [vmem:[#allocation11 + $0x358] sm:$0xf0]  ;;  %6224 = vmatpush.bf16.msra.mxu1 %v9763_v14  ;;  %v11244_v14 = vld [vmem:[#allocation13 + $0x84] sm:$0xf] }
 0x7a9   :  { %v9583_v39 = vor.u32 %v11205_v12, %v9580_v6  ;;  %v10019_v12 = vor.u32 %v11318_v38, %v10018_v44  ;;  %v11294_v38 = vld [vmem:[#allocation13 + $0x20c] sm:$0xf0] }
 0x7ab   :  { %5374 = vmatpush.bf16.msra.mxu2 %v9627_v50  ;;  %5404 = vmatpush.bf16.msrb.mxu3 %v9311_v22  ;;  %v11197_v50 = vld [vmem:[#allocation11 + $0x30c] sm:$0xf]  ;;  %v9548_v22 = vld [vmem:[#allocation11 + $0x318] sm:$0xf0] }
 0x7ac   :  { %5413 = vmatpush.bf16.msrb.mxu0 %v9503_v28  ;;  %v9551_v28 = vor.u32 %v11197_v50, %v9548_v22  ;;  %6225 = vmatpush.bf16.msra.mxu1 %v9747_v25  ;;  %v9732_v50 = vld [vmem:[#allocation13 + $0x90] sm:$0xf0]  ;;  %v11262_v25 = vld [vmem:[#allocation13 + $0x10c] sm:$0xf0] }
 0x7ad   :  { %v9735_v54 = vor.u32 %v11244_v14, %v9732_v50 }
 0x7af   :  { %5375 = vmatpush.bf16.msra.mxu2 %v9611_v36  ;;  %5405 = vmatpush.bf16.msrb.mxu3 %v9295_v13  ;;  %v9714_v36 = vld [vmem:[#allocation13 + $0x60] sm:$0xf]  ;;  %v11242_v13 = vld [vmem:[#allocation13 + $0x6c] sm:$0xf0] }
 0x7b0   :  { %5414 = vmatpush.bf16.msrb.mxu0 %v9487_v60  ;;  %6226 = vmatpush.bf16.msra.mxu1 %v9731_v23  ;;  %v9906_v60 = vld [vmem:[#allocation13 + $0x1e0] sm:$0xf]  ;;  %v9715_v7 = vor.u32 %v11242_v13, %v9714_v36  ;;  %v9795_v23 = vor.u32 %v11262_v25, %v9794_v52  ;;  %v9987_v36 = vor.u32 %v11310_v31, %v9986_v55  ;;  %v11240_v13 = vld [vmem:[#allocation13 + $0x64] sm:$0xf]  ;;  %v9828_v25 = vld [vmem:[#allocation13 + $0x150] sm:$0xf0] }
 0x7b1   :  { %v9907_v53 = vor.u32 %v11290_v40, %v9906_v60  ;;  %v9716_v60 = vld [vmem:[#allocation13 + $0x70] sm:$0xf0]  ;;  %v11268_v52 = vld [vmem:[#allocation13 + $0x144] sm:$0xf] }
 0x7b2   :  { %5328 = vmatmul.bf16.vlgmr.msrb.gmra.mxu2 %v12847_v8  ;;  %5406 = vmatmul.bf16.vlgmr.msrb.gmra.mxu3 %v12834_v1  ;;  %v9423_v1 = vor.u32 %v11165_v30, %v9420_v46  ;;  %v11278_v30 = vld [vmem:[#allocation13 + $0x18c] sm:$0xf0]  ;;  %v11256_v46 = vld [vmem:[#allocation13 + $0xe4] sm:$0xf]  ;;  %v9719_v40 = vor.u32 %v11240_v13, %v9716_v60  ;;  %v10130_v60 = vld [vmem:[#allocation13 + $0x3a0] sm:$0xf] }
 0x7b3   :  { %5376 = vmatpush.bf16.msra.mxu2 %v9595_v11  ;;  %6236 = vmatpush.bf16.msra.mxu3 %v9907_v53  ;;  %v9698_v11 = vld [vmem:[#allocation13 + $0x40] sm:$0xf]  ;;  %v9859_v57 = vor.u32 %v11278_v30, %v9858_v41  ;;  %v9908_v53 = vld [vmem:[#allocation13 + $0x1f0] sm:$0xf0]  ;;  %v11316_v55 = vld [vmem:[#allocation13 + $0x2c4] sm:$0xf] }
 0x7b4   :  { %5415 = vmatpush.bf16.msrb.mxu0 %v9471_v18  ;;  %6227 = vmatpush.bf16.msra.mxu1 %v9715_v7  ;;  %v11238_v18 = vld [vmem:[#allocation13 + $0x4c] sm:$0xf0]  ;;  %v11288_v7 = vld [vmem:[#allocation13 + $0x1e4] sm:$0xf]  ;;  %v9684_v30 = vld [vmem:[#allocation13 + $0x30] sm:$0xf0] }
 0x7b5   :  { %v9699_v35 = vor.u32 %v11238_v18, %v9698_v11  ;;  %v9911_v11 = vor.u32 %v11288_v7, %v9908_v53  ;;  %v11346_v7 = vld [vmem:[#allocation13 + $0x3ac] sm:$0xf0]  ;;  %v11264_v53 = vld [vmem:[#allocation13 + $0x124] sm:$0xf] }
 0x7b7   :  { %5377 = vmatpush.bf16.msra.mxu2 %v9579_v29  ;;  %6237 = vmatpush.bf16.msra.mxu3 %v9891_v17  ;;  %v11234_v29 = vld [vmem:[#allocation13 + $0x2c] sm:$0xf0]  ;;  %v11236_v17 = vld [vmem:[#allocation13 + $0x44] sm:$0xf] }
 0x7b8   :  { %5416 = vmatpush.bf16.msrb.mxu0 %v9455_v26  ;;  %6228 = vmatpush.bf16.msra.mxu1 %v9699_v35  ;;  %v9874_v26 = vld [vmem:[#allocation13 + $0x1a0] sm:$0xf]  ;;  %v11306_v35 = vld [vmem:[#allocation13 + $0x26c] sm:$0xf0] }
 0x7b9   :  { %v9875_v45 = vor.u32 %v11282_v62, %v9874_v26  ;;  %v9971_v59 = vor.u32 %v11306_v35, %v9970_v21  ;;  %v9892_v62 = vld [vmem:[#allocation13 + $0x1d0] sm:$0xf0] }
 0x7ba   :  { %v10004_v35 = vld [vmem:[#allocation13 + $0x2b0] sm:$0xf0] }
 0x7bb   :  { %5378 = vmatpush.bf16.msra.mxu2 %v9563_v49  ;;  %v9666_v49 = vld [vmem:[#allocation13] sm:$0xf]  ;;  %6238 = vmatpush.bf16.msra.mxu3 %v9875_v45 }
 0x7bc   :  { %5417 = vmatpush.bf16.msrb.mxu0 %v9439_v37  ;;  %v11230_v37 = vld [vmem:[#allocation13 + $0xc] sm:$0xf0] }
 0x7bd   :  { %v9667_v15 = vor.u32 %v11230_v37, %v9666_v49  ;;  %v9954_v49 = vld [vmem:[#allocation13 + $0x240] sm:$0xf]  ;;  %v11302_v37 = vld [vmem:[#allocation13 + $0x24c] sm:$0xf0] }
 0x7be   :  { %v9955_v41 = vor.u32 %v11302_v37, %v9954_v49  ;;  %v9796_v49 = vld [vmem:[#allocation13 + $0x110] sm:$0xf0]  ;;  %v11308_v37 = vld [vmem:[#allocation13 + $0x284] sm:$0xf] }
 0x7bf   :  { %5379 = vmatpush.bf16.msra.mxu2 %v9547_v42  ;;  %v9783_v42 = vor.u32 %v11256_v46, %v9780_v10  ;;  %6239 = vmatpush.bf16.msra.mxu3 %v9859_v57  ;;  %v11280_v46 = vld [vmem:[#allocation13 + $0x1a4] sm:$0xf]  ;;  %v9876_v57 = vld [vmem:[#allocation13 + $0x1b0] sm:$0xf0] }
 0x7c0   :  { %5418 = vmatpush.bf16.msrb.mxu0 %v9423_v1  ;;  %v9842_v1 = vld [vmem:[#allocation13 + $0x160] sm:$0xf] }
 0x7c2   :  { %5380 = vmatmul.bf16.vlgmr.msra.gmra.mxu2 %v12847_v8 }
 0x7c3   :  { %5424 = vmatpush.bf16.msrb.mxu2 %v9663_v63  ;;  %5419 = vmatmul.bf16.vlgmr.msrb.gmra.mxu0 %v12839_v19  ;;  %v9564_v19 = vld [vmem:[#allocation11 + $0x338] sm:$0xf0]  ;;  %v11274_v63 = vld [vmem:[#allocation13 + $0x16c] sm:$0xf0] }
 0x7c4   :  { %v9567_v33 = vor.u32 %v11201_v3, %v9564_v19  ;;  %v9843_v0 = vor.u32 %v11274_v63, %v9842_v1  ;;  %v9810_v3 = vld [vmem:[#allocation13 + $0x120] sm:$0xf]  ;;  %v11266_v19 = vld [vmem:[#allocation13 + $0x12c] sm:$0xf0] }
 0x7c5   :  { %v9811_v56 = vor.u32 %v11266_v19, %v9810_v3  ;;  %v9938_v63 = vld [vmem:[#allocation13 + $0x220] sm:$0xf]  ;;  %v9844_v3 = vld [vmem:[#allocation13 + $0x170] sm:$0xf0] }
 0x7c6   :  { %6240 = vmatpush.bf16.msra.mxu3 %v9843_v0 }
 0x7c7   :  { %5425 = vmatpush.bf16.msrb.mxu2 %v9647_v61  ;;  %v11322_v61 = vld [vmem:[#allocation13 + $0x2ec] sm:$0xf0] }
 0x7c8   :  { %v10035_v9 = vor.u32 %v11322_v61, %v10034_v20  ;;  %v11298_v20 = vld [vmem:[#allocation13 + $0x22c] sm:$0xf0]  ;;  %v11228_v61 = vld [vmem:[#allocation13 + $0x4] sm:$0xf] }
 0x7c9   :  { %v9939_v0 = vor.u32 %v11298_v20, %v9938_v63  ;;  %v11304_v20 = vld [vmem:[#allocation13 + $0x264] sm:$0xf] }
 0x7ca   :  { %6249 = vmatpush.bf16.msra.mxu0 %v10035_v9 }
 0x7cb   :  { %5426 = vmatpush.bf16.msrb.mxu2 %v9631_v16 }
 0x7ce   :  { %6250 = vmatpush.bf16.msra.mxu0 %v10019_v12  ;;  %v11354_v12 = vld [vmem:[#allocation13 + $0x3ec] sm:$0xf0] }
 0x7cf   :  { %5427 = vmatpush.bf16.msrb.mxu2 %v9615_v24  ;;  %v9826_v24 = vld [vmem:[#allocation13 + $0x140] sm:$0xf] }
 0x7d0   :  { %v9827_v34 = vor.u32 %v11270_v27, %v9826_v24  ;;  %v9860_v24 = vld [vmem:[#allocation13 + $0x190] sm:$0xf0] }
 0x7d1   :  { %v9863_v44 = vor.u32 %v11276_v43, %v9860_v24  ;;  %v11334_v24 = vld [vmem:[#allocation13 + $0x34c] sm:$0xf0] }
 0x7d2   :  { %6241 = vmatpush.bf16.msra.mxu3 %v9827_v34  ;;  %v9922_v34 = vld [vmem:[#allocation13 + $0x200] sm:$0xf] }
 0x7d3   :  { %5428 = vmatpush.bf16.msrb.mxu2 %v9599_v5  ;;  %v9748_v5 = vld [vmem:[#allocation13 + $0xb0] sm:$0xf0] }
 0x7d4   :  { %v9751_v6 = vor.u32 %v11248_v48, %v9748_v5  ;;  %v10162_v48 = vld [vmem:[#allocation13 + $0x3e0] sm:$0xf]  ;;  %v9923_v5 = vor.u32 %v11294_v38, %v9922_v34  ;;  %v9956_v34 = vld [vmem:[#allocation13 + $0x250] sm:$0xf0] }
 0x7d5   :  { %v10163_v19 = vor.u32 %v11354_v12, %v10162_v48 }
 0x7d6   :  { %6242 = vmatpush.bf16.msra.mxu3 %v9811_v56  ;;  %v11320_v56 = vld [vmem:[#allocation13 + $0x2e4] sm:$0xf] }
 0x7d7   :  { %5429 = vmatpush.bf16.msrb.mxu2 %v9583_v39 }
 0x7da   :  { %6243 = vmatpush.bf16.msra.mxu3 %v9795_v23  ;;  %v9831_v23 = vor.u32 %v11268_v52, %v9828_v25  ;;  %v11326_v52 = vld [vmem:[#allocation13 + $0x30c] sm:$0xf0] }
 0x7db   :  { %5430 = vmatpush.bf16.msrb.mxu2 %v9567_v33  ;;  %v11314_v33 = vld [vmem:[#allocation13 + $0x2ac] sm:$0xf0] }
 0x7de   :  { %6288 = vmatpush.bf16.msrb.mxu3 %v9911_v11  ;;  %v9812_v11 = vld [vmem:[#allocation13 + $0x130] sm:$0xf0] }
 0x7df   :  { %5431 = vmatpush.bf16.msrb.mxu2 %v9551_v28  ;;  %v12857_v47 = vpop.f32.mrf.mxu1  ;;  %v10003_v28 = vor.u32 %v11314_v33, %v10002_v58  ;;  %v10036_v33 = vld [vmem:[#allocation13 + $0x2f0] sm:$0xf0]  ;;  %v9815_v21 = vor.u32 %v11264_v53, %v9812_v11 }
 0x7e0   :  { %v10039_v14 = vor.u32 %v11320_v56, %v10036_v33  ;;  %v9940_v56 = vld [vmem:[#allocation13 + $0x230] sm:$0xf0] }
 0x7e1   :  { %6251 = vmatpush.bf16.msra.mxu0 %v10003_v28  ;;  %v11350_v28 = vld [vmem:[#allocation13 + $0x3cc] sm:$0xf0]  ;;  %v10164_v53 = vld [vmem:[#allocation13 + $0x3f0] sm:$0xf0] }
 0x7e2   :  { %5432 = vmatmul.bf16.vlgmr.msrb.gmra.mxu2 %v12847_v8  ;;  %v9682_v8 = vld [vmem:[#allocation13 + $0x20] sm:$0xf] }
 0x7e3   :  { %v9683_v32 = vor.u32 %v11234_v29, %v9682_v8  ;;  %v9700_v8 = vld [vmem:[#allocation13 + $0x50] sm:$0xf0]  ;;  %v11284_v29 = vld [vmem:[#allocation13 + $0x1c4] sm:$0xf]  ;;  %6262 = vmatpush.bf16.msra.mxu2 %v10163_v19 }
 0x7e4   :  { %v9895_v45 = vor.u32 %v11284_v29, %v9892_v62  ;;  %v10114_v29 = vld [vmem:[#allocation13 + $0x380] sm:$0xf] }
 0x7e5   :  { %6229 = vmatpush.bf16.msra.mxu1 %v9683_v32  ;;  %6252 = vmatpush.bf16.msra.mxu0 %v9987_v36  ;;  %v9703_v32 = vor.u32 %v11236_v17, %v9700_v8  ;;  %v10020_v36 = vld [vmem:[#allocation13 + $0x2d0] sm:$0xf0]  ;;  %v12874_v17 = vld [vmem:[%s13015_s11] sm:$0xf] }
 0x7e6   :  { %6289 = vmatpush.bf16.msrb.mxu3 %v9895_v45  ;;  %v10023_v13 = vor.u32 %v11316_v55, %v10020_v36  ;;  %v11260_v45 = vld [vmem:[#allocation13 + $0x104] sm:$0xf] }
 0x7e7   :  { %v5240_v4 = vpop.f32.mrf.mxu1  ;;  %v11292_v55 = vld [vmem:[#allocation13 + $0x204] sm:$0xf] }
 0x7e8   :  { %v11352_v36 = vld [vmem:[#allocation13 + $0x3e4] sm:$0xf] }
 0x7e9   :  { %6230 = vmatpush.bf16.msra.mxu1 %v9667_v15  ;;  %6253 = vmatpush.bf16.msra.mxu0 %v9971_v59  ;;  %v11232_v15 = vld [vmem:[#allocation13 + $0x24] sm:$0xf] }
 0x7ea   :  { %v9687_v10 = vor.u32 %v11232_v15, %v9684_v30  ;;  %v9799_v15 = vor.u32 %v11260_v45, %v9796_v49  ;;  %v9988_v30 = vld [vmem:[#allocation13 + $0x290] sm:$0xf0] }
 0x7eb   :  { %v10148_v45 = vld [vmem:[#allocation13 + $0x3d0] sm:$0xf0] }
 0x7ed   :  { %6275 = vmatpush.bf16.msrb.mxu1 %v9783_v42  ;;  %v9879_v42 = vor.u32 %v11280_v46, %v9876_v57  ;;  %6254 = vmatpush.bf16.msra.mxu0 %v9955_v41  ;;  %v9991_v46 = vor.u32 %v11308_v37, %v9988_v30  ;;  %v10098_v57 = vld [vmem:[#allocation13 + $0x360] sm:$0xf] }
 0x7ef   :  { %v12859_v16 = vpop.f32.mrf.mxu1  ;;  %6290 = vmatpush.bf16.msrb.mxu3 %v9879_v42  ;;  %v11338_v42 = vld [vmem:[#allocation13 + $0x36c] sm:$0xf0] }
 0x7f0   :  { %v10099_v63 = vor.u32 %v11338_v42, %v10098_v57  ;;  %v10132_v57 = vld [vmem:[#allocation13 + $0x3b0] sm:$0xf0] }
 0x7f1   :  { %6276 = vmatpush.bf16.msrb.mxu1 %v9767_v51  ;;  %v9671_v51 = vor.u32 %v11228_v61, %v9668_v2  ;;  %6255 = vmatpush.bf16.msra.mxu0 %v9939_v0  ;;  %v9972_v0 = vld [vmem:[#allocation13 + $0x270] sm:$0xf0] }
 0x7f2   :  { %v9975_v61 = vor.u32 %v11304_v20, %v9972_v0 }
 0x7f3   :  { %6291 = vmatpush.bf16.msrb.mxu3 %v9863_v44  ;;  %v11300_v44 = vld [vmem:[#allocation13 + $0x244] sm:$0xf] }
 0x7f4   :  { %v9959_v48 = vor.u32 %v11300_v44, %v9956_v34 }
 0x7f5   :  { %v12861_v39 = vpop.f32.mrf.mxu3  ;;  %6277 = vmatpush.bf16.msrb.mxu1 %v9751_v6  ;;  %v11272_v6 = vld [vmem:[#allocation13 + $0x164] sm:$0xf]  ;;  %6256 = vmatpush.bf16.msra.mxu0 %v9923_v5 }
 0x7f6   :  { %v9847_v58 = vor.u32 %v11272_v6, %v9844_v3  ;;  %v10066_v6 = vld [vmem:[#allocation13 + $0x320] sm:$0xf]  ;;  %v11330_v3 = vld [vmem:[#allocation13 + $0x32c] sm:$0xf0] }
 0x7f7   :  { %v5292_v22 = vpop.f32.mrf.mxu1 }
 0x7f8   :  { %v10146_v22 = vld [vmem:[#allocation13 + $0x3c0] sm:$0xf]  ;;  %6292 = vmatpush.bf16.msrb.mxu3 %v9847_v58  ;;  %v11296_v58 = vld [vmem:[#allocation13 + $0x224] sm:$0xf] }
 0x7f9   :  { %6278 = vmatpush.bf16.msrb.mxu1 %v9735_v54  ;;  %6301 = vmatpush.bf16.msrb.mxu0 %v10039_v14  ;;  %v10147_v54 = vor.u32 %v11350_v28, %v10146_v22  ;;  %v9786_v14 = vld [vmem:[#allocation13 + $0xe8] sm:$0xf]  ;;  %v9943_v22 = vor.u32 %v11296_v58, %v9940_v56  ;;  %v10100_v58 = vld [vmem:[#allocation13 + $0x370] sm:$0xf0] }
 0x7fb   :  { %6263 = vmatpush.bf16.msra.mxu2 %v10147_v54 }
 0x7fc   :  { %6293 = vmatpush.bf16.msrb.mxu3 %v9831_v23  ;;  %v9924_v23 = vld [vmem:[#allocation13 + $0x210] sm:$0xf0] }
 0x7fd   :  { %v5253_v18 = vpop.f32.mrf.mxu3  ;;  %6279 = vmatpush.bf16.msrb.mxu1 %v9719_v40  ;;  %6302 = vmatpush.bf16.msrb.mxu0 %v10023_v13  ;;  %v10131_v40 = vor.u32 %v11346_v7, %v10130_v60  ;;  %v9770_v60 = vld [vmem:[#allocation13 + $0xc8] sm:$0xf]  ;;  %v11255_v7 = vld [vmem:[#allocation13 + $0xd4] sm:$0xf0] }
 0x7fe   :  { %v11312_v18 = vld [vmem:[#allocation13 + $0x2a4] sm:$0xf] }
 0x7ff   :  { %v12863_v26 = vpop.f32.mrf.mxu0  ;;  %v10007_v59 = vor.u32 %v11312_v18, %v10004_v35  ;;  %6264 = vmatpush.bf16.msra.mxu2 %v10131_v40  ;;  %v9927_v40 = vor.u32 %v11292_v55, %v9924_v23  ;;  %v10167_v18 = vor.u32 %v11352_v36, %v10164_v53  ;;  %v10084_v55 = vld [vmem:[#allocation13 + $0x350] sm:$0xf0]  ;;  %v9674_v53 = vld [vmem:[#allocation13 + $0x8] sm:$0xf] }
 0x800   :  { %6294 = vmatpush.bf16.msrb.mxu3 %v9815_v21  ;;  %v4582_v21 = vperm.slane %v12874_v17, 1 }
 0x801   :  { %v12865_v4 = vpop.f32.mrf.mxu1  ;;  %6280 = vmatpush.bf16.msrb.mxu1 %v9703_v32  ;;  %v11342_v32 = vld [vmem:[#allocation13 + $0x38c] sm:$0xf0]  ;;  %6303 = vmatpush.bf16.msrb.mxu0 %v10007_v59  ;;  %v9771_v59 = vor.u32 %v11255_v7, %v9770_v60 }
 0x802   :  { %v10115_v62 = vor.u32 %v11342_v32, %v10114_v29  ;;  %v9754_v29 = vld [vmem:[#allocation13 + $0xa8] sm:$0xf]  ;;  %v11251_v32 = vld [vmem:[#allocation13 + $0xb4] sm:$0xf0]  ;;  %v5291_v37 = vadd.f32 %v12859_v16, %v4582_v21 }
 0x804   :  { %6265 = vmatpush.bf16.msra.mxu2 %v10115_v62  ;;  %6295 = vmatpush.bf16.msrb.mxu3 %v9799_v15  ;;  %v11348_v62 = vld [vmem:[#allocation13 + $0x3c4] sm:$0xf]  ;;  %v9738_v15 = vld [vmem:[#allocation13 + $0x88] sm:$0xf] }
 0x805   :  { %v12867_v1 = vpop.f32.mrf.mxu3  ;;  %6281 = vmatpush.bf16.msrb.mxu1 %v9687_v10  ;;  %v4581_v10 = vperm.slane %v12874_v17, 0  ;;  %6304 = vmatpush.bf16.msrb.mxu0 %v9991_v46  ;;  %v10151_v49 = vor.u32 %v11348_v62, %v10148_v45  ;;  %v11247_v46 = vld [vmem:[#allocation13 + $0x94] sm:$0xf0]  ;;  %v9788_v62 = vld [vmem:[#allocation13 + $0xf8] sm:$0xf0] }
 0x806   :  { %v5304_v30 = vadd.f32 %v12867_v1, %v5291_v37  ;;  %v9739_v0 = vor.u32 %v11247_v46, %v9738_v15  ;;  %v10116_v1 = vld [vmem:[#allocation13 + $0x390] sm:$0xf0]  ;;  %v9850_v15 = vld [vmem:[#allocation13 + $0x168] sm:$0xf] }
 0x807   :  { %v5266_v9 = vpop.f32.mrf.mxu0  ;;  %v5239_v43 = vadd.f32 %v12857_v47, %v4581_v10  ;;  %v10067_v47 = vor.u32 %v11330_v3, %v10066_v6  ;;  %v11344_v10 = vld [vmem:[#allocation13 + $0x3a4] sm:$0xf]  ;;  %v9898_v6 = vld [vmem:[#allocation13 + $0x1c8] sm:$0xf] }
 0x808   :  { %6266 = vmatpush.bf16.msra.mxu2 %v10099_v63  ;;  %v10135_v42 = vor.u32 %v11344_v10, %v10132_v57  ;;  %v10042_v57 = vld [vmem:[#allocation13 + $0x2e8] sm:$0xf] }
 0x809   :  { %v5344_v27 = vpop.f32.mrf.mxu1  ;;  %6282 = vmatpush.bf16.msrb.mxu1 %v9671_v51  ;;  %v10082_v51 = vld [vmem:[#allocation13 + $0x340] sm:$0xf]  ;;  %6305 = vmatpush.bf16.msrb.mxu0 %v9975_v61  ;;  %v5252_v38 = vadd.f32 %v12861_v39, %v5239_v43  ;;  %v9722_v61 = vld [vmem:[#allocation13 + $0x68] sm:$0xf]  ;;  %v11243_v43 = vld [vmem:[#allocation13 + $0x74] sm:$0xf0] }
 0x80a   :  { %v10083_v27 = vor.u32 %v11334_v24, %v10082_v51  ;;  %v10050_v39 = vld [vmem:[#allocation13 + $0x300] sm:$0xf]  ;;  %v11291_v24 = vld [vmem:[#allocation13 + $0x1f4] sm:$0xf0] }
 0x80b   :  { %v5265_v12 = vadd.f32 %v12863_v26, %v5252_v38  ;;  %v10051_v26 = vor.u32 %v11326_v52, %v10050_v39  ;;  %v9723_v38 = vor.u32 %v11243_v43, %v9722_v61  ;;  %v9882_v39 = vld [vmem:[#allocation13 + $0x1a8] sm:$0xf] }
 0x80c   :  { %6267 = vmatpush.bf16.msra.mxu2 %v10083_v27  ;;  %v11340_v27 = vld [vmem:[#allocation13 + $0x384] sm:$0xf] }
 0x80d   :  { %v5305_v50 = vpop.f32.mrf.mxu3  ;;  %6306 = vmatpush.bf16.msrb.mxu0 %v9959_v48  ;;  %v10119_v44 = vor.u32 %v11340_v27, %v10116_v1  ;;  %v9834_v1 = vld [vmem:[#allocation13 + $0x148] sm:$0xf] }
 0x80e   :  { %v11259_v50 = vld [vmem:[#allocation13 + $0xf4] sm:$0xf0] }
 0x80f   :  { %v12869_v31 = vpop.f32.mrf.mxu0  ;;  %v9787_v25 = vor.u32 %v11259_v50, %v9786_v14 }
 0x810   :  { %6268 = vmatpush.bf16.msra.mxu2 %v10067_v47  ;;  %v5317_v63 = vadd.f32 %v12869_v31, %v5304_v30  ;;  %v11239_v31 = vld [vmem:[#allocation13 + $0x54] sm:$0xf0]  ;;  %v11336_v47 = vld [vmem:[#allocation13 + $0x364] sm:$0xf] }
 0x811   :  { %6307 = vmatpush.bf16.msrb.mxu0 %v9943_v22  ;;  %v10103_v56 = vor.u32 %v11336_v47, %v10100_v58  ;;  %v11275_v30 = vld [vmem:[#allocation13 + $0x174] sm:$0xf0]  ;;  %v9818_v58 = vld [vmem:[#allocation13 + $0x128] sm:$0xf] }
 0x814   :  { %6269 = vmatpush.bf16.msra.mxu2 %v10051_v26  ;;  %v11332_v26 = vld [vmem:[#allocation13 + $0x344] sm:$0xf] }
 0x815   :  { %v12876_v8 = vpop.f32.mrf.mxu3  ;;  %6308 = vmatpush.bf16.msrb.mxu0 %v9927_v40  ;;  %v10087_v23 = vor.u32 %v11332_v26, %v10084_v55  ;;  %v9994_v26 = vld [vmem:[#allocation13 + $0x288] sm:$0xf]  ;;  %v11311_v55 = vld [vmem:[#allocation13 + $0x294] sm:$0xf0] }
 0x817   :  { %v5318_v41 = vpop.f32.mrf.mxu0 }
 0x818   :  { %6314 = vmatpush.bf16.msrb.mxu2 %v10167_v18  ;;  %v9755_v41 = vor.u32 %v11251_v32, %v9754_v29  ;;  %v9866_v18 = vld [vmem:[#allocation13 + $0x188] sm:$0xf]  ;;  %v10068_v29 = vld [vmem:[#allocation13 + $0x330] sm:$0xf0]  ;;  %v11257_v32 = vld [vmem:[#allocation13 + $0xec] sm:$0xf] }
 0x819   :  { %v9791_v10 = vor.u32 %v11257_v32, %v9788_v62  ;;  %v9708_v32 = vld [vmem:[#allocation13 + $0x58] sm:$0xf0]  ;;  %v11285_v62 = vld [vmem:[#allocation13 + $0x1cc] sm:$0xf] }
 0x81c   :  { %6315 = vmatpush.bf16.msrb.mxu2 %v10151_v49 }
 0x81d   :  { %v5357_v9 = vpop.f32.mrf.mxu3 }
 0x81e   :  { %v9914_v9 = vld [vmem:[#allocation13 + $0x1e8] sm:$0xf] }
 0x81f   :  { %v12879_v2 = vpop.f32.mrf.mxu1  ;;  %v9915_v48 = vor.u32 %v11291_v24, %v9914_v9 }
 0x820   :  { %6316 = vmatpush.bf16.msrb.mxu2 %v10135_v42  ;;  %v10052_v42 = vld [vmem:[#allocation13 + $0x310] sm:$0xf0] }
 0x822   :  { %v12883_v5 = vpop.f32.mrf.mxu0 }
 0x824   :  { %6317 = vmatpush.bf16.msrb.mxu2 %v10119_v44  ;;  %v11271_v44 = vld [vmem:[#allocation13 + $0x154] sm:$0xf0] }
 0x825   :  { %v5277_v19 = vpop.f32.mrf.mxu2 }
 0x826   :  { %v5278_v33 = vadd.f32 %v5277_v19, %v5265_v12  ;;  %v9706_v12 = vld [vmem:[#allocation13 + $0x48] sm:$0xf]  ;;  %v11287_v19 = vld [vmem:[#allocation13 + $0x1d4] sm:$0xf0] }
 0x827   :  { %v5396_v28 = vpop.f32.mrf.mxu1  ;;  %v9707_v50 = vor.u32 %v11239_v31, %v9706_v12  ;;  %v9899_v22 = vor.u32 %v11287_v19, %v9898_v6  ;;  %v9756_v12 = vld [vmem:[#allocation13 + $0xb8] sm:$0xf0]  ;;  %v9835_v6 = vor.u32 %v11271_v44, %v9834_v1 }
 0x828   :  { %v5437_v54 = vmax.f32 %v5278_v33, 0.0  ;;  %v4583_v33 = vperm.slane %v12874_v17, 2  ;;  %v9690_v28 = vld [vmem:[#allocation13 + $0x28] sm:$0xf]  ;;  %6318 = vmatpush.bf16.msrb.mxu2 %v10103_v56  ;;  %v11267_v56 = vld [vmem:[#allocation13 + $0x134] sm:$0xf0] }
 0x82a   :  { %v12886_v13 = vpack.c.bf16 %v5437_v54, %v5437_v54  ;;  %v5370_v11 = vpop.f32.mrf.mxu0  ;;  %v11235_v54 = vld [vmem:[#allocation13 + $0x34] sm:$0xf0]  ;;  %v5343_v36 = vadd.f32 %v12865_v4, %v4583_v33  ;;  %v10010_v33 = vld [vmem:[#allocation13 + $0x2a8] sm:$0xf] }
 0x82b   :  { %v9691_v7 = vor.u32 %v11235_v54, %v9690_v28  ;;  %v11231_v11 = vld [vmem:[#allocation13 + $0x14] sm:$0xf0]  ;;  %v9819_v28 = vor.u32 %v11267_v56, %v9818_v58  ;;  %v11321_v58 = vld [vmem:[#allocation13 + $0x2ec] sm:$0xf]  ;;  %v10044_v56 = vld [vmem:[#allocation13 + $0x2f8] sm:$0xf0] }
 0x82c   :  { %6231 = vmatmul.bf16.vlgmr.msra.gmra.mxu1 %v12886_v13  ;;  %v5356_v21 = vadd.f32 %v12876_v8, %v5343_v36  ;;  %6319 = vmatpush.bf16.msrb.mxu2 %v10087_v23  ;;  %v9675_v37 = vor.u32 %v11231_v11, %v9674_v53  ;;  %v11324_v8 = vld [vmem:[#allocation13 + $0x304] sm:$0xf]  ;;  %v11241_v23 = vld [vmem:[#allocation13 + $0x6c] sm:$0xf]  ;;  %v9724_v36 = vld [vmem:[#allocation13 + $0x78] sm:$0xf0]  ;;  %v9995_v11 = vor.u32 %v11311_v55, %v9994_v26 }
 0x82d   :  { %6327 = vmatpush.bf16.msra.mxu1 %v9787_v25  ;;  %v5279_v35 = vpop.f32.mrf.mxu2  ;;  %v11283_v25 = vld [vmem:[#allocation13 + $0x1b4] sm:$0xf0]  ;;  %v10055_v61 = vor.u32 %v11324_v8, %v10052_v42  ;;  %v9884_v8 = vld [vmem:[#allocation13 + $0x1b8] sm:$0xf0]  ;;  %v11317_v26 = vld [vmem:[#allocation13 + $0x2cc] sm:$0xf] }
 0x82e   :  { %v9883_v40 = vor.u32 %v11283_v25, %v9882_v39  ;;  %v11279_v35 = vld [vmem:[#allocation13 + $0x194] sm:$0xf0]  ;;  %v5369_v4 = vadd.f32 %v12883_v5, %v5356_v21  ;;  %v9851_v5 = vor.u32 %v11275_v30, %v9850_v15  ;;  %v9978_v21 = vld [vmem:[#allocation13 + $0x268] sm:$0xf]  ;;  %v10028_v55 = vld [vmem:[#allocation13 + $0x2d8] sm:$0xf0] }
 0x82f   :  { %v11263_v25 = vld [vmem:[#allocation13 + $0x114] sm:$0xf0] }
 0x830   :  { %v11303_v30 = vld [vmem:[#allocation13 + $0x254] sm:$0xf0] }
 0x831   :  { %6328 = vmatpush.bf16.msra.mxu1 %v9771_v59  ;;  %v11328_v59 = vld [vmem:[#allocation13 + $0x324] sm:$0xf] }
 0x832   :  { %v10071_v45 = vor.u32 %v11328_v59, %v10068_v29  ;;  %v11307_v59 = vld [vmem:[#allocation13 + $0x274] sm:$0xf0]  ;;  %v11237_v29 = vld [vmem:[#allocation13 + $0x4c] sm:$0xf] }
 0x834   :  { %6320 = vmatpush.bf16.msrb.mxu2 %v10071_v45  ;;  %v9900_v45 = vld [vmem:[#allocation13 + $0x1d8] sm:$0xf0] }
 0x835   :  { %6329 = vmatpush.bf16.msra.mxu1 %v9755_v41  ;;  %v5329_v20 = vpop.f32.mrf.mxu2  ;;  %v12893_v16 = vpop.f32.mrf.mxu3  ;;  %v9867_v41 = vor.u32 %v11279_v35, %v9866_v18  ;;  %v9727_v18 = vor.u32 %v11241_v23, %v9724_v36  ;;  %v9903_v15 = vor.u32 %v11285_v62, %v9900_v45  ;;  %v10122_v62 = vld [vmem:[#allocation13 + $0x388] sm:$0xf]  ;;  %v11343_v45 = vld [vmem:[#allocation13 + $0x394] sm:$0xf0] }
 0x836   :  { %v5330_v51 = vadd.f32 %v5329_v20, %v5317_v63  ;;  %v11323_v63 = vld [vmem:[#allocation13 + $0x2f4] sm:$0xf0]  ;;  %v11253_v20 = vld [vmem:[#allocation13 + $0xcc] sm:$0xf] }
 0x837   :  { %v10043_v24 = vor.u32 %v11323_v63, %v10042_v57  ;;  %v11281_v57 = vld [vmem:[#allocation13 + $0x1ac] sm:$0xf] }
 0x838   :  { %v5438_v34 = vmax.f32 %v5330_v51, 0.0  ;;  %6321 = vmatpush.bf16.msrb.mxu2 %v10055_v61  ;;  %v9887_v61 = vor.u32 %v11281_v57, %v9884_v8  ;;  %v11339_v57 = vld [vmem:[#allocation13 + $0x374] sm:$0xf0]  ;;  %v11305_v8 = vld [vmem:[#allocation13 + $0x26c] sm:$0xf] }
 0x839   :  { %6330 = vmatpush.bf16.msra.mxu1 %v9739_v0  ;;  %v9772_v0 = vld [vmem:[#allocation13 + $0xd8] sm:$0xf0] }
 0x83a   :  { %v12895_v3 = vpack.c.bf16 %v5438_v34, %v5438_v34  ;;  %v9775_v27 = vor.u32 %v11253_v20, %v9772_v0  ;;  %v10026_v34 = vld [vmem:[#allocation13 + $0x2c8] sm:$0xf] }
 0x83b   :  { %v9946_v20 = vld [vmem:[#allocation13 + $0x228] sm:$0xf] }
 0x83c   :  { %6244 = vmatmul.bf16.vlgmr.msra.gmra.mxu3 %v12895_v3  ;;  %6283 = vmatmul.bf16.vlgmr.msrb.gmra.mxu1 %v12886_v13 }
 0x83d   :  { %6331 = vmatpush.bf16.msra.mxu1 %v9723_v38  ;;  %6340 = vmatpush.bf16.msra.mxu3 %v9915_v48  ;;  %v5331_v14 = vpop.f32.mrf.mxu2  ;;  %v5409_v52 = vpop.f32.mrf.mxu3  ;;  %v11319_v38 = vld [vmem:[#allocation13 + $0x2d4] sm:$0xf0]  ;;  %v11249_v48 = vld [vmem:[#allocation13 + $0xac] sm:$0xf] }
 0x83e   :  { %v10027_v19 = vor.u32 %v11319_v38, %v10026_v34  ;;  %v9759_v47 = vor.u32 %v11249_v48, %v9756_v12  ;;  %v11315_v14 = vld [vmem:[#allocation13 + $0x2b4] sm:$0xf0]  ;;  %v9802_v52 = vld [vmem:[#allocation13 + $0x108] sm:$0xf] }
 0x83f   :  { %v10011_v54 = vor.u32 %v11315_v14, %v10010_v33  ;;  %v9803_v53 = vor.u32 %v11263_v25, %v9802_v52  ;;  %v9930_v38 = vld [vmem:[#allocation13 + $0x208] sm:$0xf]  ;;  %v11295_v48 = vld [vmem:[#allocation13 + $0x214] sm:$0xf0]  ;;  %v11269_v52 = vld [vmem:[#allocation13 + $0x14c] sm:$0xf] }
 0x840   :  { %v12901_v60 = vpop.f32.mrf.mxu0  ;;  %v9836_v25 = vld [vmem:[#allocation13 + $0x158] sm:$0xf0] }
 0x841   :  { %6332 = vmatpush.bf16.msra.mxu1 %v9707_v50  ;;  %6341 = vmatpush.bf16.msra.mxu3 %v9899_v22  ;;  %v11245_v50 = vld [vmem:[#allocation13 + $0x8c] sm:$0xf]  ;;  %v9740_v22 = vld [vmem:[#allocation13 + $0x98] sm:$0xf0] }
 0x842   :  { %v9743_v39 = vor.u32 %v11245_v50, %v9740_v22 }
 0x845   :  { %6333 = vmatpush.bf16.msra.mxu1 %v9691_v7  ;;  %6342 = vmatpush.bf16.msra.mxu3 %v9883_v40  ;;  %v5381_v49 = vpop.f32.mrf.mxu2  ;;  %v11289_v7 = vld [vmem:[#allocation13 + $0x1ec] sm:$0xf]  ;;  %v9916_v40 = vld [vmem:[#allocation13 + $0x1f8] sm:$0xf0] }
 0x846   :  { %v5382_v46 = vadd.f32 %v5381_v49, %v5369_v4  ;;  %v9919_v35 = vor.u32 %v11289_v7, %v9916_v40  ;;  %v4584_v4 = vperm.slane %v12874_v17, 3  ;;  %v9979_v49 = vor.u32 %v11307_v59, %v9978_v21  ;;  %v9820_v21 = vld [vmem:[#allocation13 + $0x138] sm:$0xf0] }
 0x847   :  { %v9839_v7 = vor.u32 %v11269_v52, %v9836_v25  ;;  %v10031_v40 = vor.u32 %v11317_v26, %v10028_v55  ;;  %v10012_v59 = vld [vmem:[#allocation13 + $0x2b8] sm:$0xf0]  ;;  %v11337_v52 = vld [vmem:[#allocation13 + $0x36c] sm:$0xf]  ;;  %v10290_v26 = vld [vmem:[#allocation14 + $0xe0] sm:$0xf] }
 0x848   :  { %v5439_v43 = vmax.f32 %v5382_v46, 0.0  ;;  %v5422_v9 = vpop.f32.mrf.mxu0  ;;  %v11233_v46 = vld [vmem:[#allocation13 + $0x2c] sm:$0xf]  ;;  %v5395_v42 = vadd.f32 %v12879_v2, %v4584_v4  ;;  %v10108_v25 = vld [vmem:[#allocation13 + $0x378] sm:$0xf0] }
 0x849   :  { %6334 = vmatpush.bf16.msra.mxu1 %v9675_v37  ;;  %6343 = vmatpush.bf16.msra.mxu3 %v9867_v41  ;;  %v9711_v37 = vor.u32 %v11237_v29, %v9708_v32  ;;  %v9962_v41 = vld [vmem:[#allocation13 + $0x248] sm:$0xf]  ;;  %v11229_v9 = vld [vmem:[#allocation13 + $0xc] sm:$0xf]  ;;  %v11386_v55 = vld [vmem:[#allocation14 + $0xec] sm:$0xf0] }
 0x84a   :  { %v12905_v51 = vpack.c.bf16 %v5439_v43, %v5439_v43  ;;  %v9963_v17 = vor.u32 %v11303_v30, %v9962_v41  ;;  %v5408_v0 = vadd.f32 %v12893_v16, %v5395_v42  ;;  %v11299_v43 = vld [vmem:[#allocation13 + $0x234] sm:$0xf0]  ;;  %v10170_v16 = vld [vmem:[#allocation13 + $0x3e8] sm:$0xf]  ;;  %v11261_v4 = vld [vmem:[#allocation13 + $0x10c] sm:$0xf] }
 0x84b   :  { %v9947_v2 = vor.u32 %v11299_v43, %v9946_v20  ;;  %v9996_v41 = vld [vmem:[#allocation13 + $0x298] sm:$0xf0]  ;;  %v10090_v20 = vld [vmem:[#allocation13 + $0x348] sm:$0xf] }
 0x84c   :  { %6257 = vmatmul.bf16.vlgmr.msra.gmra.mxu0 %v12905_v51  ;;  %6296 = vmatmul.bf16.vlgmr.msrb.gmra.mxu3 %v12895_v3  ;;  %v5421_v1 = vadd.f32 %v12901_v60, %v5408_v0  ;;  %v9931_v60 = vor.u32 %v11295_v48, %v9930_v38  ;;  %v9980_v42 = vld [vmem:[#allocation13 + $0x278] sm:$0xf0]  ;;  %v11335_v0 = vld [vmem:[#allocation13 + $0x354] sm:$0xf0]  ;;  %v10058_v38 = vld [vmem:[#allocation13 + $0x308] sm:$0xf] }
 0x84d   :  { %6379 = vmatpush.bf16.msrb.mxu1 %v9791_v10  ;;  %6344 = vmatpush.bf16.msra.mxu3 %v9851_v5  ;;  %v5383_v31 = vpop.f32.mrf.mxu2  ;;  %v9692_v10 = vld [vmem:[#allocation13 + $0x38] sm:$0xf0]  ;;  %v11327_v48 = vld [vmem:[#allocation13 + $0x314] sm:$0xf0] }
 0x84e   :  { %6335 = vmatmul.bf16.vlgmr.msra.gmra.mxu1 %v12886_v13  ;;  %6353 = vmatpush.bf16.msra.mxu0 %v10043_v24  ;;  %v9695_v63 = vor.u32 %v11233_v46, %v9692_v10  ;;  %v9676_v5 = vld [vmem:[#allocation13 + $0x18] sm:$0xf0]  ;;  %v11277_v24 = vld [vmem:[#allocation13 + $0x18c] sm:$0xf]  ;;  %v10106_v10 = vld [vmem:[#allocation13 + $0x368] sm:$0xf] }
 0x84f   :  { %v9679_v34 = vor.u32 %v11229_v9, %v9676_v5  ;;  %v9964_v43 = vld [vmem:[#allocation13 + $0x258] sm:$0xf0]  ;;  %v10091_v9 = vor.u32 %v11335_v0, %v10090_v20  ;;  %v10402_v20 = vld [vmem:[#allocation14 + $0x1c0] sm:$0xf] }
 0x851   :  { %6380 = vmatpush.bf16.msrb.mxu1 %v9775_v27  ;;  %6345 = vmatpush.bf16.msra.mxu3 %v9835_v6  ;;  %v9868_v27 = vld [vmem:[#allocation13 + $0x198] sm:$0xf0]  ;;  %v11355_v6 = vld [vmem:[#allocation13 + $0x3f4] sm:$0xf0] }
 0x852   :  { %6354 = vmatpush.bf16.msra.mxu0 %v10027_v19  ;;  %v9871_v31 = vor.u32 %v11277_v24, %v9868_v27  ;;  %v11273_v19 = vld [vmem:[#allocation13 + $0x16c] sm:$0xf]  ;;  %v10171_v14 = vor.u32 %v11355_v6, %v10170_v16  ;;  %v10074_v24 = vld [vmem:[#allocation13 + $0x328] sm:$0xf]  ;;  %v11331_v27 = vld [vmem:[#allocation13 + $0x334] sm:$0xf0] }
 0x853   :  { %v11353_v16 = vld [vmem:[#allocation13 + $0x3ec] sm:$0xf]  ;;  %v10172_v6 = vld [vmem:[#allocation13 + $0x3f8] sm:$0xf0] }
 0x855   :  { %6381 = vmatpush.bf16.msrb.mxu1 %v9759_v47  ;;  %6346 = vmatpush.bf16.msra.mxu3 %v9819_v28  ;;  %v9852_v47 = vld [vmem:[#allocation13 + $0x178] sm:$0xf0]  ;;  %v10047_v28 = vor.u32 %v11321_v58, %v10044_v56  ;;  %v11349_v58 = vld [vmem:[#allocation13 + $0x3cc] sm:$0xf] }
 0x856   :  { %6355 = vmatpush.bf16.msra.mxu0 %v10011_v54  ;;  %v9855_v22 = vor.u32 %v11273_v19, %v9852_v47  ;;  %v10154_v54 = vld [vmem:[#allocation13 + $0x3c8] sm:$0xf]  ;;  %v10059_v19 = vor.u32 %v11327_v48, %v10058_v38  ;;  %v10175_v47 = vor.u32 %v11353_v16, %v10172_v6  ;;  %v10156_v56 = vld [vmem:[#allocation13 + $0x3d8] sm:$0xf0]  ;;  %v10370_v38 = vld [vmem:[#allocation14 + $0x180] sm:$0xf] }
 0x857   :  { %v10292_v16 = vld [vmem:[#allocation14 + $0xf0] sm:$0xf0] }
 0x859   :  { %6382 = vmatpush.bf16.msrb.mxu1 %v9743_v39  ;;  %6347 = vmatpush.bf16.msra.mxu3 %v9803_v53  ;;  %v11351_v39 = vld [vmem:[#allocation13 + $0x3d4] sm:$0xf0]  ;;  %v10138_v53 = vld [vmem:[#allocation13 + $0x3a8] sm:$0xf] }
 0x85a   :  { %6356 = vmatpush.bf16.msra.mxu0 %v9995_v11  ;;  %v10155_v36 = vor.u32 %v11351_v39, %v10154_v54  ;;  %v11347_v11 = vld [vmem:[#allocation13 + $0x3b4] sm:$0xf0]  ;;  %v10124_v54 = vld [vmem:[#allocation13 + $0x398] sm:$0xf0] }
 0x85b   :  { %v10139_v29 = vor.u32 %v11347_v11, %v10138_v53  ;;  %v11329_v11 = vld [vmem:[#allocation13 + $0x32c] sm:$0xf] }
 0x85c   :  { %6309 = vmatmul.bf16.vlgmr.msrb.gmra.mxu0 %v12905_v51  ;;  %6348 = vmatmul.bf16.vlgmr.msra.gmra.mxu3 %v12895_v3 }
 0x85d   :  { %6383 = vmatpush.bf16.msrb.mxu1 %v9727_v18  ;;  %6392 = vmatpush.bf16.msrb.mxu3 %v9919_v35  ;;  %v11265_v18 = vld [vmem:[#allocation13 + $0x12c] sm:$0xf] }
 0x85e   :  { %6357 = vmatpush.bf16.msra.mxu0 %v9979_v49  ;;  %v11313_v35 = vld [vmem:[#allocation13 + $0x2ac] sm:$0xf]  ;;  %v9804_v49 = vld [vmem:[#allocation13 + $0x118] sm:$0xf0] }
 0x85f   :  { %v10015_v32 = vor.u32 %v11313_v35, %v10012_v59  ;;  %v9807_v30 = vor.u32 %v11261_v4, %v9804_v49  ;;  %v10242_v49 = vld [vmem:[#allocation14 + $0x80] sm:$0xf] }
 0x861   :  { %6384 = vmatpush.bf16.msrb.mxu1 %v9711_v37  ;;  %6393 = vmatpush.bf16.msrb.mxu3 %v9903_v15  ;;  %v11309_v37 = vld [vmem:[#allocation13 + $0x28c] sm:$0xf]  ;;  %v10123_v15 = vor.u32 %v11343_v45, %v10122_v62  ;;  %v10258_v62 = vld [vmem:[#allocation14 + $0xa0] sm:$0xf]  ;;  %v11378_v45 = vld [vmem:[#allocation14 + $0xac] sm:$0xf0] }
 0x862   :  { %6358 = vmatpush.bf16.msra.mxu0 %v9963_v17  ;;  %v9999_v46 = vor.u32 %v11309_v37, %v9996_v41  ;;  %v10107_v17 = vor.u32 %v11339_v57, %v10106_v10  ;;  %v10259_v4 = vor.u32 %v11378_v45, %v10258_v62  ;;  %v11374_v37 = vld [vmem:[#allocation14 + $0x8c] sm:$0xf0]  ;;  %v10306_v45 = vld [vmem:[#allocation14 + $0x100] sm:$0xf] }
 0x863   :  { %v10243_v41 = vor.u32 %v11374_v37, %v10242_v49  ;;  %v11418_v57 = vld [vmem:[#allocation14 + $0x1ec] sm:$0xf0]  ;;  %v10498_v49 = vld [vmem:[#allocation14 + $0x280] sm:$0xf] }
 0x864   :  { %v11438_v37 = vld [vmem:[#allocation14 + $0x28c] sm:$0xf0] }
 0x865   :  { %v5433_v44 = vpop.f32.mrf.mxu2  ;;  %6385 = vmatpush.bf16.msrb.mxu1 %v9695_v63  ;;  %6394 = vmatpush.bf16.msrb.mxu3 %v9887_v61  ;;  %v9983_v63 = vor.u32 %v11305_v8, %v9980_v42  ;;  %v11301_v61 = vld [vmem:[#allocation13 + $0x24c] sm:$0xf] }
 0x866   :  { %v5434_v12 = vadd.f32 %v5433_v44, %v5421_v1  ;;  %6359 = vmatpush.bf16.msra.mxu0 %v9947_v2  ;;  %v9967_v5 = vor.u32 %v11301_v61, %v9964_v43  ;;  %v11297_v1 = vld [vmem:[#allocation13 + $0x22c] sm:$0xf]  ;;  %v9948_v44 = vld [vmem:[#allocation13 + $0x238] sm:$0xf0]  ;;  %v10075_v2 = vor.u32 %v11331_v27, %v10074_v24  ;;  %v11414_v61 = vld [vmem:[#allocation14 + $0x1cc] sm:$0xf0] }
 0x867   :  { %v10403_v43 = vor.u32 %v11414_v61, %v10402_v20  ;;  %v11410_v27 = vld [vmem:[#allocation14 + $0x1ac] sm:$0xf0]  ;;  %v10482_v20 = vld [vmem:[#allocation14 + $0x260] sm:$0xf] }
 0x868   :  { %v5440_v33 = vmax.f32 %v5434_v12, 0.0  ;;  %v11293_v12 = vld [vmem:[#allocation13 + $0x20c] sm:$0xf] }
 0x869   :  { %6386 = vmatpush.bf16.msrb.mxu1 %v9679_v34  ;;  %6395 = vmatpush.bf16.msrb.mxu3 %v9871_v31  ;;  %v9951_v34 = vor.u32 %v11297_v1, %v9948_v44  ;;  %v9932_v31 = vld [vmem:[#allocation13 + $0x218] sm:$0xf0] }
 0x86a   :  { %v12916_v50 = vpack.c.bf16 %v5440_v33, %v5440_v33  ;;  %6360 = vmatpush.bf16.msra.mxu0 %v9931_v60  ;;  %v10159_v33 = vor.u32 %v11349_v58, %v10156_v56  ;;  %v11345_v60 = vld [vmem:[#allocation13 + $0x3ac] sm:$0xf]  ;;  %v10546_v58 = vld [vmem:[#allocation14 + $0x2e0] sm:$0xf] }
 0x86c   :  { %6270 = vmatmul.bf16.vlgmr.msra.gmra.mxu2 %v12916_v50  ;;  %6387 = vmatmul.bf16.vlgmr.msrb.gmra.mxu1 %v12886_v13  ;;  %v9823_v13 = vor.u32 %v11265_v18, %v9820_v21  ;;  %v10274_v18 = vld [vmem:[#allocation14 + $0xc0] sm:$0xf]  ;;  %v11382_v21 = vld [vmem:[#allocation14 + $0xcc] sm:$0xf0] }
 0x86d   :  { %6366 = vmatpush.bf16.msra.mxu2 %v10171_v14  ;;  %v5435_v23 = vpop.f32.mrf.mxu2  ;;  %6396 = vmatpush.bf16.msrb.mxu3 %v9855_v22  ;;  %v10140_v14 = vld [vmem:[#allocation13 + $0x3b8] sm:$0xf0]  ;;  %v10275_v59 = vor.u32 %v11382_v21, %v10274_v18  ;;  %v10514_v18 = vld [vmem:[#allocation14 + $0x2a0] sm:$0xf] }
 0x86e   :  { %6405 = vmatpush.bf16.msrb.mxu0 %v10047_v28  ;;  %v10143_v22 = vor.u32 %v11345_v60, %v10140_v14  ;;  %v11341_v28 = vld [vmem:[#allocation13 + $0x38c] sm:$0xf]  ;;  %v10291_v23 = vor.u32 %v11386_v55, %v10290_v26  ;;  %v11380_v60 = vld [vmem:[#allocation14 + $0xc4] sm:$0xf]  ;;  %v10276_v14 = vld [vmem:[#allocation14 + $0xd0] sm:$0xf0] }
 0x86f   :  { %6361 = vmatmul.bf16.vlgmr.msra.gmra.mxu0 %v12905_v51  ;;  %v10127_v39 = vor.u32 %v11341_v28, %v10124_v54  ;;  %v10279_v54 = vor.u32 %v11380_v60, %v10276_v14  ;;  %v11446_v55 = vld [vmem:[#allocation14 + $0x2cc] sm:$0xf0]  ;;  %v10180_v60 = vld [vmem:[#allocation14 + $0x10] sm:$0xf0]  ;;  %v11404_v14 = vld [vmem:[#allocation14 + $0x184] sm:$0xf] }
 0x870   :  { %7217 = vmatpush.bf16.msra.mxu1 %v10291_v23  ;;  %v11376_v23 = vld [vmem:[#allocation14 + $0xa4] sm:$0xf] }
 0x871   :  { %6367 = vmatpush.bf16.msra.mxu2 %v10155_v36  ;;  %6397 = vmatpush.bf16.msrb.mxu3 %v9839_v7  ;;  %v10111_v36 = vor.u32 %v11337_v52, %v10108_v25  ;;  %v11333_v7 = vld [vmem:[#allocation13 + $0x34c] sm:$0xf]  ;;  %v11398_v52 = vld [vmem:[#allocation14 + $0x14c] sm:$0xf0]  ;;  %v10530_v25 = vld [vmem:[#allocation14 + $0x2c0] sm:$0xf] }
 0x872   :  { %6406 = vmatpush.bf16.msrb.mxu0 %v10031_v40  ;;  %v10092_v40 = vld [vmem:[#allocation13 + $0x358] sm:$0xf0] }
 0x873   :  { %v10095_v53 = vor.u32 %v11333_v7, %v10092_v40  ;;  %v10531_v7 = vor.u32 %v11446_v55, %v10530_v25  ;;  %v11422_v55 = vld [vmem:[#allocation14 + $0x20c] sm:$0xf0] }
 0x874   :  { %7218 = vmatpush.bf16.msra.mxu1 %v10275_v59  ;;  %v11372_v59 = vld [vmem:[#allocation14 + $0x84] sm:$0xf] }
 0x875   :  { %6368 = vmatpush.bf16.msra.mxu2 %v10139_v29  ;;  %6398 = vmatpush.bf16.msrb.mxu3 %v9823_v13  ;;  %v11325_v29 = vld [vmem:[#allocation13 + $0x30c] sm:$0xf]  ;;  %v10060_v13 = vld [vmem:[#allocation13 + $0x318] sm:$0xf0] }
 0x876   :  { %6407 = vmatpush.bf16.msrb.mxu0 %v10015_v32  ;;  %v10063_v32 = vor.u32 %v11325_v29, %v10060_v13  ;;  %v10244_v29 = vld [vmem:[#allocation14 + $0x90] sm:$0xf0] }
 0x877   :  { %v10247_v62 = vor.u32 %v11372_v59, %v10244_v29 }
 0x878   :  { %7219 = vmatpush.bf16.msra.mxu1 %v10259_v4  ;;  %v11390_v4 = vld [vmem:[#allocation14 + $0x10c] sm:$0xf0] }
 0x879   :  { %6369 = vmatpush.bf16.msra.mxu2 %v10123_v15  ;;  %6399 = vmatpush.bf16.msrb.mxu3 %v9807_v30  ;;  %v10226_v15 = vld [vmem:[#allocation14 + $0x60] sm:$0xf]  ;;  %v11370_v30 = vld [vmem:[#allocation14 + $0x6c] sm:$0xf0] }
 0x87a   :  { %6408 = vmatpush.bf16.msrb.mxu0 %v9999_v46  ;;  %v10418_v46 = vld [vmem:[#allocation14 + $0x1e0] sm:$0xf]  ;;  %v10227_v10 = vor.u32 %v11370_v30, %v10226_v15  ;;  %v10499_v15 = vor.u32 %v11438_v37, %v10498_v49  ;;  %v11368_v30 = vld [vmem:[#allocation14 + $0x64] sm:$0xf] }
 0x87b   :  { %v10419_v42 = vor.u32 %v11418_v57, %v10418_v46  ;;  %v10228_v46 = vld [vmem:[#allocation14 + $0x70] sm:$0xf0]  ;;  %v11444_v49 = vld [vmem:[#allocation14 + $0x2c4] sm:$0xf] }
 0x87c   :  { %6322 = vmatmul.bf16.vlgmr.msrb.gmra.mxu2 %v12916_v50  ;;  %6400 = vmatmul.bf16.vlgmr.msrb.gmra.mxu3 %v12895_v3  ;;  %v9935_v3 = vor.u32 %v11293_v12, %v9932_v31  ;;  %v11406_v12 = vld [vmem:[#allocation14 + $0x18c] sm:$0xf0]  ;;  %v11384_v31 = vld [vmem:[#allocation14 + $0xe4] sm:$0xf]  ;;  %v10231_v57 = vor.u32 %v11368_v30, %v10228_v46  ;;  %v10642_v46 = vld [vmem:[#allocation14 + $0x3a0] sm:$0xf] }
 0x87d   :  { %6370 = vmatpush.bf16.msra.mxu2 %v10107_v17  ;;  %7220 = vmatpush.bf16.msra.mxu1 %v10243_v41  ;;  %v10210_v17 = vld [vmem:[#allocation14 + $0x40] sm:$0xf]  ;;  %v10371_v6 = vor.u32 %v11406_v12, %v10370_v38  ;;  %v10307_v41 = vor.u32 %v11390_v4, %v10306_v45  ;;  %v10196_v12 = vld [vmem:[#allocation14 + $0x30] sm:$0xf0]  ;;  %v11396_v45 = vld [vmem:[#allocation14 + $0x144] sm:$0xf] }
 0x87e   :  { %6409 = vmatpush.bf16.msrb.mxu0 %v9983_v63  ;;  %7230 = vmatpush.bf16.msra.mxu3 %v10419_v42  ;;  %v11366_v63 = vld [vmem:[#allocation14 + $0x4c] sm:$0xf0]  ;;  %v10420_v42 = vld [vmem:[#allocation14 + $0x1f0] sm:$0xf0] }
 0x87f   :  { %v10211_v0 = vor.u32 %v11366_v63, %v10210_v17  ;;  %v10340_v4 = vld [vmem:[#allocation14 + $0x150] sm:$0xf0] }
 0x881   :  { %6371 = vmatpush.bf16.msra.mxu2 %v10091_v9  ;;  %7221 = vmatpush.bf16.msra.mxu1 %v10227_v10  ;;  %v11362_v9 = vld [vmem:[#allocation14 + $0x2c] sm:$0xf0]  ;;  %v11416_v10 = vld [vmem:[#allocation14 + $0x1e4] sm:$0xf] }
 0x882   :  { %6410 = vmatpush.bf16.msrb.mxu0 %v9967_v5  ;;  %7231 = vmatpush.bf16.msra.mxu3 %v10403_v43  ;;  %v10386_v5 = vld [vmem:[#allocation14 + $0x1a0] sm:$0xf]  ;;  %v10423_v17 = vor.u32 %v11416_v10, %v10420_v42  ;;  %v11364_v43 = vld [vmem:[#allocation14 + $0x44] sm:$0xf]  ;;  %v11474_v10 = vld [vmem:[#allocation14 + $0x3ac] sm:$0xf0] }
 0x883   :  { %v10387_v44 = vor.u32 %v11410_v27, %v10386_v5  ;;  %v10404_v27 = vld [vmem:[#allocation14 + $0x1d0] sm:$0xf0]  ;;  %v11392_v42 = vld [vmem:[#allocation14 + $0x124] sm:$0xf] }
 0x885   :  { %6372 = vmatpush.bf16.msra.mxu2 %v10075_v2  ;;  %7222 = vmatpush.bf16.msra.mxu1 %v10211_v0  ;;  %v10178_v2 = vld [vmem:[#allocation14] sm:$0xf]  ;;  %v11434_v0 = vld [vmem:[#allocation14 + $0x26c] sm:$0xf0] }
 0x886   :  { %6411 = vmatpush.bf16.msrb.mxu0 %v9951_v34  ;;  %v11358_v34 = vld [vmem:[#allocation14 + $0xc] sm:$0xf0]  ;;  %7232 = vmatpush.bf16.msra.mxu3 %v10387_v44  ;;  %v10483_v61 = vor.u32 %v11434_v0, %v10482_v20  ;;  %v10516_v0 = vld [vmem:[#allocation14 + $0x2b0] sm:$0xf0] }
 0x887   :  { %v10179_v48 = vor.u32 %v11358_v34, %v10178_v2  ;;  %v10466_v2 = vld [vmem:[#allocation14 + $0x240] sm:$0xf]  ;;  %v11430_v34 = vld [vmem:[#allocation14 + $0x24c] sm:$0xf0] }
 0x888   :  { %v10467_v38 = vor.u32 %v11430_v34, %v10466_v2  ;;  %v10308_v2 = vld [vmem:[#allocation14 + $0x110] sm:$0xf0]  ;;  %v11436_v34 = vld [vmem:[#allocation14 + $0x284] sm:$0xf] }
 0x889   :  { %6373 = vmatpush.bf16.msra.mxu2 %v10059_v19  ;;  %v10295_v19 = vor.u32 %v11384_v31, %v10292_v16  ;;  %v11408_v31 = vld [vmem:[#allocation14 + $0x1a4] sm:$0xf] }
 0x88a   :  { %6412 = vmatpush.bf16.msrb.mxu0 %v9935_v3  ;;  %7233 = vmatpush.bf16.msra.mxu3 %v10371_v6  ;;  %v10354_v3 = vld [vmem:[#allocation14 + $0x160] sm:$0xf]  ;;  %v10388_v6 = vld [vmem:[#allocation14 + $0x1b0] sm:$0xf0] }
 0x88c   :  { %6374 = vmatmul.bf16.vlgmr.msra.gmra.mxu2 %v12916_v50 }
 0x88d   :  { %6418 = vmatpush.bf16.msrb.mxu2 %v10175_v47  ;;  %6413 = vmatmul.bf16.vlgmr.msrb.gmra.mxu0 %v12905_v51  ;;  %v10076_v51 = vld [vmem:[#allocation13 + $0x338] sm:$0xf0]  ;;  %v11402_v47 = vld [vmem:[#allocation14 + $0x16c] sm:$0xf0] }
 0x88e   :  { %v10079_v35 = vor.u32 %v11329_v11, %v10076_v51  ;;  %v10355_v56 = vor.u32 %v11402_v47, %v10354_v3  ;;  %v10322_v11 = vld [vmem:[#allocation14 + $0x120] sm:$0xf]  ;;  %v11394_v51 = vld [vmem:[#allocation14 + $0x12c] sm:$0xf0] }
 0x88f   :  { %v10323_v21 = vor.u32 %v11394_v51, %v10322_v11  ;;  %v10450_v47 = vld [vmem:[#allocation14 + $0x220] sm:$0xf]  ;;  %v10356_v11 = vld [vmem:[#allocation14 + $0x170] sm:$0xf0] }
 0x890   :  { %7234 = vmatpush.bf16.msra.mxu3 %v10355_v56 }
 0x891   :  { %6419 = vmatpush.bf16.msrb.mxu2 %v10159_v33  ;;  %v11450_v33 = vld [vmem:[#allocation14 + $0x2ec] sm:$0xf0] }
 0x892   :  { %v10547_v28 = vor.u32 %v11450_v33, %v10546_v58  ;;  %v11426_v58 = vld [vmem:[#allocation14 + $0x22c] sm:$0xf0]  ;;  %v11356_v33 = vld [vmem:[#allocation14 + $0x4] sm:$0xf] }
 0x893   :  { %v10451_v56 = vor.u32 %v11426_v58, %v10450_v47  ;;  %v11432_v58 = vld [vmem:[#allocation14 + $0x264] sm:$0xf] }
 0x894   :  { %7243 = vmatpush.bf16.msra.mxu0 %v10547_v28 }
 0x895   :  { %6420 = vmatpush.bf16.msrb.mxu2 %v10143_v22 }
 0x898   :  { %7244 = vmatpush.bf16.msra.mxu0 %v10531_v7  ;;  %v11482_v7 = vld [vmem:[#allocation14 + $0x3ec] sm:$0xf0] }
 0x899   :  { %6421 = vmatpush.bf16.msrb.mxu2 %v10127_v39  ;;  %v10338_v39 = vld [vmem:[#allocation14 + $0x140] sm:$0xf] }
 0x89a   :  { %v10339_v26 = vor.u32 %v11398_v52, %v10338_v39  ;;  %v10372_v39 = vld [vmem:[#allocation14 + $0x190] sm:$0xf0] }
 0x89b   :  { %v10375_v25 = vor.u32 %v11404_v14, %v10372_v39  ;;  %v11462_v39 = vld [vmem:[#allocation14 + $0x34c] sm:$0xf0] }
 0x89c   :  { %7235 = vmatpush.bf16.msra.mxu3 %v10339_v26  ;;  %v10434_v26 = vld [vmem:[#allocation14 + $0x200] sm:$0xf] }
 0x89d   :  { %6422 = vmatpush.bf16.msrb.mxu2 %v10111_v36  ;;  %v10260_v36 = vld [vmem:[#allocation14 + $0xb0] sm:$0xf0] }
 0x89e   :  { %v10263_v40 = vor.u32 %v11376_v23, %v10260_v36  ;;  %v10674_v23 = vld [vmem:[#allocation14 + $0x3e0] sm:$0xf]  ;;  %v10435_v36 = vor.u32 %v11422_v55, %v10434_v26  ;;  %v10468_v26 = vld [vmem:[#allocation14 + $0x250] sm:$0xf0] }
 0x89f   :  { %v10675_v51 = vor.u32 %v11482_v7, %v10674_v23 }
 0x8a0   :  { %7236 = vmatpush.bf16.msra.mxu3 %v10323_v21  ;;  %v11448_v21 = vld [vmem:[#allocation14 + $0x2e4] sm:$0xf] }
 0x8a1   :  { %6423 = vmatpush.bf16.msrb.mxu2 %v10095_v53 }
 0x8a4   :  { %7237 = vmatpush.bf16.msra.mxu3 %v10307_v41  ;;  %v10343_v41 = vor.u32 %v11396_v45, %v10340_v4  ;;  %v11454_v45 = vld [vmem:[#allocation14 + $0x30c] sm:$0xf0] }
 0x8a5   :  { %6424 = vmatpush.bf16.msrb.mxu2 %v10079_v35  ;;  %v11442_v35 = vld [vmem:[#allocation14 + $0x2ac] sm:$0xf0] }
 0x8a8   :  { %7282 = vmatpush.bf16.msrb.mxu3 %v10423_v17  ;;  %v10324_v17 = vld [vmem:[#allocation14 + $0x130] sm:$0xf0] }
 0x8a9   :  { %6425 = vmatpush.bf16.msrb.mxu2 %v10063_v32  ;;  %v12926_v8 = vpop.f32.mrf.mxu1  ;;  %v10515_v32 = vor.u32 %v11442_v35, %v10514_v18  ;;  %v10548_v35 = vld [vmem:[#allocation14 + $0x2f0] sm:$0xf0]  ;;  %v10327_v20 = vor.u32 %v11392_v42, %v10324_v17 }
 0x8aa   :  { %v10551_v59 = vor.u32 %v11448_v21, %v10548_v35  ;;  %v10452_v21 = vld [vmem:[#allocation14 + $0x230] sm:$0xf0] }
 0x8ab   :  { %7245 = vmatpush.bf16.msra.mxu0 %v10515_v32  ;;  %v11478_v32 = vld [vmem:[#allocation14 + $0x3cc] sm:$0xf0]  ;;  %v10676_v42 = vld [vmem:[#allocation14 + $0x3f0] sm:$0xf0] }
 0x8ac   :  { %6426 = vmatmul.bf16.vlgmr.msrb.gmra.mxu2 %v12916_v50  ;;  %v10194_v50 = vld [vmem:[#allocation14 + $0x20] sm:$0xf] }
 0x8ad   :  { %v10195_v24 = vor.u32 %v11362_v9, %v10194_v50  ;;  %v10212_v50 = vld [vmem:[#allocation14 + $0x50] sm:$0xf0]  ;;  %v11412_v9 = vld [vmem:[#allocation14 + $0x1c4] sm:$0xf]  ;;  %7256 = vmatpush.bf16.msra.mxu2 %v10675_v51 }
 0x8ae   :  { %v10407_v44 = vor.u32 %v11412_v9, %v10404_v27  ;;  %v10626_v9 = vld [vmem:[#allocation14 + $0x380] sm:$0xf] }
 0x8af   :  { %7223 = vmatpush.bf16.msra.mxu1 %v10195_v24  ;;  %7246 = vmatpush.bf16.msra.mxu0 %v10499_v15  ;;  %v10215_v24 = vor.u32 %v11364_v43, %v10212_v50  ;;  %v10532_v15 = vld [vmem:[#allocation14 + $0x2d0] sm:$0xf0]  ;;  %v12943_v43 = vld [vmem:[%s13017_s13] sm:$0xf] }
 0x8b0   :  { %7283 = vmatpush.bf16.msrb.mxu3 %v10407_v44  ;;  %v10535_v30 = vor.u32 %v11444_v49, %v10532_v15  ;;  %v11388_v44 = vld [vmem:[#allocation14 + $0x104] sm:$0xf] }
 0x8b1   :  { %v6234_v1 = vpop.f32.mrf.mxu1  ;;  %v11420_v49 = vld [vmem:[#allocation14 + $0x204] sm:$0xf] }
 0x8b2   :  { %v11480_v15 = vld [vmem:[#allocation14 + $0x3e4] sm:$0xf] }
 0x8b3   :  { %7224 = vmatpush.bf16.msra.mxu1 %v10179_v48  ;;  %7247 = vmatpush.bf16.msra.mxu0 %v10483_v61  ;;  %v11360_v48 = vld [vmem:[#allocation14 + $0x24] sm:$0xf] }
 0x8b4   :  { %v10199_v16 = vor.u32 %v11360_v48, %v10196_v12  ;;  %v10311_v48 = vor.u32 %v11388_v44, %v10308_v2  ;;  %v10500_v12 = vld [vmem:[#allocation14 + $0x290] sm:$0xf0] }
 0x8b5   :  { %v10660_v44 = vld [vmem:[#allocation14 + $0x3d0] sm:$0xf0] }
 0x8b7   :  { %7269 = vmatpush.bf16.msrb.mxu1 %v10295_v19  ;;  %v10391_v19 = vor.u32 %v11408_v31, %v10388_v6  ;;  %7248 = vmatpush.bf16.msra.mxu0 %v10467_v38  ;;  %v10503_v31 = vor.u32 %v11436_v34, %v10500_v12  ;;  %v10610_v6 = vld [vmem:[#allocation14 + $0x360] sm:$0xf] }
 0x8b9   :  { %v12928_v22 = vpop.f32.mrf.mxu1  ;;  %7284 = vmatpush.bf16.msrb.mxu3 %v10391_v19  ;;  %v11466_v19 = vld [vmem:[#allocation14 + $0x36c] sm:$0xf0] }
 0x8ba   :  { %v10611_v47 = vor.u32 %v11466_v19, %v10610_v6  ;;  %v10644_v6 = vld [vmem:[#allocation14 + $0x3b0] sm:$0xf0] }
 0x8bb   :  { %7270 = vmatpush.bf16.msrb.mxu1 %v10279_v54  ;;  %v10183_v54 = vor.u32 %v11356_v33, %v10180_v60  ;;  %7249 = vmatpush.bf16.msra.mxu0 %v10451_v56  ;;  %v10484_v56 = vld [vmem:[#allocation14 + $0x270] sm:$0xf0] }
 0x8bc   :  { %v10487_v33 = vor.u32 %v11432_v58, %v10484_v56 }
 0x8bd   :  { %7285 = vmatpush.bf16.msrb.mxu3 %v10375_v25  ;;  %v11428_v25 = vld [vmem:[#allocation14 + $0x244] sm:$0xf] }
 0x8be   :  { %v10471_v23 = vor.u32 %v11428_v25, %v10468_v26 }
 0x8bf   :  { %v12930_v53 = vpop.f32.mrf.mxu3  ;;  %7271 = vmatpush.bf16.msrb.mxu1 %v10263_v40  ;;  %v11400_v40 = vld [vmem:[#allocation14 + $0x164] sm:$0xf]  ;;  %7250 = vmatpush.bf16.msra.mxu0 %v10435_v36 }
 0x8c0   :  { %v10359_v18 = vor.u32 %v11400_v40, %v10356_v11  ;;  %v10578_v40 = vld [vmem:[#allocation14 + $0x320] sm:$0xf]  ;;  %v11458_v11 = vld [vmem:[#allocation14 + $0x32c] sm:$0xf0] }
 0x8c1   :  { %v6286_v13 = vpop.f32.mrf.mxu1 }
 0x8c2   :  { %v10658_v13 = vld [vmem:[#allocation14 + $0x3c0] sm:$0xf]  ;;  %7286 = vmatpush.bf16.msrb.mxu3 %v10359_v18  ;;  %v11424_v18 = vld [vmem:[#allocation14 + $0x224] sm:$0xf] }
 0x8c3   :  { %7272 = vmatpush.bf16.msrb.mxu1 %v10247_v62  ;;  %7295 = vmatpush.bf16.msrb.mxu0 %v10551_v59  ;;  %v10659_v62 = vor.u32 %v11478_v32, %v10658_v13  ;;  %v10298_v59 = vld [vmem:[#allocation14 + $0xe8] sm:$0xf]  ;;  %v10455_v13 = vor.u32 %v11424_v18, %v10452_v21  ;;  %v10612_v18 = vld [vmem:[#allocation14 + $0x370] sm:$0xf0] }
 0x8c5   :  { %7257 = vmatpush.bf16.msra.mxu2 %v10659_v62 }
 0x8c6   :  { %7287 = vmatpush.bf16.msrb.mxu3 %v10343_v41  ;;  %v10436_v41 = vld [vmem:[#allocation14 + $0x210] sm:$0xf0] }
 0x8c7   :  { %v6247_v63 = vpop.f32.mrf.mxu3  ;;  %7273 = vmatpush.bf16.msrb.mxu1 %v10231_v57  ;;  %7296 = vmatpush.bf16.msrb.mxu0 %v10535_v30  ;;  %v10643_v57 = vor.u32 %v11474_v10, %v10642_v46  ;;  %v10282_v46 = vld [vmem:[#allocation14 + $0xc8] sm:$0xf]  ;;  %v11383_v10 = vld [vmem:[#allocation14 + $0xd4] sm:$0xf0] }
 0x8c8   :  { %v11440_v63 = vld [vmem:[#allocation14 + $0x2a4] sm:$0xf] }
 0x8c9   :  { %v12932_v5 = vpop.f32.mrf.mxu0  ;;  %v10519_v61 = vor.u32 %v11440_v63, %v10516_v0  ;;  %7258 = vmatpush.bf16.msra.mxu2 %v10643_v57  ;;  %v10439_v57 = vor.u32 %v11420_v49, %v10436_v41  ;;  %v10679_v63 = vor.u32 %v11480_v15, %v10676_v42  ;;  %v10596_v49 = vld [vmem:[#allocation14 + $0x350] sm:$0xf0]  ;;  %v10186_v42 = vld [vmem:[#allocation14 + $0x8] sm:$0xf] }
 0x8ca   :  { %7288 = vmatpush.bf16.msrb.mxu3 %v10327_v20  ;;  %v5576_v20 = vperm.slane %v12943_v43, 1 }
 0x8cb   :  { %v12934_v1 = vpop.f32.mrf.mxu1  ;;  %7274 = vmatpush.bf16.msrb.mxu1 %v10215_v24  ;;  %v11470_v24 = vld [vmem:[#allocation14 + $0x38c] sm:$0xf0]  ;;  %7297 = vmatpush.bf16.msrb.mxu0 %v10519_v61  ;;  %v10283_v61 = vor.u32 %v11383_v10, %v10282_v46 }
 0x8cc   :  { %v10627_v27 = vor.u32 %v11470_v24, %v10626_v9  ;;  %v10266_v9 = vld [vmem:[#allocation14 + $0xa8] sm:$0xf]  ;;  %v11379_v24 = vld [vmem:[#allocation14 + $0xb4] sm:$0xf0]  ;;  %v6285_v34 = vadd.f32 %v12928_v22, %v5576_v20 }
 0x8ce   :  { %7259 = vmatpush.bf16.msra.mxu2 %v10627_v27  ;;  %7289 = vmatpush.bf16.msrb.mxu3 %v10311_v48  ;;  %v11476_v27 = vld [vmem:[#allocation14 + $0x3c4] sm:$0xf]  ;;  %v10250_v48 = vld [vmem:[#allocation14 + $0x88] sm:$0xf] }
 0x8cf   :  { %v12936_v3 = vpop.f32.mrf.mxu3  ;;  %7275 = vmatpush.bf16.msrb.mxu1 %v10199_v16  ;;  %v5575_v16 = vperm.slane %v12943_v43, 0  ;;  %7298 = vmatpush.bf16.msrb.mxu0 %v10503_v31  ;;  %v10663_v2 = vor.u32 %v11476_v27, %v10660_v44  ;;  %v11375_v31 = vld [vmem:[#allocation14 + $0x94] sm:$0xf0]  ;;  %v10300_v27 = vld [vmem:[#allocation14 + $0xf8] sm:$0xf0] }
 0x8d0   :  { %v6298_v12 = vadd.f32 %v12936_v3, %v6285_v34  ;;  %v10251_v56 = vor.u32 %v11375_v31, %v10250_v48  ;;  %v10628_v3 = vld [vmem:[#allocation14 + $0x390] sm:$0xf0]  ;;  %v10362_v48 = vld [vmem:[#allocation14 + $0x168] sm:$0xf] }
 0x8d1   :  { %v6260_v28 = vpop.f32.mrf.mxu0  ;;  %v6233_v14 = vadd.f32 %v12926_v8, %v5575_v16  ;;  %v10579_v8 = vor.u32 %v11458_v11, %v10578_v40  ;;  %v11472_v16 = vld [vmem:[#allocation14 + $0x3a4] sm:$0xf]  ;;  %v10410_v40 = vld [vmem:[#allocation14 + $0x1c8] sm:$0xf] }
 0x8d2   :  { %7260 = vmatpush.bf16.msra.mxu2 %v10611_v47  ;;  %v10647_v19 = vor.u32 %v11472_v16, %v10644_v6  ;;  %v10554_v6 = vld [vmem:[#allocation14 + $0x2e8] sm:$0xf] }
 0x8d3   :  { %v6338_v52 = vpop.f32.mrf.mxu1  ;;  %7276 = vmatpush.bf16.msrb.mxu1 %v10183_v54  ;;  %v10594_v54 = vld [vmem:[#allocation14 + $0x340] sm:$0xf]  ;;  %7299 = vmatpush.bf16.msrb.mxu0 %v10487_v33  ;;  %v6246_v55 = vadd.f32 %v12930_v53, %v6233_v14  ;;  %v10234_v33 = vld [vmem:[#allocation14 + $0x68] sm:$0xf]  ;;  %v11371_v14 = vld [vmem:[#allocation14 + $0x74] sm:$0xf0] }
 0x8d4   :  { %v10595_v52 = vor.u32 %v11462_v39, %v10594_v54  ;;  %v10562_v53 = vld [vmem:[#allocation14 + $0x300] sm:$0xf]  ;;  %v11419_v39 = vld [vmem:[#allocation14 + $0x1f4] sm:$0xf0] }
 0x8d5   :  { %v6259_v7 = vadd.f32 %v12932_v5, %v6246_v55  ;;  %v10563_v5 = vor.u32 %v11454_v45, %v10562_v53  ;;  %v10235_v55 = vor.u32 %v11371_v14, %v10234_v33  ;;  %v10394_v53 = vld [vmem:[#allocation14 + $0x1a8] sm:$0xf] }
 0x8d6   :  { %7261 = vmatpush.bf16.msra.mxu2 %v10595_v52  ;;  %v11468_v52 = vld [vmem:[#allocation14 + $0x384] sm:$0xf] }
 0x8d7   :  { %v6299_v29 = vpop.f32.mrf.mxu3  ;;  %7300 = vmatpush.bf16.msrb.mxu0 %v10471_v23  ;;  %v10631_v25 = vor.u32 %v11468_v52, %v10628_v3  ;;  %v10346_v3 = vld [vmem:[#allocation14 + $0x148] sm:$0xf] }
 0x8d8   :  { %v11387_v29 = vld [vmem:[#allocation14 + $0xf4] sm:$0xf0] }
 0x8d9   :  { %v12938_v37 = vpop.f32.mrf.mxu0  ;;  %v10299_v4 = vor.u32 %v11387_v29, %v10298_v59 }
 0x8da   :  { %7262 = vmatpush.bf16.msra.mxu2 %v10579_v8  ;;  %v6311_v47 = vadd.f32 %v12938_v37, %v6298_v12  ;;  %v11367_v37 = vld [vmem:[#allocation14 + $0x54] sm:$0xf0]  ;;  %v11464_v8 = vld [vmem:[#allocation14 + $0x364] sm:$0xf] }
 0x8db   :  { %7301 = vmatpush.bf16.msrb.mxu0 %v10455_v13  ;;  %v10615_v21 = vor.u32 %v11464_v8, %v10612_v18  ;;  %v11403_v12 = vld [vmem:[#allocation14 + $0x174] sm:$0xf0]  ;;  %v10330_v18 = vld [vmem:[#allocation14 + $0x128] sm:$0xf] }
 0x8de   :  { %7263 = vmatpush.bf16.msra.mxu2 %v10563_v5  ;;  %v11460_v5 = vld [vmem:[#allocation14 + $0x344] sm:$0xf] }
 0x8df   :  { %v12945_v50 = vpop.f32.mrf.mxu3  ;;  %7302 = vmatpush.bf16.msrb.mxu0 %v10439_v57  ;;  %v10599_v41 = vor.u32 %v11460_v5, %v10596_v49  ;;  %v10506_v5 = vld [vmem:[#allocation14 + $0x288] sm:$0xf]  ;;  %v11439_v49 = vld [vmem:[#allocation14 + $0x294] sm:$0xf0] }
 0x8e1   :  { %v6312_v38 = vpop.f32.mrf.mxu0 }
 0x8e2   :  { %7308 = vmatpush.bf16.msrb.mxu2 %v10679_v63  ;;  %v10267_v38 = vor.u32 %v11379_v24, %v10266_v9  ;;  %v10378_v63 = vld [vmem:[#allocation14 + $0x188] sm:$0xf]  ;;  %v10580_v9 = vld [vmem:[#allocation14 + $0x330] sm:$0xf0]  ;;  %v11385_v24 = vld [vmem:[#allocation14 + $0xec] sm:$0xf] }
 0x8e3   :  { %v10303_v16 = vor.u32 %v11385_v24, %v10300_v27  ;;  %v10220_v24 = vld [vmem:[#allocation14 + $0x58] sm:$0xf0]  ;;  %v11413_v27 = vld [vmem:[#allocation14 + $0x1cc] sm:$0xf] }
 0x8e6   :  { %7309 = vmatpush.bf16.msrb.mxu2 %v10663_v2 }
 0x8e7   :  { %v6351_v28 = vpop.f32.mrf.mxu3 }
 0x8e8   :  { %v10426_v28 = vld [vmem:[#allocation14 + $0x1e8] sm:$0xf] }
 0x8e9   :  { %v12948_v60 = vpop.f32.mrf.mxu1  ;;  %v10427_v23 = vor.u32 %v11419_v39, %v10426_v28 }
 0x8ea   :  { %7310 = vmatpush.bf16.msrb.mxu2 %v10647_v19  ;;  %v10564_v19 = vld [vmem:[#allocation14 + $0x310] sm:$0xf0] }
 0x8ec   :  { %v12952_v36 = vpop.f32.mrf.mxu0 }
 0x8ee   :  { %7311 = vmatpush.bf16.msrb.mxu2 %v10631_v25  ;;  %v11399_v25 = vld [vmem:[#allocation14 + $0x154] sm:$0xf0] }
 0x8ef   :  { %v6271_v51 = vpop.f32.mrf.mxu2 }
 0x8f0   :  { %v6272_v35 = vadd.f32 %v6271_v51, %v6259_v7  ;;  %v10218_v7 = vld [vmem:[#allocation14 + $0x48] sm:$0xf]  ;;  %v11415_v51 = vld [vmem:[#allocation14 + $0x1d4] sm:$0xf0] }
 0x8f1   :  { %v6390_v32 = vpop.f32.mrf.mxu1  ;;  %v10219_v29 = vor.u32 %v11367_v37, %v10218_v7  ;;  %v10411_v13 = vor.u32 %v11415_v51, %v10410_v40  ;;  %v10268_v7 = vld [vmem:[#allocation14 + $0xb8] sm:$0xf0]  ;;  %v10347_v40 = vor.u32 %v11399_v25, %v10346_v3 }
 0x8f2   :  { %v6431_v62 = vmax.f32 %v6272_v35, 0.0  ;;  %v5577_v35 = vperm.slane %v12943_v43, 2  ;;  %v10202_v32 = vld [vmem:[#allocation14 + $0x28] sm:$0xf]  ;;  %7312 = vmatpush.bf16.msrb.mxu2 %v10615_v21  ;;  %v11395_v21 = vld [vmem:[#allocation14 + $0x134] sm:$0xf0] }
 0x8f4   :  { %v12955_v30 = vpack.c.bf16 %v6431_v62, %v6431_v62  ;;  %v6364_v17 = vpop.f32.mrf.mxu0  ;;  %v11363_v62 = vld [vmem:[#allocation14 + $0x34] sm:$0xf0]  ;;  %v6337_v15 = vadd.f32 %v12934_v1, %v5577_v35  ;;  %v10522_v35 = vld [vmem:[#allocation14 + $0x2a8] sm:$0xf] }
 0x8f5   :  { %v10203_v10 = vor.u32 %v11363_v62, %v10202_v32  ;;  %v11359_v17 = vld [vmem:[#allocation14 + $0x14] sm:$0xf0]  ;;  %v10331_v32 = vor.u32 %v11395_v21, %v10330_v18  ;;  %v11449_v18 = vld [vmem:[#allocation14 + $0x2ec] sm:$0xf]  ;;  %v10556_v21 = vld [vmem:[#allocation14 + $0x2f8] sm:$0xf0] }
 0x8f6   :  { %7225 = vmatmul.bf16.vlgmr.msra.gmra.mxu1 %v12955_v30  ;;  %v6350_v20 = vadd.f32 %v12945_v50, %v6337_v15  ;;  %7313 = vmatpush.bf16.msrb.mxu2 %v10599_v41  ;;  %v10187_v34 = vor.u32 %v11359_v17, %v10186_v42  ;;  %v11452_v50 = vld [vmem:[#allocation14 + $0x304] sm:$0xf]  ;;  %v11369_v41 = vld [vmem:[#allocation14 + $0x6c] sm:$0xf]  ;;  %v10236_v15 = vld [vmem:[#allocation14 + $0x78] sm:$0xf0]  ;;  %v10507_v17 = vor.u32 %v11439_v49, %v10506_v5 }
 0x8f7   :  { %7321 = vmatpush.bf16.msra.mxu1 %v10299_v4  ;;  %v6273_v0 = vpop.f32.mrf.mxu2  ;;  %v11411_v4 = vld [vmem:[#allocation14 + $0x1b4] sm:$0xf0]  ;;  %v10567_v33 = vor.u32 %v11452_v50, %v10564_v19  ;;  %v10396_v50 = vld [vmem:[#allocation14 + $0x1b8] sm:$0xf0]  ;;  %v11445_v5 = vld [vmem:[#allocation14 + $0x2cc] sm:$0xf] }
 0x8f8   :  { %v10395_v57 = vor.u32 %v11411_v4, %v10394_v53  ;;  %v11407_v0 = vld [vmem:[#allocation14 + $0x194] sm:$0xf0]  ;;  %v6363_v1 = vadd.f32 %v12952_v36, %v6350_v20  ;;  %v10363_v36 = vor.u32 %v11403_v12, %v10362_v48  ;;  %v10490_v20 = vld [vmem:[#allocation14 + $0x268] sm:$0xf]  ;;  %v10540_v49 = vld [vmem:[#allocation14 + $0x2d8] sm:$0xf0] }
 0x8f9   :  { %v11391_v4 = vld [vmem:[#allocation14 + $0x114] sm:$0xf0] }
 0x8fa   :  { %v11431_v12 = vld [vmem:[#allocation14 + $0x254] sm:$0xf0] }
 0x8fb   :  { %7322 = vmatpush.bf16.msra.mxu1 %v10283_v61  ;;  %v11456_v61 = vld [vmem:[#allocation14 + $0x324] sm:$0xf] }
 0x8fc   :  { %v10583_v44 = vor.u32 %v11456_v61, %v10580_v9  ;;  %v11435_v61 = vld [vmem:[#allocation14 + $0x274] sm:$0xf0]  ;;  %v11365_v9 = vld [vmem:[#allocation14 + $0x4c] sm:$0xf] }
 0x8fe   :  { %7314 = vmatpush.bf16.msrb.mxu2 %v10583_v44  ;;  %v10412_v44 = vld [vmem:[#allocation14 + $0x1d8] sm:$0xf0] }
 0x8ff   :  { %7323 = vmatpush.bf16.msra.mxu1 %v10267_v38  ;;  %v6323_v58 = vpop.f32.mrf.mxu2  ;;  %v12962_v22 = vpop.f32.mrf.mxu3  ;;  %v10379_v38 = vor.u32 %v11407_v0, %v10378_v63  ;;  %v10239_v63 = vor.u32 %v11369_v41, %v10236_v15  ;;  %v10415_v48 = vor.u32 %v11413_v27, %v10412_v44  ;;  %v10634_v27 = vld [vmem:[#allocation14 + $0x388] sm:$0xf]  ;;  %v11471_v44 = vld [vmem:[#allocation14 + $0x394] sm:$0xf0] }
 0x900   :  { %v6324_v54 = vadd.f32 %v6323_v58, %v6311_v47  ;;  %v11451_v47 = vld [vmem:[#allocation14 + $0x2f4] sm:$0xf0]  ;;  %v11381_v58 = vld [vmem:[#allocation14 + $0xcc] sm:$0xf] }
 0x901   :  { %v10555_v39 = vor.u32 %v11451_v47, %v10554_v6  ;;  %v11409_v6 = vld [vmem:[#allocation14 + $0x1ac] sm:$0xf] }
 0x902   :  { %v6432_v26 = vmax.f32 %v6324_v54, 0.0  ;;  %7315 = vmatpush.bf16.msrb.mxu2 %v10567_v33  ;;  %v10399_v33 = vor.u32 %v11409_v6, %v10396_v50  ;;  %v11467_v6 = vld [vmem:[#allocation14 + $0x374] sm:$0xf0]  ;;  %v11433_v50 = vld [vmem:[#allocation14 + $0x26c] sm:$0xf] }
 0x903   :  { %7324 = vmatpush.bf16.msra.mxu1 %v10251_v56  ;;  %v10284_v56 = vld [vmem:[#allocation14 + $0xd8] sm:$0xf0] }
 0x904   :  { %v12964_v11 = vpack.c.bf16 %v6432_v26, %v6432_v26  ;;  %v10287_v52 = vor.u32 %v11381_v58, %v10284_v56  ;;  %v10538_v26 = vld [vmem:[#allocation14 + $0x2c8] sm:$0xf] }
 0x905   :  { %v10458_v58 = vld [vmem:[#allocation14 + $0x228] sm:$0xf] }
 0x906   :  { %7238 = vmatmul.bf16.vlgmr.msra.gmra.mxu3 %v12964_v11  ;;  %7277 = vmatmul.bf16.vlgmr.msrb.gmra.mxu1 %v12955_v30 }
 0x907   :  { %7325 = vmatpush.bf16.msra.mxu1 %v10235_v55  ;;  %7334 = vmatpush.bf16.msra.mxu3 %v10427_v23  ;;  %v6325_v59 = vpop.f32.mrf.mxu2  ;;  %v6403_v45 = vpop.f32.mrf.mxu3  ;;  %v11447_v55 = vld [vmem:[#allocation14 + $0x2d4] sm:$0xf0]  ;;  %v11377_v23 = vld [vmem:[#allocation14 + $0xac] sm:$0xf] }
 0x908   :  { %v10539_v51 = vor.u32 %v11447_v55, %v10538_v26  ;;  %v10271_v8 = vor.u32 %v11377_v23, %v10268_v7  ;;  %v11443_v59 = vld [vmem:[#allocation14 + $0x2b4] sm:$0xf0]  ;;  %v10314_v45 = vld [vmem:[#allocation14 + $0x108] sm:$0xf] }
 0x909   :  { %v10523_v62 = vor.u32 %v11443_v59, %v10522_v35  ;;  %v10315_v42 = vor.u32 %v11391_v4, %v10314_v45  ;;  %v10442_v55 = vld [vmem:[#allocation14 + $0x208] sm:$0xf]  ;;  %v11423_v23 = vld [vmem:[#allocation14 + $0x214] sm:$0xf0]  ;;  %v11397_v45 = vld [vmem:[#allocation14 + $0x14c] sm:$0xf] }
 0x90a   :  { %v12970_v46 = vpop.f32.mrf.mxu0  ;;  %v10348_v4 = vld [vmem:[#allocation14 + $0x158] sm:$0xf0] }
 0x90b   :  { %7326 = vmatpush.bf16.msra.mxu1 %v10219_v29  ;;  %7335 = vmatpush.bf16.msra.mxu3 %v10411_v13  ;;  %v11373_v29 = vld [vmem:[#allocation14 + $0x8c] sm:$0xf]  ;;  %v10252_v13 = vld [vmem:[#allocation14 + $0x98] sm:$0xf0] }
 0x90c   :  { %v10255_v53 = vor.u32 %v11373_v29, %v10252_v13 }
 0x90f   :  { %7327 = vmatpush.bf16.msra.mxu1 %v10203_v10  ;;  %7336 = vmatpush.bf16.msra.mxu3 %v10395_v57  ;;  %v6375_v2 = vpop.f32.mrf.mxu2  ;;  %v11417_v10 = vld [vmem:[#allocation14 + $0x1ec] sm:$0xf]  ;;  %v10428_v57 = vld [vmem:[#allocation14 + $0x1f8] sm:$0xf0] }
 0x910   :  { %v6376_v31 = vadd.f32 %v6375_v2, %v6363_v1  ;;  %v10431_v0 = vor.u32 %v11417_v10, %v10428_v57  ;;  %v5578_v1 = vperm.slane %v12943_v43, 3  ;;  %v10491_v2 = vor.u32 %v11435_v61, %v10490_v20  ;;  %v10332_v20 = vld [vmem:[#allocation14 + $0x138] sm:$0xf0] }
 0x911   :  { %v10351_v10 = vor.u32 %v11397_v45, %v10348_v4  ;;  %v10543_v57 = vor.u32 %v11445_v5, %v10540_v49  ;;  %v10524_v61 = vld [vmem:[#allocation14 + $0x2b8] sm:$0xf0]  ;;  %v11465_v45 = vld [vmem:[#allocation14 + $0x36c] sm:$0xf] }
 0x912   :  { %v6433_v14 = vmax.f32 %v6376_v31, 0.0  ;;  %v6416_v28 = vpop.f32.mrf.mxu0  ;;  %v11361_v31 = vld [vmem:[#allocation14 + $0x2c] sm:$0xf]  ;;  %v6389_v19 = vadd.f32 %v12948_v60, %v5578_v1  ;;  %v10620_v4 = vld [vmem:[#allocation14 + $0x378] sm:$0xf0] }
 0x913   :  { %7328 = vmatpush.bf16.msra.mxu1 %v10187_v34  ;;  %7337 = vmatpush.bf16.msra.mxu3 %v10379_v38  ;;  %v10223_v34 = vor.u32 %v11365_v9, %v10220_v24  ;;  %v10474_v38 = vld [vmem:[#allocation14 + $0x248] sm:$0xf]  ;;  %v11357_v28 = vld [vmem:[#allocation14 + $0xc] sm:$0xf]  ;;  %v10623_v5 = vor.u32 %v11465_v45, %v10620_v4 }
 0x914   :  { %v12974_v54 = vpack.c.bf16 %v6433_v14, %v6433_v14  ;;  %v10475_v43 = vor.u32 %v11431_v12, %v10474_v38  ;;  %v6402_v56 = vadd.f32 %v12962_v22, %v6389_v19  ;;  %v11427_v14 = vld [vmem:[#allocation14 + $0x234] sm:$0xf0]  ;;  %v10682_v22 = vld [vmem:[#allocation14 + $0x3e8] sm:$0xf]  ;;  %v11389_v1 = vld [vmem:[#allocation14 + $0x10c] sm:$0xf] }
 0x915   :  { %v10459_v60 = vor.u32 %v11427_v14, %v10458_v58  ;;  %v10508_v38 = vld [vmem:[#allocation14 + $0x298] sm:$0xf0]  ;;  %v10602_v58 = vld [vmem:[#allocation14 + $0x348] sm:$0xf]  ;;  %v11461_v49 = vld [vmem:[#allocation14 + $0x34c] sm:$0xf] }
 0x916   :  { %7251 = vmatmul.bf16.vlgmr.msra.gmra.mxu0 %v12974_v54  ;;  %7290 = vmatmul.bf16.vlgmr.msrb.gmra.mxu3 %v12964_v11  ;;  %v6415_v3 = vadd.f32 %v12970_v46, %v6402_v56  ;;  %v10443_v46 = vor.u32 %v11423_v23, %v10442_v55  ;;  %v10492_v19 = vld [vmem:[#allocation14 + $0x278] sm:$0xf0]  ;;  %v11463_v56 = vld [vmem:[#allocation14 + $0x354] sm:$0xf0]  ;;  %v10570_v55 = vld [vmem:[#allocation14 + $0x308] sm:$0xf] }
 0x917   :  { %7373 = vmatpush.bf16.msrb.mxu1 %v10303_v16  ;;  %7338 = vmatpush.bf16.msra.mxu3 %v10363_v36  ;;  %v6377_v37 = vpop.f32.mrf.mxu2  ;;  %v10204_v16 = vld [vmem:[#allocation14 + $0x38] sm:$0xf0]  ;;  %v11455_v23 = vld [vmem:[#allocation14 + $0x314] sm:$0xf0] }
 0x918   :  { %7329 = vmatmul.bf16.vlgmr.msra.gmra.mxu1 %v12955_v30  ;;  %7347 = vmatpush.bf16.msra.mxu0 %v10555_v39  ;;  %v10207_v47 = vor.u32 %v11361_v31, %v10204_v16  ;;  %v10188_v36 = vld [vmem:[#allocation14 + $0x18] sm:$0xf0]  ;;  %v11405_v39 = vld [vmem:[#allocation14 + $0x18c] sm:$0xf]  ;;  %v10618_v16 = vld [vmem:[#allocation14 + $0x368] sm:$0xf] }
 0x919   :  { %v10191_v26 = vor.u32 %v11357_v28, %v10188_v36  ;;  %v10476_v14 = vld [vmem:[#allocation14 + $0x258] sm:$0xf0]  ;;  %v10603_v28 = vor.u32 %v11463_v56, %v10602_v58 }
 0x91b   :  { %7374 = vmatpush.bf16.msrb.mxu1 %v10287_v52  ;;  %7339 = vmatpush.bf16.msra.mxu3 %v10347_v40  ;;  %v10380_v52 = vld [vmem:[#allocation14 + $0x198] sm:$0xf0]  ;;  %v11483_v40 = vld [vmem:[#allocation14 + $0x3f4] sm:$0xf0] }
 0x91c   :  { %7348 = vmatpush.bf16.msra.mxu0 %v10539_v51  ;;  %v10383_v37 = vor.u32 %v11405_v39, %v10380_v52  ;;  %v11401_v51 = vld [vmem:[#allocation14 + $0x16c] sm:$0xf]  ;;  %v10683_v59 = vor.u32 %v11483_v40, %v10682_v22  ;;  %v10586_v39 = vld [vmem:[#allocation14 + $0x328] sm:$0xf]  ;;  %v11459_v52 = vld [vmem:[#allocation14 + $0x334] sm:$0xf0] }
 0x91d   :  { %v11481_v22 = vld [vmem:[#allocation14 + $0x3ec] sm:$0xf]  ;;  %v10684_v40 = vld [vmem:[#allocation14 + $0x3f8] sm:$0xf0] }
 0x91f   :  { %7375 = vmatpush.bf16.msrb.mxu1 %v10271_v8  ;;  %7340 = vmatpush.bf16.msra.mxu3 %v10331_v32  ;;  %v10364_v8 = vld [vmem:[#allocation14 + $0x178] sm:$0xf0]  ;;  %v10559_v32 = vor.u32 %v11449_v18, %v10556_v21  ;;  %v11477_v18 = vld [vmem:[#allocation14 + $0x3cc] sm:$0xf] }
 0x920   :  { %7349 = vmatpush.bf16.msra.mxu0 %v10523_v62  ;;  %v10367_v13 = vor.u32 %v11401_v51, %v10364_v8  ;;  %v10666_v62 = vld [vmem:[#allocation14 + $0x3c8] sm:$0xf]  ;;  %v10571_v51 = vor.u32 %v11455_v23, %v10570_v55  ;;  %v10687_v8 = vor.u32 %v11481_v22, %v10684_v40  ;;  %v10668_v21 = vld [vmem:[#allocation14 + $0x3d8] sm:$0xf0] }
 0x921   :  { %v7429_v23 = vld [vmem:[%s13020_s16] sm:$0xf] }
 0x922   :  { %v7431_v22 = vperm.slane %v7429_v23, 0  ;;  %v7433_v45 = vperm.slane %v7429_v23, 2 }
 0x923   :  { %7376 = vmatpush.bf16.msrb.mxu1 %v10255_v53  ;;  %7341 = vmatpush.bf16.msra.mxu3 %v10315_v42  ;;  %v11479_v53 = vld [vmem:[#allocation14 + $0x3d4] sm:$0xf0]  ;;  %v10650_v42 = vld [vmem:[#allocation14 + $0x3a8] sm:$0xf] }
 0x924   :  { %7350 = vmatpush.bf16.msra.mxu0 %v10507_v17  ;;  %v10667_v15 = vor.u32 %v11479_v53, %v10666_v62  ;;  %v11475_v17 = vld [vmem:[#allocation14 + $0x3b4] sm:$0xf0]  ;;  %v10636_v62 = vld [vmem:[#allocation14 + $0x398] sm:$0xf0] }
 0x925   :  { %v10651_v9 = vor.u32 %v11475_v17, %v10650_v42  ;;  %v11453_v17 = vld [vmem:[#allocation14 + $0x30c] sm:$0xf] }
 0x926   :  { %7303 = vmatmul.bf16.vlgmr.msrb.gmra.mxu0 %v12974_v54  ;;  %7342 = vmatmul.bf16.vlgmr.msra.gmra.mxu3 %v12964_v11 }
 0x927   :  { %7377 = vmatpush.bf16.msrb.mxu1 %v10239_v63  ;;  %7386 = vmatpush.bf16.msrb.mxu3 %v10431_v0  ;;  %v11393_v63 = vld [vmem:[#allocation14 + $0x12c] sm:$0xf] }
 0x928   :  { %7351 = vmatpush.bf16.msra.mxu0 %v10491_v2  ;;  %v11441_v0 = vld [vmem:[#allocation14 + $0x2ac] sm:$0xf]  ;;  %v10316_v2 = vld [vmem:[#allocation14 + $0x118] sm:$0xf0] }
 0x929   :  { %v10527_v24 = vor.u32 %v11441_v0, %v10524_v61  ;;  %v10319_v12 = vor.u32 %v11389_v1, %v10316_v2  ;;  %v6567_v61 = vld [vmem:[%s13019_s15] sm:$0xf] }
 0x92b   :  { %7378 = vmatpush.bf16.msrb.mxu1 %v10223_v34  ;;  %7387 = vmatpush.bf16.msrb.mxu3 %v10415_v48  ;;  %v11437_v34 = vld [vmem:[#allocation14 + $0x28c] sm:$0xf]  ;;  %v10635_v48 = vor.u32 %v11471_v44, %v10634_v27 }
 0x92c   :  { %7352 = vmatpush.bf16.msra.mxu0 %v10475_v43  ;;  %v10511_v31 = vor.u32 %v11437_v34, %v10508_v38  ;;  %v10619_v43 = vor.u32 %v11467_v6, %v10618_v16  ;;  %v6570_v38 = vperm.slane %v6567_v61, 1 }
 0x92f   :  { %v6427_v25 = vpop.f32.mrf.mxu2  ;;  %7379 = vmatpush.bf16.msrb.mxu1 %v10207_v47  ;;  %7388 = vmatpush.bf16.msrb.mxu3 %v10399_v33  ;;  %v10495_v47 = vor.u32 %v11433_v50, %v10492_v19  ;;  %v11429_v33 = vld [vmem:[#allocation14 + $0x24c] sm:$0xf] }
 0x930   :  { %v6428_v7 = vadd.f32 %v6427_v25, %v6415_v3  ;;  %7353 = vmatpush.bf16.msra.mxu0 %v10459_v60  ;;  %v10479_v36 = vor.u32 %v11429_v33, %v10476_v14  ;;  %v11425_v3 = vld [vmem:[#allocation14 + $0x22c] sm:$0xf]  ;;  %v10460_v25 = vld [vmem:[#allocation14 + $0x238] sm:$0xf0]  ;;  %v10587_v60 = vor.u32 %v11459_v52, %v10586_v39 }
 0x932   :  { %v6434_v35 = vmax.f32 %v6428_v7, 0.0  ;;  %v11421_v7 = vld [vmem:[#allocation14 + $0x20c] sm:$0xf] }
 0x933   :  { %7380 = vmatpush.bf16.msrb.mxu1 %v10191_v26  ;;  %7389 = vmatpush.bf16.msrb.mxu3 %v10383_v37  ;;  %v10463_v26 = vor.u32 %v11425_v3, %v10460_v25  ;;  %v10444_v37 = vld [vmem:[#allocation14 + $0x218] sm:$0xf0] }
 0x934   :  { %v12985_v29 = vpack.c.bf16 %v6434_v35, %v6434_v35  ;;  %7354 = vmatpush.bf16.msra.mxu0 %v10443_v46  ;;  %v10671_v35 = vor.u32 %v11477_v18, %v10668_v21  ;;  %v11473_v46 = vld [vmem:[#allocation14 + $0x3ac] sm:$0xf] }
 0x936   :  { %7264 = vmatmul.bf16.vlgmr.msra.gmra.mxu2 %v12985_v29  ;;  %7381 = vmatmul.bf16.vlgmr.msrb.gmra.mxu1 %v12955_v30  ;;  %v10335_v30 = vor.u32 %v11393_v63, %v10332_v20 }
 0x937   :  { %7360 = vmatpush.bf16.msra.mxu2 %v10683_v59  ;;  %v6429_v41 = vpop.f32.mrf.mxu2  ;;  %7390 = vmatpush.bf16.msrb.mxu3 %v10367_v13  ;;  %v10652_v59 = vld [vmem:[#allocation14 + $0x3b8] sm:$0xf0] }
 0x938   :  { %7399 = vmatpush.bf16.msrb.mxu0 %v10559_v32  ;;  %v10655_v13 = vor.u32 %v11473_v46, %v10652_v59  ;;  %v11469_v32 = vld [vmem:[#allocation14 + $0x38c] sm:$0xf]  ;;  %v10604_v41 = vld [vmem:[#allocation14 + $0x358] sm:$0xf0] }
 0x939   :  { %7355 = vmatmul.bf16.vlgmr.msra.gmra.mxu0 %v12974_v54  ;;  %v10639_v53 = vor.u32 %v11469_v32, %v10636_v62 }
 0x93b   :  { %7361 = vmatpush.bf16.msra.mxu2 %v10667_v15  ;;  %7391 = vmatpush.bf16.msrb.mxu3 %v10351_v10  ;;  %v10607_v15 = vor.u32 %v11461_v49, %v10604_v41  ;;  %v11457_v10 = vld [vmem:[#allocation14 + $0x32c] sm:$0xf] }
 0x93c   :  { %7400 = vmatpush.bf16.msrb.mxu0 %v10543_v57  ;;  %v10588_v57 = vld [vmem:[#allocation14 + $0x338] sm:$0xf0] }
 0x93d   :  { %v10591_v42 = vor.u32 %v11457_v10, %v10588_v57  ;;  %v6572_v10 = vperm.slane %v6567_v61, 3 }
 0x93f   :  { %7362 = vmatpush.bf16.msra.mxu2 %v10651_v9  ;;  %7392 = vmatpush.bf16.msrb.mxu3 %v10335_v30  ;;  %v6569_v30 = vperm.slane %v6567_v61, 0 }
 0x940   :  { %7401 = vmatpush.bf16.msrb.mxu0 %v10527_v24 }
 0x943   :  { %7363 = vmatpush.bf16.msra.mxu2 %v10635_v48  ;;  %7393 = vmatpush.bf16.msrb.mxu3 %v10319_v12 }
 0x944   :  { %7402 = vmatpush.bf16.msrb.mxu0 %v10511_v31 }
 0x946   :  { %7316 = vmatmul.bf16.vlgmr.msrb.gmra.mxu2 %v12985_v29  ;;  %7394 = vmatmul.bf16.vlgmr.msrb.gmra.mxu3 %v12964_v11  ;;  %v10447_v11 = vor.u32 %v11421_v7, %v10444_v37 }
 0x947   :  { %7364 = vmatpush.bf16.msra.mxu2 %v10619_v43 }
 0x948   :  { %7403 = vmatpush.bf16.msrb.mxu0 %v10495_v47  ;;  %v6571_v47 = vperm.slane %v6567_v61, 2 }
 0x94b   :  { %7365 = vmatpush.bf16.msra.mxu2 %v10603_v28 }
 0x94c   :  { %7404 = vmatpush.bf16.msrb.mxu0 %v10479_v36 }
 0x94f   :  { %7366 = vmatpush.bf16.msra.mxu2 %v10587_v60 }
 0x950   :  { %7405 = vmatpush.bf16.msrb.mxu0 %v10463_v26 }
 0x953   :  { %7367 = vmatpush.bf16.msra.mxu2 %v10571_v51  ;;  %v7432_v51 = vperm.slane %v7429_v23, 1 }
 0x954   :  { %7406 = vmatpush.bf16.msrb.mxu0 %v10447_v11 }
 0x956   :  { %7368 = vmatmul.bf16.vlgmr.msra.gmra.mxu2 %v12985_v29 }
 0x957   :  { %7412 = vmatpush.bf16.msrb.mxu2 %v10687_v8  ;;  %7407 = vmatmul.bf16.vlgmr.msrb.gmra.mxu0 %v12974_v54  ;;  %v10572_v54 = vld [vmem:[#allocation14 + $0x318] sm:$0xf0] }
 0x958   :  { %v10575_v63 = vor.u32 %v11453_v17, %v10572_v54 }
 0x95b   :  { %7413 = vmatpush.bf16.msrb.mxu2 %v10671_v35 }
 0x95f   :  { %7414 = vmatpush.bf16.msrb.mxu2 %v10655_v13 }
 0x963   :  { %7415 = vmatpush.bf16.msrb.mxu2 %v10639_v53 }
 0x967   :  { %7416 = vmatpush.bf16.msrb.mxu2 %v10623_v5 }
 0x96b   :  { %7417 = vmatpush.bf16.msrb.mxu2 %v10607_v15 }
 0x96f   :  { %7418 = vmatpush.bf16.msrb.mxu2 %v10591_v42 }
 0x973   :  { %7419 = vmatpush.bf16.msrb.mxu2 %v10575_v63  ;;  %v7226_v20 = vpop.f32.mrf.mxu1 }
 0x974   :  { %v7227_v24 = vadd.f32 %v7226_v20, %v6569_v30  ;;  %v7434_v20 = vperm.slane %v7429_v23, 3 }
 0x976   :  { %7420 = vmatmul.bf16.vlgmr.msrb.gmra.mxu2 %v12985_v29 }
 0x97b   :  { %v7228_v0 = vpop.f32.mrf.mxu1 }
 0x983   :  { %v7278_v9 = vpop.f32.mrf.mxu1 }
 0x984   :  { %v7279_v31 = vadd.f32 %v7278_v9, %v6570_v38 }
 0x989   :  { %v7239_v27 = vpop.f32.mrf.mxu3 }
 0x98a   :  { %v7240_v44 = vadd.f32 %v7239_v27, %v7227_v24  ;;  %v11495_v27 = vld [vmem:[#allocation2] ss:$0 sm:$0xff] }
 0x98b   :  { %v7280_v1 = vpop.f32.mrf.mxu1 }
 0x991   :  { %v7241_v2 = vpop.f32.mrf.mxu3 }
 0x993   :  { %v7252_v34 = vpop.f32.mrf.mxu0 }
 0x994   :  { %v7253_v48 = vadd.f32 %v7252_v34, %v7240_v44 }
 0x995   :  { %v7330_v12 = vpop.f32.mrf.mxu1 }
 0x996   :  { %v7331_v56 = vadd.f32 %v7330_v12, %v6571_v47 }
 0x999   :  { %v7291_v16 = vpop.f32.mrf.mxu3 }
 0x99a   :  { %v7292_v29 = vadd.f32 %v7291_v16, %v7279_v31 }
 0x99b   :  { %v7254_v6 = vpop.f32.mrf.mxu0 }
 0x99d   :  { %v7332_v50 = vpop.f32.mrf.mxu1 }
 0x9a1   :  { %v7293_v19 = vpop.f32.mrf.mxu3 }
 0x9a3   :  { %v7304_v43 = vpop.f32.mrf.mxu0 }
 0x9a4   :  { %v7305_v58 = vadd.f32 %v7304_v43, %v7292_v29 }
 0x9a9   :  { %v7343_v33 = vpop.f32.mrf.mxu3 }
 0x9aa   :  { %v7344_v14 = vadd.f32 %v7343_v33, %v7331_v56 }
 0x9ab   :  { %v7306_v28 = vpop.f32.mrf.mxu0 }
 0x9b1   :  { %v7345_v39 = vpop.f32.mrf.mxu3 }
 0x9b3   :  { %v7382_v36 = vpop.f32.mrf.mxu1 }
 0x9b4   :  { %v7383_v57 = vadd.f32 %v7382_v36, %v6572_v10 }
 0x9b6   :  { %v7356_v52 = vpop.f32.mrf.mxu0 }
 0x9b7   :  { %v7357_v32 = vadd.f32 %v7356_v52, %v7344_v14 }
 0x9b9   :  { %v7265_v3 = vpop.f32.mrf.mxu2 }
 0x9ba   :  { %v7266_v55 = vadd.f32 %v7265_v3, %v7253_v48 }
 0x9bb   :  { %v7384_v25 = vpop.f32.mrf.mxu1 }
 0x9bc   :  { %v7425_v37 = vmax.f32 %v7266_v55, 0.0 }
 0x9be   :  { %v7358_v60 = vpop.f32.mrf.mxu0  ;;  %v7439_v18 = vmul.f32 %v7431_v22, %v7425_v37 }
 0x9c1   :  { %v7267_v26 = vpop.f32.mrf.mxu2 }
 0x9c9   :  { %v7317_v7 = vpop.f32.mrf.mxu2  ;;  %v7395_v11 = vpop.f32.mrf.mxu3 }
 0x9ca   :  { %v7318_v40 = vadd.f32 %v7317_v7, %v7305_v58  ;;  %v7396_v42 = vadd.f32 %v7395_v11, %v7383_v57 }
 0x9cc   :  { %v7426_v8 = vmax.f32 %v7318_v40, 0.0 }
 0x9ce   :  { %v7440_v21 = vmul.f32 %v7432_v51, %v7426_v8 }
 0x9d0   :  { %v7443_v35 = vadd.f32 %v7440_v21, %v7439_v18 }
 0x9d1   :  { %v7319_v46 = vpop.f32.mrf.mxu2  ;;  %v7397_v59 = vpop.f32.mrf.mxu3 }
 0x9d4   :  { %v7408_v13 = vpop.f32.mrf.mxu0 }
 0x9d5   :  { %v7409_v17 = vadd.f32 %v7408_v13, %v7396_v42 }
 0x9d9   :  { %v7369_v62 = vpop.f32.mrf.mxu2 }
 0x9da   :  { %v7370_v53 = vadd.f32 %v7369_v62, %v7357_v32 }
 0x9dc   :  { %v7427_v4 = vmax.f32 %v7370_v53, 0.0  ;;  %v7410_v5 = vpop.f32.mrf.mxu0 }
 0x9de   :  { %v7441_v49 = vmul.f32 %v7433_v45, %v7427_v4 }
 0x9e0   :  { %v7444_v41 = vadd.f32 %v7443_v35, %v7441_v49 }
 0x9e1   :  { %v7371_v15 = vpop.f32.mrf.mxu2 }
 0x9f9   :  { %v7421_v54 = vpop.f32.mrf.mxu2 }
 0x9fa   :  { %v7422_v63 = vadd.f32 %v7421_v54, %v7409_v17 }
 0x9fc   :  { %v7428_v0 = vmax.f32 %v7422_v63, 0.0 }
 0x9fe   :  { %v7442_v9 = vmul.f32 %v7434_v20, %v7428_v0 }
 0xa00   :  { %v7445_v30 = vadd.f32 %v7444_v41, %v7442_v9 }
 0xa01   :  { %v7423_v24 = vpop.f32.mrf.mxu2 }
 0xa02   :  { %7446 = vadd.xlane.f32.xlu0 %v7445_v30 }
 0xa75   :  { %v7447_v44 = vpop.xlane.xlu0 %7446 }
 0xa76   :  { %v7452_v1 = vadd.f32 %v11495_v27, %v7447_v44 }
 0xa78   :  { %7454 = vst.msk [vmem:[%s13022_s18] sm:$0xff] %vm7453_vm1, %v7452_v1 }
 0xa79   :  { %7459 = vsyncpa [#allocation4], 1 }
 0xa7a   :  { %7460 = vsyncpa [#allocation6], 1 }
 0xa7b   :  { %7461 = vsyncpa [#allocation9], 1 }
 0xa7c   :  { %7462 = vsyncpa [#allocation12], 1 }
 0xa7d   :  { %7463 = vsyncpa [#allocation15], 1 }

</bundles_post_ra>
